<compile_context>
chip_gen: v7x
topology: tpu7x:2x2x1
jax: 0.10.0
libtpu: 0.0.40
codegen_flags: <defaults>
</compile_context>

<pallas_src>
import functools

import jax
import jax.numpy as jnp
from jax import lax
from jax.experimental import pallas as pl
from jax.experimental.pallas import tpu as pltpu

CP = 128                        # padded channel / lane width
VMEM_LIMIT = 32 * 1024 * 1024   # safe on v5e/v6e/v7x; usage is ~5 MiB

# ----- static LeNet geometry (32x32 input) -----------------------------------
K5 = 5
HIN = 32
HO1 = HIN - K5 + 1          # 28   conv1 output side
NP1 = HO1 * HO1             # 784  conv1 output pixels (im2col rows)
NH1 = NP1 // 2              # 392
HP1 = HO1 // 2              # 14   pool1 output side
S1 = 200                    # pool1 scratch rows: 196 valid + 4 zero pad (covers tap reads)
HO2 = HP1 - K5 + 1          # 10   conv2 output side
L2 = HO2 * HP1              # 140  conv2 flat output rows (cols wo>=10 are wrap garbage)
NH2 = L2 // 2               # 70
HP2 = HO2 // 2              # 5    pool2 output side
W1H = HP1 // 2              # 7
KIN1 = K5 * K5 * 3          # 75   conv1 im2col contraction size


# ---------------------------------------------------------------------------
# Fused whole-network kernel.  One grid step handles `nb` images.
# Activation layouts (per image):
#   conv1 out : flat rows r = ho*28 + wo                 (784 rows, CP lanes)
#   pool1 out : flat rows r = hp*14 + wp                 (196 rows + 4 zero)
#   conv2 out : flat rows r = ho*14 + wo  (wo>=10 junk)  (140 rows)
#   pool2 out : rows r = hp*8 + wp (aligned stride 8)    (<=37 rows used)
# ---------------------------------------------------------------------------
def _lenet_kernel(xp_ref, w1_ref, b1_ref, w2_ref, b2_ref,
                  fw1_ref, fb1_ref, fw2_ref, fb2_ref, fw3_ref, fb3_ref,
                  out_ref,
                  c1_s, h1_s, p1f_s, p1_s, p1x_s, c2_s, h2_s, p2_s, *, nb):
    f32 = jnp.float32
    bf16 = jnp.bfloat16

    for b in range(nb):
        # ---- conv1 + bias + ReLU: one im2col MXU matmul, streamed to VMEM ----
        c1_s[...] = jnp.maximum(
            jnp.dot(xp_ref[b], w1_ref[...], preferred_element_type=f32)
            + b1_ref[...], 0.0)

        # ---- pool1 (2x2 / 2) ----
        # horizontal pair-max: one whole-tile stride-2 read pair (28 is even, so
        # flat stride-2 pairing never mixes rows); result row k = ho*14 + wp.
        h1_s[...] = jnp.maximum(c1_s[pl.ds(0, NH1, stride=2), :],
                                c1_s[pl.ds(1, NH1, stride=2), :])
        # vertical pair-max: contiguous row-block reads.
        for hp in range(HP1):
            top = h1_s[pl.ds((2 * hp) * HP1, HP1), :]
            bot = h1_s[pl.ds((2 * hp + 1) * HP1, HP1), :]
            p1f_s[pl.ds(hp * HP1, HP1), :] = jnp.maximum(top, bot)
        # zero the pad rows that the last conv2 taps read (keep MXU inputs finite).
        p1f_s[pl.ds(HP1 * HP1, S1 - HP1 * HP1), :] = jnp.zeros(
            (S1 - HP1 * HP1, CP), f32)

        # One cast per image (not per tap) into the bf16 MXU operand, plus a
        # row-shifted copy so every conv2 tap slice starts at an EVEN row offset
        # (packed-sublane aligned for bf16).
        p1_s[...] = p1f_s[...].astype(bf16)
        p1x_s[pl.ds(0, S1 - 2), :] = p1f_s[pl.ds(1, S1 - 2), :].astype(bf16)
        p1x_s[pl.ds(S1 - 2, 2), :] = jnp.zeros((2, CP), bf16)

        # ---- conv2 + bias + ReLU: 25 shifted matmuls, value(vreg)-accumulated ----
        # Output columns wo >= 10 of each row are wrap-around garbage; pool2
        # below never selects them (do not change its indexing without care).
        acc = None
        for t in range(K5 * K5):
            i, j = divmod(t, K5)
            if j % 2 == 0:
                xs = p1_s[pl.ds(i * HP1 + j, L2), :]
            else:  # odd taps read the shifted copy -> even, aligned offsets
                xs = p1x_s[pl.ds(i * HP1 + j - 1, L2), :]
            part = jnp.dot(xs, w2_ref[t], preferred_element_type=f32)
            acc = part if acc is None else acc + part
        c2_s[pl.ds(0, L2), :] = jnp.maximum(acc + b2_ref[...], 0.0)

        # ---- pool2 (2x2 / 2) ----
        h2_s[pl.ds(0, NH2), :] = jnp.maximum(c2_s[pl.ds(0, NH2, stride=2), :],
                                             c2_s[pl.ds(1, NH2, stride=2), :])
        for hp in range(HP2):
            top = h2_s[pl.ds((2 * hp) * W1H, HP2), :]
            bot = h2_s[pl.ds((2 * hp + 1) * W1H, HP2), :]
            p2_s[pl.ds(hp * 8, HP2), :] = jnp.maximum(top, bot)

        # ---- fc1 (+ReLU) as 25 per-pixel taps, fc2 (+ReLU), fc3 ----
        f = fb1_ref[...]
        for hp in range(HP2):
            for wp in range(HP2):
                f = f + jnp.dot(
                    p2_s[pl.ds(hp * 8 + wp, 1), :].astype(bf16),
                    fw1_ref[hp * HP2 + wp],
                    preferred_element_type=f32)
        f = jnp.maximum(f, 0.0)
        f = jnp.maximum(
            jnp.dot(f.astype(bf16), fw2_ref[...],
                    preferred_element_type=f32) + fb2_ref[...], 0.0)
        out_ref[b, :, :] = jnp.dot(f.astype(bf16), fw3_ref[...],
                                   preferred_element_type=f32) + fb3_ref[...]


def lenet_fused(xp, w1, b1, w2, b2, fw1, fb1, fw2, fb2, fw3, fb3, *, nb):
    """xp: (N, 784, CP) bf16 im2col patches.  Returns (N, CP) f32 padded logits."""
    n = xp.shape[0]
    assert n % nb == 0
    kern = functools.partial(_lenet_kernel, nb=nb)
    out = pl.pallas_call(
        kern,
        out_shape=jax.ShapeDtypeStruct((n, 1, CP), jnp.float32),
        grid=(n // nb,),
        in_specs=[
            pl.BlockSpec((nb, NP1, CP), lambda g: (g, 0, 0)),        # im2col patches
            pl.BlockSpec((CP, CP), lambda g: (0, 0)),                # conv1 weight
            pl.BlockSpec((1, CP), lambda g: (0, 0)),                 # conv1 bias
            pl.BlockSpec((K5 * K5, CP, CP), lambda g: (0, 0, 0)),    # conv2 weight
            pl.BlockSpec((1, CP), lambda g: (0, 0)),                 # conv2 bias
            pl.BlockSpec((K5 * K5, CP, CP), lambda g: (0, 0, 0)),    # fc1 weight (per pixel)
            pl.BlockSpec((1, CP), lambda g: (0, 0)),                 # fc1 bias
            pl.BlockSpec((CP, CP), lambda g: (0, 0)),                # fc2 weight
            pl.BlockSpec((1, CP), lambda g: (0, 0)),                 # fc2 bias
            pl.BlockSpec((CP, CP), lambda g: (0, 0)),                # fc3 weight
            pl.BlockSpec((1, CP), lambda g: (0, 0)),                 # fc3 bias
        ],
        out_specs=pl.BlockSpec((nb, 1, CP), lambda g: (g, 0, 0)),
        scratch_shapes=[
            pltpu.VMEM((NP1, CP), jnp.float32),   # conv1 out
            pltpu.VMEM((NH1, CP), jnp.float32),   # pool1 horizontal-max staging
            pltpu.VMEM((S1, CP), jnp.float32),    # pool1 out (f32 staging)
            pltpu.VMEM((S1, CP), jnp.bfloat16),   # pool1 out, bf16 MXU operand
            pltpu.VMEM((S1, CP), jnp.bfloat16),   # pool1 out shifted by one row
            pltpu.VMEM((144, CP), jnp.float32),   # conv2 out (140 rows used)
            pltpu.VMEM((72, CP), jnp.float32),    # pool2 horizontal-max staging
            pltpu.VMEM((40, CP), jnp.float32),    # pool2 out (rows hp*8+wp)
        ],
        compiler_params=pltpu.CompilerParams(
            dimension_semantics=("parallel",),
            vmem_limit_bytes=VMEM_LIMIT),
    )(xp, w1, b1, w2, b2, fw1, fb1, fw2, fb2, fw3, fb3)
    return out[:, 0, :]


# ---------------------------------------------------------------------------
# Parameters: PyTorch-layout init (Net.initialize_weights semantics), then a
# one-time host-side repack into padded, lane-dense kernel layouts.
# ---------------------------------------------------------------------------
def init_params(key):
    ks = jax.random.split(key, 5)

    def xavier_normal(k, shape):
        cout, cin, kh, kw = shape
        fan_in, fan_out = cin * kh * kw, cout * kh * kw
        std = (2.0 / (fan_in + fan_out)) ** 0.5
        return std * jax.random.normal(k, shape, dtype=jnp.float32)

    return {
        "conv1_w": xavier_normal(ks[0], (6, 3, 5, 5)),
        "conv1_b": jnp.zeros((6,), jnp.float32),
        "conv2_w": xavier_normal(ks[1], (16, 6, 5, 5)),
        "conv2_b": jnp.zeros((16,), jnp.float32),
        "fc1_w": 0.01 * jax.random.normal(ks[2], (120, 400), dtype=jnp.float32),
        "fc1_b": jnp.zeros((120,), jnp.float32),
        "fc2_w": 0.01 * jax.random.normal(ks[3], (84, 120), dtype=jnp.float32),
        "fc2_b": jnp.zeros((84,), jnp.float32),
        "fc3_w": 0.01 * jax.random.normal(ks[4], (10, 84), dtype=jnp.float32),
        "fc3_b": jnp.zeros((10,), jnp.float32),
    }


def _pad_bias(b):
    return jnp.pad(b, (0, CP - b.shape[0])).reshape(1, CP).astype(jnp.float32)


def _prep_conv1(w, b):
    # torch (cout, cin, kh, kw) -> im2col weight (K=(ki,kj,ci)->CP, cout->CP)
    cout, cin, kh, kw = w.shape
    wt = jnp.transpose(w, (2, 3, 1, 0)).reshape(kh * kw * cin, cout)
    wt = jnp.pad(wt, ((0, CP - kh * kw * cin), (0, CP - cout)))
    return wt.astype(jnp.bfloat16), _pad_bias(b)


def _prep_conv2(w, b):
    # torch (cout, cin, kh, kw) -> per-tap (25, cin->CP, cout->CP)
    cout, cin, kh, kw = w.shape
    wt = jnp.transpose(w, (2, 3, 1, 0)).reshape(kh * kw, cin, cout)
    wt = jnp.pad(wt, ((0, 0), (0, CP - cin), (0, CP - cout)))
    return wt.astype(jnp.bfloat16), _pad_bias(b)


def _prep_fc1(w, b):
    # torch fc1 consumes .view(-1, 400) with index c*25 + hp*5 + wp; reorganize
    # as one (c->CP, out->CP) matrix per pool2 pixel (hp, wp).
    out_f = w.shape[0]
    wt = w.reshape(out_f, 16, HP2, HP2)          # (o, c, hp, wp)
    wt = jnp.transpose(wt, (2, 3, 1, 0))         # (hp, wp, c, o)
    wt = wt.reshape(HP2 * HP2, 16, out_f)
    wt = jnp.pad(wt, ((0, 0), (0, CP - 16), (0, CP - out_f)))
    return wt.astype(jnp.bfloat16), _pad_bias(b)


def _prep_fc(w, b):
    out_f, in_f = w.shape
    wt = jnp.pad(w.T, ((0, CP - in_f), (0, CP - out_f)))
    return wt.astype(jnp.bfloat16), _pad_bias(b)


def prepare_params(p):
    c1w, c1b = _prep_conv1(p["conv1_w"], p["conv1_b"])
    c2w, c2b = _prep_conv2(p["conv2_w"], p["conv2_b"])
    f1w, f1b = _prep_fc1(p["fc1_w"], p["fc1_b"])
    f2w, f2b = _prep_fc(p["fc2_w"], p["fc2_b"])
    f3w, f3b = _prep_fc(p["fc3_w"], p["fc3_b"])
    return dict(c1w=c1w, c1b=c1b, c2w=c2w, c2b=c2b,
                f1w=f1w, f1b=f1b, f2w=f2w, f2b=f2b, f3w=f3w, f3b=f3b)


def _im2col_conv1(x):
    """(N,3,32,32) f32 NCHW -> (N, 784, CP) bf16 patches, feature order (ki,kj,ci)."""
    n = x.shape[0]
    xt = jnp.transpose(x, (0, 2, 3, 1))                      # NHWC
    taps = [xt[:, ki:ki + HO1, kj:kj + HO1, :]
            for ki in range(K5) for kj in range(K5)]
    p = jnp.concatenate(taps, axis=-1)                       # (N, 28, 28, 75)
    p = p.reshape(n, NP1, KIN1)
    p = jnp.pad(p, ((0, 0), (0, 0), (0, CP - KIN1)))
    return p.astype(jnp.bfloat16)


def lenet_forward(kp, x, *, nb=1):
    """x: (N, 3, 32, 32) NCHW float32 -> logits (N, 10)."""
    patches = _im2col_conv1(x)
    logits = lenet_fused(patches, kp["c1w"], kp["c1b"], kp["c2w"], kp["c2b"],
                         kp["f1w"], kp["f1b"], kp["f2w"], kp["f2b"],
                         kp["f3w"], kp["f3b"], nb=nb)
    return logits[:, :10]


# ---------------------------------------------------------------------------
# Pure-JAX f32 reference (mirrors Net.forward) for a loose-tolerance self-test.
# ---------------------------------------------------------------------------
def reference_forward(p, x):
    dn = ("NCHW", "OIHW", "NCHW")
    y = lax.conv_general_dilated(x, p["conv1_w"], (1, 1), "VALID",
                                 dimension_numbers=dn)
    y = jnp.maximum(y + p["conv1_b"][None, :, None, None], 0.0)
    y = lax.reduce_window(y, -jnp.inf, lax.max, (1, 1, 2, 2), (1, 1, 2, 2), "VALID")
    y = lax.conv_general_dilated(y, p["conv2_w"], (1, 1), "VALID",
                                 dimension_numbers=dn)
    y = jnp.maximum(y + p["conv2_b"][None, :, None, None], 0.0)
    y = lax.reduce_window(y, -jnp.inf, lax.max, (1, 1, 2, 2), (1, 1, 2, 2), "VALID")
    y = y.reshape(y.shape[0], -1)
    y = jnp.maximum(y @ p["fc1_w"].T + p["fc1_b"], 0.0)
    y = jnp.maximum(y @ p["fc2_w"].T + p["fc2_b"], 0.0)
    return y @ p["fc3_w"].T + p["fc3_b"]


if __name__ == "__main__":
    key = jax.random.PRNGKey(0)
    kx, kparam = jax.random.split(key)
    # LeNet geometry requires 32x32 spatial input (16*5*5 = 400 after conv/pool).
    x = jax.random.normal(kx, (2, 3, 32, 32), dtype=jnp.float32)
    params = init_params(kparam)
    kparams = prepare_params(params)

    fwd = jax.jit(lenet_forward)
    out = jax.block_until_ready(fwd(kparams, x))
    assert out.shape == (2, 10), out.shape
    assert bool(jnp.all(jnp.isfinite(out))), "non-finite output"

    # Loose-tolerance check vs pure-f32 reference (kernel uses bf16 MXU operands).
    ref = reference_forward(params, x)
    err = float(jnp.max(jnp.abs(out - ref)))
    tol = 1e-2 + 5e-2 * (float(jnp.max(jnp.abs(ref))) + 1e-6)
    assert err <= tol, (err, tol)

    print("KERNEL_OK")
</pallas_src>

<mosaic_0001>
module attributes {stable_mosaic.version = 11 : i64} {
  func.func @_lenet_kernel(%arg0: i32, %arg1: memref<1x784x128xbf16, #tpu.memory_space<vmem>>, %arg2: memref<128x128xbf16, #tpu.memory_space<vmem>>, %arg3: memref<1x128xf32, #tpu.memory_space<vmem>>, %arg4: memref<25x128x128xbf16, #tpu.memory_space<vmem>>, %arg5: memref<1x128xf32, #tpu.memory_space<vmem>>, %arg6: memref<25x128x128xbf16, #tpu.memory_space<vmem>>, %arg7: memref<1x128xf32, #tpu.memory_space<vmem>>, %arg8: memref<128x128xbf16, #tpu.memory_space<vmem>>, %arg9: memref<1x128xf32, #tpu.memory_space<vmem>>, %arg10: memref<128x128xbf16, #tpu.memory_space<vmem>>, %arg11: memref<1x128xf32, #tpu.memory_space<vmem>>, %arg12: memref<1x1x128xf32, #tpu.memory_space<vmem>>, %arg13: memref<784x128xf32, #tpu.memory_space<vmem>>, %arg14: memref<392x128xf32, #tpu.memory_space<vmem>>, %arg15: memref<200x128xf32, #tpu.memory_space<vmem>>, %arg16: memref<200x128xbf16, #tpu.memory_space<vmem>>, %arg17: memref<200x128xbf16, #tpu.memory_space<vmem>>, %arg18: memref<144x128xf32, #tpu.memory_space<vmem>>, %arg19: memref<72x128xf32, #tpu.memory_space<vmem>>, %arg20: memref<40x128xf32, #tpu.memory_space<vmem>>) attributes {dimension_semantics = [#tpu.dimension_semantics<parallel>], iteration_bounds = array<i64: 2>, scalar_prefetch = 0 : i64, scratch_operands = 8 : i64, tpu.core_type = #tpu.core_type<tc>, window_params = [{transform_indices = @transform_0, window_bounds = array<i64: 1, 784, 128>}, {pipeline_mode = #tpu.pipeline_mode<synchronous>, transform_indices = @transform_1, window_bounds = array<i64: 128, 128>}, {pipeline_mode = #tpu.pipeline_mode<synchronous>, transform_indices = @transform_2, window_bounds = array<i64: 1, 128>}, {pipeline_mode = #tpu.pipeline_mode<synchronous>, transform_indices = @transform_3, window_bounds = array<i64: 25, 128, 128>}, {pipeline_mode = #tpu.pipeline_mode<synchronous>, transform_indices = @transform_4, window_bounds = array<i64: 1, 128>}, {pipeline_mode = #tpu.pipeline_mode<synchronous>, transform_indices = @transform_5, window_bounds = array<i64: 25, 128, 128>}, {pipeline_mode = #tpu.pipeline_mode<synchronous>, transform_indices = @transform_6, window_bounds = array<i64: 1, 128>}, {pipeline_mode = #tpu.pipeline_mode<synchronous>, transform_indices = @transform_7, window_bounds = array<i64: 128, 128>}, {pipeline_mode = #tpu.pipeline_mode<synchronous>, transform_indices = @transform_8, window_bounds = array<i64: 1, 128>}, {pipeline_mode = #tpu.pipeline_mode<synchronous>, transform_indices = @transform_9, window_bounds = array<i64: 128, 128>}, {pipeline_mode = #tpu.pipeline_mode<synchronous>, transform_indices = @transform_10, window_bounds = array<i64: 1, 128>}, {transform_indices = @transform_11, window_bounds = array<i64: 1, 1, 128>}]} {
    %c0 = arith.constant 0 : index
    %c0_0 = arith.constant 0 : index
    %c0_1 = arith.constant 0 : index
    %0 = vector.load %arg1[%c0, %c0_0, %c0_1] : memref<1x784x128xbf16, #tpu.memory_space<vmem>>, vector<1x784x128xbf16>
    %1 = vector.shape_cast %0 : vector<1x784x128xbf16> to vector<784x128xbf16>
    %c0_2 = arith.constant 0 : index
    %c0_3 = arith.constant 0 : index
    %2 = vector.load %arg2[%c0_2, %c0_3] : memref<128x128xbf16, #tpu.memory_space<vmem>>, vector<128x128xbf16>
    %cst = arith.constant dense<0.000000e+00> : vector<784x128xf32>
    %3 = tpu.matmul %1, %2, %cst {dimension_numbers = #tpu.dot_dimension_numbers<[1], [0], [0], [1], [0, 0, 1, 1], [], []>} : vector<784x128xbf16>, vector<128x128xbf16>, vector<784x128xf32> -> vector<784x128xf32>
    %c0_4 = arith.constant 0 : index
    %c0_5 = arith.constant 0 : index
    %4 = vector.load %arg3[%c0_4, %c0_5] : memref<1x128xf32, #tpu.memory_space<vmem>>, vector<1x128xf32>
    %5 = vector.broadcast %4 : vector<1x128xf32> to vector<784x128xf32>
    %6 = arith.addf %3, %5 : vector<784x128xf32>
    %cst_6 = arith.constant 0.000000e+00 : f32
    %7 = vector.broadcast %cst_6 : f32 to vector<784x128xf32>
    %8 = arith.maximumf %6, %7 : vector<784x128xf32>
    %c0_7 = arith.constant 0 : index
    %c0_8 = arith.constant 0 : index
    %9 = vector.load %arg13[%c0_7, %c0_8] : memref<784x128xf32, #tpu.memory_space<vmem>>, vector<784x128xf32>
    tpu.vector_store %arg13[%c0_7, %c0_8], %8 {strides = array<i32>} : memref<784x128xf32, #tpu.memory_space<vmem>>, vector<784x128xf32>,
    %c0_9 = arith.constant 0 : index
    %c0_10 = arith.constant 0 : index
    %10 = tpu.strided_load %arg13[%c0_9, %c0_10] {strides = array<i32: 2, 1>} : memref<784x128xf32, #tpu.memory_space<vmem>>, vector<392x128xf32>
    %c1 = arith.constant 1 : index
    %c0_11 = arith.constant 0 : index
    %11 = tpu.strided_load %arg13[%c1, %c0_11] {strides = array<i32: 2, 1>} : memref<784x128xf32, #tpu.memory_space<vmem>>, vector<392x128xf32>
    %12 = arith.maximumf %10, %11 : vector<392x128xf32>
    %c0_12 = arith.constant 0 : index
    %c0_13 = arith.constant 0 : index
    %13 = vector.load %arg14[%c0_12, %c0_13] : memref<392x128xf32, #tpu.memory_space<vmem>>, vector<392x128xf32>
    tpu.vector_store %arg14[%c0_12, %c0_13], %12 {strides = array<i32>} : memref<392x128xf32, #tpu.memory_space<vmem>>, vector<392x128xf32>,
    %c0_14 = arith.constant 0 : index
    %c0_15 = arith.constant 0 : index
    %14 = vector.load %arg14[%c0_14, %c0_15] : memref<392x128xf32, #tpu.memory_space<vmem>>, vector<14x128xf32>
    %c14 = arith.constant 14 : index
    %c0_16 = arith.constant 0 : index
    %15 = vector.load %arg14[%c14, %c0_16] : memref<392x128xf32, #tpu.memory_space<vmem>>, vector<14x128xf32>
    %16 = arith.maximumf %14, %15 : vector<14x128xf32>
    %c0_17 = arith.constant 0 : index
    %c0_18 = arith.constant 0 : index
    %17 = vector.load %arg15[%c0_17, %c0_18] : memref<200x128xf32, #tpu.memory_space<vmem>>, vector<14x128xf32>
    tpu.vector_store %arg15[%c0_17, %c0_18], %16 {strides = array<i32>} : memref<200x128xf32, #tpu.memory_space<vmem>>, vector<14x128xf32>,
    %c28 = arith.constant 28 : index
    %c0_19 = arith.constant 0 : index
    %18 = vector.load %arg14[%c28, %c0_19] : memref<392x128xf32, #tpu.memory_space<vmem>>, vector<14x128xf32>
    %c42 = arith.constant 42 : index
    %c0_20 = arith.constant 0 : index
    %19 = vector.load %arg14[%c42, %c0_20] : memref<392x128xf32, #tpu.memory_space<vmem>>, vector<14x128xf32>
    %20 = arith.maximumf %18, %19 : vector<14x128xf32>
    %c14_21 = arith.constant 14 : index
    %c0_22 = arith.constant 0 : index
    %21 = vector.load %arg15[%c14_21, %c0_22] : memref<200x128xf32, #tpu.memory_space<vmem>>, vector<14x128xf32>
    tpu.vector_store %arg15[%c14_21, %c0_22], %20 {strides = array<i32>} : memref<200x128xf32, #tpu.memory_space<vmem>>, vector<14x128xf32>,
    %c56 = arith.constant 56 : index
    %c0_23 = arith.constant 0 : index
    %22 = vector.load %arg14[%c56, %c0_23] : memref<392x128xf32, #tpu.memory_space<vmem>>, vector<14x128xf32>
    %c70 = arith.constant 70 : index
    %c0_24 = arith.constant 0 : index
    %23 = vector.load %arg14[%c70, %c0_24] : memref<392x128xf32, #tpu.memory_space<vmem>>, vector<14x128xf32>
    %24 = arith.maximumf %22, %23 : vector<14x128xf32>
    %c28_25 = arith.constant 28 : index
    %c0_26 = arith.constant 0 : index
    %25 = vector.load %arg15[%c28_25, %c0_26] : memref<200x128xf32, #tpu.memory_space<vmem>>, vector<14x128xf32>
    tpu.vector_store %arg15[%c28_25, %c0_26], %24 {strides = array<i32>} : memref<200x128xf32, #tpu.memory_space<vmem>>, vector<14x128xf32>,
    %c84 = arith.constant 84 : index
    %c0_27 = arith.constant 0 : index
    %26 = vector.load %arg14[%c84, %c0_27] : memref<392x128xf32, #tpu.memory_space<vmem>>, vector<14x128xf32>
    %c98 = arith.constant 98 : index
    %c0_28 = arith.constant 0 : index
    %27 = vector.load %arg14[%c98, %c0_28] : memref<392x128xf32, #tpu.memory_space<vmem>>, vector<14x128xf32>
    %28 = arith.maximumf %26, %27 : vector<14x128xf32>
    %c42_29 = arith.constant 42 : index
    %c0_30 = arith.constant 0 : index
    %29 = vector.load %arg15[%c42_29, %c0_30] : memref<200x128xf32, #tpu.memory_space<vmem>>, vector<14x128xf32>
    tpu.vector_store %arg15[%c42_29, %c0_30], %28 {strides = array<i32>} : memref<200x128xf32, #tpu.memory_space<vmem>>, vector<14x128xf32>,
    %c112 = arith.constant 112 : index
    %c0_31 = arith.constant 0 : index
    %30 = vector.load %arg14[%c112, %c0_31] : memref<392x128xf32, #tpu.memory_space<vmem>>, vector<14x128xf32>
    %c126 = arith.constant 126 : index
    %c0_32 = arith.constant 0 : index
    %31 = vector.load %arg14[%c126, %c0_32] : memref<392x128xf32, #tpu.memory_space<vmem>>, vector<14x128xf32>
    %32 = arith.maximumf %30, %31 : vector<14x128xf32>
    %c56_33 = arith.constant 56 : index
    %c0_34 = arith.constant 0 : index
    %33 = vector.load %arg15[%c56_33, %c0_34] : memref<200x128xf32, #tpu.memory_space<vmem>>, vector<14x128xf32>
    tpu.vector_store %arg15[%c56_33, %c0_34], %32 {strides = array<i32>} : memref<200x128xf32, #tpu.memory_space<vmem>>, vector<14x128xf32>,
    %c140 = arith.constant 140 : index
    %c0_35 = arith.constant 0 : index
    %34 = vector.load %arg14[%c140, %c0_35] : memref<392x128xf32, #tpu.memory_space<vmem>>, vector<14x128xf32>
    %c154 = arith.constant 154 : index
    %c0_36 = arith.constant 0 : index
    %35 = vector.load %arg14[%c154, %c0_36] : memref<392x128xf32, #tpu.memory_space<vmem>>, vector<14x128xf32>
    %36 = arith.maximumf %34, %35 : vector<14x128xf32>
    %c70_37 = arith.constant 70 : index
    %c0_38 = arith.constant 0 : index
    %37 = vector.load %arg15[%c70_37, %c0_38] : memref<200x128xf32, #tpu.memory_space<vmem>>, vector<14x128xf32>
    tpu.vector_store %arg15[%c70_37, %c0_38], %36 {strides = array<i32>} : memref<200x128xf32, #tpu.memory_space<vmem>>, vector<14x128xf32>,
    %c168 = arith.constant 168 : index
    %c0_39 = arith.constant 0 : index
    %38 = vector.load %arg14[%c168, %c0_39] : memref<392x128xf32, #tpu.memory_space<vmem>>, vector<14x128xf32>
    %c182 = arith.constant 182 : index
    %c0_40 = arith.constant 0 : index
    %39 = vector.load %arg14[%c182, %c0_40] : memref<392x128xf32, #tpu.memory_space<vmem>>, vector<14x128xf32>
    %40 = arith.maximumf %38, %39 : vector<14x128xf32>
    %c84_41 = arith.constant 84 : index
    %c0_42 = arith.constant 0 : index
    %41 = vector.load %arg15[%c84_41, %c0_42] : memref<200x128xf32, #tpu.memory_space<vmem>>, vector<14x128xf32>
    tpu.vector_store %arg15[%c84_41, %c0_42], %40 {strides = array<i32>} : memref<200x128xf32, #tpu.memory_space<vmem>>, vector<14x128xf32>,
    %c196 = arith.constant 196 : index
    %c0_43 = arith.constant 0 : index
    %42 = vector.load %arg14[%c196, %c0_43] : memref<392x128xf32, #tpu.memory_space<vmem>>, vector<14x128xf32>
    %c210 = arith.constant 210 : index
    %c0_44 = arith.constant 0 : index
    %43 = vector.load %arg14[%c210, %c0_44] : memref<392x128xf32, #tpu.memory_space<vmem>>, vector<14x128xf32>
    %44 = arith.maximumf %42, %43 : vector<14x128xf32>
    %c98_45 = arith.constant 98 : index
    %c0_46 = arith.constant 0 : index
    %45 = vector.load %arg15[%c98_45, %c0_46] : memref<200x128xf32, #tpu.memory_space<vmem>>, vector<14x128xf32>
    tpu.vector_store %arg15[%c98_45, %c0_46], %44 {strides = array<i32>} : memref<200x128xf32, #tpu.memory_space<vmem>>, vector<14x128xf32>,
    %c224 = arith.constant 224 : index
    %c0_47 = arith.constant 0 : index
    %46 = vector.load %arg14[%c224, %c0_47] : memref<392x128xf32, #tpu.memory_space<vmem>>, vector<14x128xf32>
    %c238 = arith.constant 238 : index
    %c0_48 = arith.constant 0 : index
    %47 = vector.load %arg14[%c238, %c0_48] : memref<392x128xf32, #tpu.memory_space<vmem>>, vector<14x128xf32>
    %48 = arith.maximumf %46, %47 : vector<14x128xf32>
    %c112_49 = arith.constant 112 : index
    %c0_50 = arith.constant 0 : index
    %49 = vector.load %arg15[%c112_49, %c0_50] : memref<200x128xf32, #tpu.memory_space<vmem>>, vector<14x128xf32>
    tpu.vector_store %arg15[%c112_49, %c0_50], %48 {strides = array<i32>} : memref<200x128xf32, #tpu.memory_space<vmem>>, vector<14x128xf32>,
    %c252 = arith.constant 252 : index
    %c0_51 = arith.constant 0 : index
    %50 = vector.load %arg14[%c252, %c0_51] : memref<392x128xf32, #tpu.memory_space<vmem>>, vector<14x128xf32>
    %c266 = arith.constant 266 : index
    %c0_52 = arith.constant 0 : index
    %51 = vector.load %arg14[%c266, %c0_52] : memref<392x128xf32, #tpu.memory_space<vmem>>, vector<14x128xf32>
    %52 = arith.maximumf %50, %51 : vector<14x128xf32>
    %c126_53 = arith.constant 126 : index
    %c0_54 = arith.constant 0 : index
    %53 = vector.load %arg15[%c126_53, %c0_54] : memref<200x128xf32, #tpu.memory_space<vmem>>, vector<14x128xf32>
    tpu.vector_store %arg15[%c126_53, %c0_54], %52 {strides = array<i32>} : memref<200x128xf32, #tpu.memory_space<vmem>>, vector<14x128xf32>,
    %c280 = arith.constant 280 : index
    %c0_55 = arith.constant 0 : index
    %54 = vector.load %arg14[%c280, %c0_55] : memref<392x128xf32, #tpu.memory_space<vmem>>, vector<14x128xf32>
    %c294 = arith.constant 294 : index
    %c0_56 = arith.constant 0 : index
    %55 = vector.load %arg14[%c294, %c0_56] : memref<392x128xf32, #tpu.memory_space<vmem>>, vector<14x128xf32>
    %56 = arith.maximumf %54, %55 : vector<14x128xf32>
    %c140_57 = arith.constant 140 : index
    %c0_58 = arith.constant 0 : index
    %57 = vector.load %arg15[%c140_57, %c0_58] : memref<200x128xf32, #tpu.memory_space<vmem>>, vector<14x128xf32>
    tpu.vector_store %arg15[%c140_57, %c0_58], %56 {strides = array<i32>} : memref<200x128xf32, #tpu.memory_space<vmem>>, vector<14x128xf32>,
    %c308 = arith.constant 308 : index
    %c0_59 = arith.constant 0 : index
    %58 = vector.load %arg14[%c308, %c0_59] : memref<392x128xf32, #tpu.memory_space<vmem>>, vector<14x128xf32>
    %c322 = arith.constant 322 : index
    %c0_60 = arith.constant 0 : index
    %59 = vector.load %arg14[%c322, %c0_60] : memref<392x128xf32, #tpu.memory_space<vmem>>, vector<14x128xf32>
    %60 = arith.maximumf %58, %59 : vector<14x128xf32>
    %c154_61 = arith.constant 154 : index
    %c0_62 = arith.constant 0 : index
    %61 = vector.load %arg15[%c154_61, %c0_62] : memref<200x128xf32, #tpu.memory_space<vmem>>, vector<14x128xf32>
    tpu.vector_store %arg15[%c154_61, %c0_62], %60 {strides = array<i32>} : memref<200x128xf32, #tpu.memory_space<vmem>>, vector<14x128xf32>,
    %c336 = arith.constant 336 : index
    %c0_63 = arith.constant 0 : index
    %62 = vector.load %arg14[%c336, %c0_63] : memref<392x128xf32, #tpu.memory_space<vmem>>, vector<14x128xf32>
    %c350 = arith.constant 350 : index
    %c0_64 = arith.constant 0 : index
    %63 = vector.load %arg14[%c350, %c0_64] : memref<392x128xf32, #tpu.memory_space<vmem>>, vector<14x128xf32>
    %64 = arith.maximumf %62, %63 : vector<14x128xf32>
    %c168_65 = arith.constant 168 : index
    %c0_66 = arith.constant 0 : index
    %65 = vector.load %arg15[%c168_65, %c0_66] : memref<200x128xf32, #tpu.memory_space<vmem>>, vector<14x128xf32>
    tpu.vector_store %arg15[%c168_65, %c0_66], %64 {strides = array<i32>} : memref<200x128xf32, #tpu.memory_space<vmem>>, vector<14x128xf32>,
    %c364 = arith.constant 364 : index
    %c0_67 = arith.constant 0 : index
    %66 = vector.load %arg14[%c364, %c0_67] : memref<392x128xf32, #tpu.memory_space<vmem>>, vector<14x128xf32>
    %c378 = arith.constant 378 : index
    %c0_68 = arith.constant 0 : index
    %67 = vector.load %arg14[%c378, %c0_68] : memref<392x128xf32, #tpu.memory_space<vmem>>, vector<14x128xf32>
    %68 = arith.maximumf %66, %67 : vector<14x128xf32>
    %c182_69 = arith.constant 182 : index
    %c0_70 = arith.constant 0 : index
    %69 = vector.load %arg15[%c182_69, %c0_70] : memref<200x128xf32, #tpu.memory_space<vmem>>, vector<14x128xf32>
    tpu.vector_store %arg15[%c182_69, %c0_70], %68 {strides = array<i32>} : memref<200x128xf32, #tpu.memory_space<vmem>>, vector<14x128xf32>,
    %cst_71 = arith.constant 0.000000e+00 : f32
    %70 = vector.broadcast %cst_71 : f32 to vector<4x128xf32>
    %c196_72 = arith.constant 196 : index
    %c0_73 = arith.constant 0 : index
    %71 = vector.load %arg15[%c196_72, %c0_73] : memref<200x128xf32, #tpu.memory_space<vmem>>, vector<4x128xf32>
    tpu.vector_store %arg15[%c196_72, %c0_73], %70 {strides = array<i32>} : memref<200x128xf32, #tpu.memory_space<vmem>>, vector<4x128xf32>,
    %c0_74 = arith.constant 0 : index
    %c0_75 = arith.constant 0 : index
    %72 = vector.load %arg15[%c0_74, %c0_75] : memref<200x128xf32, #tpu.memory_space<vmem>>, vector<200x128xf32>
    %73 = arith.truncf %72 : vector<200x128xf32> to vector<200x128xbf16>
    %c0_76 = arith.constant 0 : index
    %c0_77 = arith.constant 0 : index
    %74 = vector.load %arg16[%c0_76, %c0_77] : memref<200x128xbf16, #tpu.memory_space<vmem>>, vector<200x128xbf16>
    tpu.vector_store %arg16[%c0_76, %c0_77], %73 {strides = array<i32>} : memref<200x128xbf16, #tpu.memory_space<vmem>>, vector<200x128xbf16>,
    %c1_78 = arith.constant 1 : index
    %c0_79 = arith.constant 0 : index
    %75 = vector.load %arg15[%c1_78, %c0_79] : memref<200x128xf32, #tpu.memory_space<vmem>>, vector<198x128xf32>
    %76 = arith.truncf %75 : vector<198x128xf32> to vector<198x128xbf16>
    %c0_80 = arith.constant 0 : index
    %c0_81 = arith.constant 0 : index
    %77 = vector.load %arg17[%c0_80, %c0_81] : memref<200x128xbf16, #tpu.memory_space<vmem>>, vector<198x128xbf16>
    tpu.vector_store %arg17[%c0_80, %c0_81], %76 {strides = array<i32>} : memref<200x128xbf16, #tpu.memory_space<vmem>>, vector<198x128xbf16>,
    %cst_82 = arith.constant 0.000000e+00 : bf16
    %78 = vector.broadcast %cst_82 : bf16 to vector<2x128xbf16>
    %c198 = arith.constant 198 : index
    %c0_83 = arith.constant 0 : index
    %79 = vector.load %arg17[%c198, %c0_83] : memref<200x128xbf16, #tpu.memory_space<vmem>>, vector<2x128xbf16>
    tpu.vector_store %arg17[%c198, %c0_83], %78 {strides = array<i32>} : memref<200x128xbf16, #tpu.memory_space<vmem>>, vector<2x128xbf16>,
    %c0_84 = arith.constant 0 : index
    %c0_85 = arith.constant 0 : index
    %80 = vector.load %arg16[%c0_84, %c0_85] : memref<200x128xbf16, #tpu.memory_space<vmem>>, vector<140x128xbf16>
    %c0_86 = arith.constant 0 : index
    %c0_87 = arith.constant 0 : index
    %c0_88 = arith.constant 0 : index
    %81 = vector.load %arg4[%c0_86, %c0_87, %c0_88] : memref<25x128x128xbf16, #tpu.memory_space<vmem>>, vector<1x128x128xbf16>
    %82 = vector.shape_cast %81 : vector<1x128x128xbf16> to vector<128x128xbf16>
    %cst_89 = arith.constant dense<0.000000e+00> : vector<140x128xf32>
    %83 = tpu.matmul %80, %82, %cst_89 {dimension_numbers = #tpu.dot_dimension_numbers<[1], [0], [0], [1], [0, 0, 1, 1], [], []>} : vector<140x128xbf16>, vector<128x128xbf16>, vector<140x128xf32> -> vector<140x128xf32>
    %c0_90 = arith.constant 0 : index
    %c0_91 = arith.constant 0 : index
    %84 = vector.load %arg17[%c0_90, %c0_91] : memref<200x128xbf16, #tpu.memory_space<vmem>>, vector<140x128xbf16>
    %c1_92 = arith.constant 1 : index
    %c0_93 = arith.constant 0 : index
    %c0_94 = arith.constant 0 : index
    %85 = vector.load %arg4[%c1_92, %c0_93, %c0_94] : memref<25x128x128xbf16, #tpu.memory_space<vmem>>, vector<1x128x128xbf16>
    %86 = vector.shape_cast %85 : vector<1x128x128xbf16> to vector<128x128xbf16>
    %cst_95 = arith.constant dense<0.000000e+00> : vector<140x128xf32>
    %87 = tpu.matmul %84, %86, %cst_95 {dimension_numbers = #tpu.dot_dimension_numbers<[1], [0], [0], [1], [0, 0, 1, 1], [], []>} : vector<140x128xbf16>, vector<128x128xbf16>, vector<140x128xf32> -> vector<140x128xf32>
    %88 = arith.addf %83, %87 : vector<140x128xf32>
    %c2 = arith.constant 2 : index
    %c0_96 = arith.constant 0 : index
    %89 = vector.load %arg16[%c2, %c0_96] : memref<200x128xbf16, #tpu.memory_space<vmem>>, vector<140x128xbf16>
    %c2_97 = arith.constant 2 : index
    %c0_98 = arith.constant 0 : index
    %c0_99 = arith.constant 0 : index
    %90 = vector.load %arg4[%c2_97, %c0_98, %c0_99] : memref<25x128x128xbf16, #tpu.memory_space<vmem>>, vector<1x128x128xbf16>
    %91 = vector.shape_cast %90 : vector<1x128x128xbf16> to vector<128x128xbf16>
    %cst_100 = arith.constant dense<0.000000e+00> : vector<140x128xf32>
    %92 = tpu.matmul %89, %91, %cst_100 {dimension_numbers = #tpu.dot_dimension_numbers<[1], [0], [0], [1], [0, 0, 1, 1], [], []>} : vector<140x128xbf16>, vector<128x128xbf16>, vector<140x128xf32> -> vector<140x128xf32>
    %93 = arith.addf %88, %92 : vector<140x128xf32>
    %c2_101 = arith.constant 2 : index
    %c0_102 = arith.constant 0 : index
    %94 = vector.load %arg17[%c2_101, %c0_102] : memref<200x128xbf16, #tpu.memory_space<vmem>>, vector<140x128xbf16>
    %c3 = arith.constant 3 : index
    %c0_103 = arith.constant 0 : index
    %c0_104 = arith.constant 0 : index
    %95 = vector.load %arg4[%c3, %c0_103, %c0_104] : memref<25x128x128xbf16, #tpu.memory_space<vmem>>, vector<1x128x128xbf16>
    %96 = vector.shape_cast %95 : vector<1x128x128xbf16> to vector<128x128xbf16>
    %cst_105 = arith.constant dense<0.000000e+00> : vector<140x128xf32>
    %97 = tpu.matmul %94, %96, %cst_105 {dimension_numbers = #tpu.dot_dimension_numbers<[1], [0], [0], [1], [0, 0, 1, 1], [], []>} : vector<140x128xbf16>, vector<128x128xbf16>, vector<140x128xf32> -> vector<140x128xf32>
    %98 = arith.addf %93, %97 : vector<140x128xf32>
    %c4 = arith.constant 4 : index
    %c0_106 = arith.constant 0 : index
    %99 = vector.load %arg16[%c4, %c0_106] : memref<200x128xbf16, #tpu.memory_space<vmem>>, vector<140x128xbf16>
    %c4_107 = arith.constant 4 : index
    %c0_108 = arith.constant 0 : index
    %c0_109 = arith.constant 0 : index
    %100 = vector.load %arg4[%c4_107, %c0_108, %c0_109] : memref<25x128x128xbf16, #tpu.memory_space<vmem>>, vector<1x128x128xbf16>
    %101 = vector.shape_cast %100 : vector<1x128x128xbf16> to vector<128x128xbf16>
    %cst_110 = arith.constant dense<0.000000e+00> : vector<140x128xf32>
    %102 = tpu.matmul %99, %101, %cst_110 {dimension_numbers = #tpu.dot_dimension_numbers<[1], [0], [0], [1], [0, 0, 1, 1], [], []>} : vector<140x128xbf16>, vector<128x128xbf16>, vector<140x128xf32> -> vector<140x128xf32>
    %103 = arith.addf %98, %102 : vector<140x128xf32>
    %c14_111 = arith.constant 14 : index
    %c0_112 = arith.constant 0 : index
    %104 = vector.load %arg16[%c14_111, %c0_112] : memref<200x128xbf16, #tpu.memory_space<vmem>>, vector<140x128xbf16>
    %c5 = arith.constant 5 : index
    %c0_113 = arith.constant 0 : index
    %c0_114 = arith.constant 0 : index
    %105 = vector.load %arg4[%c5, %c0_113, %c0_114] : memref<25x128x128xbf16, #tpu.memory_space<vmem>>, vector<1x128x128xbf16>
    %106 = vector.shape_cast %105 : vector<1x128x128xbf16> to vector<128x128xbf16>
    %cst_115 = arith.constant dense<0.000000e+00> : vector<140x128xf32>
    %107 = tpu.matmul %104, %106, %cst_115 {dimension_numbers = #tpu.dot_dimension_numbers<[1], [0], [0], [1], [0, 0, 1, 1], [], []>} : vector<140x128xbf16>, vector<128x128xbf16>, vector<140x128xf32> -> vector<140x128xf32>
    %108 = arith.addf %103, %107 : vector<140x128xf32>
    %c14_116 = arith.constant 14 : index
    %c0_117 = arith.constant 0 : index
    %109 = vector.load %arg17[%c14_116, %c0_117] : memref<200x128xbf16, #tpu.memory_space<vmem>>, vector<140x128xbf16>
    %c6 = arith.constant 6 : index
    %c0_118 = arith.constant 0 : index
    %c0_119 = arith.constant 0 : index
    %110 = vector.load %arg4[%c6, %c0_118, %c0_119] : memref<25x128x128xbf16, #tpu.memory_space<vmem>>, vector<1x128x128xbf16>
    %111 = vector.shape_cast %110 : vector<1x128x128xbf16> to vector<128x128xbf16>
    %cst_120 = arith.constant dense<0.000000e+00> : vector<140x128xf32>
    %112 = tpu.matmul %109, %111, %cst_120 {dimension_numbers = #tpu.dot_dimension_numbers<[1], [0], [0], [1], [0, 0, 1, 1], [], []>} : vector<140x128xbf16>, vector<128x128xbf16>, vector<140x128xf32> -> vector<140x128xf32>
    %113 = arith.addf %108, %112 : vector<140x128xf32>
    %c16 = arith.constant 16 : index
    %c0_121 = arith.constant 0 : index
    %114 = vector.load %arg16[%c16, %c0_121] : memref<200x128xbf16, #tpu.memory_space<vmem>>, vector<140x128xbf16>
    %c7 = arith.constant 7 : index
    %c0_122 = arith.constant 0 : index
    %c0_123 = arith.constant 0 : index
    %115 = vector.load %arg4[%c7, %c0_122, %c0_123] : memref<25x128x128xbf16, #tpu.memory_space<vmem>>, vector<1x128x128xbf16>
    %116 = vector.shape_cast %115 : vector<1x128x128xbf16> to vector<128x128xbf16>
    %cst_124 = arith.constant dense<0.000000e+00> : vector<140x128xf32>
    %117 = tpu.matmul %114, %116, %cst_124 {dimension_numbers = #tpu.dot_dimension_numbers<[1], [0], [0], [1], [0, 0, 1, 1], [], []>} : vector<140x128xbf16>, vector<128x128xbf16>, vector<140x128xf32> -> vector<140x128xf32>
    %118 = arith.addf %113, %117 : vector<140x128xf32>
    %c16_125 = arith.constant 16 : index
    %c0_126 = arith.constant 0 : index
    %119 = vector.load %arg17[%c16_125, %c0_126] : memref<200x128xbf16, #tpu.memory_space<vmem>>, vector<140x128xbf16>
    %c8 = arith.constant 8 : index
    %c0_127 = arith.constant 0 : index
    %c0_128 = arith.constant 0 : index
    %120 = vector.load %arg4[%c8, %c0_127, %c0_128] : memref<25x128x128xbf16, #tpu.memory_space<vmem>>, vector<1x128x128xbf16>
    %121 = vector.shape_cast %120 : vector<1x128x128xbf16> to vector<128x128xbf16>
    %cst_129 = arith.constant dense<0.000000e+00> : vector<140x128xf32>
    %122 = tpu.matmul %119, %121, %cst_129 {dimension_numbers = #tpu.dot_dimension_numbers<[1], [0], [0], [1], [0, 0, 1, 1], [], []>} : vector<140x128xbf16>, vector<128x128xbf16>, vector<140x128xf32> -> vector<140x128xf32>
    %123 = arith.addf %118, %122 : vector<140x128xf32>
    %c18 = arith.constant 18 : index
    %c0_130 = arith.constant 0 : index
    %124 = vector.load %arg16[%c18, %c0_130] : memref<200x128xbf16, #tpu.memory_space<vmem>>, vector<140x128xbf16>
    %c9 = arith.constant 9 : index
    %c0_131 = arith.constant 0 : index
    %c0_132 = arith.constant 0 : index
    %125 = vector.load %arg4[%c9, %c0_131, %c0_132] : memref<25x128x128xbf16, #tpu.memory_space<vmem>>, vector<1x128x128xbf16>
    %126 = vector.shape_cast %125 : vector<1x128x128xbf16> to vector<128x128xbf16>
    %cst_133 = arith.constant dense<0.000000e+00> : vector<140x128xf32>
    %127 = tpu.matmul %124, %126, %cst_133 {dimension_numbers = #tpu.dot_dimension_numbers<[1], [0], [0], [1], [0, 0, 1, 1], [], []>} : vector<140x128xbf16>, vector<128x128xbf16>, vector<140x128xf32> -> vector<140x128xf32>
    %128 = arith.addf %123, %127 : vector<140x128xf32>
    %c28_134 = arith.constant 28 : index
    %c0_135 = arith.constant 0 : index
    %129 = vector.load %arg16[%c28_134, %c0_135] : memref<200x128xbf16, #tpu.memory_space<vmem>>, vector<140x128xbf16>
    %c10 = arith.constant 10 : index
    %c0_136 = arith.constant 0 : index
    %c0_137 = arith.constant 0 : index
    %130 = vector.load %arg4[%c10, %c0_136, %c0_137] : memref<25x128x128xbf16, #tpu.memory_space<vmem>>, vector<1x128x128xbf16>
    %131 = vector.shape_cast %130 : vector<1x128x128xbf16> to vector<128x128xbf16>
    %cst_138 = arith.constant dense<0.000000e+00> : vector<140x128xf32>
    %132 = tpu.matmul %129, %131, %cst_138 {dimension_numbers = #tpu.dot_dimension_numbers<[1], [0], [0], [1], [0, 0, 1, 1], [], []>} : vector<140x128xbf16>, vector<128x128xbf16>, vector<140x128xf32> -> vector<140x128xf32>
    %133 = arith.addf %128, %132 : vector<140x128xf32>
    %c28_139 = arith.constant 28 : index
    %c0_140 = arith.constant 0 : index
    %134 = vector.load %arg17[%c28_139, %c0_140] : memref<200x128xbf16, #tpu.memory_space<vmem>>, vector<140x128xbf16>
    %c11 = arith.constant 11 : index
    %c0_141 = arith.constant 0 : index
    %c0_142 = arith.constant 0 : index
    %135 = vector.load %arg4[%c11, %c0_141, %c0_142] : memref<25x128x128xbf16, #tpu.memory_space<vmem>>, vector<1x128x128xbf16>
    %136 = vector.shape_cast %135 : vector<1x128x128xbf16> to vector<128x128xbf16>
    %cst_143 = arith.constant dense<0.000000e+00> : vector<140x128xf32>
    %137 = tpu.matmul %134, %136, %cst_143 {dimension_numbers = #tpu.dot_dimension_numbers<[1], [0], [0], [1], [0, 0, 1, 1], [], []>} : vector<140x128xbf16>, vector<128x128xbf16>, vector<140x128xf32> -> vector<140x128xf32>
    %138 = arith.addf %133, %137 : vector<140x128xf32>
    %c30 = arith.constant 30 : index
    %c0_144 = arith.constant 0 : index
    %139 = vector.load %arg16[%c30, %c0_144] : memref<200x128xbf16, #tpu.memory_space<vmem>>, vector<140x128xbf16>
    %c12 = arith.constant 12 : index
    %c0_145 = arith.constant 0 : index
    %c0_146 = arith.constant 0 : index
    %140 = vector.load %arg4[%c12, %c0_145, %c0_146] : memref<25x128x128xbf16, #tpu.memory_space<vmem>>, vector<1x128x128xbf16>
    %141 = vector.shape_cast %140 : vector<1x128x128xbf16> to vector<128x128xbf16>
    %cst_147 = arith.constant dense<0.000000e+00> : vector<140x128xf32>
    %142 = tpu.matmul %139, %141, %cst_147 {dimension_numbers = #tpu.dot_dimension_numbers<[1], [0], [0], [1], [0, 0, 1, 1], [], []>} : vector<140x128xbf16>, vector<128x128xbf16>, vector<140x128xf32> -> vector<140x128xf32>
    %143 = arith.addf %138, %142 : vector<140x128xf32>
    %c30_148 = arith.constant 30 : index
    %c0_149 = arith.constant 0 : index
    %144 = vector.load %arg17[%c30_148, %c0_149] : memref<200x128xbf16, #tpu.memory_space<vmem>>, vector<140x128xbf16>
    %c13 = arith.constant 13 : index
    %c0_150 = arith.constant 0 : index
    %c0_151 = arith.constant 0 : index
    %145 = vector.load %arg4[%c13, %c0_150, %c0_151] : memref<25x128x128xbf16, #tpu.memory_space<vmem>>, vector<1x128x128xbf16>
    %146 = vector.shape_cast %145 : vector<1x128x128xbf16> to vector<128x128xbf16>
    %cst_152 = arith.constant dense<0.000000e+00> : vector<140x128xf32>
    %147 = tpu.matmul %144, %146, %cst_152 {dimension_numbers = #tpu.dot_dimension_numbers<[1], [0], [0], [1], [0, 0, 1, 1], [], []>} : vector<140x128xbf16>, vector<128x128xbf16>, vector<140x128xf32> -> vector<140x128xf32>
    %148 = arith.addf %143, %147 : vector<140x128xf32>
    %c32 = arith.constant 32 : index
    %c0_153 = arith.constant 0 : index
    %149 = vector.load %arg16[%c32, %c0_153] : memref<200x128xbf16, #tpu.memory_space<vmem>>, vector<140x128xbf16>
    %c14_154 = arith.constant 14 : index
    %c0_155 = arith.constant 0 : index
    %c0_156 = arith.constant 0 : index
    %150 = vector.load %arg4[%c14_154, %c0_155, %c0_156] : memref<25x128x128xbf16, #tpu.memory_space<vmem>>, vector<1x128x128xbf16>
    %151 = vector.shape_cast %150 : vector<1x128x128xbf16> to vector<128x128xbf16>
    %cst_157 = arith.constant dense<0.000000e+00> : vector<140x128xf32>
    %152 = tpu.matmul %149, %151, %cst_157 {dimension_numbers = #tpu.dot_dimension_numbers<[1], [0], [0], [1], [0, 0, 1, 1], [], []>} : vector<140x128xbf16>, vector<128x128xbf16>, vector<140x128xf32> -> vector<140x128xf32>
    %153 = arith.addf %148, %152 : vector<140x128xf32>
    %c42_158 = arith.constant 42 : index
    %c0_159 = arith.constant 0 : index
    %154 = vector.load %arg16[%c42_158, %c0_159] : memref<200x128xbf16, #tpu.memory_space<vmem>>, vector<140x128xbf16>
    %c15 = arith.constant 15 : index
    %c0_160 = arith.constant 0 : index
    %c0_161 = arith.constant 0 : index
    %155 = vector.load %arg4[%c15, %c0_160, %c0_161] : memref<25x128x128xbf16, #tpu.memory_space<vmem>>, vector<1x128x128xbf16>
    %156 = vector.shape_cast %155 : vector<1x128x128xbf16> to vector<128x128xbf16>
    %cst_162 = arith.constant dense<0.000000e+00> : vector<140x128xf32>
    %157 = tpu.matmul %154, %156, %cst_162 {dimension_numbers = #tpu.dot_dimension_numbers<[1], [0], [0], [1], [0, 0, 1, 1], [], []>} : vector<140x128xbf16>, vector<128x128xbf16>, vector<140x128xf32> -> vector<140x128xf32>
    %158 = arith.addf %153, %157 : vector<140x128xf32>
    %c42_163 = arith.constant 42 : index
    %c0_164 = arith.constant 0 : index
    %159 = vector.load %arg17[%c42_163, %c0_164] : memref<200x128xbf16, #tpu.memory_space<vmem>>, vector<140x128xbf16>
    %c16_165 = arith.constant 16 : index
    %c0_166 = arith.constant 0 : index
    %c0_167 = arith.constant 0 : index
    %160 = vector.load %arg4[%c16_165, %c0_166, %c0_167] : memref<25x128x128xbf16, #tpu.memory_space<vmem>>, vector<1x128x128xbf16>
    %161 = vector.shape_cast %160 : vector<1x128x128xbf16> to vector<128x128xbf16>
    %cst_168 = arith.constant dense<0.000000e+00> : vector<140x128xf32>
    %162 = tpu.matmul %159, %161, %cst_168 {dimension_numbers = #tpu.dot_dimension_numbers<[1], [0], [0], [1], [0, 0, 1, 1], [], []>} : vector<140x128xbf16>, vector<128x128xbf16>, vector<140x128xf32> -> vector<140x128xf32>
    %163 = arith.addf %158, %162 : vector<140x128xf32>
    %c44 = arith.constant 44 : index
    %c0_169 = arith.constant 0 : index
    %164 = vector.load %arg16[%c44, %c0_169] : memref<200x128xbf16, #tpu.memory_space<vmem>>, vector<140x128xbf16>
    %c17 = arith.constant 17 : index
    %c0_170 = arith.constant 0 : index
    %c0_171 = arith.constant 0 : index
    %165 = vector.load %arg4[%c17, %c0_170, %c0_171] : memref<25x128x128xbf16, #tpu.memory_space<vmem>>, vector<1x128x128xbf16>
    %166 = vector.shape_cast %165 : vector<1x128x128xbf16> to vector<128x128xbf16>
    %cst_172 = arith.constant dense<0.000000e+00> : vector<140x128xf32>
    %167 = tpu.matmul %164, %166, %cst_172 {dimension_numbers = #tpu.dot_dimension_numbers<[1], [0], [0], [1], [0, 0, 1, 1], [], []>} : vector<140x128xbf16>, vector<128x128xbf16>, vector<140x128xf32> -> vector<140x128xf32>
    %168 = arith.addf %163, %167 : vector<140x128xf32>
    %c44_173 = arith.constant 44 : index
    %c0_174 = arith.constant 0 : index
    %169 = vector.load %arg17[%c44_173, %c0_174] : memref<200x128xbf16, #tpu.memory_space<vmem>>, vector<140x128xbf16>
    %c18_175 = arith.constant 18 : index
    %c0_176 = arith.constant 0 : index
    %c0_177 = arith.constant 0 : index
    %170 = vector.load %arg4[%c18_175, %c0_176, %c0_177] : memref<25x128x128xbf16, #tpu.memory_space<vmem>>, vector<1x128x128xbf16>
    %171 = vector.shape_cast %170 : vector<1x128x128xbf16> to vector<128x128xbf16>
    %cst_178 = arith.constant dense<0.000000e+00> : vector<140x128xf32>
    %172 = tpu.matmul %169, %171, %cst_178 {dimension_numbers = #tpu.dot_dimension_numbers<[1], [0], [0], [1], [0, 0, 1, 1], [], []>} : vector<140x128xbf16>, vector<128x128xbf16>, vector<140x128xf32> -> vector<140x128xf32>
    %173 = arith.addf %168, %172 : vector<140x128xf32>
    %c46 = arith.constant 46 : index
    %c0_179 = arith.constant 0 : index
    %174 = vector.load %arg16[%c46, %c0_179] : memref<200x128xbf16, #tpu.memory_space<vmem>>, vector<140x128xbf16>
    %c19 = arith.constant 19 : index
    %c0_180 = arith.constant 0 : index
    %c0_181 = arith.constant 0 : index
    %175 = vector.load %arg4[%c19, %c0_180, %c0_181] : memref<25x128x128xbf16, #tpu.memory_space<vmem>>, vector<1x128x128xbf16>
    %176 = vector.shape_cast %175 : vector<1x128x128xbf16> to vector<128x128xbf16>
    %cst_182 = arith.constant dense<0.000000e+00> : vector<140x128xf32>
    %177 = tpu.matmul %174, %176, %cst_182 {dimension_numbers = #tpu.dot_dimension_numbers<[1], [0], [0], [1], [0, 0, 1, 1], [], []>} : vector<140x128xbf16>, vector<128x128xbf16>, vector<140x128xf32> -> vector<140x128xf32>
    %178 = arith.addf %173, %177 : vector<140x128xf32>
    %c56_183 = arith.constant 56 : index
    %c0_184 = arith.constant 0 : index
    %179 = vector.load %arg16[%c56_183, %c0_184] : memref<200x128xbf16, #tpu.memory_space<vmem>>, vector<140x128xbf16>
    %c20 = arith.constant 20 : index
    %c0_185 = arith.constant 0 : index
    %c0_186 = arith.constant 0 : index
    %180 = vector.load %arg4[%c20, %c0_185, %c0_186] : memref<25x128x128xbf16, #tpu.memory_space<vmem>>, vector<1x128x128xbf16>
    %181 = vector.shape_cast %180 : vector<1x128x128xbf16> to vector<128x128xbf16>
    %cst_187 = arith.constant dense<0.000000e+00> : vector<140x128xf32>
    %182 = tpu.matmul %179, %181, %cst_187 {dimension_numbers = #tpu.dot_dimension_numbers<[1], [0], [0], [1], [0, 0, 1, 1], [], []>} : vector<140x128xbf16>, vector<128x128xbf16>, vector<140x128xf32> -> vector<140x128xf32>
    %183 = arith.addf %178, %182 : vector<140x128xf32>
    %c56_188 = arith.constant 56 : index
    %c0_189 = arith.constant 0 : index
    %184 = vector.load %arg17[%c56_188, %c0_189] : memref<200x128xbf16, #tpu.memory_space<vmem>>, vector<140x128xbf16>
    %c21 = arith.constant 21 : index
    %c0_190 = arith.constant 0 : index
    %c0_191 = arith.constant 0 : index
    %185 = vector.load %arg4[%c21, %c0_190, %c0_191] : memref<25x128x128xbf16, #tpu.memory_space<vmem>>, vector<1x128x128xbf16>
    %186 = vector.shape_cast %185 : vector<1x128x128xbf16> to vector<128x128xbf16>
    %cst_192 = arith.constant dense<0.000000e+00> : vector<140x128xf32>
    %187 = tpu.matmul %184, %186, %cst_192 {dimension_numbers = #tpu.dot_dimension_numbers<[1], [0], [0], [1], [0, 0, 1, 1], [], []>} : vector<140x128xbf16>, vector<128x128xbf16>, vector<140x128xf32> -> vector<140x128xf32>
    %188 = arith.addf %183, %187 : vector<140x128xf32>
    %c58 = arith.constant 58 : index
    %c0_193 = arith.constant 0 : index
    %189 = vector.load %arg16[%c58, %c0_193] : memref<200x128xbf16, #tpu.memory_space<vmem>>, vector<140x128xbf16>
    %c22 = arith.constant 22 : index
    %c0_194 = arith.constant 0 : index
    %c0_195 = arith.constant 0 : index
    %190 = vector.load %arg4[%c22, %c0_194, %c0_195] : memref<25x128x128xbf16, #tpu.memory_space<vmem>>, vector<1x128x128xbf16>
    %191 = vector.shape_cast %190 : vector<1x128x128xbf16> to vector<128x128xbf16>
    %cst_196 = arith.constant dense<0.000000e+00> : vector<140x128xf32>
    %192 = tpu.matmul %189, %191, %cst_196 {dimension_numbers = #tpu.dot_dimension_numbers<[1], [0], [0], [1], [0, 0, 1, 1], [], []>} : vector<140x128xbf16>, vector<128x128xbf16>, vector<140x128xf32> -> vector<140x128xf32>
    %193 = arith.addf %188, %192 : vector<140x128xf32>
    %c58_197 = arith.constant 58 : index
    %c0_198 = arith.constant 0 : index
    %194 = vector.load %arg17[%c58_197, %c0_198] : memref<200x128xbf16, #tpu.memory_space<vmem>>, vector<140x128xbf16>
    %c23 = arith.constant 23 : index
    %c0_199 = arith.constant 0 : index
    %c0_200 = arith.constant 0 : index
    %195 = vector.load %arg4[%c23, %c0_199, %c0_200] : memref<25x128x128xbf16, #tpu.memory_space<vmem>>, vector<1x128x128xbf16>
    %196 = vector.shape_cast %195 : vector<1x128x128xbf16> to vector<128x128xbf16>
    %cst_201 = arith.constant dense<0.000000e+00> : vector<140x128xf32>
    %197 = tpu.matmul %194, %196, %cst_201 {dimension_numbers = #tpu.dot_dimension_numbers<[1], [0], [0], [1], [0, 0, 1, 1], [], []>} : vector<140x128xbf16>, vector<128x128xbf16>, vector<140x128xf32> -> vector<140x128xf32>
    %198 = arith.addf %193, %197 : vector<140x128xf32>
    %c60 = arith.constant 60 : index
    %c0_202 = arith.constant 0 : index
    %199 = vector.load %arg16[%c60, %c0_202] : memref<200x128xbf16, #tpu.memory_space<vmem>>, vector<140x128xbf16>
    %c24 = arith.constant 24 : index
    %c0_203 = arith.constant 0 : index
    %c0_204 = arith.constant 0 : index
    %200 = vector.load %arg4[%c24, %c0_203, %c0_204] : memref<25x128x128xbf16, #tpu.memory_space<vmem>>, vector<1x128x128xbf16>
    %201 = vector.shape_cast %200 : vector<1x128x128xbf16> to vector<128x128xbf16>
    %cst_205 = arith.constant dense<0.000000e+00> : vector<140x128xf32>
    %202 = tpu.matmul %199, %201, %cst_205 {dimension_numbers = #tpu.dot_dimension_numbers<[1], [0], [0], [1], [0, 0, 1, 1], [], []>} : vector<140x128xbf16>, vector<128x128xbf16>, vector<140x128xf32> -> vector<140x128xf32>
    %203 = arith.addf %198, %202 : vector<140x128xf32>
    %c0_206 = arith.constant 0 : index
    %c0_207 = arith.constant 0 : index
    %204 = vector.load %arg5[%c0_206, %c0_207] : memref<1x128xf32, #tpu.memory_space<vmem>>, vector<1x128xf32>
    %205 = vector.broadcast %204 : vector<1x128xf32> to vector<140x128xf32>
    %206 = arith.addf %203, %205 : vector<140x128xf32>
    %cst_208 = arith.constant 0.000000e+00 : f32
    %207 = vector.broadcast %cst_208 : f32 to vector<140x128xf32>
    %208 = arith.maximumf %206, %207 : vector<140x128xf32>
    %c0_209 = arith.constant 0 : index
    %c0_210 = arith.constant 0 : index
    %209 = vector.load %arg18[%c0_209, %c0_210] : memref<144x128xf32, #tpu.memory_space<vmem>>, vector<140x128xf32>
    tpu.vector_store %arg18[%c0_209, %c0_210], %208 {strides = array<i32>} : memref<144x128xf32, #tpu.memory_space<vmem>>, vector<140x128xf32>,
    %c0_211 = arith.constant 0 : index
    %c0_212 = arith.constant 0 : index
    %210 = tpu.strided_load %arg18[%c0_211, %c0_212] {strides = array<i32: 2, 1>} : memref<144x128xf32, #tpu.memory_space<vmem>>, vector<70x128xf32>
    %c1_213 = arith.constant 1 : index
    %c0_214 = arith.constant 0 : index
    %211 = tpu.strided_load %arg18[%c1_213, %c0_214] {strides = array<i32: 2, 1>} : memref<144x128xf32, #tpu.memory_space<vmem>>, vector<70x128xf32>
    %212 = arith.maximumf %210, %211 : vector<70x128xf32>
    %c0_215 = arith.constant 0 : index
    %c0_216 = arith.constant 0 : index
    %213 = vector.load %arg19[%c0_215, %c0_216] : memref<72x128xf32, #tpu.memory_space<vmem>>, vector<70x128xf32>
    tpu.vector_store %arg19[%c0_215, %c0_216], %212 {strides = array<i32>} : memref<72x128xf32, #tpu.memory_space<vmem>>, vector<70x128xf32>,
    %c0_217 = arith.constant 0 : index
    %c0_218 = arith.constant 0 : index
    %214 = vector.load %arg19[%c0_217, %c0_218] : memref<72x128xf32, #tpu.memory_space<vmem>>, vector<5x128xf32>
    %c7_219 = arith.constant 7 : index
    %c0_220 = arith.constant 0 : index
    %215 = vector.load %arg19[%c7_219, %c0_220] : memref<72x128xf32, #tpu.memory_space<vmem>>, vector<5x128xf32>
    %216 = arith.maximumf %214, %215 : vector<5x128xf32>
    %c0_221 = arith.constant 0 : index
    %c0_222 = arith.constant 0 : index
    %217 = vector.load %arg20[%c0_221, %c0_222] : memref<40x128xf32, #tpu.memory_space<vmem>>, vector<5x128xf32>
    tpu.vector_store %arg20[%c0_221, %c0_222], %216 {strides = array<i32>} : memref<40x128xf32, #tpu.memory_space<vmem>>, vector<5x128xf32>,
    %c14_223 = arith.constant 14 : index
    %c0_224 = arith.constant 0 : index
    %218 = vector.load %arg19[%c14_223, %c0_224] : memref<72x128xf32, #tpu.memory_space<vmem>>, vector<5x128xf32>
    %c21_225 = arith.constant 21 : index
    %c0_226 = arith.constant 0 : index
    %219 = vector.load %arg19[%c21_225, %c0_226] : memref<72x128xf32, #tpu.memory_space<vmem>>, vector<5x128xf32>
    %220 = arith.maximumf %218, %219 : vector<5x128xf32>
    %c8_227 = arith.constant 8 : index
    %c0_228 = arith.constant 0 : index
    %221 = vector.load %arg20[%c8_227, %c0_228] : memref<40x128xf32, #tpu.memory_space<vmem>>, vector<5x128xf32>
    tpu.vector_store %arg20[%c8_227, %c0_228], %220 {strides = array<i32>} : memref<40x128xf32, #tpu.memory_space<vmem>>, vector<5x128xf32>,
    %c28_229 = arith.constant 28 : index
    %c0_230 = arith.constant 0 : index
    %222 = vector.load %arg19[%c28_229, %c0_230] : memref<72x128xf32, #tpu.memory_space<vmem>>, vector<5x128xf32>
    %c35 = arith.constant 35 : index
    %c0_231 = arith.constant 0 : index
    %223 = vector.load %arg19[%c35, %c0_231] : memref<72x128xf32, #tpu.memory_space<vmem>>, vector<5x128xf32>
    %224 = arith.maximumf %222, %223 : vector<5x128xf32>
    %c16_232 = arith.constant 16 : index
    %c0_233 = arith.constant 0 : index
    %225 = vector.load %arg20[%c16_232, %c0_233] : memref<40x128xf32, #tpu.memory_space<vmem>>, vector<5x128xf32>
    tpu.vector_store %arg20[%c16_232, %c0_233], %224 {strides = array<i32>} : memref<40x128xf32, #tpu.memory_space<vmem>>, vector<5x128xf32>,
    %c42_234 = arith.constant 42 : index
    %c0_235 = arith.constant 0 : index
    %226 = vector.load %arg19[%c42_234, %c0_235] : memref<72x128xf32, #tpu.memory_space<vmem>>, vector<5x128xf32>
    %c49 = arith.constant 49 : index
    %c0_236 = arith.constant 0 : index
    %227 = vector.load %arg19[%c49, %c0_236] : memref<72x128xf32, #tpu.memory_space<vmem>>, vector<5x128xf32>
    %228 = arith.maximumf %226, %227 : vector<5x128xf32>
    %c24_237 = arith.constant 24 : index
    %c0_238 = arith.constant 0 : index
    %229 = vector.load %arg20[%c24_237, %c0_238] : memref<40x128xf32, #tpu.memory_space<vmem>>, vector<5x128xf32>
    tpu.vector_store %arg20[%c24_237, %c0_238], %228 {strides = array<i32>} : memref<40x128xf32, #tpu.memory_space<vmem>>, vector<5x128xf32>,
    %c56_239 = arith.constant 56 : index
    %c0_240 = arith.constant 0 : index
    %230 = vector.load %arg19[%c56_239, %c0_240] : memref<72x128xf32, #tpu.memory_space<vmem>>, vector<5x128xf32>
    %c63 = arith.constant 63 : index
    %c0_241 = arith.constant 0 : index
    %231 = vector.load %arg19[%c63, %c0_241] : memref<72x128xf32, #tpu.memory_space<vmem>>, vector<5x128xf32>
    %232 = arith.maximumf %230, %231 : vector<5x128xf32>
    %c32_242 = arith.constant 32 : index
    %c0_243 = arith.constant 0 : index
    %233 = vector.load %arg20[%c32_242, %c0_243] : memref<40x128xf32, #tpu.memory_space<vmem>>, vector<5x128xf32>
    tpu.vector_store %arg20[%c32_242, %c0_243], %232 {strides = array<i32>} : memref<40x128xf32, #tpu.memory_space<vmem>>, vector<5x128xf32>,
    %c0_244 = arith.constant 0 : index
    %c0_245 = arith.constant 0 : index
    %234 = vector.load %arg7[%c0_244, %c0_245] : memref<1x128xf32, #tpu.memory_space<vmem>>, vector<1x128xf32>
    %c0_246 = arith.constant 0 : index
    %c0_247 = arith.constant 0 : index
    %235 = vector.load %arg20[%c0_246, %c0_247] : memref<40x128xf32, #tpu.memory_space<vmem>>, vector<1x128xf32>
    %236 = arith.truncf %235 : vector<1x128xf32> to vector<1x128xbf16>
    %c0_248 = arith.constant 0 : index
    %c0_249 = arith.constant 0 : index
    %c0_250 = arith.constant 0 : index
    %237 = vector.load %arg6[%c0_248, %c0_249, %c0_250] : memref<25x128x128xbf16, #tpu.memory_space<vmem>>, vector<1x128x128xbf16>
    %238 = vector.shape_cast %237 : vector<1x128x128xbf16> to vector<128x128xbf16>
    %cst_251 = arith.constant dense<0.000000e+00> : vector<1x128xf32>
    %239 = tpu.matmul %236, %238, %cst_251 {dimension_numbers = #tpu.dot_dimension_numbers<[1], [0], [0], [1], [0, 0, 1, 1], [], []>} : vector<1x128xbf16>, vector<128x128xbf16>, vector<1x128xf32> -> vector<1x128xf32>
    %240 = arith.addf %234, %239 : vector<1x128xf32>
    %c1_252 = arith.constant 1 : index
    %c0_253 = arith.constant 0 : index
    %241 = vector.load %arg20[%c1_252, %c0_253] : memref<40x128xf32, #tpu.memory_space<vmem>>, vector<1x128xf32>
    %242 = arith.truncf %241 : vector<1x128xf32> to vector<1x128xbf16>
    %c1_254 = arith.constant 1 : index
    %c0_255 = arith.constant 0 : index
    %c0_256 = arith.constant 0 : index
    %243 = vector.load %arg6[%c1_254, %c0_255, %c0_256] : memref<25x128x128xbf16, #tpu.memory_space<vmem>>, vector<1x128x128xbf16>
    %244 = vector.shape_cast %243 : vector<1x128x128xbf16> to vector<128x128xbf16>
    %cst_257 = arith.constant dense<0.000000e+00> : vector<1x128xf32>
    %245 = tpu.matmul %242, %244, %cst_257 {dimension_numbers = #tpu.dot_dimension_numbers<[1], [0], [0], [1], [0, 0, 1, 1], [], []>} : vector<1x128xbf16>, vector<128x128xbf16>, vector<1x128xf32> -> vector<1x128xf32>
    %246 = arith.addf %240, %245 : vector<1x128xf32>
    %c2_258 = arith.constant 2 : index
    %c0_259 = arith.constant 0 : index
    %247 = vector.load %arg20[%c2_258, %c0_259] : memref<40x128xf32, #tpu.memory_space<vmem>>, vector<1x128xf32>
    %248 = arith.truncf %247 : vector<1x128xf32> to vector<1x128xbf16>
    %c2_260 = arith.constant 2 : index
    %c0_261 = arith.constant 0 : index
    %c0_262 = arith.constant 0 : index
    %249 = vector.load %arg6[%c2_260, %c0_261, %c0_262] : memref<25x128x128xbf16, #tpu.memory_space<vmem>>, vector<1x128x128xbf16>
    %250 = vector.shape_cast %249 : vector<1x128x128xbf16> to vector<128x128xbf16>
    %cst_263 = arith.constant dense<0.000000e+00> : vector<1x128xf32>
    %251 = tpu.matmul %248, %250, %cst_263 {dimension_numbers = #tpu.dot_dimension_numbers<[1], [0], [0], [1], [0, 0, 1, 1], [], []>} : vector<1x128xbf16>, vector<128x128xbf16>, vector<1x128xf32> -> vector<1x128xf32>
    %252 = arith.addf %246, %251 : vector<1x128xf32>
    %c3_264 = arith.constant 3 : index
    %c0_265 = arith.constant 0 : index
    %253 = vector.load %arg20[%c3_264, %c0_265] : memref<40x128xf32, #tpu.memory_space<vmem>>, vector<1x128xf32>
    %254 = arith.truncf %253 : vector<1x128xf32> to vector<1x128xbf16>
    %c3_266 = arith.constant 3 : index
    %c0_267 = arith.constant 0 : index
    %c0_268 = arith.constant 0 : index
    %255 = vector.load %arg6[%c3_266, %c0_267, %c0_268] : memref<25x128x128xbf16, #tpu.memory_space<vmem>>, vector<1x128x128xbf16>
    %256 = vector.shape_cast %255 : vector<1x128x128xbf16> to vector<128x128xbf16>
    %cst_269 = arith.constant dense<0.000000e+00> : vector<1x128xf32>
    %257 = tpu.matmul %254, %256, %cst_269 {dimension_numbers = #tpu.dot_dimension_numbers<[1], [0], [0], [1], [0, 0, 1, 1], [], []>} : vector<1x128xbf16>, vector<128x128xbf16>, vector<1x128xf32> -> vector<1x128xf32>
    %258 = arith.addf %252, %257 : vector<1x128xf32>
    %c4_270 = arith.constant 4 : index
    %c0_271 = arith.constant 0 : index
    %259 = vector.load %arg20[%c4_270, %c0_271] : memref<40x128xf32, #tpu.memory_space<vmem>>, vector<1x128xf32>
    %260 = arith.truncf %259 : vector<1x128xf32> to vector<1x128xbf16>
    %c4_272 = arith.constant 4 : index
    %c0_273 = arith.constant 0 : index
    %c0_274 = arith.constant 0 : index
    %261 = vector.load %arg6[%c4_272, %c0_273, %c0_274] : memref<25x128x128xbf16, #tpu.memory_space<vmem>>, vector<1x128x128xbf16>
    %262 = vector.shape_cast %261 : vector<1x128x128xbf16> to vector<128x128xbf16>
    %cst_275 = arith.constant dense<0.000000e+00> : vector<1x128xf32>
    %263 = tpu.matmul %260, %262, %cst_275 {dimension_numbers = #tpu.dot_dimension_numbers<[1], [0], [0], [1], [0, 0, 1, 1], [], []>} : vector<1x128xbf16>, vector<128x128xbf16>, vector<1x128xf32> -> vector<1x128xf32>
    %264 = arith.addf %258, %263 : vector<1x128xf32>
    %c8_276 = arith.constant 8 : index
    %c0_277 = arith.constant 0 : index
    %265 = vector.load %arg20[%c8_276, %c0_277] : memref<40x128xf32, #tpu.memory_space<vmem>>, vector<1x128xf32>
    %266 = arith.truncf %265 : vector<1x128xf32> to vector<1x128xbf16>
    %c5_278 = arith.constant 5 : index
    %c0_279 = arith.constant 0 : index
    %c0_280 = arith.constant 0 : index
    %267 = vector.load %arg6[%c5_278, %c0_279, %c0_280] : memref<25x128x128xbf16, #tpu.memory_space<vmem>>, vector<1x128x128xbf16>
    %268 = vector.shape_cast %267 : vector<1x128x128xbf16> to vector<128x128xbf16>
    %cst_281 = arith.constant dense<0.000000e+00> : vector<1x128xf32>
    %269 = tpu.matmul %266, %268, %cst_281 {dimension_numbers = #tpu.dot_dimension_numbers<[1], [0], [0], [1], [0, 0, 1, 1], [], []>} : vector<1x128xbf16>, vector<128x128xbf16>, vector<1x128xf32> -> vector<1x128xf32>
    %270 = arith.addf %264, %269 : vector<1x128xf32>
    %c9_282 = arith.constant 9 : index
    %c0_283 = arith.constant 0 : index
    %271 = vector.load %arg20[%c9_282, %c0_283] : memref<40x128xf32, #tpu.memory_space<vmem>>, vector<1x128xf32>
    %272 = arith.truncf %271 : vector<1x128xf32> to vector<1x128xbf16>
    %c6_284 = arith.constant 6 : index
    %c0_285 = arith.constant 0 : index
    %c0_286 = arith.constant 0 : index
    %273 = vector.load %arg6[%c6_284, %c0_285, %c0_286] : memref<25x128x128xbf16, #tpu.memory_space<vmem>>, vector<1x128x128xbf16>
    %274 = vector.shape_cast %273 : vector<1x128x128xbf16> to vector<128x128xbf16>
    %cst_287 = arith.constant dense<0.000000e+00> : vector<1x128xf32>
    %275 = tpu.matmul %272, %274, %cst_287 {dimension_numbers = #tpu.dot_dimension_numbers<[1], [0], [0], [1], [0, 0, 1, 1], [], []>} : vector<1x128xbf16>, vector<128x128xbf16>, vector<1x128xf32> -> vector<1x128xf32>
    %276 = arith.addf %270, %275 : vector<1x128xf32>
    %c10_288 = arith.constant 10 : index
    %c0_289 = arith.constant 0 : index
    %277 = vector.load %arg20[%c10_288, %c0_289] : memref<40x128xf32, #tpu.memory_space<vmem>>, vector<1x128xf32>
    %278 = arith.truncf %277 : vector<1x128xf32> to vector<1x128xbf16>
    %c7_290 = arith.constant 7 : index
    %c0_291 = arith.constant 0 : index
    %c0_292 = arith.constant 0 : index
    %279 = vector.load %arg6[%c7_290, %c0_291, %c0_292] : memref<25x128x128xbf16, #tpu.memory_space<vmem>>, vector<1x128x128xbf16>
    %280 = vector.shape_cast %279 : vector<1x128x128xbf16> to vector<128x128xbf16>
    %cst_293 = arith.constant dense<0.000000e+00> : vector<1x128xf32>
    %281 = tpu.matmul %278, %280, %cst_293 {dimension_numbers = #tpu.dot_dimension_numbers<[1], [0], [0], [1], [0, 0, 1, 1], [], []>} : vector<1x128xbf16>, vector<128x128xbf16>, vector<1x128xf32> -> vector<1x128xf32>
    %282 = arith.addf %276, %281 : vector<1x128xf32>
    %c11_294 = arith.constant 11 : index
    %c0_295 = arith.constant 0 : index
    %283 = vector.load %arg20[%c11_294, %c0_295] : memref<40x128xf32, #tpu.memory_space<vmem>>, vector<1x128xf32>
    %284 = arith.truncf %283 : vector<1x128xf32> to vector<1x128xbf16>
    %c8_296 = arith.constant 8 : index
    %c0_297 = arith.constant 0 : index
    %c0_298 = arith.constant 0 : index
    %285 = vector.load %arg6[%c8_296, %c0_297, %c0_298] : memref<25x128x128xbf16, #tpu.memory_space<vmem>>, vector<1x128x128xbf16>
    %286 = vector.shape_cast %285 : vector<1x128x128xbf16> to vector<128x128xbf16>
    %cst_299 = arith.constant dense<0.000000e+00> : vector<1x128xf32>
    %287 = tpu.matmul %284, %286, %cst_299 {dimension_numbers = #tpu.dot_dimension_numbers<[1], [0], [0], [1], [0, 0, 1, 1], [], []>} : vector<1x128xbf16>, vector<128x128xbf16>, vector<1x128xf32> -> vector<1x128xf32>
    %288 = arith.addf %282, %287 : vector<1x128xf32>
    %c12_300 = arith.constant 12 : index
    %c0_301 = arith.constant 0 : index
    %289 = vector.load %arg20[%c12_300, %c0_301] : memref<40x128xf32, #tpu.memory_space<vmem>>, vector<1x128xf32>
    %290 = arith.truncf %289 : vector<1x128xf32> to vector<1x128xbf16>
    %c9_302 = arith.constant 9 : index
    %c0_303 = arith.constant 0 : index
    %c0_304 = arith.constant 0 : index
    %291 = vector.load %arg6[%c9_302, %c0_303, %c0_304] : memref<25x128x128xbf16, #tpu.memory_space<vmem>>, vector<1x128x128xbf16>
    %292 = vector.shape_cast %291 : vector<1x128x128xbf16> to vector<128x128xbf16>
    %cst_305 = arith.constant dense<0.000000e+00> : vector<1x128xf32>
    %293 = tpu.matmul %290, %292, %cst_305 {dimension_numbers = #tpu.dot_dimension_numbers<[1], [0], [0], [1], [0, 0, 1, 1], [], []>} : vector<1x128xbf16>, vector<128x128xbf16>, vector<1x128xf32> -> vector<1x128xf32>
    %294 = arith.addf %288, %293 : vector<1x128xf32>
    %c16_306 = arith.constant 16 : index
    %c0_307 = arith.constant 0 : index
    %295 = vector.load %arg20[%c16_306, %c0_307] : memref<40x128xf32, #tpu.memory_space<vmem>>, vector<1x128xf32>
    %296 = arith.truncf %295 : vector<1x128xf32> to vector<1x128xbf16>
    %c10_308 = arith.constant 10 : index
    %c0_309 = arith.constant 0 : index
    %c0_310 = arith.constant 0 : index
    %297 = vector.load %arg6[%c10_308, %c0_309, %c0_310] : memref<25x128x128xbf16, #tpu.memory_space<vmem>>, vector<1x128x128xbf16>
    %298 = vector.shape_cast %297 : vector<1x128x128xbf16> to vector<128x128xbf16>
    %cst_311 = arith.constant dense<0.000000e+00> : vector<1x128xf32>
    %299 = tpu.matmul %296, %298, %cst_311 {dimension_numbers = #tpu.dot_dimension_numbers<[1], [0], [0], [1], [0, 0, 1, 1], [], []>} : vector<1x128xbf16>, vector<128x128xbf16>, vector<1x128xf32> -> vector<1x128xf32>
    %300 = arith.addf %294, %299 : vector<1x128xf32>
    %c17_312 = arith.constant 17 : index
    %c0_313 = arith.constant 0 : index
    %301 = vector.load %arg20[%c17_312, %c0_313] : memref<40x128xf32, #tpu.memory_space<vmem>>, vector<1x128xf32>
    %302 = arith.truncf %301 : vector<1x128xf32> to vector<1x128xbf16>
    %c11_314 = arith.constant 11 : index
    %c0_315 = arith.constant 0 : index
    %c0_316 = arith.constant 0 : index
    %303 = vector.load %arg6[%c11_314, %c0_315, %c0_316] : memref<25x128x128xbf16, #tpu.memory_space<vmem>>, vector<1x128x128xbf16>
    %304 = vector.shape_cast %303 : vector<1x128x128xbf16> to vector<128x128xbf16>
    %cst_317 = arith.constant dense<0.000000e+00> : vector<1x128xf32>
    %305 = tpu.matmul %302, %304, %cst_317 {dimension_numbers = #tpu.dot_dimension_numbers<[1], [0], [0], [1], [0, 0, 1, 1], [], []>} : vector<1x128xbf16>, vector<128x128xbf16>, vector<1x128xf32> -> vector<1x128xf32>
    %306 = arith.addf %300, %305 : vector<1x128xf32>
    %c18_318 = arith.constant 18 : index
    %c0_319 = arith.constant 0 : index
    %307 = vector.load %arg20[%c18_318, %c0_319] : memref<40x128xf32, #tpu.memory_space<vmem>>, vector<1x128xf32>
    %308 = arith.truncf %307 : vector<1x128xf32> to vector<1x128xbf16>
    %c12_320 = arith.constant 12 : index
    %c0_321 = arith.constant 0 : index
    %c0_322 = arith.constant 0 : index
    %309 = vector.load %arg6[%c12_320, %c0_321, %c0_322] : memref<25x128x128xbf16, #tpu.memory_space<vmem>>, vector<1x128x128xbf16>
    %310 = vector.shape_cast %309 : vector<1x128x128xbf16> to vector<128x128xbf16>
    %cst_323 = arith.constant dense<0.000000e+00> : vector<1x128xf32>
    %311 = tpu.matmul %308, %310, %cst_323 {dimension_numbers = #tpu.dot_dimension_numbers<[1], [0], [0], [1], [0, 0, 1, 1], [], []>} : vector<1x128xbf16>, vector<128x128xbf16>, vector<1x128xf32> -> vector<1x128xf32>
    %312 = arith.addf %306, %311 : vector<1x128xf32>
    %c19_324 = arith.constant 19 : index
    %c0_325 = arith.constant 0 : index
    %313 = vector.load %arg20[%c19_324, %c0_325] : memref<40x128xf32, #tpu.memory_space<vmem>>, vector<1x128xf32>
    %314 = arith.truncf %313 : vector<1x128xf32> to vector<1x128xbf16>
    %c13_326 = arith.constant 13 : index
    %c0_327 = arith.constant 0 : index
    %c0_328 = arith.constant 0 : index
    %315 = vector.load %arg6[%c13_326, %c0_327, %c0_328] : memref<25x128x128xbf16, #tpu.memory_space<vmem>>, vector<1x128x128xbf16>
    %316 = vector.shape_cast %315 : vector<1x128x128xbf16> to vector<128x128xbf16>
    %cst_329 = arith.constant dense<0.000000e+00> : vector<1x128xf32>
    %317 = tpu.matmul %314, %316, %cst_329 {dimension_numbers = #tpu.dot_dimension_numbers<[1], [0], [0], [1], [0, 0, 1, 1], [], []>} : vector<1x128xbf16>, vector<128x128xbf16>, vector<1x128xf32> -> vector<1x128xf32>
    %318 = arith.addf %312, %317 : vector<1x128xf32>
    %c20_330 = arith.constant 20 : index
    %c0_331 = arith.constant 0 : index
    %319 = vector.load %arg20[%c20_330, %c0_331] : memref<40x128xf32, #tpu.memory_space<vmem>>, vector<1x128xf32>
    %320 = arith.truncf %319 : vector<1x128xf32> to vector<1x128xbf16>
    %c14_332 = arith.constant 14 : index
    %c0_333 = arith.constant 0 : index
    %c0_334 = arith.constant 0 : index
    %321 = vector.load %arg6[%c14_332, %c0_333, %c0_334] : memref<25x128x128xbf16, #tpu.memory_space<vmem>>, vector<1x128x128xbf16>
    %322 = vector.shape_cast %321 : vector<1x128x128xbf16> to vector<128x128xbf16>
    %cst_335 = arith.constant dense<0.000000e+00> : vector<1x128xf32>
    %323 = tpu.matmul %320, %322, %cst_335 {dimension_numbers = #tpu.dot_dimension_numbers<[1], [0], [0], [1], [0, 0, 1, 1], [], []>} : vector<1x128xbf16>, vector<128x128xbf16>, vector<1x128xf32> -> vector<1x128xf32>
    %324 = arith.addf %318, %323 : vector<1x128xf32>
    %c24_336 = arith.constant 24 : index
    %c0_337 = arith.constant 0 : index
    %325 = vector.load %arg20[%c24_336, %c0_337] : memref<40x128xf32, #tpu.memory_space<vmem>>, vector<1x128xf32>
    %326 = arith.truncf %325 : vector<1x128xf32> to vector<1x128xbf16>
    %c15_338 = arith.constant 15 : index
    %c0_339 = arith.constant 0 : index
    %c0_340 = arith.constant 0 : index
    %327 = vector.load %arg6[%c15_338, %c0_339, %c0_340] : memref<25x128x128xbf16, #tpu.memory_space<vmem>>, vector<1x128x128xbf16>
    %328 = vector.shape_cast %327 : vector<1x128x128xbf16> to vector<128x128xbf16>
    %cst_341 = arith.constant dense<0.000000e+00> : vector<1x128xf32>
    %329 = tpu.matmul %326, %328, %cst_341 {dimension_numbers = #tpu.dot_dimension_numbers<[1], [0], [0], [1], [0, 0, 1, 1], [], []>} : vector<1x128xbf16>, vector<128x128xbf16>, vector<1x128xf32> -> vector<1x128xf32>
    %330 = arith.addf %324, %329 : vector<1x128xf32>
    %c25 = arith.constant 25 : index
    %c0_342 = arith.constant 0 : index
    %331 = vector.load %arg20[%c25, %c0_342] : memref<40x128xf32, #tpu.memory_space<vmem>>, vector<1x128xf32>
    %332 = arith.truncf %331 : vector<1x128xf32> to vector<1x128xbf16>
    %c16_343 = arith.constant 16 : index
    %c0_344 = arith.constant 0 : index
    %c0_345 = arith.constant 0 : index
    %333 = vector.load %arg6[%c16_343, %c0_344, %c0_345] : memref<25x128x128xbf16, #tpu.memory_space<vmem>>, vector<1x128x128xbf16>
    %334 = vector.shape_cast %333 : vector<1x128x128xbf16> to vector<128x128xbf16>
    %cst_346 = arith.constant dense<0.000000e+00> : vector<1x128xf32>
    %335 = tpu.matmul %332, %334, %cst_346 {dimension_numbers = #tpu.dot_dimension_numbers<[1], [0], [0], [1], [0, 0, 1, 1], [], []>} : vector<1x128xbf16>, vector<128x128xbf16>, vector<1x128xf32> -> vector<1x128xf32>
    %336 = arith.addf %330, %335 : vector<1x128xf32>
    %c26 = arith.constant 26 : index
    %c0_347 = arith.constant 0 : index
    %337 = vector.load %arg20[%c26, %c0_347] : memref<40x128xf32, #tpu.memory_space<vmem>>, vector<1x128xf32>
    %338 = arith.truncf %337 : vector<1x128xf32> to vector<1x128xbf16>
    %c17_348 = arith.constant 17 : index
    %c0_349 = arith.constant 0 : index
    %c0_350 = arith.constant 0 : index
    %339 = vector.load %arg6[%c17_348, %c0_349, %c0_350] : memref<25x128x128xbf16, #tpu.memory_space<vmem>>, vector<1x128x128xbf16>
    %340 = vector.shape_cast %339 : vector<1x128x128xbf16> to vector<128x128xbf16>
    %cst_351 = arith.constant dense<0.000000e+00> : vector<1x128xf32>
    %341 = tpu.matmul %338, %340, %cst_351 {dimension_numbers = #tpu.dot_dimension_numbers<[1], [0], [0], [1], [0, 0, 1, 1], [], []>} : vector<1x128xbf16>, vector<128x128xbf16>, vector<1x128xf32> -> vector<1x128xf32>
    %342 = arith.addf %336, %341 : vector<1x128xf32>
    %c27 = arith.constant 27 : index
    %c0_352 = arith.constant 0 : index
    %343 = vector.load %arg20[%c27, %c0_352] : memref<40x128xf32, #tpu.memory_space<vmem>>, vector<1x128xf32>
    %344 = arith.truncf %343 : vector<1x128xf32> to vector<1x128xbf16>
    %c18_353 = arith.constant 18 : index
    %c0_354 = arith.constant 0 : index
    %c0_355 = arith.constant 0 : index
    %345 = vector.load %arg6[%c18_353, %c0_354, %c0_355] : memref<25x128x128xbf16, #tpu.memory_space<vmem>>, vector<1x128x128xbf16>
    %346 = vector.shape_cast %345 : vector<1x128x128xbf16> to vector<128x128xbf16>
    %cst_356 = arith.constant dense<0.000000e+00> : vector<1x128xf32>
    %347 = tpu.matmul %344, %346, %cst_356 {dimension_numbers = #tpu.dot_dimension_numbers<[1], [0], [0], [1], [0, 0, 1, 1], [], []>} : vector<1x128xbf16>, vector<128x128xbf16>, vector<1x128xf32> -> vector<1x128xf32>
    %348 = arith.addf %342, %347 : vector<1x128xf32>
    %c28_357 = arith.constant 28 : index
    %c0_358 = arith.constant 0 : index
    %349 = vector.load %arg20[%c28_357, %c0_358] : memref<40x128xf32, #tpu.memory_space<vmem>>, vector<1x128xf32>
    %350 = arith.truncf %349 : vector<1x128xf32> to vector<1x128xbf16>
    %c19_359 = arith.constant 19 : index
    %c0_360 = arith.constant 0 : index
    %c0_361 = arith.constant 0 : index
    %351 = vector.load %arg6[%c19_359, %c0_360, %c0_361] : memref<25x128x128xbf16, #tpu.memory_space<vmem>>, vector<1x128x128xbf16>
    %352 = vector.shape_cast %351 : vector<1x128x128xbf16> to vector<128x128xbf16>
    %cst_362 = arith.constant dense<0.000000e+00> : vector<1x128xf32>
    %353 = tpu.matmul %350, %352, %cst_362 {dimension_numbers = #tpu.dot_dimension_numbers<[1], [0], [0], [1], [0, 0, 1, 1], [], []>} : vector<1x128xbf16>, vector<128x128xbf16>, vector<1x128xf32> -> vector<1x128xf32>
    %354 = arith.addf %348, %353 : vector<1x128xf32>
    %c32_363 = arith.constant 32 : index
    %c0_364 = arith.constant 0 : index
    %355 = vector.load %arg20[%c32_363, %c0_364] : memref<40x128xf32, #tpu.memory_space<vmem>>, vector<1x128xf32>
    %356 = arith.truncf %355 : vector<1x128xf32> to vector<1x128xbf16>
    %c20_365 = arith.constant 20 : index
    %c0_366 = arith.constant 0 : index
    %c0_367 = arith.constant 0 : index
    %357 = vector.load %arg6[%c20_365, %c0_366, %c0_367] : memref<25x128x128xbf16, #tpu.memory_space<vmem>>, vector<1x128x128xbf16>
    %358 = vector.shape_cast %357 : vector<1x128x128xbf16> to vector<128x128xbf16>
    %cst_368 = arith.constant dense<0.000000e+00> : vector<1x128xf32>
    %359 = tpu.matmul %356, %358, %cst_368 {dimension_numbers = #tpu.dot_dimension_numbers<[1], [0], [0], [1], [0, 0, 1, 1], [], []>} : vector<1x128xbf16>, vector<128x128xbf16>, vector<1x128xf32> -> vector<1x128xf32>
    %360 = arith.addf %354, %359 : vector<1x128xf32>
    %c33 = arith.constant 33 : index
    %c0_369 = arith.constant 0 : index
    %361 = vector.load %arg20[%c33, %c0_369] : memref<40x128xf32, #tpu.memory_space<vmem>>, vector<1x128xf32>
    %362 = arith.truncf %361 : vector<1x128xf32> to vector<1x128xbf16>
    %c21_370 = arith.constant 21 : index
    %c0_371 = arith.constant 0 : index
    %c0_372 = arith.constant 0 : index
    %363 = vector.load %arg6[%c21_370, %c0_371, %c0_372] : memref<25x128x128xbf16, #tpu.memory_space<vmem>>, vector<1x128x128xbf16>
    %364 = vector.shape_cast %363 : vector<1x128x128xbf16> to vector<128x128xbf16>
    %cst_373 = arith.constant dense<0.000000e+00> : vector<1x128xf32>
    %365 = tpu.matmul %362, %364, %cst_373 {dimension_numbers = #tpu.dot_dimension_numbers<[1], [0], [0], [1], [0, 0, 1, 1], [], []>} : vector<1x128xbf16>, vector<128x128xbf16>, vector<1x128xf32> -> vector<1x128xf32>
    %366 = arith.addf %360, %365 : vector<1x128xf32>
    %c34 = arith.constant 34 : index
    %c0_374 = arith.constant 0 : index
    %367 = vector.load %arg20[%c34, %c0_374] : memref<40x128xf32, #tpu.memory_space<vmem>>, vector<1x128xf32>
    %368 = arith.truncf %367 : vector<1x128xf32> to vector<1x128xbf16>
    %c22_375 = arith.constant 22 : index
    %c0_376 = arith.constant 0 : index
    %c0_377 = arith.constant 0 : index
    %369 = vector.load %arg6[%c22_375, %c0_376, %c0_377] : memref<25x128x128xbf16, #tpu.memory_space<vmem>>, vector<1x128x128xbf16>
    %370 = vector.shape_cast %369 : vector<1x128x128xbf16> to vector<128x128xbf16>
    %cst_378 = arith.constant dense<0.000000e+00> : vector<1x128xf32>
    %371 = tpu.matmul %368, %370, %cst_378 {dimension_numbers = #tpu.dot_dimension_numbers<[1], [0], [0], [1], [0, 0, 1, 1], [], []>} : vector<1x128xbf16>, vector<128x128xbf16>, vector<1x128xf32> -> vector<1x128xf32>
    %372 = arith.addf %366, %371 : vector<1x128xf32>
    %c35_379 = arith.constant 35 : index
    %c0_380 = arith.constant 0 : index
    %373 = vector.load %arg20[%c35_379, %c0_380] : memref<40x128xf32, #tpu.memory_space<vmem>>, vector<1x128xf32>
    %374 = arith.truncf %373 : vector<1x128xf32> to vector<1x128xbf16>
    %c23_381 = arith.constant 23 : index
    %c0_382 = arith.constant 0 : index
    %c0_383 = arith.constant 0 : index
    %375 = vector.load %arg6[%c23_381, %c0_382, %c0_383] : memref<25x128x128xbf16, #tpu.memory_space<vmem>>, vector<1x128x128xbf16>
    %376 = vector.shape_cast %375 : vector<1x128x128xbf16> to vector<128x128xbf16>
    %cst_384 = arith.constant dense<0.000000e+00> : vector<1x128xf32>
    %377 = tpu.matmul %374, %376, %cst_384 {dimension_numbers = #tpu.dot_dimension_numbers<[1], [0], [0], [1], [0, 0, 1, 1], [], []>} : vector<1x128xbf16>, vector<128x128xbf16>, vector<1x128xf32> -> vector<1x128xf32>
    %378 = arith.addf %372, %377 : vector<1x128xf32>
    %c36 = arith.constant 36 : index
    %c0_385 = arith.constant 0 : index
    %379 = vector.load %arg20[%c36, %c0_385] : memref<40x128xf32, #tpu.memory_space<vmem>>, vector<1x128xf32>
    %380 = arith.truncf %379 : vector<1x128xf32> to vector<1x128xbf16>
    %c24_386 = arith.constant 24 : index
    %c0_387 = arith.constant 0 : index
    %c0_388 = arith.constant 0 : index
    %381 = vector.load %arg6[%c24_386, %c0_387, %c0_388] : memref<25x128x128xbf16, #tpu.memory_space<vmem>>, vector<1x128x128xbf16>
    %382 = vector.shape_cast %381 : vector<1x128x128xbf16> to vector<128x128xbf16>
    %cst_389 = arith.constant dense<0.000000e+00> : vector<1x128xf32>
    %383 = tpu.matmul %380, %382, %cst_389 {dimension_numbers = #tpu.dot_dimension_numbers<[1], [0], [0], [1], [0, 0, 1, 1], [], []>} : vector<1x128xbf16>, vector<128x128xbf16>, vector<1x128xf32> -> vector<1x128xf32>
    %384 = arith.addf %378, %383 : vector<1x128xf32>
    %cst_390 = arith.constant 0.000000e+00 : f32
    %385 = vector.broadcast %cst_390 : f32 to vector<1x128xf32>
    %386 = arith.maximumf %384, %385 : vector<1x128xf32>
    %387 = arith.truncf %386 : vector<1x128xf32> to vector<1x128xbf16>
    %c0_391 = arith.constant 0 : index
    %c0_392 = arith.constant 0 : index
    %388 = vector.load %arg8[%c0_391, %c0_392] : memref<128x128xbf16, #tpu.memory_space<vmem>>, vector<128x128xbf16>
    %cst_393 = arith.constant dense<0.000000e+00> : vector<1x128xf32>
    %389 = tpu.matmul %387, %388, %cst_393 {dimension_numbers = #tpu.dot_dimension_numbers<[1], [0], [0], [1], [0, 0, 1, 1], [], []>} : vector<1x128xbf16>, vector<128x128xbf16>, vector<1x128xf32> -> vector<1x128xf32>
    %c0_394 = arith.constant 0 : index
    %c0_395 = arith.constant 0 : index
    %390 = vector.load %arg9[%c0_394, %c0_395] : memref<1x128xf32, #tpu.memory_space<vmem>>, vector<1x128xf32>
    %391 = arith.addf %389, %390 : vector<1x128xf32>
    %cst_396 = arith.constant 0.000000e+00 : f32
    %392 = vector.broadcast %cst_396 : f32 to vector<1x128xf32>
    %393 = arith.maximumf %391, %392 : vector<1x128xf32>
    %394 = arith.truncf %393 : vector<1x128xf32> to vector<1x128xbf16>
    %c0_397 = arith.constant 0 : index
    %c0_398 = arith.constant 0 : index
    %395 = vector.load %arg10[%c0_397, %c0_398] : memref<128x128xbf16, #tpu.memory_space<vmem>>, vector<128x128xbf16>
    %cst_399 = arith.constant dense<0.000000e+00> : vector<1x128xf32>
    %396 = tpu.matmul %394, %395, %cst_399 {dimension_numbers = #tpu.dot_dimension_numbers<[1], [0], [0], [1], [0, 0, 1, 1], [], []>} : vector<1x128xbf16>, vector<128x128xbf16>, vector<1x128xf32> -> vector<1x128xf32>
    %c0_400 = arith.constant 0 : index
    %c0_401 = arith.constant 0 : index
    %397 = vector.load %arg11[%c0_400, %c0_401] : memref<1x128xf32, #tpu.memory_space<vmem>>, vector<1x128xf32>
    %398 = arith.addf %396, %397 : vector<1x128xf32>
    %c0_402 = arith.constant 0 : index
    %c0_403 = arith.constant 0 : index
    %c0_404 = arith.constant 0 : index
    %399 = vector.load %arg12[%c0_402, %c0_403, %c0_404] : memref<1x1x128xf32, #tpu.memory_space<vmem>>, vector<1x1x128xf32>
    %400 = vector.shape_cast %399 : vector<1x1x128xf32> to vector<1x128xf32>
    %401 = vector.shape_cast %398 : vector<1x128xf32> to vector<1x1x128xf32>
    tpu.vector_store %arg12[%c0_402, %c0_403, %c0_404], %401 {strides = array<i32>} : memref<1x1x128xf32, #tpu.memory_space<vmem>>, vector<1x1x128xf32>,
    return
  }
  func.func @transform_0(%arg0: i32) -> (i32, i32, i32) {
    %c0_i32 = arith.constant 0 : i32
    %c0_i32_0 = arith.constant 0 : i32
    %c0_i32_1 = arith.constant 0 : i32
    return %arg0, %c0_i32, %c0_i32_0 : i32, i32, i32
  }
  func.func @transform_1(%arg0: i32) -> (i32, i32) {
    %c0_i32 = arith.constant 0 : i32
    %c0_i32_0 = arith.constant 0 : i32
    %c0_i32_1 = arith.constant 0 : i32
    return %c0_i32, %c0_i32_0 : i32, i32
  }
  func.func @transform_2(%arg0: i32) -> (i32, i32) {
    %c0_i32 = arith.constant 0 : i32
    %c0_i32_0 = arith.constant 0 : i32
    %c0_i32_1 = arith.constant 0 : i32
    return %c0_i32, %c0_i32_0 : i32, i32
  }
  func.func @transform_3(%arg0: i32) -> (i32, i32, i32) {
    %c0_i32 = arith.constant 0 : i32
    %c0_i32_0 = arith.constant 0 : i32
    %c0_i32_1 = arith.constant 0 : i32
    %c0_i32_2 = arith.constant 0 : i32
    return %c0_i32, %c0_i32_0, %c0_i32_1 : i32, i32, i32
  }
  func.func @transform_4(%arg0: i32) -> (i32, i32) {
    %c0_i32 = arith.constant 0 : i32
    %c0_i32_0 = arith.constant 0 : i32
    %c0_i32_1 = arith.constant 0 : i32
    return %c0_i32, %c0_i32_0 : i32, i32
  }
  func.func @transform_5(%arg0: i32) -> (i32, i32, i32) {
    %c0_i32 = arith.constant 0 : i32
    %c0_i32_0 = arith.constant 0 : i32
    %c0_i32_1 = arith.constant 0 : i32
    %c0_i32_2 = arith.constant 0 : i32
    return %c0_i32, %c0_i32_0, %c0_i32_1 : i32, i32, i32
  }
  func.func @transform_6(%arg0: i32) -> (i32, i32) {
    %c0_i32 = arith.constant 0 : i32
    %c0_i32_0 = arith.constant 0 : i32
    %c0_i32_1 = arith.constant 0 : i32
    return %c0_i32, %c0_i32_0 : i32, i32
  }
  func.func @transform_7(%arg0: i32) -> (i32, i32) {
    %c0_i32 = arith.constant 0 : i32
    %c0_i32_0 = arith.constant 0 : i32
    %c0_i32_1 = arith.constant 0 : i32
    return %c0_i32, %c0_i32_0 : i32, i32
  }
  func.func @transform_8(%arg0: i32) -> (i32, i32) {
    %c0_i32 = arith.constant 0 : i32
    %c0_i32_0 = arith.constant 0 : i32
    %c0_i32_1 = arith.constant 0 : i32
    return %c0_i32, %c0_i32_0 : i32, i32
  }
  func.func @transform_9(%arg0: i32) -> (i32, i32) {
    %c0_i32 = arith.constant 0 : i32
    %c0_i32_0 = arith.constant 0 : i32
    %c0_i32_1 = arith.constant 0 : i32
    return %c0_i32, %c0_i32_0 : i32, i32
  }
  func.func @transform_10(%arg0: i32) -> (i32, i32) {
    %c0_i32 = arith.constant 0 : i32
    %c0_i32_0 = arith.constant 0 : i32
    %c0_i32_1 = arith.constant 0 : i32
    return %c0_i32, %c0_i32_0 : i32, i32
  }
  func.func @transform_11(%arg0: i32) -> (i32, i32, i32) {
    %c0_i32 = arith.constant 0 : i32
    %c0_i32_0 = arith.constant 0 : i32
    %c0_i32_1 = arith.constant 0 : i32
    return %arg0, %c0_i32, %c0_i32_0 : i32, i32, i32
  }
}

</mosaic_0001>

<bundles_post_ra>
// kernel: lenet_forward.1
= control target key start
LH: loop header
LB: loop body
LE: loop exit
PB: predicated region body
PF: predicated region fallthrough
CT: control target
= control target key end

     0   :  { %16 = vsyncpa [#allocation11], 0  ;;  %s21629_s0 = inlined_call_operand.vmem [shape: bf16[2,784,128], index: 0, kind: input, shape index: {}]   ;;  %s21630_s1 = inlined_call_operand.vmem [shape: bf16[128,128], index: 1, kind: input, shape index: {}]   ;;  %s21631_s2 = inlined_call_operand.vmem [shape: f32[1,128], index: 2, kind: input, shape index: {}]   ;;  %s21632_s3 = inlined_call_operand.vmem [shape: bf16[25,128,128], index: 3, kind: input, shape index: {}]   ;;  %s21633_s4 = inlined_call_operand.vmem [shape: f32[1,128], index: 4, kind: input, shape index: {}]   ;;  %s21634_s5 = inlined_call_operand.vmem [shape: bf16[25,128,128], index: 5, kind: input, shape index: {}]   ;;  %s21635_s6 = inlined_call_operand.vmem [shape: f32[1,128], index: 6, kind: input, shape index: {}]   ;;  %s21636_s7 = inlined_call_operand.vmem [shape: bf16[128,128], index: 7, kind: input, shape index: {}]   ;;  %s21637_s8 = inlined_call_operand.vmem [shape: f32[1,128], index: 8, kind: input, shape index: {}]   ;;  %s21638_s9 = inlined_call_operand.vmem [shape: bf16[128,128], index: 9, kind: input, shape index: {}]   ;;  %s21639_s10 = inlined_call_operand.vmem [shape: f32[1,128], index: 10, kind: input, shape index: {}]   ;;  %s21640_s11 = inlined_call_operand.hbm [shape: f32[2,1,128], index: 11, kind: output, shape index: {}]  }
   0x1   :  { %18 = vsyncpa [#allocation11 + $0x1], 0  ;;  %s16852_s17 = smov 0   ;;  %s16854_s18 = smov 0  }
   0x2   :  { %s16856_s19 = smov 0   ;;  %s16858_s20 = smov 0  }
   0x3 LB: > { %s16873_s21 = sadd.s32 4294967295, %s16787_s20   ;;  %s11449_s22 = sadd.s32 4294967294, %s16787_s20   ;;  %s16787_s20 = sphi %s16858_s20, %s22024_s20   ;;  %s16783_s19 = sphi %s16856_s19, %s22023_s19   ;;  %s16779_s18 = sphi %s16854_s18, %s22022_s18   ;;  %s16775_s17 = sphi %s16852_s17, %s22021_s17  }
   0x4   : > { %s16877_s23 = sadd.s32 1, %s16787_s20   ;;  %s267_s24 = sadd.s32 1, %s16783_s19 }
   0x5   : > { %s264_s25 = ssub.s32 %s16787_s20, %s16877_s23  ;;  %p277_p0 = scmp.ne.s32.totalorder %s16783_s19, %s16779_s18 }
   0x6   : > { %p265_p1 = scmp.eq.s32.totalorder %s264_s25, 0  ;;  %p278_p2 = scmp.eq.s32.totalorder %s16873_s21, 1 }
   0x7   : > { %p283_p3 = scmp.ne.s32.totalorder %s16779_s18, %s16775_s17  ;;  %p284_p4 = scmp.eq.s32.totalorder %s11449_s22, 1 }
   0x8   : > { %s16888_s26 = scalar_select %p265_p1, %s16783_s19, %s267_s24  }
   0x9   : > { %p16890_p5 = por %p278_p2, %p277_p0  ;;  %p16894_p6 = por %p284_p4, %p283_p3 }
   0xa   : > { %p11452_p7 = scmp.ge.s32.totalorder %s16787_s20, 1  ;;  %p340_p8 = scmp.lt.s32.totalorder %s16787_s20, 3 }
   0xc   : > { %p341_p9 = pnand %p11452_p7, %p340_p8 }
   0xe   : > { %344 = sbr.rel (%p341_p9) target bundleno = 3242 (0xcaa), region = 64 }
  0x15   : > { %v16026_v0 = vld [vmem:[%s21630_s1] sm:$0xff]   ;;  %v21646_v1 = vmov 0.0   ;;  %v16027_v2 = vld [vmem:[%s21630_s1 + $0x8] sm:$0xff]   ;;  %vm16790_vm0 = vmmov 0   ;;  %p379_p10 = scmp.lt.s32.totalorder %s16873_s21, 1  ;;  %v16028_v3 = vld [vmem:[%s21630_s1 + $0x10] sm:$0xff]  }
  0x16   : > { %13834 = vmatprep.subr.bf16.mxu0 %v21646_v1  ;;  %1874 = vst [vmem:[#allocation4 + $0xc4] sm:$0xf] %v21646_v1  ;;  %14306 = vmatprep.subr.bf16.mxu1 %v21646_v1  ;;  %v16029_v4 = vld [vmem:[%s21630_s1 + $0x18] sm:$0xff]   ;;  %v16030_v5 = vld [vmem:[%s21630_s1 + $0x20] sm:$0xff]   ;;  %v16031_v6 = vld [vmem:[%s21630_s1 + $0x28] sm:$0xff]   ;;  %vm3413_vm1 = vcmask 1044480  }
  0x17   : > { %13835 = vmatpush3.bf16.msra.mxu0 %v16026_v0  ;;  %13850 = vmatprep.mubr.msk.bf16.mxu0 %vm16790_vm0, %v21646_v1  ;;  %s380_s14 = scalar_select %p379_p10, %s16873_s21, 1  ;;  %v16032_v7 = vld [vmem:[%s21630_s1 + $0x30] sm:$0xff]   ;;  %v16033_v8 = vld [vmem:[%s21630_s1 + $0x38] sm:$0xff]   ;;  %v16047_v10 = vld [vmem:[%s21632_s3 + $0x40] sm:$0xff]   ;;  %vm2686_vm2 = vcmask 1046528   ;;  %vm3131_vm3 = vcmask 1045504  }
  0x18   : > { %13836 = vmatprep.subr.bf16.mxu0 %v21646_v1  ;;  %14322 = vmatprep.mubr.msk.bf16.mxu1 %vm16790_vm0, %v21646_v1  ;;  %v16054_v13 = vld [vmem:[%s21632_s3 + $0x48] sm:$0xff]   ;;  %v16061_v20 = vld [vmem:[%s21632_s3 + $0x50] sm:$0xff]   ;;  %v16068_v31 = vld [vmem:[%s21632_s3 + $0x58] sm:$0xff]   ;;  %s12914_s15 = sshll.u32 %s16873_s21, 4  ;;  %s16791_s12 = smov [#allocation10]  }
  0x19   : > { %s15983_s22 = smul.u32 392, %s380_s14  ;;  %v16075_v38 = vld [vmem:[%s21632_s3 + $0x60] sm:$0xff]   ;;  %v16083_v43 = vld [vmem:[%s21632_s3 + $0x148] sm:$0xff]   ;;  %v16084_v48 = vld [vmem:[%s21632_s3 + $0x150] sm:$0xff]   ;;  %s21587_s25 = scalar_lea.hbm %s21640_s11, %s12914_s15 }
  0x1a   : > { %v16081_v41 = vld [vmem:[%s21632_s3 + $0x140] sm:$0xff]   ;;  %v16087_v54 = vld [vmem:[%s21632_s3 + $0x158] sm:$0xff]   ;;  %s16729_s13 = sshll.u32 %s16791_s12, 4  ;;  %s16730_s13 = int_to_ptr.vmem [resolvable:$false] %s16729_s13 }
  0x1b   : > { %13837 = vmatpush3.bf16.msra.mxu0 %v16027_v2  ;;  %s16923_s29 = scalar_lea.vmem %s21629_s0, %s15983_s22  ;;  %14307 = vmatpush3.bf16.msra.mxu1 %v16081_v41  ;;  %v17051_v42 = vld [vmem:[%s21631_s2] ss:$0 sm:$0xff]  ;;  %v16090_v2 = vld [vmem:[%s21632_s3 + $0x168] sm:$0xff]   ;;  %s16731_s22 = scalar_lea.vmem %s16730_s13, 32 }
  0x1c   : > { %13838 = vmatprep.subr.bf16.mxu0 %v21646_v1  ;;  %v16034_v9 = vld [vmem:[%s16923_s29] sm:$0xff]   ;;  %v16035_v11 = vld [vmem:[%s16923_s29 + $0x8] sm:$0xff]   ;;  %v16036_v12 = vld [vmem:[%s16923_s29 + $0x10] sm:$0xff]   ;;  %14308 = vmatprep.subr.bf16.mxu1 %v21646_v1 }
  0x1d   : > { %v16037_v14 = vld [vmem:[%s16923_s29 + $0x18] sm:$0xff]   ;;  %v16038_v15 = vld [vmem:[%s16923_s29 + $0x20] sm:$0xff]   ;;  %v16039_v16 = vld [vmem:[%s16923_s29 + $0x28] sm:$0xff]  }
  0x1e   : > { %v16040_v17 = vld [vmem:[%s16923_s29 + $0x30] sm:$0xff]   ;;  %v16041_v18 = vld [vmem:[%s16923_s29 + $0x38] sm:$0xff]   ;;  %v16042_v19 = vld [vmem:[%s16923_s29 + $0x40] sm:$0xff]  }
  0x1f   : > { %13839 = vmatpush3.bf16.msra.mxu0 %v16028_v3  ;;  %v16043_v21 = vld [vmem:[%s16923_s29 + $0x48] sm:$0xff]   ;;  %v16044_v22 = vld [vmem:[%s16923_s29 + $0x50] sm:$0xff]   ;;  %v16045_v23 = vld [vmem:[%s16923_s29 + $0x58] sm:$0xff]   ;;  %14309 = vmatpush3.bf16.msra.mxu1 %v16083_v43 }
  0x20   : > { %13840 = vmatprep.subr.bf16.mxu0 %v21646_v1  ;;  %v16046_v24 = vld [vmem:[%s16923_s29 + $0x60] sm:$0xff]   ;;  %v16048_v25 = vld [vmem:[%s16923_s29 + $0x68] sm:$0xff]   ;;  %v16049_v26 = vld [vmem:[%s16923_s29 + $0x70] sm:$0xff]   ;;  %14310 = vmatprep.subr.bf16.mxu1 %v21646_v1 }
  0x21   : > { %v16050_v27 = vld [vmem:[%s16923_s29 + $0x78] sm:$0xff]   ;;  %v16051_v28 = vld [vmem:[%s16923_s29 + $0x80] sm:$0xff]   ;;  %v16052_v29 = vld [vmem:[%s16923_s29 + $0x88] sm:$0xff]  }
  0x22   : > { %v16053_v30 = vld [vmem:[%s16923_s29 + $0x90] sm:$0xff]   ;;  %v16055_v32 = vld [vmem:[%s16923_s29 + $0x98] sm:$0xff]   ;;  %v16056_v33 = vld [vmem:[%s16923_s29 + $0xa0] sm:$0xff]  }
  0x23   : > { %13841 = vmatpush3.bf16.msra.mxu0 %v16029_v4  ;;  %v16057_v34 = vld [vmem:[%s16923_s29 + $0xa8] sm:$0xff]   ;;  %v16058_v35 = vld [vmem:[%s16923_s29 + $0xb0] sm:$0xff]   ;;  %v16059_v36 = vld [vmem:[%s16923_s29 + $0xb8] sm:$0xff]   ;;  %14311 = vmatpush3.bf16.msra.mxu1 %v16084_v48 }
  0x24   : > { %13842 = vmatprep.subr.bf16.mxu0 %v21646_v1  ;;  %v16060_v37 = vld [vmem:[%s16923_s29 + $0xc0] sm:$0xff]   ;;  %v16062_v39 = vld [vmem:[%s16923_s29 + $0xc8] sm:$0xff]   ;;  %v16063_v40 = vld [vmem:[%s16923_s29 + $0xd0] sm:$0xff]   ;;  %14312 = vmatprep.subr.bf16.mxu1 %v21646_v1 }
  0x25   : > { %v16064_v45 = vld [vmem:[%s16923_s29 + $0xd8] sm:$0xff]   ;;  %v16065_v56 = vld [vmem:[%s16923_s29 + $0xe0] sm:$0xff]  }
  0x26   : > { %v16088_v59 = vld [vmem:[%s21632_s3 + $0x160] sm:$0xff]  }
  0x27   : > { %13843 = vmatpush3.bf16.msra.mxu0 %v16030_v5  ;;  %14313 = vmatpush3.bf16.msra.mxu1 %v16087_v54 }
  0x28   : > { %13844 = vmatprep.subr.bf16.mxu0 %v21646_v1  ;;  %14314 = vmatprep.subr.bf16.mxu1 %v21646_v1 }
  0x2b   : > { %13845 = vmatpush3.bf16.msra.mxu0 %v16031_v6  ;;  %14315 = vmatpush3.bf16.msra.mxu1 %v16088_v59 }
  0x2c   : > { %13846 = vmatprep.subr.bf16.mxu0 %v21646_v1  ;;  %14316 = vmatprep.subr.bf16.mxu1 %v21646_v1 }
  0x2f   : > { %13847 = vmatpush3.bf16.msra.mxu0 %v16032_v7  ;;  %14317 = vmatpush3.bf16.msra.mxu1 %v16090_v2  ;;  %v16066_v7 = vld [vmem:[%s16923_s29 + $0xe8] sm:$0xff]  }
  0x30   : > { %13848 = vmatprep.subr.bf16.mxu0 %v21646_v1  ;;  %14318 = vmatprep.subr.bf16.mxu1 %v21646_v1 }
  0x33   : > { %13849 = vmatpush3.bf16.msra.mxu0 %v16033_v8 }
  0x34   : > { %14046 = vmatprep.subr.bf16.mxu0 %v21646_v1 }
  0x36   : > { %13851 = vmatmul.mubr.bf16.vlgmr.msra.gmra.mrb[0].mxu0 %v16034_v9 }
  0x37   : > { %13854 = vmatprep.mubr.msk.bf16.mxu0 %vm16790_vm0, %v21646_v1  ;;  %14047 = vmatpush3.bf16.msra.mxu0 %v16047_v10  ;;  %v16091_v10 = vld [vmem:[%s21632_s3 + $0x170] sm:$0xff]  }
  0x38   : > { %14048 = vmatprep.subr.bf16.mxu0 %v21646_v1  ;;  %14319 = vmatpush3.bf16.msra.mxu1 %v16091_v10 }
  0x39   : > { %14320 = vmatprep.subr.bf16.mxu1 %v21646_v1 }
  0x3b   : > { %14049 = vmatpush3.bf16.msra.mxu0 %v16054_v13 }
  0x3c   : > { %14050 = vmatprep.subr.bf16.mxu0 %v21646_v1 }
  0x3e   : > { %13855 = vmatmul.mubr.bf16.gmra.mrb[4].mxu0 %v16035_v11 }
  0x3f   : > { %13858 = vmatprep.mubr.msk.bf16.mxu0 %vm16790_vm0, %v21646_v1  ;;  %14051 = vmatpush3.bf16.msra.mxu0 %v16061_v20 }
  0x40   : > { %14052 = vmatprep.subr.bf16.mxu0 %v21646_v1 }
  0x43   : > { %14053 = vmatpush3.bf16.msra.mxu0 %v16068_v31 }
  0x44   : > { %14054 = vmatprep.subr.bf16.mxu0 %v21646_v1 }
  0x46   : > { %13859 = vmatmul.mubr.bf16.gmra.mrb[8].mxu0 %v16036_v12 }
  0x47   : > { %13862 = vmatprep.mubr.msk.bf16.mxu0 %vm16790_vm0, %v21646_v1  ;;  %14055 = vmatpush3.bf16.msra.mxu0 %v16075_v38 }
  0x48   : > { %14056 = vmatprep.subr.bf16.mxu0 %v21646_v1 }
  0x4e   : > { %13863 = vmatmul.mubr.bf16.gmra.mrb[12].mxu0 %v16037_v14 }
  0x4f   : > { %13866 = vmatprep.mubr.msk.bf16.mxu0 %vm16790_vm0, %v21646_v1 }
  0x56   : > { %13867 = vmatmul.mubr.bf16.gmra.mrb[16].mxu0 %v16038_v15 }
  0x57   : > { %13870 = vmatprep.mubr.msk.bf16.mxu0 %vm16790_vm0, %v21646_v1 }
  0x5e   : > { %13871 = vmatmul.mubr.bf16.gmra.mrb[20].mxu0 %v16039_v16  ;;  %v16093_v16 = vld [vmem:[%s21632_s3 + $0x178] sm:$0xff]  }
  0x5f   : > { %13874 = vmatprep.mubr.msk.bf16.mxu0 %vm16790_vm0, %v21646_v1  ;;  %14321 = vmatpush3.bf16.msra.mxu1 %v16093_v16 }
  0x60   : > { %14410 = vmatprep.subr.bf16.mxu1 %v21646_v1 }
  0x66   : > { %13875 = vmatmul.mubr.bf16.gmra.mrb[24].mxu0 %v16040_v17 }
  0x67   : > { %13878 = vmatprep.mubr.msk.bf16.mxu0 %vm16790_vm0, %v21646_v1 }
  0x6e   : > { %13879 = vmatmul.mubr.bf16.gmra.mrb[28].mxu0 %v16041_v18 }
  0x6f   : > { %13882 = vmatprep.mubr.msk.bf16.mxu0 %vm16790_vm0, %v21646_v1 }
  0x76   : > { %13883 = vmatmul.mubr.bf16.gmra.mrb[32].mxu0 %v16042_v19 }
  0x77   : > { %13886 = vmatprep.mubr.msk.bf16.mxu0 %vm16790_vm0, %v21646_v1 }
  0x7e   : > { %13887 = vmatmul.mubr.bf16.gmra.mrb[36].mxu0 %v16043_v21 }
  0x7f   : > { %13890 = vmatprep.mubr.msk.bf16.mxu0 %vm16790_vm0, %v21646_v1 }
  0x86   : > { %13891 = vmatmul.mubr.bf16.gmra.mrb[40].mxu0 %v16044_v22 }
  0x87   : > { %13894 = vmatprep.mubr.msk.bf16.mxu0 %vm16790_vm0, %v21646_v1 }
  0x8e   : > { %13895 = vmatmul.mubr.bf16.gmra.mrb[44].mxu0 %v16045_v23  ;;  %v16067_v23 = vld [vmem:[%s16923_s29 + $0xf0] sm:$0xff]  }
  0x8f   : > { %13898 = vmatprep.mubr.msk.bf16.mxu0 %vm16790_vm0, %v21646_v1 }
  0x96   : > { %13899 = vmatmul.mubr.bf16.gmra.mrb[48].mxu0 %v16046_v24 }
  0x97   : > { %13902 = vmatprep.mubr.msk.bf16.mxu0 %vm16790_vm0, %v21646_v1 }
  0x9e   : > { %13903 = vmatmul.mubr.bf16.gmra.mrb[52].mxu0 %v16048_v25 }
  0x9f   : > { %13906 = vmatprep.mubr.msk.bf16.mxu0 %vm16790_vm0, %v21646_v1 }
  0xa6   : > { %13907 = vmatmul.mubr.bf16.gmra.mrb[56].mxu0 %v16049_v26 }
  0xa7   : > { %13910 = vmatprep.mubr.msk.bf16.mxu0 %vm16790_vm0, %v21646_v1 }
  0xae   : > { %13911 = vmatmul.mubr.bf16.gmra.mrb[60].mxu0 %v16050_v27 }
  0xaf   : > { %13914 = vmatprep.mubr.msk.bf16.mxu0 %vm16790_vm0, %v21646_v1 }
  0xb6   : > { %13915 = vmatmul.mubr.bf16.gmra.mrb[64].mxu0 %v16051_v28  ;;  %v16085_v28 = vld [vmem:[%s21632_s3 + $0x68] sm:$0xff]  }
  0xb7   : > { %13918 = vmatprep.mubr.msk.bf16.mxu0 %vm16790_vm0, %v21646_v1  ;;  %14057 = vmatpush3.bf16.msra.mxu0 %v16085_v28 }
  0xb8   : > { %14058 = vmatprep.subr.bf16.mxu0 %v21646_v1 }
  0xbe   : > { %13919 = vmatmul.mubr.bf16.gmra.mrb[68].mxu0 %v16052_v29 }
  0xbf   : > { %13922 = vmatprep.mubr.msk.bf16.mxu0 %vm16790_vm0, %v21646_v1 }
  0xc6   : > { %13923 = vmatmul.mubr.bf16.gmra.mrb[72].mxu0 %v16053_v30 }
  0xc7   : > { %13926 = vmatprep.mubr.msk.bf16.mxu0 %vm16790_vm0, %v21646_v1 }
  0xce   : > { %13927 = vmatmul.mubr.bf16.gmra.mrb[76].mxu0 %v16055_v32 }
  0xcf   : > { %13930 = vmatprep.mubr.msk.bf16.mxu0 %vm16790_vm0, %v21646_v1 }
  0xd6   : > { %13931 = vmatmul.mubr.bf16.gmra.mrb[80].mxu0 %v16056_v33 }
  0xd7   : > { %13934 = vmatprep.mubr.msk.bf16.mxu0 %vm16790_vm0, %v21646_v1 }
  0xde   : > { %13935 = vmatmul.mubr.bf16.gmra.mrb[84].mxu0 %v16057_v34 }
  0xdf   : > { %13938 = vmatprep.mubr.msk.bf16.mxu0 %vm16790_vm0, %v21646_v1 }
  0xe6   : > { %13939 = vmatmul.mubr.bf16.gmra.mrb[88].mxu0 %v16058_v35 }
  0xe7   : > { %13942 = vmatprep.mubr.msk.bf16.mxu0 %vm16790_vm0, %v21646_v1 }
  0xee   : > { %13943 = vmatmul.mubr.bf16.gmra.mrb[92].mxu0 %v16059_v36  ;;  %v16069_v36 = vld [vmem:[%s16923_s29 + $0xf8] sm:$0xff]  }
  0xef   : > { %13946 = vmatprep.mubr.msk.bf16.mxu0 %vm16790_vm0, %v21646_v1 }
  0xf6   : > { %13947 = vmatmul.mubr.bf16.gmra.mrb[96].mxu0 %v16060_v37 }
  0xf7   : > { %13950 = vmatprep.mubr.msk.bf16.mxu0 %vm16790_vm0, %v21646_v1 }
  0xfe   : > { %13951 = vmatmul.mubr.bf16.gmra.mrb[100].mxu0 %v16062_v39 }
  0xff   : > { %13954 = vmatprep.mubr.msk.bf16.mxu0 %vm16790_vm0, %v21646_v1 }
 0x106   : > { %13955 = vmatmul.mubr.bf16.gmra.mrb[104].mxu0 %v16063_v40 }
 0x107   : > { %13958 = vmatprep.mubr.msk.bf16.mxu0 %vm16790_vm0, %v21646_v1 }
 0x109   : > { %v882_v44 = vpop.f32.mrb[0].mxu0 }
 0x10a   : > { %v883_v46 = vadd.f32 %v17051_v42, %v882_v44  ;;  %v13852_v47 = vpop.f32.mrb[1].mxu0 }
 0x10b   : > { %v885_v49 = vpop.f32.mrb[2].mxu0 }
 0x10c   : > { %v1273_v50 = vmax.f32 %v883_v46, 0.0  ;;  %v886_v51 = vadd.f32 %v17051_v42, %v885_v49  ;;  %v13853_v52 = vpop.f32.mrb[3].mxu0 }
 0x10e   : > { %1371 = vst [vmem:[#allocation2] sm:$0xff] %v1273_v50  ;;  %v1274_v53 = vmax.f32 %v886_v51, 0.0  ;;  %13959 = vmatmul.mubr.bf16.gmra.mrb[108].mxu0 %v16064_v45  ;;  %v16070_v51 = vld [vmem:[%s16923_s29 + $0x100] sm:$0xff]  }
 0x10f   : > { %13962 = vmatprep.mubr.msk.bf16.mxu0 %vm16790_vm0, %v21646_v1 }
 0x110   : > { %1372 = vst [vmem:[#allocation2 + $0x8] sm:$0xff] %v1274_v53 }
 0x111   : > { %v890_v55 = vpop.f32.mrb[4].mxu0 }
 0x112   : > { %v891_v57 = vadd.f32 %v17051_v42, %v890_v55  ;;  %v13856_v58 = vpop.f32.mrb[5].mxu0 }
 0x113   : > { %v893_v60 = vpop.f32.mrb[6].mxu0 }
 0x114   : > { %v1275_v61 = vmax.f32 %v891_v57, 0.0  ;;  %v894_v62 = vadd.f32 %v17051_v42, %v893_v60  ;;  %v13857_v63 = vpop.f32.mrb[7].mxu0 }
 0x116   : > { %1373 = vst [vmem:[#allocation2 + $0x10] sm:$0xff] %v1275_v61  ;;  %v1276_v0 = vmax.f32 %v894_v62, 0.0  ;;  %13963 = vmatmul.mubr.bf16.gmra.mrb[112].mxu0 %v16065_v56  ;;  %v16100_v56 = vld [vmem:[%s21632_s3 + $0x70] sm:$0xff]  }
 0x117   : > { %v17083_v3 = vld [vmem:[#allocation2] ss:$2 sm:$0xff]  ;;  %v17085_v4 = vld [vmem:[#allocation2 + $0x1] ss:$2 sm:$0xff]  ;;  %13966 = vmatprep.mubr.msk.bf16.mxu0 %vm16790_vm0, %v21646_v1  ;;  %14059 = vmatpush3.bf16.msra.mxu0 %v16100_v56 }
 0x118   : > { %v1664_v5 = vmax.f32 %v17083_v3, %v17085_v4  ;;  %1374 = vst [vmem:[#allocation2 + $0x18] sm:$0xff] %v1276_v0  ;;  %14060 = vmatprep.subr.bf16.mxu0 %v21646_v1  ;;  %v16101_v0 = vld [vmem:[%s21632_s3 + $0x78] sm:$0xff]  }
 0x119   : > { %v898_v6 = vpop.f32.mrb[8].mxu0 }
 0x11a   : > { %v899_v8 = vadd.f32 %v17051_v42, %v898_v6  ;;  %v13860_v9 = vpop.f32.mrb[9].mxu0 }
 0x11b   : > { %v901_v11 = vpop.f32.mrb[10].mxu0  ;;  %14061 = vmatpush3.bf16.msra.mxu0 %v16101_v0 }
 0x11c   : > { %v1277_v12 = vmax.f32 %v899_v8, 0.0  ;;  %v902_v13 = vadd.f32 %v17051_v42, %v901_v11  ;;  %v13861_v14 = vpop.f32.mrb[11].mxu0  ;;  %14098 = vmatprep.subr.bf16.mxu0 %v21646_v1 }
 0x11e   : > { %1375 = vst [vmem:[#allocation2 + $0x20] sm:$0xff] %v1277_v12  ;;  %v1278_v15 = vmax.f32 %v902_v13, 0.0  ;;  %13967 = vmatmul.mubr.bf16.gmra.mrb[116].mxu0 %v16066_v7 }
 0x11f   : > { %v1471_v17 = vld [vmem:[#allocation2 + $0x10] ss:$2 sm:$0xff]  ;;  %v1569_v18 = vld [vmem:[#allocation2 + $0x11] ss:$2 sm:$0xff]  ;;  %13970 = vmatprep.mubr.msk.bf16.mxu0 %vm16790_vm0, %v21646_v1 }
 0x120   : > { %v1665_v19 = vmax.f32 %v1471_v17, %v1569_v18  ;;  %1376 = vst [vmem:[#allocation2 + $0x28] sm:$0xff] %v1278_v15  ;;  %v16072_v17 = vld [vmem:[%s16923_s29 + $0x110] sm:$0xff]  }
 0x121   : > { %v906_v20 = vpop.f32.mrb[12].mxu0 }
 0x122   : > { %1714 = vst [vmem:[#allocation3 + $0x8] sm:$0xff] %v1665_v19  ;;  %v907_v21 = vadd.f32 %v17051_v42, %v906_v20  ;;  %v13864_v22 = vpop.f32.mrb[13].mxu0 }
 0x123   : > { %v909_v24 = vpop.f32.mrb[14].mxu0 }
 0x124   : > { %v1279_v25 = vmax.f32 %v907_v21, 0.0  ;;  %v910_v26 = vadd.f32 %v17051_v42, %v909_v24  ;;  %v13865_v27 = vpop.f32.mrb[15].mxu0 }
 0x126   : > { %1377 = vst [vmem:[#allocation2 + $0x30] sm:$0xff] %v1279_v25  ;;  %v1280_v29 = vmax.f32 %v910_v26, 0.0  ;;  %13971 = vmatmul.mubr.bf16.gmra.mrb[120].mxu0 %v16067_v23 }
 0x127   : > { %v1473_v30 = vld [vmem:[#allocation2 + $0x20] ss:$2 sm:$0xff]  ;;  %v1571_v31 = vld [vmem:[#allocation2 + $0x21] ss:$2 sm:$0xff]  ;;  %13974 = vmatprep.mubr.msk.bf16.mxu0 %vm16790_vm0, %v21646_v1 }
 0x128   : > { %v1666_v32 = vmax.f32 %v1473_v30, %v1571_v31  ;;  %1378 = vst [vmem:[#allocation2 + $0x38] sm:$0xff] %v1280_v29  ;;  %v16073_v29 = vld [vmem:[%s16923_s29 + $0x118] sm:$0xff]  }
 0x129   : > { %v914_v33 = vpop.f32.mrb[16].mxu0  ;;  %v1763_v58 = vld [vmem:[#allocation3 + $0x8] sm:$0x3f] }
 0x12a   : > { %1715 = vst [vmem:[#allocation3 + $0x10] sm:$0xff] %v1666_v32  ;;  %v915_v34 = vadd.f32 %v17051_v42, %v914_v33  ;;  %v13868_v35 = vpop.f32.mrb[17].mxu0 }
 0x12b   : > { %v917_v37 = vpop.f32.mrb[18].mxu0 }
 0x12c   : > { %v1281_v38 = vmax.f32 %v915_v34, 0.0  ;;  %v918_v39 = vadd.f32 %v17051_v42, %v917_v37  ;;  %v13869_v40 = vpop.f32.mrb[19].mxu0 }
 0x12e   : > { %1379 = vst [vmem:[#allocation2 + $0x40] sm:$0xff] %v1281_v38  ;;  %v1282_v41 = vmax.f32 %v918_v39, 0.0  ;;  %13975 = vmatmul.mubr.bf16.gmra.mrb[124].mxu0 %v16069_v36 }
 0x12f   : > { %v1475_v43 = vld [vmem:[#allocation2 + $0x30] ss:$2 sm:$0xff]  ;;  %v1573_v44 = vld [vmem:[#allocation2 + $0x31] ss:$2 sm:$0xff]  ;;  %13978 = vmatprep.mubr.msk.bf16.mxu0 %vm16790_vm0, %v21646_v1 }
 0x130   : > { %v1667_v45 = vmax.f32 %v1475_v43, %v1573_v44  ;;  %1380 = vst [vmem:[#allocation2 + $0x48] sm:$0xff] %v1282_v41 }
 0x131   : > { %v1764_v46 = vld [vmem:[#allocation3 + $0xe] sm:$0xff]  ;;  %v922_v47 = vpop.f32.mrb[20].mxu0 }
 0x132   : > { %v17122_v48 = vmax.f32 %v1664_v5, %v1764_v46  ;;  %1716 = vst [vmem:[#allocation3 + $0x18] sm:$0xff] %v1667_v45  ;;  %v923_v49 = vadd.f32 %v17051_v42, %v922_v47  ;;  %v13872_v50 = vpop.f32.mrb[21].mxu0  ;;  %v16071_v5 = vld [vmem:[%s16923_s29 + $0x108] sm:$0xff]  }
 0x133   : > { %v925_v52 = vpop.f32.mrb[22].mxu0 }
 0x134   : > { %1768 = vst [vmem:[#allocation4] sm:$0xff] %v17122_v48  ;;  %v1283_v53 = vmax.f32 %v923_v49, 0.0  ;;  %v926_v54 = vadd.f32 %v17051_v42, %v925_v52  ;;  %v13873_v55 = vpop.f32.mrb[23].mxu0  ;;  %v16074_v49 = vld [vmem:[%s16923_s29 + $0x120] sm:$0xff]  }
 0x136   : > { %1381 = vst [vmem:[#allocation2 + $0x50] sm:$0xff] %v1283_v53  ;;  %v1284_v57 = vmax.f32 %v926_v54, 0.0  ;;  %13979 = vmatmul.mubr.bf16.gmra.mrb[128].mxu0 %v16070_v51 }
 0x137   : > { %v1477_v59 = vld [vmem:[#allocation2 + $0x40] ss:$2 sm:$0xff]  ;;  %v1575_v60 = vld [vmem:[#allocation2 + $0x41] ss:$2 sm:$0xff]  ;;  %13982 = vmatprep.mubr.msk.bf16.mxu0 %vm16790_vm0, %v21646_v1 }
 0x138   : > { %v1668_v61 = vmax.f32 %v1477_v59, %v1575_v60  ;;  %1382 = vst [vmem:[#allocation2 + $0x58] sm:$0xff] %v1284_v57 }
 0x139   : > { %v1765_v62 = vld [vmem:[#allocation3 + $0x16] sm:$0x3f]  ;;  %v930_v63 = vpop.f32.mrb[24].mxu0 }
 0x13a   : > { %v1767_v2 = vmax.f32 %v1763_v58, %v1765_v62  ;;  %1717 = vst [vmem:[#allocation3 + $0x20] sm:$0xff] %v1668_v61  ;;  %v931_v3 = vadd.f32 %v17051_v42, %v930_v63  ;;  %v13876_v4 = vpop.f32.mrb[25].mxu0  ;;  %v16076_v61 = vld [vmem:[%s16923_s29 + $0x128] sm:$0xff]  }
 0x13b   : > { %v933_v6 = vpop.f32.mrb[26].mxu0 }
 0x13c   : > { %1769 = vst [vmem:[#allocation4 + $0x8] sm:$0x3f] %v1767_v2  ;;  %v1285_v7 = vmax.f32 %v931_v3, 0.0  ;;  %v934_v8 = vadd.f32 %v17051_v42, %v933_v6  ;;  %v13877_v9 = vpop.f32.mrb[27].mxu0 }
 0x13e   : > { %1383 = vst [vmem:[#allocation2 + $0x60] sm:$0xff] %v1285_v7  ;;  %v1286_v10 = vmax.f32 %v934_v8, 0.0  ;;  %13983 = vmatmul.mubr.bf16.gmra.mrb[132].mxu0 %v16071_v5 }
 0x13f   : > { %v1479_v11 = vld [vmem:[#allocation2 + $0x50] ss:$2 sm:$0xff]  ;;  %v1577_v12 = vld [vmem:[#allocation2 + $0x51] ss:$2 sm:$0xff]  ;;  %13986 = vmatprep.mubr.msk.bf16.mxu0 %vm16790_vm0, %v21646_v1 }
 0x140   : > { %v1669_v13 = vmax.f32 %v1479_v11, %v1577_v12  ;;  %1384 = vst [vmem:[#allocation2 + $0x68] sm:$0xff] %v1286_v10 }
 0x141   : > { %v938_v14 = vpop.f32.mrb[28].mxu0  ;;  %v1770_v35 = vld [vmem:[#allocation3 + $0x1c] sm:$0xff] }
 0x142   : > { %1718 = vst [vmem:[#allocation3 + $0x28] sm:$0xff] %v1669_v13  ;;  %v939_v15 = vadd.f32 %v17051_v42, %v938_v14  ;;  %v13880_v16 = vpop.f32.mrb[29].mxu0 }
 0x143   : > { %v941_v18 = vpop.f32.mrb[30].mxu0  ;;  %v2026_v0 = vld [vmem:[#allocation4 + $0x1] sm:$0xff] }
 0x144   : > { %v1287_v19 = vmax.f32 %v939_v15, 0.0  ;;  %v942_v20 = vadd.f32 %v17051_v42, %v941_v18  ;;  %v13881_v21 = vpop.f32.mrb[31].mxu0 }
 0x146   : > { %1385 = vst [vmem:[#allocation2 + $0x70] sm:$0xff] %v1287_v19  ;;  %v1288_v22 = vmax.f32 %v942_v20, 0.0  ;;  %13987 = vmatmul.mubr.bf16.gmra.mrb[136].mxu0 %v16072_v17 }
 0x147   : > { %v1481_v23 = vld [vmem:[#allocation2 + $0x60] ss:$2 sm:$0xff]  ;;  %v1579_v24 = vld [vmem:[#allocation2 + $0x61] ss:$2 sm:$0xff]  ;;  %13990 = vmatprep.mubr.msk.bf16.mxu0 %vm16790_vm0, %v21646_v1 }
 0x148   : > { %v1670_v25 = vmax.f32 %v1481_v23, %v1579_v24  ;;  %1386 = vst [vmem:[#allocation2 + $0x78] sm:$0xff] %v1288_v22 }
 0x149   : > { %v946_v26 = vpop.f32.mrb[32].mxu0  ;;  %v1771_v36 = vld [vmem:[#allocation3 + $0x24] sm:$0x3f] }
 0x14a   : > { %1719 = vst [vmem:[#allocation3 + $0x30] sm:$0xff] %v1670_v25  ;;  %v947_v27 = vadd.f32 %v17051_v42, %v946_v26  ;;  %v13884_v28 = vpop.f32.mrb[33].mxu0 }
 0x14b   : > { %v949_v30 = vpop.f32.mrb[34].mxu0  ;;  %v16078_v28 = vld [vmem:[%s16923_s29 + $0x138] sm:$0xff]  }
 0x14c   : > { %v1289_v31 = vmax.f32 %v947_v27, 0.0  ;;  %v950_v32 = vadd.f32 %v17051_v42, %v949_v30  ;;  %v13885_v33 = vpop.f32.mrb[35].mxu0 }
 0x14e   : > { %1387 = vst [vmem:[#allocation2 + $0x80] sm:$0xff] %v1289_v31  ;;  %v1290_v34 = vmax.f32 %v950_v32, 0.0  ;;  %13991 = vmatmul.mubr.bf16.gmra.mrb[140].mxu0 %v16073_v29 }
 0x14f   : > { %v17151_v37 = vld [vmem:[#allocation2 + $0x70] ss:$2 sm:$0xff]  ;;  %v17153_v38 = vld [vmem:[#allocation2 + $0x71] ss:$2 sm:$0xff]  ;;  %13994 = vmatprep.mubr.msk.bf16.mxu0 %vm16790_vm0, %v21646_v1 }
 0x150   : > { %v1671_v39 = vmax.f32 %v17151_v37, %v17153_v38  ;;  %1388 = vst [vmem:[#allocation2 + $0x88] sm:$0xff] %v1290_v34  ;;  %v16079_v38 = vld [vmem:[%s16923_s29 + $0x140] sm:$0xff]  }
 0x151   : > { %v1772_v40 = vld [vmem:[#allocation3 + $0x2a] sm:$0xff]  ;;  %v1773_v41 = vld [vmem:[#allocation3 + $0x32] sm:$0x3f]  ;;  %v954_v43 = vpop.f32.mrb[36].mxu0 }
 0x152   : > { %v1774_v44 = vmax.f32 %v1770_v35, %v1772_v40  ;;  %v1775_v45 = vmax.f32 %v1771_v36, %v1773_v41  ;;  %v955_v46 = vadd.f32 %v17051_v42, %v954_v43  ;;  %v13888_v47 = vpop.f32.mrb[37].mxu0 }
 0x153   : > { %v957_v50 = vpop.f32.mrb[38].mxu0 }
 0x154   : > { %1776 = vst [vmem:[#allocation4 + $0xe] sm:$0xff] %v1774_v44  ;;  %1777 = vst [vmem:[#allocation4 + $0x16] sm:$0x3f] %v1775_v45  ;;  %v1291_v51 = vmax.f32 %v955_v46, 0.0  ;;  %v958_v52 = vadd.f32 %v17051_v42, %v957_v50  ;;  %v13889_v53 = vpop.f32.mrb[39].mxu0 }
 0x156   : > { %1389 = vst [vmem:[#allocation2 + $0x90] sm:$0xff] %v1291_v51  ;;  %v1292_v54 = vmax.f32 %v958_v52, 0.0  ;;  %13995 = vmatmul.mubr.bf16.gmra.mrb[144].mxu0 %v16074_v49 }
 0x157   : > { %v1485_v55 = vld [vmem:[#allocation2 + $0x80] ss:$2 sm:$0xff]  ;;  %v1583_v56 = vld [vmem:[#allocation2 + $0x81] ss:$2 sm:$0xff]  ;;  %13998 = vmatprep.mubr.msk.bf16.mxu0 %vm16790_vm0, %v21646_v1 }
 0x158   : > { %v1672_v57 = vmax.f32 %v1485_v55, %v1583_v56  ;;  %1390 = vst [vmem:[#allocation2 + $0x98] sm:$0xff] %v1292_v54 }
 0x159   : > { %v962_v58 = vpop.f32.mrb[40].mxu0 }
 0x15a   : > { %1721 = vst [vmem:[#allocation3 + $0x40] sm:$0xff] %v1672_v57  ;;  %v963_v59 = vadd.f32 %v17051_v42, %v962_v58  ;;  %v13892_v60 = vpop.f32.mrb[41].mxu0 }
 0x15b   : > { %v965_v62 = vpop.f32.mrb[42].mxu0  ;;  %v1876_v63 = vld [vmem:[#allocation4 + $0x8] sm:$0xff]  ;;  %v1877_v41 = vld [vmem:[#allocation4 + $0x10] sm:$0xff] }
 0x15c   : > { %v2027_v2 = vld [vmem:[#allocation4 + $0x9] sm:$0xff]  ;;  %v1293_v3 = vmax.f32 %v963_v59, 0.0  ;;  %v966_v4 = vadd.f32 %v17051_v42, %v965_v62  ;;  %v13893_v5 = vpop.f32.mrb[43].mxu0  ;;  %v12970_v6 = vpack.c.bf16 %v1876_v63, %v17122_v48  ;;  %v16077_v48 = vld [vmem:[%s16923_s29 + $0x130] sm:$0xff]  }
 0x15d   : > { %v13030_v7 = vpack.c.bf16 %v2027_v2, %v2026_v0  ;;  %v2028_v46 = vld [vmem:[#allocation4 + $0x11] sm:$0xff] }
 0x15e   : > { %1391 = vst [vmem:[#allocation2 + $0xa0] sm:$0xff] %v1293_v3  ;;  %v1294_v8 = vmax.f32 %v966_v4, 0.0  ;;  %13999 = vmatmul.mubr.bf16.gmra.mrb[148].mxu0 %v16076_v61  ;;  %12971 = vst [vmem:[#allocation5] sm:$0xff] %v12970_v6   ;;  %v16080_v63 = vld [vmem:[%s16923_s29 + $0x148] sm:$0xff]  }
 0x15f   : > { %13031 = vst [vmem:[#allocation6] sm:$0xff] %v13030_v7   ;;  %v1487_v9 = vld [vmem:[#allocation2 + $0x90] ss:$2 sm:$0xff]  ;;  %v1585_v10 = vld [vmem:[#allocation2 + $0x91] ss:$2 sm:$0xff]  ;;  %14002 = vmatprep.mubr.msk.bf16.mxu0 %vm16790_vm0, %v21646_v1 }
 0x160   : > { %v1673_v11 = vmax.f32 %v1487_v9, %v1585_v10  ;;  %1392 = vst [vmem:[#allocation2 + $0xa8] sm:$0xff] %v1294_v8 }
 0x161   : > { %v970_v12 = vpop.f32.mrb[44].mxu0  ;;  %v1779_v34 = vld [vmem:[#allocation3 + $0x40] sm:$0x3f] }
 0x162   : > { %1722 = vst [vmem:[#allocation3 + $0x48] sm:$0xff] %v1673_v11  ;;  %v971_v13 = vadd.f32 %v17051_v42, %v970_v12  ;;  %v13896_v14 = vpop.f32.mrb[45].mxu0 }
 0x163   : > { %v973_v15 = vpop.f32.mrb[46].mxu0 }
 0x164   : > { %v1295_v16 = vmax.f32 %v971_v13, 0.0  ;;  %v974_v17 = vadd.f32 %v17051_v42, %v973_v15  ;;  %v13897_v18 = vpop.f32.mrb[47].mxu0 }
 0x166   : > { %1393 = vst [vmem:[#allocation2 + $0xb0] sm:$0xff] %v1295_v16  ;;  %v1296_v19 = vmax.f32 %v974_v17, 0.0  ;;  %14003 = vmatmul.mubr.bf16.gmra.mrb[152].mxu0 %v16077_v48  ;;  %v16082_v48 = vld [vmem:[%s16923_s29 + $0x150] sm:$0xff]  }
 0x167   : > { %v1489_v20 = vld [vmem:[#allocation2 + $0xa0] ss:$2 sm:$0xff]  ;;  %v1587_v21 = vld [vmem:[#allocation2 + $0xa1] ss:$2 sm:$0xff]  ;;  %14006 = vmatprep.mubr.msk.bf16.mxu0 %vm16790_vm0, %v21646_v1 }
 0x168   : > { %v1674_v22 = vmax.f32 %v1489_v20, %v1587_v21  ;;  %1394 = vst [vmem:[#allocation2 + $0xb8] sm:$0xff] %v1296_v19  ;;  %v16142_v21 = vld [vmem:[%s21632_s3 + $0x1e0] sm:$0xff]  }
 0x169   : > { %v1780_v23 = vld [vmem:[#allocation3 + $0x46] sm:$0xff]  ;;  %v978_v24 = vpop.f32.mrb[48].mxu0 }
 0x16a   : > { %v1782_v25 = vmax.f32 %v1671_v39, %v1780_v23  ;;  %1723 = vst [vmem:[#allocation3 + $0x50] sm:$0xff] %v1674_v22  ;;  %v979_v26 = vadd.f32 %v17051_v42, %v978_v24  ;;  %v13900_v27 = vpop.f32.mrb[49].mxu0 }
 0x16b   : > { %v981_v29 = vpop.f32.mrb[50].mxu0 }
 0x16c   : > { %1784 = vst [vmem:[#allocation4 + $0x1c] sm:$0xff] %v1782_v25  ;;  %v1297_v30 = vmax.f32 %v979_v26, 0.0  ;;  %v982_v31 = vadd.f32 %v17051_v42, %v981_v29  ;;  %v13901_v32 = vpop.f32.mrb[51].mxu0 }
 0x16e   : > { %1395 = vst [vmem:[#allocation2 + $0xc0] sm:$0xff] %v1297_v30  ;;  %v1298_v33 = vmax.f32 %v982_v31, 0.0  ;;  %14007 = vmatmul.mubr.bf16.gmra.mrb[156].mxu0 %v16078_v28 }
 0x16f   : > { %v1491_v35 = vld [vmem:[#allocation2 + $0xb0] ss:$2 sm:$0xff]  ;;  %v1589_v36 = vld [vmem:[#allocation2 + $0xb1] ss:$2 sm:$0xff]  ;;  %14010 = vmatprep.mubr.msk.bf16.mxu0 %vm16790_vm0, %v21646_v1 }
 0x170   : > { %v1675_v37 = vmax.f32 %v1491_v35, %v1589_v36  ;;  %1396 = vst [vmem:[#allocation2 + $0xc8] sm:$0xff] %v1298_v33  ;;  %v16086_v35 = vld [vmem:[%s16923_s29 + $0x158] sm:$0xff]  }
 0x171   : > { %v1781_v39 = vld [vmem:[#allocation3 + $0x4e] sm:$0x3f]  ;;  %v986_v40 = vpop.f32.mrb[52].mxu0 }
 0x172   : > { %v1783_v43 = vmax.f32 %v1779_v34, %v1781_v39  ;;  %1724 = vst [vmem:[#allocation3 + $0x58] sm:$0xff] %v1675_v37  ;;  %v987_v44 = vadd.f32 %v17051_v42, %v986_v40  ;;  %v13904_v45 = vpop.f32.mrb[53].mxu0 }
 0x173   : > { %v989_v47 = vpop.f32.mrb[54].mxu0  ;;  %v1878_v49 = vld [vmem:[#allocation4 + $0x18] sm:$0xff] }
 0x174   : > { %v2029_v50 = vld [vmem:[#allocation4 + $0x19] sm:$0xff]  ;;  %1785 = vst [vmem:[#allocation4 + $0x24] sm:$0x3f] %v1783_v43  ;;  %v1299_v51 = vmax.f32 %v987_v44, 0.0  ;;  %v990_v52 = vadd.f32 %v17051_v42, %v989_v47  ;;  %v13905_v53 = vpop.f32.mrb[55].mxu0  ;;  %v12975_v54 = vpack.c.bf16 %v1878_v49, %v1877_v41 }
 0x175   : > { %v13035_v55 = vpack.c.bf16 %v2029_v50, %v2028_v46  ;;  %v17191_v42 = vld [vmem:[%s21631_s2] ss:$0 sm:$0xff] }
 0x176   : > { %1397 = vst [vmem:[#allocation2 + $0xd0] sm:$0xff] %v1299_v51  ;;  %v1300_v56 = vmax.f32 %v990_v52, 0.0  ;;  %14011 = vmatmul.mubr.bf16.gmra.mrb[160].mxu0 %v16079_v38  ;;  %13087 = vst [vmem:[#allocation5 + $0x8] sm:$0xff] %v12975_v54   ;;  %v16089_v46 = vld [vmem:[%s16923_s29 + $0x160] sm:$0xff]  }
 0x177   : > { %13098 = vst [vmem:[#allocation6 + $0x8] sm:$0xff] %v13035_v55   ;;  %v1493_v57 = vld [vmem:[#allocation2 + $0xc0] ss:$2 sm:$0xff]  ;;  %v1591_v58 = vld [vmem:[#allocation2 + $0xc1] ss:$2 sm:$0xff]  ;;  %14014 = vmatprep.mubr.msk.bf16.mxu0 %vm16790_vm0, %v21646_v1 }
 0x178   : > { %v1676_v59 = vmax.f32 %v1493_v57, %v1591_v58  ;;  %1398 = vst [vmem:[#allocation2 + $0xd8] sm:$0xff] %v1300_v56 }
 0x179   : > { %v994_v60 = vpop.f32.mrb[56].mxu0  ;;  %v1786_v23 = vld [vmem:[#allocation3 + $0x54] sm:$0xff] }
 0x17a   : > { %1725 = vst [vmem:[#allocation3 + $0x60] sm:$0xff] %v1676_v59  ;;  %v995_v61 = vadd.f32 %v17191_v42, %v994_v60  ;;  %v13908_v62 = vpop.f32.mrb[57].mxu0 }
 0x17b   : > { %v997_v0 = vpop.f32.mrb[58].mxu0  ;;  %v1879_v50 = vld [vmem:[#allocation4 + $0x20] sm:$0xff] }
 0x17c   : > { %v1301_v2 = vmax.f32 %v995_v61, 0.0  ;;  %v998_v3 = vadd.f32 %v17191_v42, %v997_v0  ;;  %v13909_v4 = vpop.f32.mrb[59].mxu0  ;;  %v2030_v53 = vld [vmem:[#allocation4 + $0x21] sm:$0xff] }
 0x17d   : > { %v17196_v5 = vld [vmem:[#allocation5 + $0x8] sm:$0xf]  ;;  %v17198_v6 = vld [vmem:[#allocation5 + $0xc] sm:$0xf] }
 0x17e   : > { %1399 = vst [vmem:[#allocation2 + $0xe0] sm:$0xff] %v1301_v2  ;;  %v1302_v7 = vmax.f32 %v998_v3, 0.0  ;;  %14015 = vmatmul.mubr.bf16.gmra.mrb[164].mxu0 %v16080_v63  ;;  %v17206_v16 = vld [vmem:[#allocation6 + $0x8] sm:$0xf]  ;;  %v17208_v17 = vld [vmem:[#allocation6 + $0xc] sm:$0xf] }
 0x17f   : > { %v1495_v9 = vld [vmem:[#allocation2 + $0xd0] ss:$2 sm:$0xff]  ;;  %v1593_v10 = vld [vmem:[#allocation2 + $0xd1] ss:$2 sm:$0xff]  ;;  %14018 = vmatprep.mubr.msk.bf16.mxu0 %vm16790_vm0, %v21646_v1  ;;  %v3329_v2 = vld [vmem:[#allocation5 + $0x4] sm:$0x8] }
 0x180   : > { %v1677_v11 = vmax.f32 %v1495_v9, %v1593_v10  ;;  %1400 = vst [vmem:[#allocation2 + $0xe8] sm:$0xff] %v1302_v7  ;;  %v4314_v3 = vld [vmem:[#allocation5 + $0x8] sm:$0xe] }
 0x181   : > { %v1002_v12 = vpop.f32.mrb[60].mxu0  ;;  %v1787_v24 = vld [vmem:[#allocation3 + $0x5c] sm:$0x3f] }
 0x182   : > { %1726 = vst [vmem:[#allocation3 + $0x68] sm:$0xff] %v1677_v11  ;;  %v1003_v13 = vadd.f32 %v17191_v42, %v1002_v12  ;;  %v13912_v14 = vpop.f32.mrb[61].mxu0  ;;  %v16092_v9 = vld [vmem:[%s16923_s29 + $0x168] sm:$0xff]  }
 0x183   : > { %v1005_v15 = vpop.f32.mrb[62].mxu0  ;;  %v11706_v14 = vcombine.low %v3329_v2, %v17196_v5 }
 0x184   : > { %v1303_v18 = vmax.f32 %v1003_v13, 0.0  ;;  %v1006_v19 = vadd.f32 %v17191_v42, %v1005_v15  ;;  %v13913_v20 = vpop.f32.mrb[63].mxu0 }
 0x186   : > { %1401 = vst [vmem:[#allocation2 + $0xf0] sm:$0xff] %v1303_v18  ;;  %v1304_v22 = vmax.f32 %v1006_v19, 0.0  ;;  %14019 = vmatmul.mubr.bf16.gmra.mrb[168].mxu0 %v16082_v48  ;;  %v11840_v18 = vcombine.low %v4314_v3, %v17198_v6 }
 0x187   : > { %v17213_v25 = vld [vmem:[#allocation2 + $0xe0] ss:$2 sm:$0xff]  ;;  %v17215_v26 = vld [vmem:[#allocation2 + $0xe1] ss:$2 sm:$0xff]  ;;  %14022 = vmatprep.mubr.msk.bf16.mxu0 %vm16790_vm0, %v21646_v1 }
 0x188   : > { %v1678_v27 = vmax.f32 %v17213_v25, %v17215_v26  ;;  %1402 = vst [vmem:[#allocation2 + $0xf8] sm:$0xff] %v1304_v22 }
 0x189   : > { %v1788_v28 = vld [vmem:[#allocation3 + $0x62] sm:$0xff]  ;;  %v1789_v29 = vld [vmem:[#allocation3 + $0x6a] sm:$0x3f]  ;;  %v1010_v30 = vpop.f32.mrb[64].mxu0 }
 0x18a   : > { %v1790_v31 = vmax.f32 %v1786_v23, %v1788_v28  ;;  %v1791_v32 = vmax.f32 %v1787_v24, %v1789_v29  ;;  %v1011_v33 = vadd.f32 %v17191_v42, %v1010_v30  ;;  %v13916_v34 = vpop.f32.mrb[65].mxu0  ;;  %v3414_v29 = vrot.slane %v11706_v14, 3 }
 0x18b   : > { %v1013_v36 = vpop.f32.mrb[66].mxu0  ;;  %v4339_v34 = vrot.slane %v11840_v18, 1 }
 0x18c   : > { %1792 = vst [vmem:[#allocation4 + $0x2a] sm:$0xff] %v1790_v31  ;;  %1793 = vst [vmem:[#allocation4 + $0x32] sm:$0x3f] %v1791_v32  ;;  %v1305_v37 = vmax.f32 %v1011_v33, 0.0  ;;  %v1014_v38 = vadd.f32 %v17191_v42, %v1013_v36  ;;  %v13917_v39 = vpop.f32.mrb[67].mxu0 }
 0x18d   : > { %v16097_v39 = vld [vmem:[%s16923_s29 + $0x170] sm:$0xff]  }
 0x18e   : > { %1403 = vst [vmem:[#allocation2 + $0x100] sm:$0xff] %v1305_v37  ;;  %v1306_v40 = vmax.f32 %v1014_v38, 0.0  ;;  %14023 = vmatmul.mubr.bf16.gmra.mrb[172].mxu0 %v16086_v35 }
 0x18f   : > { %v1499_v41 = vld [vmem:[#allocation2 + $0xf0] ss:$2 sm:$0xff]  ;;  %v1597_v43 = vld [vmem:[#allocation2 + $0xf1] ss:$2 sm:$0xff]  ;;  %14026 = vmatprep.mubr.msk.bf16.mxu0 %vm16790_vm0, %v21646_v1 }
 0x190   : > { %v1679_v44 = vmax.f32 %v1499_v41, %v1597_v43  ;;  %1404 = vst [vmem:[#allocation2 + $0x108] sm:$0xff] %v1306_v40 }
 0x191   : > { %v1018_v45 = vpop.f32.mrb[68].mxu0 }
 0x192   : > { %1728 = vst [vmem:[#allocation3 + $0x78] sm:$0xff] %v1679_v44  ;;  %v1019_v47 = vadd.f32 %v17191_v42, %v1018_v45  ;;  %v13920_v49 = vpop.f32.mrb[69].mxu0 }
 0x193   : > { %v1021_v51 = vpop.f32.mrb[70].mxu0  ;;  %v1880_v52 = vld [vmem:[#allocation4 + $0x28] sm:$0xff]  ;;  %v1881_v41 = vld [vmem:[#allocation4 + $0x30] sm:$0xff] }
 0x194   : > { %v2031_v54 = vld [vmem:[#allocation4 + $0x29] sm:$0xff]  ;;  %v1307_v55 = vmax.f32 %v1019_v47, 0.0  ;;  %v1022_v56 = vadd.f32 %v17191_v42, %v1021_v51  ;;  %v13921_v57 = vpop.f32.mrb[71].mxu0  ;;  %v12980_v58 = vpack.c.bf16 %v1880_v52, %v1879_v50 }
 0x195   : > { %v13040_v59 = vpack.c.bf16 %v2031_v54, %v2030_v53 }
 0x196   : > { %1405 = vst [vmem:[#allocation2 + $0x110] sm:$0xff] %v1307_v55  ;;  %v1308_v60 = vmax.f32 %v1022_v56, 0.0  ;;  %14027 = vmatmul.mubr.bf16.gmra.mrb[176].mxu0 %v16089_v46  ;;  %13088 = vst [vmem:[#allocation5 + $0x10] sm:$0xff] %v12980_v58  }
 0x197   : > { %13099 = vst [vmem:[#allocation6 + $0x10] sm:$0xff] %v13040_v59   ;;  %v1501_v61 = vld [vmem:[#allocation2 + $0x100] ss:$2 sm:$0xff]  ;;  %v1599_v62 = vld [vmem:[#allocation2 + $0x101] ss:$2 sm:$0xff]  ;;  %14030 = vmatprep.mubr.msk.bf16.mxu0 %vm16790_vm0, %v21646_v1 }
 0x198   : > { %v1680_v63 = vmax.f32 %v1501_v61, %v1599_v62  ;;  %1406 = vst [vmem:[#allocation2 + $0x118] sm:$0xff] %v1308_v60  ;;  %v16098_v60 = vld [vmem:[%s16923_s29 + $0x178] sm:$0xff]  }
 0x199   : > { %v1026_v0 = vpop.f32.mrb[72].mxu0  ;;  %v1795_v52 = vld [vmem:[#allocation3 + $0x78] sm:$0x3f] }
 0x19a   : > { %1729 = vst [vmem:[#allocation3 + $0x80] sm:$0xff] %v1680_v63  ;;  %v1027_v4 = vadd.f32 %v17191_v42, %v1026_v0  ;;  %v13924_v7 = vpop.f32.mrb[73].mxu0 }
 0x19b   : > { %v1029_v10 = vpop.f32.mrb[74].mxu0 }
 0x19c   : > { %v1309_v11 = vmax.f32 %v1027_v4, 0.0  ;;  %v1030_v12 = vadd.f32 %v17191_v42, %v1029_v10  ;;  %v13925_v13 = vpop.f32.mrb[75].mxu0 }
 0x19d   : > { %v3332_v48 = vld [vmem:[#allocation5 + $0x10] sm:$0xf]  ;;  %v17235_v15 = vld [vmem:[#allocation5 + $0x14] sm:$0xf] }
 0x19e   : > { %1407 = vst [vmem:[#allocation2 + $0x120] sm:$0xff] %v1309_v11  ;;  %v1310_v19 = vmax.f32 %v1030_v12, 0.0  ;;  %14031 = vmatmul.mubr.bf16.gmra.mrb[180].mxu0 %v16092_v9  ;;  %v11707_v20 = vcombine.low %v17198_v6, %v3332_v48  ;;  %v17240_v22 = vcombine.low %v3332_v48, %v17235_v15  ;;  %v17262_v45 = vld [vmem:[#allocation6 + $0x10] sm:$0xf]  ;;  %v17264_v46 = vld [vmem:[#allocation6 + $0x14] sm:$0xf] }
 0x19f   : > { %v1503_v23 = vld [vmem:[#allocation2 + $0x110] ss:$2 sm:$0xff]  ;;  %v1601_v24 = vld [vmem:[#allocation2 + $0x111] ss:$2 sm:$0xff]  ;;  %14034 = vmatprep.mubr.msk.bf16.mxu0 %vm16790_vm0, %v21646_v1 }
 0x1a0   : > { %v1681_v28 = vmax.f32 %v1503_v23, %v1601_v24  ;;  %1408 = vst [vmem:[#allocation2 + $0x128] sm:$0xff] %v1310_v19  ;;  %v17244_v30 = vrot.slane %v11707_v20, 3  ;;  %v4340_v31 = vrot.slane %v17240_v22, 1  ;;  %v17270_v54 = vld [vmem:[#allocation5 + $0x10] sm:$0xf] }
 0x1a1   : > { %v1796_v32 = vld [vmem:[#allocation3 + $0x7e] sm:$0xff]  ;;  %v1034_v33 = vpop.f32.mrb[76].mxu0  ;;  %21689 = vst [vmem:[#allocation13_spill] sm:$0xff] %v17270_v54 }
 0x1a2   : > { %v1798_v35 = vmax.f32 %v1678_v27, %v1796_v32  ;;  %1730 = vst [vmem:[#allocation3 + $0x88] sm:$0xff] %v1681_v28  ;;  %v1035_v36 = vadd.f32 %v17191_v42, %v1034_v33  ;;  %v13928_v37 = vpop.f32.mrb[77].mxu0  ;;  %v3416_v38 = vsel %vm3413_vm1, %v3414_v29, %v17244_v30  ;;  %v17257_v43 = vsel %vm2686_vm2, %v4339_v34, %v4340_v31  ;;  %v17272_v57 = vld [vmem:[#allocation5 + $0x14] sm:$0xf] }
 0x1a3   : > { %v1037_v40 = vpop.f32.mrb[78].mxu0  ;;  %14323 = vmatmul.mubr.bf16.vlgmr.msra.gmra.mrb[0].mxu1 %v3416_v38  ;;  %21690 = vst [vmem:[#allocation14_spill] sm:$0xff] %v17272_v57 }
 0x1a4   : > { %1800 = vst [vmem:[#allocation4 + $0x38] sm:$0xff] %v1798_v35  ;;  %v1311_v44 = vmax.f32 %v1035_v36, 0.0  ;;  %v1038_v25 = vadd.f32 %v17191_v42, %v1037_v40  ;;  %v13929_v26 = vpop.f32.mrb[79].mxu0  ;;  %14326 = vmatprep.mubr.msk.bf16.mxu1 %vm16790_vm0, %v21646_v1  ;;  %v12985_v27 = vpack.c.bf16 %v1798_v35, %v1881_v41 }
 0x1a6   : > { %1409 = vst [vmem:[#allocation2 + $0x130] sm:$0xff] %v1311_v44  ;;  %v1312_v47 = vmax.f32 %v1038_v25, 0.0  ;;  %14035 = vmatmul.mubr.bf16.gmra.mrb[184].mxu0 %v16097_v39  ;;  %13089 = vst [vmem:[#allocation5 + $0x18] sm:$0xff] %v12985_v27   ;;  %v2212_v44 = vld [vmem:[#allocation6] sm:$0xf] }
 0x1a7   : > { %v1505_v50 = vld [vmem:[#allocation2 + $0x120] ss:$2 sm:$0xff]  ;;  %v1603_v51 = vld [vmem:[#allocation2 + $0x121] ss:$2 sm:$0xff]  ;;  %14038 = vmatprep.mubr.msk.bf16.mxu0 %vm16790_vm0, %v21646_v1 }
 0x1a8   : > { %v1682_v53 = vmax.f32 %v1505_v50, %v1603_v51  ;;  %1410 = vst [vmem:[#allocation2 + $0x138] sm:$0xff] %v1312_v47  ;;  %v2213_v27 = vld [vmem:[#allocation6 + $0x4] sm:$0xf]  ;;  %v17314_v51 = vld [vmem:[#allocation6 + $0x10] sm:$0xff]  }
 0x1a9   : > { %v1797_v55 = vld [vmem:[#allocation3 + $0x86] sm:$0x3f]  ;;  %v1042_v56 = vpop.f32.mrb[80].mxu0 }
 0x1aa   : > { %1731 = vst [vmem:[#allocation3 + $0x90] sm:$0xff] %v1682_v53  ;;  %v1043_v58 = vadd.f32 %v17191_v42, %v1042_v56  ;;  %v13932_v59 = vpop.f32.mrb[81].mxu0  ;;  %v1799_v61 = vmax.f32 %v1795_v52, %v1797_v55  ;;  %v16113_v53 = vld [vmem:[%s21632_s3] sm:$0xff]  }
 0x1ab   : > { %v1045_v63 = vpop.f32.mrb[82].mxu0  ;;  %v2032_v29 = vld [vmem:[#allocation4 + $0x31] sm:$0xff]  ;;  %v11578_v59 = vcombine.low %v2212_v44, %v2213_v27 }
 0x1ac   : > { %v1313_v0 = vmax.f32 %v1043_v58, 0.0  ;;  %v1046_v2 = vadd.f32 %v17191_v42, %v1045_v63  ;;  %v13933_v3 = vpop.f32.mrb[83].mxu0  ;;  %1801 = vst [vmem:[#allocation4 + $0x40] sm:$0x3f] %v1799_v61  ;;  %v21641_v63 = vrot.slane %v17314_v51, 1 }
 0x1ad   : > { %v3334_v4 = vld [vmem:[#allocation5 + $0x18] sm:$0xf]  ;;  %v17279_v7 = vld [vmem:[#allocation5 + $0x1c] sm:$0xf] }
 0x1ae   : > { %1411 = vst [vmem:[#allocation2 + $0x140] sm:$0xff] %v1313_v0  ;;  %v1314_v9 = vmax.f32 %v1046_v2, 0.0  ;;  %14039 = vmatmul.mubr.bf16.gmra.mrb[188].mxu0 %v16098_v60  ;;  %v11708_v10 = vcombine.low %v17235_v15, %v3334_v4  ;;  %v17283_v11 = vcombine.low %v3334_v4, %v17279_v7  ;;  %v16099_v15 = vld [vmem:[%s16923_s29 + $0x180] sm:$0xff]   ;;  %v17307_v38 = vld [vmem:[#allocation5 + $0x1c] sm:$0xf]  ;;  %v16115_v4 = vld [vmem:[%s21632_s3 + $0x8] sm:$0xff]  }
 0x1af   : > { %v1507_v12 = vld [vmem:[#allocation2 + $0x130] ss:$2 sm:$0xff]  ;;  %v1605_v13 = vld [vmem:[#allocation2 + $0x131] ss:$2 sm:$0xff]  ;;  %14042 = vmatprep.mubr.msk.bf16.mxu0 %vm16790_vm0, %v21646_v1  ;;  %21692 = vst [vmem:[#allocation16_spill] sm:$0xff] %v17307_v38  ;;  %s377_s29 = sand.u32 1, %s16779_s18  }
 0x1b0   : > { %v1683_v14 = vmax.f32 %v1507_v12, %v1605_v13  ;;  %1412 = vst [vmem:[#allocation2 + $0x148] sm:$0xff] %v1314_v9  ;;  %v17287_v48 = vrot.slane %v11708_v10, 3  ;;  %v4342_v19 = vrot.slane %v17283_v11, 1  ;;  %s378_s14 = scalar_lea.vmem [#allocation10], %s377_s29  ;;  %s11382_s30 = scalar_lea.sflag [#allocation11], %s377_s29 }
 0x1b1   : > { %v1050_v18 = vpop.f32.mrb[84].mxu0  ;;  %v1802_v9 = vld [vmem:[#allocation3 + $0x8c] sm:$0xff]  ;;  %s11394_s16 = sshll.u32 %s378_s14, 4  ;;  %s21589_s16 = int_to_ptr.vmem [resolvable:$true] %s11394_s16 }
 0x1b2   : > { %1732 = vst [vmem:[#allocation3 + $0x98] sm:$0xff] %v1683_v14  ;;  %v1051_v20 = vadd.f32 %v17191_v42, %v1050_v18  ;;  %v13936_v23 = vpop.f32.mrb[85].mxu0  ;;  %v3418_v24 = vsel %vm3413_vm1, %v17244_v30, %v17287_v48  ;;  %v17300_v33 = vsel %vm2686_vm2, %v4340_v31, %v4342_v19  ;;  %v17305_v30 = vld [vmem:[#allocation5 + $0x18] sm:$0xf]  ;;  %s16725_s21 = scalar_lea.vmem %s21589_s16, 16  ;;  %p16732_p0 = scmp.lt.s32.totalorder %s21589_s16, %s16730_s13 }
 0x1b3   : > { %v1053_v28 = vpop.f32.mrb[86].mxu0  ;;  %14327 = vmatmul.mubr.bf16.gmra.mrb[4].mxu1 %v3418_v24  ;;  %v2033_v32 = vld [vmem:[#allocation4 + $0x39] sm:$0xff]  ;;  %21691 = vst [vmem:[#allocation15_spill] sm:$0xff] %v17305_v30  ;;  %p16726_p11 = scmp.ne.s32.totalorder %s21589_s16, %s16725_s21  ;;  %p16733_p1 = scmp.lt.s32.totalorder %s16731_s22, %s16725_s21 }
 0x1b4   : > { %v1315_v34 = vmax.f32 %v1051_v20, 0.0  ;;  %v1054_v35 = vadd.f32 %v17191_v42, %v1053_v28  ;;  %v13937_v36 = vpop.f32.mrb[87].mxu0  ;;  %v13045_v37 = vpack.c.bf16 %v2033_v32, %v2032_v29  ;;  %14330 = vmatprep.mubr.msk.bf16.mxu1 %vm16790_vm0, %v21646_v1 }
 0x1b5   : > { %p16727_p12 = pnand %p16726_p11, %p16890_p5  ;;  %p16734_p2 = por %p16733_p1, %p16732_p0 }
 0x1b6   : > { %1413 = vst [vmem:[#allocation2 + $0x150] sm:$0xff] %v1315_v34  ;;  %v1316_v39 = vmax.f32 %v1054_v35, 0.0  ;;  %14043 = vmatmul.mubr.bf16.gmra.mrb[192].mxu0 %v16099_v15  ;;  %13100 = vst [vmem:[#allocation6 + $0x18] sm:$0xff] %v13045_v37   ;;  %v16116_v35 = vld [vmem:[%s21632_s3 + $0x10] sm:$0xff]  }
 0x1b7   : > { %v1509_v40 = vld [vmem:[#allocation2 + $0x140] ss:$2 sm:$0xff]  ;;  %v1607_v41 = vld [vmem:[#allocation2 + $0x141] ss:$2 sm:$0xff]  ;;  %14062 = vmatprep.mubr.msk.bf16.mxu0 %vm16790_vm0, %v21646_v1  ;;  %p16728_p13 = pneg %p16727_p12 }
 0x1b8   : > { %v1684_v25 = vmax.f32 %v1509_v40, %v1607_v41  ;;  %1414 = vst [vmem:[#allocation2 + $0x158] sm:$0xff] %v1316_v39  ;;  %v16105_v41 = vld [vmem:[#allocation6 + $0x8] sm:$0xff]  }
 0x1b9   : > { %v1058_v26 = vpop.f32.mrb[88].mxu0  ;;  %v1803_v12 = vld [vmem:[#allocation3 + $0x94] sm:$0x3f]  ;;  %p16735_p3 = pnand %p16734_p2, %p16728_p13 }
 0x1ba   : > { %1733 = vst [vmem:[#allocation3 + $0xa0] sm:$0xff] %v1684_v25  ;;  %v1059_v47 = vadd.f32 %v17191_v42, %v1058_v26  ;;  %v13940_v50 = vpop.f32.mrb[89].mxu0 }
 0x1bb   : > { %v1061_v52 = vpop.f32.mrb[90].mxu0 }
 0x1bc   : > { %v1317_v55 = vmax.f32 %v1059_v47, 0.0  ;;  %v1062_v56 = vadd.f32 %v17191_v42, %v1061_v52  ;;  %v13941_v58 = vpop.f32.mrb[91].mxu0 }
 0x1bd   : > { %v17320_v60 = vld [vmem:[#allocation6 + $0x18] sm:$0xff]  }
 0x1be   : > { %1415 = vst [vmem:[#allocation2 + $0x160] sm:$0xff] %v1317_v55  ;;  %v1318_v61 = vmax.f32 %v1062_v56, 0.0  ;;  %14063 = vmatmul.mubr.bf16.vlgmr.msra.gmra.mrb[196].mxu0 %v11578_v59  ;;  %v2914_v3 = vrot.slane %v17320_v60, 1  ;;  %v17344_v29 = vld [vmem:[#allocation6 + $0x18] sm:$0xf] }
 0x1bf   : > { %v17323_v0 = vld [vmem:[#allocation2 + $0x150] ss:$2 sm:$0xff]  ;;  %v17325_v2 = vld [vmem:[#allocation2 + $0x151] ss:$2 sm:$0xff]  ;;  %14066 = vmatprep.mubr.msk.bf16.mxu0 %vm16790_vm0, %v21646_v1  ;;  %14099 = vmatpush3.bf16.msra.mxu0 %v16113_v53  ;;  %v17346_v32 = vld [vmem:[#allocation6 + $0x1c] sm:$0xf] }
 0x1c0   : > { %v1685_v10 = vmax.f32 %v17323_v0, %v17325_v2  ;;  %1416 = vst [vmem:[#allocation2 + $0x168] sm:$0xff] %v1318_v61  ;;  %14100 = vmatprep.subr.bf16.mxu0 %v21646_v1  ;;  %v17341_v20 = vsel %vm2686_vm2, %v21641_v63, %v2914_v3 }
 0x1c1   : > { %v1804_v13 = vld [vmem:[#allocation3 + $0x9a] sm:$0xff]  ;;  %v1805_v14 = vld [vmem:[#allocation3 + $0xa2] sm:$0x3f]  ;;  %v1066_v18 = vpop.f32.mrb[92].mxu0 }
 0x1c2   : > { %v1806_v23 = vmax.f32 %v1802_v9, %v1804_v13  ;;  %v1807_v15 = vmax.f32 %v1803_v12, %v1805_v14  ;;  %v1067_v24 = vadd.f32 %v17191_v42, %v1066_v18  ;;  %v13944_v28 = vpop.f32.mrb[93].mxu0 }
 0x1c3   : > { %v1069_v34 = vpop.f32.mrb[94].mxu0  ;;  %14101 = vmatpush3.bf16.msra.mxu0 %v16115_v4 }
 0x1c4   : > { %1808 = vst [vmem:[#allocation4 + $0x46] sm:$0xff] %v1806_v23  ;;  %1809 = vst [vmem:[#allocation4 + $0x4e] sm:$0x3f] %v1807_v15  ;;  %v1319_v37 = vmax.f32 %v1067_v24, 0.0  ;;  %v1070_v39 = vadd.f32 %v17191_v42, %v1069_v34  ;;  %v13945_v40 = vpop.f32.mrb[95].mxu0  ;;  %14102 = vmatprep.subr.bf16.mxu0 %v21646_v1 }
 0x1c6   : > { %1417 = vst [vmem:[#allocation2 + $0x170] sm:$0xff] %v1319_v37  ;;  %v1320_v44 = vmax.f32 %v1070_v39, 0.0  ;;  %14067 = vmatmul.mubr.bf16.gmra.mrb[200].mxu0 %v16105_v41  ;;  %v16117_v41 = vld [vmem:[%s21632_s3 + $0x18] sm:$0xff]  }
 0x1c7   : > { %v1513_v25 = vld [vmem:[#allocation2 + $0x160] ss:$2 sm:$0xff]  ;;  %v1611_v26 = vld [vmem:[#allocation2 + $0x161] ss:$2 sm:$0xff]  ;;  %14070 = vmatprep.mubr.msk.bf16.mxu0 %vm16790_vm0, %v21646_v1  ;;  %14103 = vmatpush3.bf16.msra.mxu0 %v16116_v35 }
 0x1c8   : > { %v1686_v27 = vmax.f32 %v1513_v25, %v1611_v26  ;;  %1418 = vst [vmem:[#allocation2 + $0x178] sm:$0xff] %v1320_v44  ;;  %14104 = vmatprep.subr.bf16.mxu0 %v21646_v1  ;;  %v16118_v26 = vld [vmem:[%s21632_s3 + $0x20] sm:$0xff]  }
 0x1c9   : > { %v1074_v47 = vpop.f32.mrb[96].mxu0 }
 0x1ca   : > { %1735 = vst [vmem:[#allocation3 + $0xb0] sm:$0xff] %v1686_v27  ;;  %v1075_v50 = vadd.f32 %v17191_v42, %v1074_v47  ;;  %v13948_v52 = vpop.f32.mrb[97].mxu0 }
 0x1cb   : > { %v1077_v53 = vpop.f32.mrb[98].mxu0  ;;  %v1883_v55 = vld [vmem:[#allocation4 + $0x40] sm:$0xff]  ;;  %v1884_v56 = vld [vmem:[#allocation4 + $0x48] sm:$0xff]  ;;  %14105 = vmatpush3.bf16.msra.mxu0 %v16117_v41 }
 0x1cc   : > { %v2034_v58 = vld [vmem:[#allocation4 + $0x41] sm:$0xff]  ;;  %v1321_v59 = vmax.f32 %v1075_v50, 0.0  ;;  %v1078_v61 = vadd.f32 %v17191_v42, %v1077_v53  ;;  %v13949_v4 = vpop.f32.mrb[99].mxu0  ;;  %v12990_v9 = vpack.c.bf16 %v1884_v56, %v1883_v55  ;;  %v2035_v12 = vld [vmem:[#allocation4 + $0x49] sm:$0xff]  ;;  %14106 = vmatprep.subr.bf16.mxu0 %v21646_v1 }
 0x1cd   : > { %v13050_v13 = vpack.c.bf16 %v2035_v12, %v2034_v58  ;;  %v5866_v53 = vld [vmem:[#allocation5 + $0x18] sm:$0xf]  ;;  %v6419_v12 = vld [vmem:[#allocation5 + $0x14] sm:$0xc] }
 0x1ce   : > { %1419 = vst [vmem:[#allocation2 + $0x180] sm:$0xff] %v1321_v59  ;;  %v1322_v14 = vmax.f32 %v1078_v61, 0.0  ;;  %14071 = vmatmul.mubr.bf16.gmra.mrb[204].mxu0 %v17314_v51  ;;  %13090 = vst [vmem:[#allocation5 + $0x20] sm:$0xff] %v12990_v9  }
 0x1cf   : > { %v1515_v18 = vld [vmem:[#allocation2 + $0x170] ss:$2 sm:$0xff]  ;;  %v1613_v23 = vld [vmem:[#allocation2 + $0x171] ss:$2 sm:$0xff]  ;;  %14074 = vmatprep.mubr.msk.bf16.mxu0 %vm16790_vm0, %v21646_v1  ;;  %13101 = vst [vmem:[#allocation6 + $0x20] sm:$0xff] %v13050_v13   ;;  %14107 = vmatpush3.bf16.msra.mxu0 %v16118_v26 }
 0x1d0   : > { %v1687_v15 = vmax.f32 %v1515_v18, %v1613_v23  ;;  %1420 = vst [vmem:[#allocation2 + $0x188] sm:$0xff] %v1322_v14  ;;  %14108 = vmatprep.subr.bf16.mxu0 %v21646_v1 }
 0x1d1   : > { %v1082_v24 = vpop.f32.mrb[100].mxu0 }
 0x1d2   : > { %1736 = vst [vmem:[#allocation3 + $0xb8] sm:$0xff] %v1687_v15  ;;  %v1083_v28 = vadd.f32 %v17191_v42, %v1082_v24  ;;  %v13952_v34 = vpop.f32.mrb[101].mxu0 }
 0x1d3   : > { %v1085_v35 = vpop.f32.mrb[102].mxu0 }
 0x1d4   : > { %v1323_v37 = vmax.f32 %v1083_v28, 0.0  ;;  %v1086_v39 = vadd.f32 %v17191_v42, %v1085_v35  ;;  %v13953_v40 = vpop.f32.mrb[103].mxu0  ;;  %v16121_v28 = vld [vmem:[%s21632_s3 + $0x28] sm:$0xff]  }
 0x1d5   : > { %v3336_v44 = vld [vmem:[#allocation5 + $0x20] sm:$0xf]  ;;  %v17368_v25 = vld [vmem:[#allocation5 + $0x24] sm:$0xf]  ;;  %14109 = vmatpush3.bf16.msra.mxu0 %v16121_v28 }
 0x1d6   : > { %1421 = vst [vmem:[#allocation2 + $0x190] sm:$0xff] %v1323_v37  ;;  %v1324_v27 = vmax.f32 %v1086_v39, 0.0  ;;  %14075 = vmatmul.mubr.bf16.gmra.mrb[208].mxu0 %v17320_v60  ;;  %v11709_v47 = vcombine.low %v17279_v7, %v3336_v44  ;;  %v17375_v50 = vld [vmem:[#allocation6 + $0x20] sm:$0xff]   ;;  %v17378_v52 = vcombine.low %v3336_v44, %v17368_v25  ;;  %v12099_v60 = vcombine.low %v6419_v12, %v5866_v53  ;;  %v6143_v39 = vld [vmem:[#allocation6 + $0x18] sm:$0xf] }
 0x1d7   : > { %v1517_v55 = vld [vmem:[#allocation2 + $0x180] ss:$2 sm:$0xff]  ;;  %v1615_v56 = vld [vmem:[#allocation2 + $0x181] ss:$2 sm:$0xff]  ;;  %14078 = vmatprep.mubr.msk.bf16.mxu0 %vm16790_vm0, %v21646_v1  ;;  %v2916_v61 = vrot.slane %v17375_v50, 1  ;;  %14110 = vmatprep.subr.bf16.mxu0 %v21646_v1 }
 0x1d8   : > { %v1688_v58 = vmax.f32 %v1517_v55, %v1615_v56  ;;  %1422 = vst [vmem:[#allocation2 + $0x198] sm:$0xff] %v1324_v27  ;;  %v17382_v59 = vrot.slane %v11709_v47, 3  ;;  %v4344_v7 = vrot.slane %v17378_v52, 1  ;;  %v17415_v2 = vld [vmem:[#allocation6 + $0x20] sm:$0xf]  ;;  %v6444_v26 = vrot.slane %v12099_v60, 2 }
 0x1d9   : > { %v1812_v4 = vld [vmem:[#allocation3 + $0xb6] sm:$0xff]  ;;  %v1090_v9 = vpop.f32.mrb[104].mxu0  ;;  %v17396_v23 = vsel %vm2686_vm2, %v2914_v3, %v2916_v61  ;;  %v1811_v40 = vld [vmem:[#allocation3 + $0xb0] sm:$0x3f]  ;;  %v6641_v47 = vld [vmem:[#allocation6 + $0x14] sm:$0xc] }
 0x1da   : > { %1737 = vst [vmem:[#allocation3 + $0xc0] sm:$0xff] %v1688_v58  ;;  %v1091_v13 = vadd.f32 %v17191_v42, %v1090_v9  ;;  %v13956_v14 = vpop.f32.mrb[105].mxu0  ;;  %v3420_v18 = vsel %vm3413_vm1, %v17287_v48, %v17382_v59  ;;  %v1814_v15 = vmax.f32 %v1685_v10, %v1812_v4  ;;  %v17409_v48 = vsel %vm2686_vm2, %v4342_v19, %v4344_v7  ;;  %v17417_v10 = vld [vmem:[#allocation5 + $0x1c] sm:$0xff]   ;;  %v17419_v35 = vld [vmem:[#allocation6 + $0x24] sm:$0xf]  ;;  %v16122_v55 = vld [vmem:[%s21632_s3 + $0x30] sm:$0xff]  }
 0x1db   : > { %v1093_v24 = vpop.f32.mrb[106].mxu0  ;;  %14331 = vmatmul.mubr.bf16.gmra.mrb[8].mxu1 %v3420_v18  ;;  %21693 = vst [vmem:[#allocation17_spill] sm:$0xff] %v17419_v35  ;;  %v6445_v27 = vrot.slane %v17417_v10, 2  ;;  %v17437_v14 = vld [vmem:[#allocation5 + $0x20] sm:$0xf]  ;;  %14111 = vmatpush3.bf16.msra.mxu0 %v16122_v55 }
 0x1dc   : > { %v1325_v3 = vmax.f32 %v1091_v13, 0.0  ;;  %v1094_v34 = vadd.f32 %v17191_v42, %v1093_v24  ;;  %v13957_v0 = vpop.f32.mrb[107].mxu0  ;;  %1816 = vst [vmem:[#allocation4 + $0x54] sm:$0xff] %v1814_v15  ;;  %14334 = vmatprep.mubr.msk.bf16.mxu1 %vm16790_vm0, %v21646_v1  ;;  %21695 = vst [vmem:[#allocation19_spill] sm:$0xff] %v17437_v14  ;;  %v17439_v18 = vld [vmem:[#allocation5 + $0x24] sm:$0xf]  ;;  %v12125_v24 = vcombine.low %v6641_v47, %v6143_v39  ;;  %14112 = vmatprep.subr.bf16.mxu0 %v21646_v1 }
 0x1dd   : > { %v17434_v4 = vsel %vm3131_vm3, %v6444_v26, %v6445_v27  ;;  %21696 = vst [vmem:[#allocation20_spill] sm:$0xff] %v17439_v18  ;;  %v17441_v15 = vld [vmem:[#allocation6 + $0x1c] sm:$0xff]  }
 0x1de   : > { %1423 = vst [vmem:[#allocation2 + $0x1a0] sm:$0xff] %v1325_v3  ;;  %v1326_v19 = vmax.f32 %v1094_v34, 0.0  ;;  %14079 = vmatmul.mubr.bf16.gmra.mrb[212].mxu0 %v17375_v50  ;;  %21694 = vst [vmem:[#allocation18_spill] sm:$0xff] %v17434_v4  ;;  %v6667_v39 = vrot.slane %v17441_v15, 2 }
 0x1df   : > { %v1519_v41 = vld [vmem:[#allocation2 + $0x190] ss:$2 sm:$0xff]  ;;  %v1617_v44 = vld [vmem:[#allocation2 + $0x191] ss:$2 sm:$0xff]  ;;  %14082 = vmatprep.mubr.msk.bf16.mxu0 %vm16790_vm0, %v21646_v1 }
 0x1e0   : > { %v1689_v53 = vmax.f32 %v1519_v41, %v1617_v44  ;;  %1424 = vst [vmem:[#allocation2 + $0x1a8] sm:$0xff] %v1326_v19  ;;  %v16123_v19 = vld [vmem:[%s21632_s3 + $0x38] sm:$0xff]   ;;  %v6666_v41 = vrot.slane %v12125_v24, 2 }
 0x1e1   : > { %v1813_v56 = vld [vmem:[#allocation3 + $0xbe] sm:$0x3f]  ;;  %v1098_v58 = vpop.f32.mrb[108].mxu0  ;;  %14113 = vmatpush3.bf16.msra.mxu0 %v16123_v19 }
 0x1e2   : > { %1738 = vst [vmem:[#allocation3 + $0xc8] sm:$0xff] %v1689_v53  ;;  %v1099_v9 = vadd.f32 %v17191_v42, %v1098_v58  ;;  %v13960_v12 = vpop.f32.mrb[109].mxu0  ;;  %v1815_v13 = vmax.f32 %v1811_v40, %v1813_v56  ;;  %14150 = vmatprep.subr.bf16.mxu0 %v21646_v1  ;;  %v17455_v53 = vsel %vm3131_vm3, %v6666_v41, %v6667_v39 }
 0x1e3   : > { %v1101_v28 = vpop.f32.mrb[110].mxu0  ;;  %21697 = vst [vmem:[#allocation21_spill] sm:$0xff] %v17455_v53  ;;  %v1885_v24 = vld [vmem:[#allocation4 + $0x50] sm:$0xff] }
 0x1e4   : > { %v1327_v3 = vmax.f32 %v1099_v9, 0.0  ;;  %v1102_v34 = vadd.f32 %v17191_v42, %v1101_v28  ;;  %v13961_v0 = vpop.f32.mrb[111].mxu0  ;;  %1817 = vst [vmem:[#allocation4 + $0x5c] sm:$0x3f] %v1815_v13  ;;  %v2036_v9 = vld [vmem:[#allocation4 + $0x51] sm:$0xff] }
 0x1e6   : > { %1425 = vst [vmem:[#allocation2 + $0x1b0] sm:$0xff] %v1327_v3  ;;  %v1328_v40 = vmax.f32 %v1102_v34, 0.0  ;;  %v17461_v34 = vld [vmem:[%s21631_s2] ss:$0 sm:$0xff] }
 0x1e7   : > { %v1521_v44 = vld [vmem:[#allocation2 + $0x1a0] ss:$2 sm:$0xff]  ;;  %v1619_v26 = vld [vmem:[#allocation2 + $0x1a1] ss:$2 sm:$0xff] }
 0x1e8   : > { %v1690_v47 = vmax.f32 %v1521_v44, %v1619_v26  ;;  %1426 = vst [vmem:[#allocation2 + $0x1b8] sm:$0xff] %v1328_v40 }
 0x1e9   : > { %v1106_v55 = vpop.f32.mrb[112].mxu0 }
 0x1ea   : > { %1739 = vst [vmem:[#allocation3 + $0xd0] sm:$0xff] %v1690_v47  ;;  %v1107_v56 = vadd.f32 %v17191_v42, %v1106_v55  ;;  %v13964_v58 = vpop.f32.mrb[113].mxu0 }
 0x1eb   : > { %v1109_v12 = vpop.f32.mrb[114].mxu0  ;;  %v2037_v13 = vld [vmem:[#allocation4 + $0x59] sm:$0xff] }
 0x1ec   : > { %v1886_v28 = vld [vmem:[#allocation4 + $0x58] sm:$0xff]  ;;  %v1329_v3 = vmax.f32 %v1107_v56, 0.0  ;;  %v1110_v0 = vadd.f32 %v17461_v34, %v1109_v12  ;;  %v13965_v19 = vpop.f32.mrb[115].mxu0  ;;  %v13055_v40 = vpack.c.bf16 %v2037_v13, %v2036_v9 }
 0x1ed   : > { %v12995_v41 = vpack.c.bf16 %v1886_v28, %v1885_v24 }
 0x1ee   : > { %1427 = vst [vmem:[#allocation2 + $0x1c0] sm:$0xff] %v1329_v3  ;;  %v1330_v44 = vmax.f32 %v1110_v0, 0.0  ;;  %13102 = vst [vmem:[#allocation6 + $0x28] sm:$0xff] %v13055_v40   ;;  %v16133_v3 = vld [vmem:[%s21632_s3 + $0x1c0] sm:$0xff]  }
 0x1ef   : > { %13091 = vst [vmem:[#allocation5 + $0x28] sm:$0xff] %v12995_v41   ;;  %v1523_v42 = vld [vmem:[#allocation2 + $0x1b0] ss:$2 sm:$0xff]  ;;  %v1621_v26 = vld [vmem:[#allocation2 + $0x1b1] ss:$2 sm:$0xff]  ;;  %14411 = vmatpush3.bf16.msra.mxu1 %v16133_v3  ;;  %v16135_v3 = vld [vmem:[%s21632_s3 + $0x1c8] sm:$0xff]  }
 0x1f0   : > { %v1691_v47 = vmax.f32 %v1523_v42, %v1621_v26  ;;  %1428 = vst [vmem:[#allocation2 + $0x1c8] sm:$0xff] %v1330_v44  ;;  %v1818_v26 = vld [vmem:[#allocation3 + $0xc4] sm:$0xff]  ;;  %14412 = vmatprep.subr.bf16.mxu1 %v21646_v1 }
 0x1f1   : > { %v1114_v55 = vpop.f32.mrb[116].mxu0  ;;  %v1819_v0 = vld [vmem:[#allocation3 + $0xcc] sm:$0x3f] }
 0x1f2   : > { %1740 = vst [vmem:[#allocation3 + $0xd8] sm:$0xff] %v1691_v47  ;;  %v1115_v56 = vadd.f32 %v17461_v34, %v1114_v55  ;;  %v13968_v58 = vpop.f32.mrb[117].mxu0 }
 0x1f3   : > { %v1117_v60 = vpop.f32.mrb[118].mxu0  ;;  %14413 = vmatpush3.bf16.msra.mxu1 %v16135_v3 }
 0x1f4   : > { %v1331_v31 = vmax.f32 %v1115_v56, 0.0  ;;  %v1118_v12 = vadd.f32 %v17461_v34, %v1117_v60  ;;  %v13969_v19 = vpop.f32.mrb[119].mxu0  ;;  %14414 = vmatprep.subr.bf16.mxu1 %v21646_v1 }
 0x1f5   : > { %v17466_v9 = vld [vmem:[#allocation6 + $0x28] sm:$0xff]  }
 0x1f6   : > { %1429 = vst [vmem:[#allocation2 + $0x1d0] sm:$0xff] %v1331_v31  ;;  %v1332_v13 = vmax.f32 %v1118_v12, 0.0  ;;  %v3338_v24 = vld [vmem:[#allocation5 + $0x28] sm:$0xf]  ;;  %v17468_v28 = vld [vmem:[#allocation5 + $0x2c] sm:$0xf]  ;;  %14083 = vmatmul.mubr.bf16.gmra.mrb[216].mxu0 %v17466_v9 }
 0x1f7   : > { %v17473_v40 = vld [vmem:[#allocation2 + $0x1c0] ss:$2 sm:$0xff]  ;;  %v17475_v41 = vld [vmem:[#allocation2 + $0x1c1] ss:$2 sm:$0xff]  ;;  %v21645_v60 = vrot.slane %v17466_v9, 1  ;;  %v11710_v44 = vcombine.low %v17368_v25, %v3338_v24  ;;  %v17481_v31 = vcombine.low %v3338_v24, %v17468_v28  ;;  %14086 = vmatprep.mubr.msk.bf16.mxu0 %vm16790_vm0, %v21646_v1 }
 0x1f8   : > { %v1692_v42 = vmax.f32 %v17473_v40, %v17475_v41  ;;  %1430 = vst [vmem:[#allocation2 + $0x1d8] sm:$0xff] %v1332_v13  ;;  %v17547_v36 = vld [vmem:[#allocation6 + $0x24] sm:$0xff]  }
 0x1f9   : > { %v1820_v47 = vld [vmem:[#allocation3 + $0xd2] sm:$0xff]  ;;  %v1821_v55 = vld [vmem:[#allocation3 + $0xda] sm:$0x3f]  ;;  %v17492_v25 = vsel %vm2686_vm2, %v2916_v61, %v21645_v60  ;;  %v1122_v56 = vpop.f32.mrb[120].mxu0  ;;  %v17494_v58 = vrot.slane %v11710_v44, 3  ;;  %v4346_v61 = vrot.slane %v17481_v31, 1 }
 0x1fa   : > { %v1822_v12 = vmax.f32 %v1818_v26, %v1820_v47  ;;  %v1823_v19 = vmax.f32 %v1819_v0, %v1821_v55  ;;  %v1123_v13 = vadd.f32 %v17461_v34, %v1122_v56  ;;  %v13972_v24 = vpop.f32.mrb[121].mxu0  ;;  %v17506_v47 = vld [vmem:[#allocation5 + $0x24] sm:$0xff]   ;;  %v17517_v55 = vld [vmem:[#allocation6 + $0x28] sm:$0xf]  ;;  %v17519_v56 = vld [vmem:[#allocation6 + $0x2c] sm:$0xf] }
 0x1fb   : > { %v1125_v62 = vpop.f32.mrb[122].mxu0  ;;  %v3422_v50 = vsel %vm3413_vm1, %v17382_v59, %v17494_v58  ;;  %v17515_v59 = vsel %vm2686_vm2, %v4344_v7, %v4346_v61  ;;  %21698 = vst [vmem:[#allocation22_spill] sm:$0xff] %v17517_v55  ;;  %21699 = vst [vmem:[#allocation23_spill] sm:$0xff] %v17519_v56  ;;  %v6447_v7 = vrot.slane %v17506_v47, 2 }
 0x1fc   : > { %1824 = vst [vmem:[#allocation4 + $0x62] sm:$0xff] %v1822_v12  ;;  %1825 = vst [vmem:[#allocation4 + $0x6a] sm:$0x3f] %v1823_v19  ;;  %v1333_v44 = vmax.f32 %v1123_v13, 0.0  ;;  %v1126_v26 = vadd.f32 %v17461_v34, %v1125_v62  ;;  %14335 = vmatmul.mubr.bf16.gmra.mrb[12].mxu1 %v3422_v50  ;;  %v13973_v0 = vpop.f32.mrb[123].mxu0  ;;  %v16137_v12 = vld [vmem:[%s21632_s3 + $0x1d0] sm:$0xff]  }
 0x1fd   : > { %14338 = vmatprep.mubr.msk.bf16.mxu1 %vm16790_vm0, %v21646_v1  ;;  %14415 = vmatpush3.bf16.msra.mxu1 %v16137_v12  ;;  %v17542_v12 = vld [vmem:[#allocation5 + $0x2c] sm:$0xf] }
 0x1fe   : > { %1431 = vst [vmem:[#allocation2 + $0x1e0] sm:$0xff] %v1333_v44  ;;  %v1334_v62 = vmax.f32 %v1126_v26, 0.0  ;;  %v17533_v44 = vsel %vm3131_vm3, %v6445_v27, %v6447_v7  ;;  %14416 = vmatprep.subr.bf16.mxu1 %v21646_v1  ;;  %21702 = vst [vmem:[#allocation26_spill] sm:$0xff] %v17542_v12 }
 0x1ff   : > { %v1527_v13 = vld [vmem:[#allocation2 + $0x1d0] ss:$2 sm:$0xff]  ;;  %v1625_v24 = vld [vmem:[#allocation2 + $0x1d1] ss:$2 sm:$0xff]  ;;  %21700 = vst [vmem:[#allocation24_spill] sm:$0xff] %v17533_v44 }
 0x200   : > { %v1693_v3 = vmax.f32 %v1527_v13, %v1625_v24  ;;  %1432 = vst [vmem:[#allocation2 + $0x1e8] sm:$0xff] %v1334_v62  ;;  %v16139_v13 = vld [vmem:[%s21632_s3 + $0x1d8] sm:$0xff]   ;;  %v17540_v62 = vld [vmem:[#allocation5 + $0x28] sm:$0xf] }
 0x201   : > { %v1130_v50 = vpop.f32.mrb[124].mxu0  ;;  %21701 = vst [vmem:[#allocation25_spill] sm:$0xff] %v17540_v62  ;;  %14417 = vmatpush3.bf16.msra.mxu1 %v16139_v13 }
 0x202   : > { %1742 = vst [vmem:[#allocation3 + $0xe8] sm:$0xff] %v1693_v3  ;;  %v1131_v26 = vadd.f32 %v17461_v34, %v1130_v50  ;;  %v13976_v0 = vpop.f32.mrb[125].mxu0  ;;  %14418 = vmatprep.subr.bf16.mxu1 %v21646_v1 }
 0x203   : > { %v1133_v24 = vpop.f32.mrb[126].mxu0  ;;  %v1887_v19 = vld [vmem:[#allocation4 + $0x60] sm:$0xff]  ;;  %v1888_v10 = vld [vmem:[#allocation4 + $0x68] sm:$0xff] }
 0x204   : > { %v1335_v3 = vmax.f32 %v1131_v26, 0.0  ;;  %v1134_v50 = vadd.f32 %v17461_v34, %v1133_v24  ;;  %v13977_v0 = vpop.f32.mrb[127].mxu0  ;;  %v13000_v37 = vpack.c.bf16 %v1888_v10, %v1887_v19  ;;  %v21642_v26 = vrot.slane %v17547_v36, 2 }
 0x205   : > { %14419 = vmatpush3.bf16.msra.mxu1 %v16142_v21 }
 0x206   : > { %1433 = vst [vmem:[#allocation2 + $0x1f0] sm:$0xff] %v1335_v3  ;;  %v1336_v49 = vmax.f32 %v1134_v50, 0.0  ;;  %13092 = vst [vmem:[#allocation5 + $0x30] sm:$0xff] %v13000_v37   ;;  %v17559_v37 = vsel %vm3131_vm3, %v6667_v39, %v21642_v26  ;;  %14420 = vmatprep.subr.bf16.mxu1 %v21646_v1  ;;  %v16147_v50 = vld [vmem:[%s21632_s3 + $0x1f0] sm:$0xff]  }
 0x207   : > { %v1529_v63 = vld [vmem:[#allocation2 + $0x1e0] ss:$2 sm:$0xff]  ;;  %v1627_v8 = vld [vmem:[#allocation2 + $0x1e1] ss:$2 sm:$0xff]  ;;  %21703 = vst [vmem:[#allocation27_spill] sm:$0xff] %v17559_v37 }
 0x208   : > { %v1694_v27 = vmax.f32 %v1529_v63, %v1627_v8  ;;  %1434 = vst [vmem:[#allocation2 + $0x1f8] sm:$0xff] %v1336_v49  ;;  %v16144_v8 = vld [vmem:[%s21632_s3 + $0x1e8] sm:$0xff]  }
 0x209   : > { %v1138_v24 = vpop.f32.mrb[128].mxu0  ;;  %14421 = vmatpush3.bf16.msra.mxu1 %v16144_v8 }
 0x20a   : > { %1743 = vst [vmem:[#allocation3 + $0xf0] sm:$0xff] %v1694_v27  ;;  %v1139_v19 = vadd.f32 %v17461_v34, %v1138_v24  ;;  %v13980_v13 = vpop.f32.mrb[129].mxu0  ;;  %14422 = vmatprep.subr.bf16.mxu1 %v21646_v1 }
 0x20b   : > { %v1141_v49 = vpop.f32.mrb[130].mxu0 }
 0x20c   : > { %v1337_v63 = vmax.f32 %v1139_v19, 0.0  ;;  %v1142_v21 = vadd.f32 %v17461_v34, %v1141_v49  ;;  %v13981_v10 = vpop.f32.mrb[131].mxu0 }
 0x20d   : > { %v3340_v3 = vld [vmem:[#allocation5 + $0x30] sm:$0xf]  ;;  %v17567_v15 = vld [vmem:[#allocation5 + $0x34] sm:$0xf]  ;;  %14423 = vmatpush3.bf16.msra.mxu1 %v16147_v50 }
 0x20e   : > { %1435 = vst [vmem:[#allocation2 + $0x200] sm:$0xff] %v1337_v63  ;;  %v1338_v39 = vmax.f32 %v1142_v21, 0.0  ;;  %v11711_v27 = vcombine.low %v17468_v28, %v3340_v3  ;;  %v17575_v0 = vcombine.low %v3340_v3, %v17567_v15  ;;  %v17580_v63 = vld [vmem:[#allocation5 + $0x2c] sm:$0xff]   ;;  %14424 = vmatprep.subr.bf16.mxu1 %v21646_v1 }
 0x20f   : > { %v1531_v24 = vld [vmem:[#allocation2 + $0x1f0] ss:$2 sm:$0xff]  ;;  %v1629_v19 = vld [vmem:[#allocation2 + $0x1f1] ss:$2 sm:$0xff] }
 0x210   : > { %v1695_v13 = vmax.f32 %v1531_v24, %v1629_v19  ;;  %1436 = vst [vmem:[#allocation2 + $0x208] sm:$0xff] %v1338_v39  ;;  %v17577_v49 = vrot.slane %v11711_v27, 3  ;;  %v21644_v8 = vrot.slane %v17575_v0, 1  ;;  %v16149_v27 = vld [vmem:[%s21632_s3 + $0x1f8] sm:$0xff]   ;;  %v17616_v19 = vld [vmem:[#allocation5 + $0x34] sm:$0xf] }
 0x211   : > { %v1828_v28 = vld [vmem:[#allocation3 + $0xee] sm:$0xff]  ;;  %v1146_v21 = vpop.f32.mrb[132].mxu0  ;;  %14425 = vmatpush3.bf16.msra.mxu1 %v16149_v27  ;;  %21706 = vst [vmem:[#allocation30_spill] sm:$0xff] %v17616_v19  ;;  %v1827_v27 = vld [vmem:[#allocation3 + $0xe8] sm:$0x3f] }
 0x212   : > { %1744 = vst [vmem:[#allocation3 + $0xf8] sm:$0xff] %v1695_v13  ;;  %v1147_v10 = vadd.f32 %v17461_v34, %v1146_v21  ;;  %v13984_v26 = vpop.f32.mrb[133].mxu0  ;;  %v3424_v3 = vsel %vm3413_vm1, %v17494_v58, %v17577_v49  ;;  %v17589_v39 = vmax.f32 %v1692_v42, %v1828_v28  ;;  %v21643_v58 = vrot.slane %v17580_v63, 2  ;;  %14514 = vmatprep.subr.bf16.mxu1 %v21646_v1 }
 0x213   : > { %v1149_v50 = vpop.f32.mrb[134].mxu0  ;;  %14339 = vmatmul.mubr.bf16.gmra.mrb[16].mxu1 %v3424_v3  ;;  %v17600_v26 = vsel %vm2686_vm2, %v4346_v61, %v21644_v8  ;;  %v17614_v61 = vld [vmem:[#allocation5 + $0x30] sm:$0xf] }
 0x214   : > { %v1339_v40 = vmax.f32 %v1147_v10, 0.0  ;;  %v1150_v41 = vadd.f32 %v17461_v34, %v1149_v50  ;;  %v13985_v42 = vpop.f32.mrb[135].mxu0  ;;  %1832 = vst [vmem:[#allocation4 + $0x70] sm:$0xff] %v17589_v39  ;;  %14342 = vmatprep.mubr.msk.bf16.mxu1 %vm16790_vm0, %v21646_v1  ;;  %v17612_v24 = vsel %vm3131_vm3, %v6447_v7, %v21643_v58  ;;  %21705 = vst [vmem:[#allocation29_spill] sm:$0xff] %v17614_v61 }
 0x215   : > { %21704 = vst [vmem:[#allocation28_spill] sm:$0xff] %v17612_v24 }
 0x216   : > { %1437 = vst [vmem:[#allocation2 + $0x210] sm:$0xff] %v1339_v40  ;;  %v1340_v13 = vmax.f32 %v1150_v41, 0.0  ;;  %v2038_v40 = vld [vmem:[#allocation4 + $0x61] sm:$0xff] }
 0x217   : > { %v1533_v21 = vld [vmem:[#allocation2 + $0x200] ss:$2 sm:$0xff]  ;;  %v1631_v10 = vld [vmem:[#allocation2 + $0x201] ss:$2 sm:$0xff] }
 0x218   : > { %v1696_v3 = vmax.f32 %v1533_v21, %v1631_v10  ;;  %1438 = vst [vmem:[#allocation2 + $0x218] sm:$0xff] %v1340_v13 }
 0x219   : > { %v1829_v47 = vld [vmem:[#allocation3 + $0xf6] sm:$0x3f]  ;;  %v1154_v50 = vpop.f32.mrb[136].mxu0 }
 0x21a   : > { %1745 = vst [vmem:[#allocation3 + $0x100] sm:$0xff] %v1696_v3  ;;  %v1155_v7 = vadd.f32 %v17461_v34, %v1154_v50  ;;  %v13988_v42 = vpop.f32.mrb[137].mxu0  ;;  %v1831_v58 = vmax.f32 %v1827_v27, %v1829_v47 }
 0x21b   : > { %v1157_v8 = vpop.f32.mrb[138].mxu0  ;;  %v2039_v41 = vld [vmem:[#allocation4 + $0x69] sm:$0xff] }
 0x21c   : > { %v1341_v60 = vmax.f32 %v1155_v7, 0.0  ;;  %v1158_v1 = vadd.f32 %v17461_v34, %v1157_v8  ;;  %v13989_v37 = vpop.f32.mrb[139].mxu0  ;;  %v13060_v28 = vpack.c.bf16 %v2039_v41, %v2038_v40  ;;  %1833 = vst [vmem:[#allocation4 + $0x78] sm:$0x3f] %v1831_v58  ;;  %v21708_v41 = vrot.slane %v17466_v9, 1 }
 0x21e   : > { %1439 = vst [vmem:[#allocation2 + $0x220] sm:$0xff] %v1341_v60  ;;  %v1342_v21 = vmax.f32 %v1158_v1, 0.0  ;;  %13103 = vst [vmem:[#allocation6 + $0x30] sm:$0xff] %v13060_v28  }
 0x21f   : > { %v1535_v13 = vld [vmem:[#allocation2 + $0x210] ss:$2 sm:$0xff]  ;;  %v1633_v10 = vld [vmem:[#allocation2 + $0x211] ss:$2 sm:$0xff] }
 0x220   : > { %v1697_v53 = vmax.f32 %v1535_v13, %v1633_v10  ;;  %1440 = vst [vmem:[#allocation2 + $0x228] sm:$0xff] %v1342_v21 }
 0x221   : > { %v1162_v3 = vpop.f32.mrb[140].mxu0 }
 0x222   : > { %1746 = vst [vmem:[#allocation3 + $0x108] sm:$0xff] %v1697_v53  ;;  %v1163_v27 = vadd.f32 %v17461_v34, %v1162_v3  ;;  %v13992_v47 = vpop.f32.mrb[141].mxu0  ;;  %v21707_v53 = vmov 0.0  }
 0x223   : > { %v1165_v50 = vpop.f32.mrb[142].mxu0 }
 0x224   : > { %v1343_v42 = vmax.f32 %v1163_v27, 0.0  ;;  %v1166_v7 = vadd.f32 %v17461_v34, %v1165_v50  ;;  %v13993_v8 = vpop.f32.mrb[143].mxu0 }
 0x225   : > { %v17625_v37 = vld [vmem:[#allocation6 + $0x30] sm:$0xff]  }
 0x226   : > { %1441 = vst [vmem:[#allocation2 + $0x230] sm:$0xff] %v1343_v42  ;;  %v1344_v60 = vmax.f32 %v1166_v7, 0.0  ;;  %14087 = vmatmul.mubr.bf16.gmra.mrb[220].mxu0 %v17625_v37  ;;  %v21648_v28 = vrot.slane %v17625_v37, 1  ;;  %v17638_v10 = vld [vmem:[#allocation6 + $0x30] sm:$0xf]  ;;  %v1834_v42 = vld [vmem:[#allocation3 + $0xfc] sm:$0xff] }
 0x227   : > { %v1537_v1 = vld [vmem:[#allocation2 + $0x220] ss:$2 sm:$0xff]  ;;  %v1635_v58 = vld [vmem:[#allocation2 + $0x221] ss:$2 sm:$0xff]  ;;  %14090 = vmatprep.mubr.msk.bf16.mxu0 %vm16790_vm0, %v21707_v53  ;;  %21709 = vst [vmem:[#allocation31_spill] sm:$0xff] %v17638_v10  ;;  %v17645_v7 = vld [vmem:[#allocation6 + $0x2c] sm:$0xff]  }
 0x228   : > { %v1698_v40 = vmax.f32 %v1537_v1, %v1635_v58  ;;  %1442 = vst [vmem:[#allocation2 + $0x238] sm:$0xff] %v1344_v60  ;;  %v17636_v21 = vsel %vm2686_vm2, %v21708_v41, %v21648_v28  ;;  %v17641_v47 = vld [vmem:[#allocation6 + $0x34] sm:$0xf]  ;;  %v21654_v1 = vrot.slane %v17645_v7, 2 }
 0x229   : > { %v1170_v13 = vpop.f32.mrb[144].mxu0  ;;  %21710 = vst [vmem:[#allocation32_spill] sm:$0xff] %v17641_v47 }
 0x22a   : > { %1747 = vst [vmem:[#allocation3 + $0x110] sm:$0xff] %v1698_v40  ;;  %v1171_v3 = vadd.f32 %v17461_v34, %v1170_v13  ;;  %v13996_v27 = vpop.f32.mrb[145].mxu0  ;;  %v21711_v13 = vrot.slane %v17547_v36, 2 }
 0x22b   : > { %v1173_v50 = vpop.f32.mrb[146].mxu0 }
 0x22c   : > { %v1345_v8 = vmax.f32 %v1171_v3, 0.0  ;;  %v1174_v9 = vadd.f32 %v17461_v34, %v1173_v50  ;;  %v13997_v60 = vpop.f32.mrb[147].mxu0  ;;  %v17658_v27 = vsel %vm3131_vm3, %v21711_v13, %v21654_v1  ;;  %v1835_v50 = vld [vmem:[#allocation3 + $0x104] sm:$0x3f] }
 0x22d   : > { %21712 = vst [vmem:[#allocation33_spill] sm:$0xff] %v17658_v27 }
 0x22e   : > { %1443 = vst [vmem:[#allocation2 + $0x240] sm:$0xff] %v1345_v8  ;;  %v1346_v58 = vmax.f32 %v1174_v9, 0.0 }
 0x22f   : > { %v17649_v40 = vld [vmem:[#allocation2 + $0x230] ss:$2 sm:$0xff]  ;;  %v17651_v41 = vld [vmem:[#allocation2 + $0x231] ss:$2 sm:$0xff] }
 0x230   : > { %1444 = vst [vmem:[#allocation2 + $0x248] sm:$0xff] %v1346_v58 }
 0x231   : > { %v1836_v60 = vld [vmem:[#allocation3 + $0x10a] sm:$0xff]  ;;  %v1837_v8 = vld [vmem:[#allocation3 + $0x112] sm:$0x3f]  ;;  %v1178_v9 = vpop.f32.mrb[148].mxu0 }
 0x232   : > { %v1179_v28 = vadd.f32 %v17461_v34, %v1178_v9  ;;  %v14000_v19 = vpop.f32.mrb[149].mxu0  ;;  %v1838_v61 = vmax.f32 %v1834_v42, %v1836_v60  ;;  %v1839_v12 = vmax.f32 %v1835_v50, %v1837_v8  ;;  %v2040_v50 = vld [vmem:[#allocation4 + $0x71] sm:$0xff] }
 0x233   : > { %v1181_v62 = vpop.f32.mrb[150].mxu0 }
 0x234   : > { %v1347_v18 = vmax.f32 %v1179_v28, 0.0  ;;  %v1182_v36 = vadd.f32 %v17461_v34, %v1181_v62  ;;  %v14001_v13 = vpop.f32.mrb[151].mxu0  ;;  %1840 = vst [vmem:[#allocation4 + $0x7e] sm:$0xff] %v1838_v61  ;;  %1841 = vst [vmem:[#allocation4 + $0x86] sm:$0x3f] %v1839_v12 }
 0x236   : > { %1445 = vst [vmem:[#allocation2 + $0x250] sm:$0xff] %v1347_v18  ;;  %v1348_v1 = vmax.f32 %v1182_v36, 0.0 }
 0x237   : > { %v1541_v3 = vld [vmem:[#allocation2 + $0x240] ss:$2 sm:$0xff]  ;;  %v1639_v58 = vld [vmem:[#allocation2 + $0x241] ss:$2 sm:$0xff] }
 0x238   : > { %v1700_v27 = vmax.f32 %v1541_v3, %v1639_v58  ;;  %1446 = vst [vmem:[#allocation2 + $0x258] sm:$0xff] %v1348_v1 }
 0x239   : > { %v1186_v14 = vpop.f32.mrb[152].mxu0 }
 0x23a   : > { %1749 = vst [vmem:[#allocation3 + $0x120] sm:$0xff] %v1700_v27  ;;  %v1187_v9 = vadd.f32 %v17461_v34, %v1186_v14  ;;  %v14004_v19 = vpop.f32.mrb[153].mxu0 }
 0x23b   : > { %v1189_v42 = vpop.f32.mrb[154].mxu0  ;;  %v2041_v60 = vld [vmem:[#allocation4 + $0x79] sm:$0xff] }
 0x23c   : > { %v1890_v28 = vld [vmem:[#allocation4 + $0x78] sm:$0xff]  ;;  %v1349_v8 = vmax.f32 %v1187_v9, 0.0  ;;  %v1190_v62 = vadd.f32 %v17461_v34, %v1189_v42  ;;  %v14005_v61 = vpop.f32.mrb[155].mxu0  ;;  %v13065_v12 = vpack.c.bf16 %v2041_v60, %v2040_v50  ;;  %v1891_v38 = vld [vmem:[#allocation4 + $0x80] sm:$0xff] }
 0x23d   : > { %v13005_v18 = vpack.c.bf16 %v1890_v28, %v17589_v39 }
 0x23e   : > { %1447 = vst [vmem:[#allocation2 + $0x260] sm:$0xff] %v1349_v8  ;;  %v1350_v36 = vmax.f32 %v1190_v62, 0.0  ;;  %13104 = vst [vmem:[#allocation6 + $0x38] sm:$0xff] %v13065_v12  }
 0x23f   : > { %13093 = vst [vmem:[#allocation5 + $0x38] sm:$0xff] %v13005_v18   ;;  %v1543_v1 = vld [vmem:[#allocation2 + $0x250] ss:$2 sm:$0xff]  ;;  %v1641_v27 = vld [vmem:[#allocation2 + $0x251] ss:$2 sm:$0xff] }
 0x240   : > { %v1701_v3 = vmax.f32 %v1543_v1, %v1641_v27  ;;  %1448 = vst [vmem:[#allocation2 + $0x268] sm:$0xff] %v1350_v36 }
 0x241   : > { %v1194_v14 = vpop.f32.mrb[156].mxu0 }
 0x242   : > { %1750 = vst [vmem:[#allocation3 + $0x128] sm:$0xff] %v1701_v3  ;;  %v1195_v13 = vadd.f32 %v17461_v34, %v1194_v14  ;;  %v14008_v58 = vpop.f32.mrb[157].mxu0  ;;  %v21713_v3 = vrot.slane %v17625_v37, 1 }
 0x243   : > { %v1197_v9 = vpop.f32.mrb[158].mxu0 }
 0x244   : > { %v1351_v19 = vmax.f32 %v1195_v13, 0.0  ;;  %v1198_v42 = vadd.f32 %v17461_v34, %v1197_v9  ;;  %v14009_v50 = vpop.f32.mrb[159].mxu0 }
 0x245   : > { %v17669_v60 = vld [vmem:[#allocation6 + $0x38] sm:$0xff]  }
 0x246   : > { %1449 = vst [vmem:[#allocation2 + $0x270] sm:$0xff] %v1351_v19  ;;  %v1352_v39 = vmax.f32 %v1198_v42, 0.0  ;;  %v3342_v28 = vld [vmem:[#allocation5 + $0x38] sm:$0xf]  ;;  %v17671_v8 = vld [vmem:[#allocation5 + $0x3c] sm:$0xf]  ;;  %14091 = vmatmul.mubr.bf16.gmra.mrb[224].mxu0 %v17669_v60  ;;  %v21714_v42 = vmax.f32 %v17649_v40, %v17651_v41 }
 0x247   : > { %v1545_v62 = vld [vmem:[#allocation2 + $0x260] ss:$2 sm:$0xff]  ;;  %v1643_v61 = vld [vmem:[#allocation2 + $0x261] ss:$2 sm:$0xff]  ;;  %v21657_v12 = vrot.slane %v17669_v60, 1  ;;  %v11712_v18 = vcombine.low %v17567_v15, %v3342_v28  ;;  %v17677_v36 = vcombine.low %v3342_v28, %v17671_v8  ;;  %14094 = vmatprep.mubr.msk.bf16.mxu0 %vm16790_vm0, %v21707_v53  ;;  %v21715_v28 = vrot.slane %v17575_v0, 1 }
 0x248   : > { %v1702_v1 = vmax.f32 %v1545_v62, %v1643_v61  ;;  %1450 = vst [vmem:[#allocation2 + $0x278] sm:$0xff] %v1352_v39  ;;  %v17705_v61 = vld [vmem:[#allocation5 + $0x34] sm:$0xff]   ;;  %v17712_v41 = vld [vmem:[#allocation6 + $0x3c] sm:$0xf] }
 0x249   : > { %v1844_v27 = vld [vmem:[#allocation3 + $0x126] sm:$0xff]  ;;  %v17686_v14 = vsel %vm2686_vm2, %v21713_v3, %v21657_v12  ;;  %v17688_v13 = vrot.slane %v11712_v18, 3  ;;  %v1202_v58 = vpop.f32.mrb[160].mxu0  ;;  %v21656_v15 = vrot.slane %v17677_v36, 1  ;;  %21717 = vst [vmem:[#allocation35_spill] sm:$0xff] %v17712_v41 }
 0x24a   : > { %1751 = vst [vmem:[#allocation3 + $0x130] sm:$0xff] %v1702_v1  ;;  %v1203_v9 = vadd.f32 %v17461_v34, %v1202_v58  ;;  %v14012_v19 = vpop.f32.mrb[161].mxu0  ;;  %v1846_v50 = vmax.f32 %v21714_v42, %v1844_v27  ;;  %v17725_v12 = vld [vmem:[#allocation5 + $0x38] sm:$0xf] }
 0x24b   : > { %v3426_v37 = vsel %vm3413_vm1, %v17577_v49, %v17688_v13  ;;  %v1205_v39 = vpop.f32.mrb[162].mxu0  ;;  %v17703_v62 = vsel %vm2686_vm2, %v21715_v28, %v21656_v15  ;;  %v17710_v49 = vld [vmem:[#allocation6 + $0x38] sm:$0xf]  ;;  %21720 = vst [vmem:[#allocation37_spill] sm:$0xff] %v17725_v12 }
 0x24c   : > { %14343 = vmatmul.mubr.bf16.gmra.mrb[20].mxu1 %v3426_v37  ;;  %v1353_v18 = vmax.f32 %v1203_v9, 0.0  ;;  %v1206_v1 = vadd.f32 %v17461_v34, %v1205_v39  ;;  %v14013_v40 = vpop.f32.mrb[163].mxu0  ;;  %1848 = vst [vmem:[#allocation4 + $0x8c] sm:$0xff] %v1846_v50  ;;  %21716 = vst [vmem:[#allocation34_spill] sm:$0xff] %v17710_v49  ;;  %v21662_v9 = vrot.slane %v17705_v61, 2  ;;  %v2042_v28 = vld [vmem:[#allocation4 + $0x81] sm:$0xff] }
 0x24d   : > { %14346 = vmatprep.mubr.msk.bf16.mxu1 %vm16790_vm0, %v21707_v53  ;;  %v1843_v37 = vld [vmem:[#allocation3 + $0x120] sm:$0x3f]  ;;  %v21718_v40 = vrot.slane %v17580_v63, 2 }
 0x24e   : > { %1451 = vst [vmem:[#allocation2 + $0x280] sm:$0xff] %v1353_v18  ;;  %v1354_v27 = vmax.f32 %v1206_v1, 0.0 }
 0x24f   : > { %v1547_v58 = vld [vmem:[#allocation2 + $0x270] ss:$2 sm:$0xff]  ;;  %v1645_v19 = vld [vmem:[#allocation2 + $0x271] ss:$2 sm:$0xff]  ;;  %v17722_v18 = vsel %vm3131_vm3, %v21718_v40, %v21662_v9 }
 0x250   : > { %v1703_v42 = vmax.f32 %v1547_v58, %v1645_v19  ;;  %1452 = vst [vmem:[#allocation2 + $0x288] sm:$0xff] %v1354_v27  ;;  %21719 = vst [vmem:[#allocation36_spill] sm:$0xff] %v17722_v18  ;;  %v17727_v58 = vld [vmem:[#allocation6 + $0x34] sm:$0xff]  }
 0x251   : > { %v1845_v50 = vld [vmem:[#allocation3 + $0x12e] sm:$0x3f]  ;;  %v1210_v39 = vpop.f32.mrb[164].mxu0 }
 0x252   : > { %v1847_v1 = vmax.f32 %v1843_v37, %v1845_v50  ;;  %1752 = vst [vmem:[#allocation3 + $0x138] sm:$0xff] %v1703_v42  ;;  %v1211_v3 = vadd.f32 %v17461_v34, %v1210_v39  ;;  %v14016_v15 = vpop.f32.mrb[165].mxu0  ;;  %v17730_v37 = vld [vmem:[#allocation5 + $0x3c] sm:$0xf]  ;;  %v21663_v50 = vrot.slane %v17727_v58, 2 }
 0x253   : > { %v1213_v27 = vpop.f32.mrb[166].mxu0  ;;  %v2043_v19 = vld [vmem:[#allocation4 + $0x89] sm:$0xff]  ;;  %21721 = vst [vmem:[#allocation38_spill] sm:$0xff] %v17730_v37 }
 0x254   : > { %v1892_v30 = vld [vmem:[#allocation4 + $0x88] sm:$0xff]  ;;  %1849 = vst [vmem:[#allocation4 + $0x94] sm:$0x3f] %v1847_v1  ;;  %v1355_v57 = vmax.f32 %v1211_v3, 0.0  ;;  %v1214_v63 = vadd.f32 %v17461_v34, %v1213_v27  ;;  %v14017_v54 = vpop.f32.mrb[167].mxu0  ;;  %v13070_v40 = vpack.c.bf16 %v2043_v19, %v2042_v28 }
 0x255   : > { %v13010_v9 = vpack.c.bf16 %v1892_v30, %v1891_v38  ;;  %v21722_v54 = vrot.slane %v17645_v7, 2 }
 0x256   : > { %1453 = vst [vmem:[#allocation2 + $0x290] sm:$0xff] %v1355_v57  ;;  %v1356_v42 = vmax.f32 %v1214_v63, 0.0  ;;  %13105 = vst [vmem:[#allocation6 + $0x40] sm:$0xff] %v13070_v40  }
 0x257   : > { %13094 = vst [vmem:[#allocation5 + $0x40] sm:$0xff] %v13010_v9   ;;  %v1549_v39 = vld [vmem:[#allocation2 + $0x280] ss:$2 sm:$0xff]  ;;  %v1647_v18 = vld [vmem:[#allocation2 + $0x281] ss:$2 sm:$0xff]  ;;  %v17740_v30 = vsel %vm3131_vm3, %v21722_v54, %v21663_v50 }
 0x258   : > { %v1704_v1 = vmax.f32 %v1549_v39, %v1647_v18  ;;  %1454 = vst [vmem:[#allocation2 + $0x298] sm:$0xff] %v1356_v42  ;;  %21723 = vst [vmem:[#allocation39_spill] sm:$0xff] %v17740_v30 }
 0x259   : > { %v1218_v38 = vpop.f32.mrb[168].mxu0 }
 0x25a   : > { %1753 = vst [vmem:[#allocation3 + $0x140] sm:$0xff] %v1704_v1  ;;  %v1219_v57 = vadd.f32 %v17461_v34, %v1218_v38  ;;  %v14020_v3 = vpop.f32.mrb[169].mxu0 }
 0x25b   : > { %v1221_v28 = vpop.f32.mrb[170].mxu0 }
 0x25c   : > { %v1357_v9 = vmax.f32 %v1219_v57, 0.0  ;;  %v1222_v27 = vadd.f32 %v17461_v34, %v1221_v28  ;;  %v14021_v19 = vpop.f32.mrb[171].mxu0 }
 0x25d   : > { %v2228_v63 = vld [vmem:[#allocation6 + $0x40] sm:$0xf]  ;;  %v2229_v18 = vld [vmem:[#allocation6 + $0x44] sm:$0x3] }
 0x25e   : > { %v2885_v40 = vld [vmem:[#allocation6 + $0x44] sm:$0x7]  ;;  %v11586_v42 = vcombine.low %v2228_v63, %v2229_v18  ;;  %1455 = vst [vmem:[#allocation2 + $0x2a0] sm:$0xff] %v1357_v9  ;;  %v1358_v7 = vmax.f32 %v1222_v27, 0.0  ;;  %v3344_v15 = vld [vmem:[#allocation5 + $0x40] sm:$0xf] }
 0x25f   : > { %v11655_v39 = vcombine.low %v2228_v63, %v2885_v40  ;;  %v17744_v54 = vld [vmem:[#allocation5 + $0x44] sm:$0xf]  ;;  %v1551_v50 = vld [vmem:[#allocation2 + $0x290] ss:$2 sm:$0xff]  ;;  %v1649_v1 = vld [vmem:[#allocation2 + $0x291] ss:$2 sm:$0xff]  ;;  %v11713_v38 = vcombine.low %v17671_v8, %v3344_v15 }
 0x260   : > { %v17748_v3 = vcombine.low %v3344_v15, %v17744_v54  ;;  %v1705_v57 = vmax.f32 %v1551_v50, %v1649_v1  ;;  %14095 = vmatmul.mubr.bf16.gmra.mrb[228].mxu0 %v11586_v42  ;;  %1456 = vst [vmem:[#allocation2 + $0x2a8] sm:$0xff] %v1358_v7  ;;  %v2178_v9 = vld [vmem:[#allocation5] sm:$0xf]  ;;  %v21724_v8 = vrot.slane %v17669_v60, 1  ;;  %v21725_v60 = vrot.slane %v17677_v36, 1 }
 0x261   : > { %v17750_v28 = vrot.slane %v11655_v39, 1  ;;  %v17752_v19 = vrot.slane %v11713_v38, 3  ;;  %v1226_v63 = vpop.f32.mrb[172].mxu0  ;;  %14114 = vmatprep.mubr.msk.bf16.mxu0 %vm16790_vm0, %v21707_v53  ;;  %v17767_v39 = vld [vmem:[#allocation5 + $0x4] sm:$0xf]  ;;  %v17779_v38 = vld [vmem:[#allocation5 + $0x3c] sm:$0xff]  }
 0x262   : > { %v21665_v27 = vrot.slane %v17748_v3, 1  ;;  %1754 = vst [vmem:[#allocation3 + $0x148] sm:$0xff] %v1705_v57  ;;  %v1227_v50 = vadd.f32 %v17461_v34, %v1226_v63  ;;  %v14024_v18 = vpop.f32.mrb[173].mxu0  ;;  %v16130_v7 = vld [vmem:[%s21632_s3 + $0x80] sm:$0xff]   ;;  %v17786_v30 = vld [vmem:[#allocation6 + $0x44] sm:$0xf] }
 0x263   : > { %v17761_v15 = vsel %vm2686_vm2, %v21724_v8, %v17750_v28  ;;  %v3428_v40 = vsel %vm3413_vm1, %v17688_v13, %v17752_v19  ;;  %v1229_v42 = vpop.f32.mrb[174].mxu0  ;;  %v1851_v8 = vld [vmem:[#allocation3 + $0x13c] sm:$0x3f]  ;;  %v17784_v18 = vld [vmem:[#allocation6 + $0x40] sm:$0xf]  ;;  %21727 = vst [vmem:[#allocation41_spill] sm:$0xff] %v17786_v30 }
 0x264   : > { %v17777_v1 = vsel %vm2686_vm2, %v21725_v60, %v21665_v27  ;;  %14347 = vmatmul.mubr.bf16.gmra.mrb[24].mxu1 %v3428_v40  ;;  %v1359_v57 = vmax.f32 %v1227_v50, 0.0  ;;  %v1230_v13 = vadd.f32 %v17461_v34, %v1229_v42  ;;  %v14025_v63 = vpop.f32.mrb[175].mxu0  ;;  %21726 = vst [vmem:[#allocation40_spill] sm:$0xff] %v17784_v18  ;;  %v11595_v60 = vcombine.low %v2178_v9, %v17767_v39  ;;  %v1850_v40 = vld [vmem:[#allocation3 + $0x134] sm:$0xff]  ;;  %v17812_v18 = vld [vmem:[#allocation5 + $0x40] sm:$0xf] }
 0x265   : > { %14350 = vmatprep.mubr.msk.bf16.mxu1 %vm16790_vm0, %v21707_v53  ;;  %v21672_v63 = vrot.slane %v17779_v38, 2  ;;  %v16132_v9 = vld [vmem:[%s21632_s3 + $0x88] sm:$0xff]   ;;  %v21728_v27 = vrot.slane %v17705_v61, 2  ;;  %21730 = vst [vmem:[#allocation43_spill] sm:$0xff] %v17812_v18  ;;  %v17814_v41 = vld [vmem:[#allocation5 + $0x44] sm:$0xf] }
 0x266   : > { %1457 = vst [vmem:[#allocation2 + $0x2b0] sm:$0xff] %v1359_v57  ;;  %v1360_v37 = vmax.f32 %v1230_v13, 0.0  ;;  %21731 = vst [vmem:[#allocation44_spill] sm:$0xff] %v17814_v41  ;;  %v17854_v41 = vld [vmem:[#allocation5 + $0x10] sm:$0xff]  }
 0x267   : > { %v17791_v50 = vld [vmem:[#allocation2 + $0x2a0] ss:$2 sm:$0xff]  ;;  %v17793_v42 = vld [vmem:[#allocation2 + $0x2a1] ss:$2 sm:$0xff]  ;;  %v17808_v30 = vsel %vm3131_vm3, %v21728_v27, %v21672_v63  ;;  %v16136_v27 = vld [vmem:[%s21632_s3 + $0x90] sm:$0xff]  }
 0x268   : > { %1458 = vst [vmem:[#allocation2 + $0x2b8] sm:$0xff] %v1360_v37  ;;  %14115 = vmatmul.mubr.bf16.vlgmr.msra.gmra.mrb[232].mxu0 %v11595_v60  ;;  %21729 = vst [vmem:[#allocation42_spill] sm:$0xff] %v17808_v30 }
 0x269   : > { %v1852_v24 = vld [vmem:[#allocation3 + $0x142] sm:$0xff]  ;;  %v1853_v57 = vld [vmem:[#allocation3 + $0x14a] sm:$0x3f]  ;;  %14151 = vmatpush3.bf16.msra.mxu0 %v16130_v7  ;;  %v1234_v13 = vpop.f32.mrb[176].mxu0  ;;  %14118 = vmatprep.mubr.msk.bf16.mxu0 %vm16790_vm0, %v21707_v53 }
 0x26a   : > { %v1854_v37 = vmax.f32 %v1850_v40, %v1852_v24  ;;  %v1855_v60 = vmax.f32 %v1851_v8, %v1853_v57  ;;  %v1235_v12 = vadd.f32 %v17461_v34, %v1234_v13  ;;  %v14028_v7 = vpop.f32.mrb[177].mxu0  ;;  %14152 = vmatprep.subr.bf16.mxu0 %v21707_v53  ;;  %v17822_v8 = vld [vmem:[#allocation6 + $0x3c] sm:$0xff]   ;;  %v17824_v57 = vld [vmem:[#allocation5 + $0x8] sm:$0xff]  }
 0x26b   : > { %v1237_v44 = vpop.f32.mrb[178].mxu0 }
 0x26c   : > { %1856 = vst [vmem:[#allocation4 + $0x9a] sm:$0xff] %v1854_v37  ;;  %1857 = vst [vmem:[#allocation4 + $0xa2] sm:$0x3f] %v1855_v60  ;;  %v1361_v49 = vmax.f32 %v1235_v12, 0.0  ;;  %v1238_v61 = vadd.f32 %v17461_v34, %v1237_v44  ;;  %v14029_v4 = vpop.f32.mrb[179].mxu0 }
 0x26d   : > { %14153 = vmatpush3.bf16.msra.mxu0 %v16132_v9  ;;  %v21671_v4 = vrot.slane %v17822_v8, 2  ;;  %v21732_v9 = vrot.slane %v17727_v58, 2  ;;  %v17844_v60 = vld [vmem:[%s21631_s2] ss:$0 sm:$0xff] }
 0x26e   : > { %1459 = vst [vmem:[#allocation2 + $0x2c0] sm:$0xff] %v1361_v49  ;;  %v1362_v40 = vmax.f32 %v1238_v61, 0.0  ;;  %14154 = vmatprep.subr.bf16.mxu0 %v21707_v53  ;;  %v16140_v49 = vld [vmem:[%s21632_s3 + $0x98] sm:$0xff]  }
 0x26f   : > { %v1555_v12 = vld [vmem:[#allocation2 + $0x2b0] ss:$2 sm:$0xff]  ;;  %v1653_v13 = vld [vmem:[#allocation2 + $0x2b1] ss:$2 sm:$0xff]  ;;  %v17839_v37 = vsel %vm3131_vm3, %v21732_v9, %v21671_v4 }
 0x270   : > { %v1707_v34 = vmax.f32 %v1555_v12, %v1653_v13  ;;  %1460 = vst [vmem:[#allocation2 + $0x2c8] sm:$0xff] %v1362_v40  ;;  %14119 = vmatmul.mubr.bf16.gmra.mrb[236].mxu0 %v17824_v57  ;;  %21733 = vst [vmem:[#allocation45_spill] sm:$0xff] %v17839_v37  ;;  %v2044_v13 = vld [vmem:[#allocation4 + $0x91] sm:$0xff]  ;;  %v16146_v37 = vld [vmem:[%s21632_s3 + $0xa0] sm:$0xff]  }
 0x271   : > { %v1242_v44 = vpop.f32.mrb[180].mxu0  ;;  %14122 = vmatprep.mubr.msk.bf16.mxu0 %vm16790_vm0, %v21707_v53  ;;  %14155 = vmatpush3.bf16.msra.mxu0 %v16136_v27  ;;  %v1893_v27 = vld [vmem:[#allocation4 + $0x90] sm:$0xff] }
 0x272   : > { %1756 = vst [vmem:[#allocation3 + $0x158] sm:$0xff] %v1707_v34  ;;  %v1243_v7 = vadd.f32 %v17844_v60, %v1242_v44  ;;  %v14032_v61 = vpop.f32.mrb[181].mxu0  ;;  %14156 = vmatprep.subr.bf16.mxu0 %v21707_v53 }
 0x273   : > { %v1245_v40 = vpop.f32.mrb[182].mxu0  ;;  %v1894_v12 = vld [vmem:[#allocation4 + $0x98] sm:$0xff]  ;;  %v1895_v47 = vld [vmem:[#allocation4 + $0xa0] sm:$0xff] }
 0x274   : > { %v2045_v24 = vld [vmem:[#allocation4 + $0x99] sm:$0xff]  ;;  %v1363_v58 = vmax.f32 %v1243_v7, 0.0  ;;  %v1246_v9 = vadd.f32 %v17844_v60, %v1245_v40  ;;  %v14033_v4 = vpop.f32.mrb[183].mxu0  ;;  %v13015_v34 = vpack.c.bf16 %v1894_v12, %v1893_v27 }
 0x275   : > { %v13075_v63 = vpack.c.bf16 %v2045_v24, %v2044_v13  ;;  %14157 = vmatpush3.bf16.msra.mxu0 %v16140_v49  ;;  %v16150_v13 = vld [vmem:[%s21632_s3 + $0xa8] sm:$0xff]  }
 0x276   : > { %1461 = vst [vmem:[#allocation2 + $0x2d0] sm:$0xff] %v1363_v58  ;;  %v1364_v44 = vmax.f32 %v1246_v9, 0.0  ;;  %v17852_v61 = vpop.f32.mrb[0].mxu1  ;;  %13095 = vst [vmem:[#allocation5 + $0x48] sm:$0xff] %v13015_v34   ;;  %14158 = vmatprep.subr.bf16.mxu0 %v21707_v53 }
 0x277   : > { %21734 = vst [vmem:[#allocation46_spill] sm:$0xff] %v17852_v61  ;;  %13106 = vst [vmem:[#allocation6 + $0x48] sm:$0xff] %v13075_v63   ;;  %v1557_v7 = vld [vmem:[#allocation2 + $0x2c0] ss:$2 sm:$0xff]  ;;  %v1655_v40 = vld [vmem:[#allocation2 + $0x2c1] ss:$2 sm:$0xff] }
 0x278   : > { %v14324_v4 = vpop.f32.mrb[1].mxu1  ;;  %v1708_v27 = vmax.f32 %v1557_v7, %v1655_v40  ;;  %1462 = vst [vmem:[#allocation2 + $0x2d8] sm:$0xff] %v1364_v44  ;;  %14123 = vmatmul.mubr.bf16.gmra.mrb[240].mxu0 %v17854_v41 }
 0x279   : > { %v17858_v24 = vpop.f32.mrb[2].mxu1  ;;  %14126 = vmatprep.mubr.msk.bf16.mxu0 %vm16790_vm0, %v21707_v53  ;;  %v1250_v12 = vpop.f32.mrb[184].mxu0  ;;  %14159 = vmatpush3.bf16.msra.mxu0 %v16146_v37  ;;  %v16153_v37 = vld [vmem:[%s21632_s3 + $0xb0] sm:$0xff]   ;;  %v17873_v4 = vld [vmem:[#allocation5 + $0x18] sm:$0xff]  }
 0x27a   : > { %21735 = vst [vmem:[#allocation47_spill] sm:$0xff] %v17858_v24  ;;  %v14325_v49 = vpop.f32.mrb[3].mxu1  ;;  %1757 = vst [vmem:[#allocation3 + $0x160] sm:$0xff] %v1708_v27  ;;  %v1251_v63 = vadd.f32 %v17844_v60, %v1250_v12  ;;  %v14036_v58 = vpop.f32.mrb[185].mxu0  ;;  %14160 = vmatprep.subr.bf16.mxu0 %v21707_v53 }
 0x27b   : > { %v1253_v9 = vpop.f32.mrb[186].mxu0 }
 0x27c   : > { %v1365_v34 = vmax.f32 %v1251_v63, 0.0  ;;  %v1254_v44 = vadd.f32 %v17844_v60, %v1253_v9  ;;  %v14037_v7 = vpop.f32.mrb[187].mxu0 }
 0x27d   : > { %v17868_v40 = vld [vmem:[#allocation5 + $0x48] sm:$0xf]  ;;  %14161 = vmatpush3.bf16.msra.mxu0 %v16150_v13  ;;  %v4315_v12 = vld [vmem:[#allocation5 + $0x4c] sm:$0x7] }
 0x27e   : > { %1463 = vst [vmem:[#allocation2 + $0x2e0] sm:$0xff] %v1365_v34  ;;  %v1366_v27 = vmax.f32 %v1254_v44, 0.0  ;;  %v11714_v49 = vcombine.low %v17744_v54, %v17868_v40  ;;  %14162 = vmatprep.subr.bf16.mxu0 %v21707_v53  ;;  %v11841_v9 = vcombine.low %v17868_v40, %v4315_v12  ;;  %v16145_v18 = vld [vmem:[#allocation5 + $0x4c] ss:$0 sps:$4 sm:$0x11]   ;;  %v16156_v54 = vld [vmem:[%s21632_s3 + $0xb8] sm:$0xff]   ;;  %v21736_v44 = vmax.f32 %v17791_v50, %v17793_v42 }
 0x27f   : > { %v1559_v63 = vld [vmem:[#allocation2 + $0x2d0] ss:$2 sm:$0xff]  ;;  %v1657_v58 = vld [vmem:[#allocation2 + $0x2d1] ss:$2 sm:$0xff]  ;;  %v1859_v42 = vld [vmem:[#allocation3 + $0x158] sm:$0x3f] }
 0x280   : > { %v1709_v7 = vmax.f32 %v1559_v63, %v1657_v58  ;;  %14127 = vmatmul.mubr.bf16.gmra.mrb[244].mxu0 %v17873_v4  ;;  %1464 = vst [vmem:[#allocation2 + $0x2e8] sm:$0xff] %v1366_v27  ;;  %v3429_v13 = vrot.slane %v11714_v49, 3  ;;  %v17885_v34 = vrot.slane %v11841_v9, 1  ;;  %v21737_v9 = vrot.slane %v17748_v3, 1 }
 0x281   : > { %v1860_v30 = vld [vmem:[#allocation3 + $0x15e] sm:$0xff]  ;;  %v1258_v24 = vpop.f32.mrb[188].mxu0  ;;  %14130 = vmatprep.mubr.msk.bf16.mxu0 %vm16790_vm0, %v21707_v53  ;;  %14163 = vmatpush3.bf16.msra.mxu0 %v16153_v37  ;;  %v17894_v37 = vld [vmem:[#allocation5 + $0x44] sm:$0xff]  }
 0x282   : > { %v1862_v12 = vmax.f32 %v21736_v44, %v1860_v30  ;;  %1758 = vst [vmem:[#allocation3 + $0x168] sm:$0xff] %v1709_v7  ;;  %v3430_v27 = vsel %vm3413_vm1, %v17752_v19, %v3429_v13  ;;  %v1259_v49 = vadd.f32 %v17844_v60, %v1258_v24  ;;  %v14040_v63 = vpop.f32.mrb[189].mxu0  ;;  %14164 = vmatprep.subr.bf16.mxu0 %v21707_v53  ;;  %v17905_v24 = vld [vmem:[#allocation5 + $0x20] sm:$0xff]   ;;  %v3431_v44 = vrot.slane %v16145_v18, 3 }
 0x283   : > { %14351 = vmatmul.mubr.bf16.gmra.mrb[28].mxu1 %v3430_v27  ;;  %v1261_v58 = vpop.f32.mrb[190].mxu0  ;;  %v17900_v61 = vsel %vm2686_vm2, %v21737_v9, %v17885_v34  ;;  %v21740_v18 = vrot.slane %v17779_v38, 2 }
 0x284   : > { %1864 = vst [vmem:[#allocation4 + $0xa8] sm:$0xff] %v1862_v12  ;;  %v1367_v30 = vmax.f32 %v1259_v49, 0.0  ;;  %v1262_v50 = vadd.f32 %v17844_v60, %v1261_v58  ;;  %v14041_v19 = vpop.f32.mrb[191].mxu0  ;;  %14354 = vmatprep.mubr.msk.bf16.mxu1 %vm16790_vm0, %v21707_v53  ;;  %v21677_v12 = vrot.slane %v17894_v37, 2 }
 0x285   : > { %14165 = vmatpush3.bf16.msra.mxu0 %v16156_v54 }
 0x286   : > { %1465 = vst [vmem:[#allocation2 + $0x2f0] sm:$0xff] %v1367_v30  ;;  %v1368_v7 = vmax.f32 %v1262_v50, 0.0  ;;  %v17907_v27 = vpop.f32.mrb[4].mxu1  ;;  %14202 = vmatprep.subr.bf16.mxu0 %v21707_v53  ;;  %v17919_v54 = vsel %vm3131_vm3, %v21740_v18, %v21677_v12 }
 0x287   : > { %21738 = vst [vmem:[#allocation48_spill] sm:$0xff] %v17907_v27  ;;  %v1561_v49 = vld [vmem:[#allocation2 + $0x2e0] ss:$2 sm:$0xff]  ;;  %v1659_v63 = vld [vmem:[#allocation2 + $0x2e1] ss:$2 sm:$0xff]  ;;  %v14328_v58 = vpop.f32.mrb[5].mxu1 }
 0x288   : > { %v1710_v9 = vmax.f32 %v1561_v49, %v1659_v63  ;;  %1466 = vst [vmem:[#allocation2 + $0x2f8] sm:$0xff] %v1368_v7  ;;  %14131 = vmatmul.mubr.bf16.gmra.mrb[248].mxu0 %v17905_v24  ;;  %v17912_v19 = vpop.f32.mrb[6].mxu1  ;;  %21741 = vst [vmem:[#allocation50_spill] sm:$0xff] %v17919_v54 }
 0x289   : > { %21739 = vst [vmem:[#allocation49_spill] sm:$0xff] %v17912_v19  ;;  %v1861_v30 = vld [vmem:[#allocation3 + $0x166] sm:$0x3f]  ;;  %v1266_v50 = vpop.f32.mrb[192].mxu0  ;;  %14134 = vmatprep.mubr.msk.bf16.mxu0 %vm16790_vm0, %v21707_v53  ;;  %v14329_v58 = vpop.f32.mrb[7].mxu1  ;;  %v3432_v19 = vsel %vm3413_vm1, %v3429_v13, %v3431_v44 }
 0x28a   : > { %v1863_v49 = vmax.f32 %v1859_v42, %v1861_v30  ;;  %1759 = vst [vmem:[#allocation3 + $0x170] sm:$0xff] %v1710_v9  ;;  %v1267_v7 = vadd.f32 %v17844_v60, %v1266_v50  ;;  %v14044_v63 = vpop.f32.mrb[193].mxu0  ;;  %v17928_v58 = vld [vmem:[#allocation5 + $0x48] sm:$0xf]  ;;  %v17930_v42 = vld [vmem:[#allocation5 + $0x4c] sm:$0xf] }
 0x28b   : > { %v1269_v27 = vpop.f32.mrb[194].mxu0  ;;  %14355 = vmatmul.mubr.bf16.gmra.mrb[32].mxu1 %v3432_v19  ;;  %v1896_v10 = vld [vmem:[#allocation4 + $0xa8] sm:$0xff]  ;;  %21742 = vst [vmem:[#allocation51_spill] sm:$0xff] %v17928_v58  ;;  %21743 = vst [vmem:[#allocation52_spill] sm:$0xff] %v17930_v42  ;;  %v17932_v9 = vld [vmem:[#allocation5 + $0x28] sm:$0xff]  }
 0x28c   : > { %1865 = vst [vmem:[#allocation4 + $0xb0] sm:$0x3f] %v1863_v49  ;;  %v1369_v38 = vmax.f32 %v1267_v7, 0.0  ;;  %v1270_v18 = vadd.f32 %v17844_v60, %v1269_v27  ;;  %v14045_v12 = vpop.f32.mrb[195].mxu0  ;;  %14426 = vmatprep.mubr.msk.bf16.mxu1 %vm16790_vm0, %v21707_v53  ;;  %v13020_v54 = vpack.c.bf16 %v1896_v10, %v1895_v47  ;;  %v17936_v19 = vld [vmem:[#allocation6 + $0x44] sm:$0xff]   ;;  %v16163_v10 = vld [vmem:[%s21632_s3 + $0x240] sm:$0xff]  }
 0x28d   : > { %v21679_v47 = vrot.slane %v17936_v19, 2  ;;  %v21744_v49 = vrot.slane %v17822_v8, 2  ;;  %v2195_v42 = vld [vmem:[#allocation5 + $0x44] sm:$0x3] }
 0x28e   : > { %1467 = vst [vmem:[#allocation2 + $0x300] sm:$0xff] %v1369_v38  ;;  %v1370_v44 = vmax.f32 %v1270_v18, 0.0  ;;  %13096 = vst [vmem:[#allocation5 + $0x50] sm:$0xff] %v13020_v54   ;;  %v2046_v54 = vld [vmem:[#allocation4 + $0xa1] sm:$0xff]  ;;  %v21746_v38 = vcombine.low %v17196_v5, %v17198_v6 }
 0x28f   : > { %v1563_v60 = vld [vmem:[#allocation2 + $0x2f0] ss:$2 sm:$0xff]  ;;  %v1661_v27 = vld [vmem:[#allocation2 + $0x2f1] ss:$2 sm:$0xff]  ;;  %v17952_v7 = vsel %vm3131_vm3, %v21744_v49, %v21679_v47 }
 0x290   : > { %v1711_v12 = vmax.f32 %v1563_v60, %v1661_v27  ;;  %1468 = vst [vmem:[#allocation2 + $0x308] sm:$0xff] %v1370_v44  ;;  %14135 = vmatmul.mubr.bf16.gmra.mrb[252].mxu0 %v17932_v9  ;;  %21745 = vst [vmem:[#allocation53_spill] sm:$0xff] %v17952_v7  ;;  %v16164_v60 = vld [vmem:[%s21632_s3 + $0x248] sm:$0xff]  }
 0x291   : > { %v17943_v30 = vpop.f32.mrb[196].mxu0  ;;  %14138 = vmatprep.mubr.msk.bf16.mxu0 %vm16790_vm0, %v21707_v53 }
 0x292   : > { %1760 = vst [vmem:[#allocation3 + $0x178] sm:$0xff] %v1711_v12  ;;  %v14064_v50 = vpop.f32.mrb[197].mxu0  ;;  %v17967_v12 = vld [vmem:[#allocation5 + $0x30] sm:$0xff]  }
 0x293   : > { %v17954_v63 = vpop.f32.mrb[198].mxu0  ;;  %14427 = vmatmul.mubr.bf16.vlgmr.msra.gmra.mrb[36].mxu1 %v21746_v38  ;;  %v2047_v18 = vld [vmem:[#allocation4 + $0xa9] sm:$0xff]  ;;  %v21747_v38 = vrot.slane %v17894_v37, 2 }
 0x294   : > { %v14065_v44 = vpop.f32.mrb[199].mxu0  ;;  %14430 = vmatprep.mubr.msk.bf16.mxu1 %vm16790_vm0, %v21707_v53  ;;  %14515 = vmatpush3.bf16.msra.mxu1 %v16163_v10  ;;  %v13080_v8 = vpack.c.bf16 %v2047_v18, %v2046_v54  ;;  %v16167_v10 = vld [vmem:[%s21632_s3 + $0x250] sm:$0xff]   ;;  %v1866_v37 = vld [vmem:[#allocation3 + $0x16c] sm:$0xff] }
 0x295   : > { %14516 = vmatprep.subr.bf16.mxu1 %v21707_v53  ;;  %v17965_v27 = vld [vmem:[#allocation5 + $0x4c] sm:$0xff]  }
 0x296   : > { %13107 = vst [vmem:[#allocation6 + $0x50] sm:$0xff] %v13080_v8   ;;  %v21678_v50 = vrot.slane %v17965_v27, 2 }
 0x297   : > { %v1565_v5 = vld [vmem:[#allocation2 + $0x300] ss:$2 sm:$0xff]  ;;  %v1663_v6 = vld [vmem:[#allocation2 + $0x301] ss:$2 sm:$0xff] }
 0x298   : > { %v1712_v49 = vmax.f32 %v1565_v5, %v1663_v6  ;;  %14139 = vmatmul.mubr.bf16.gmra.mrb[0].mxu0 %v17967_v12  ;;  %14517 = vmatpush3.bf16.msra.mxu1 %v16164_v60  ;;  %v17984_v18 = vsel %vm3131_vm3, %v21747_v38, %v21678_v50  ;;  %v16168_v5 = vld [vmem:[%s21632_s3 + $0x258] sm:$0xff]  }
 0x299   : > { %v17974_v54 = vpop.f32.mrb[200].mxu0  ;;  %14142 = vmatprep.mubr.msk.bf16.mxu0 %vm16790_vm0, %v21707_v53  ;;  %14518 = vmatprep.subr.bf16.mxu1 %v21707_v53  ;;  %21748 = vst [vmem:[#allocation54_spill] sm:$0xff] %v17984_v18  ;;  %v17995_v6 = vld [vmem:[#allocation5 + $0x38] sm:$0xff]  }
 0x29a   : > { %1761 = vst [vmem:[#allocation3 + $0x180] sm:$0xff] %v1712_v49  ;;  %v14068_v44 = vpop.f32.mrb[201].mxu0  ;;  %v1867_v49 = vld [vmem:[#allocation3 + $0x174] sm:$0x3f] }
 0x29b   : > { %v17986_v60 = vpop.f32.mrb[202].mxu0  ;;  %14431 = vmatmul.mubr.bf16.gmra.mrb[40].mxu1 %v17240_v22  ;;  %v16171_v22 = vld [vmem:[%s21632_s3 + $0x260] sm:$0xff]  }
 0x29c   : > { %v14069_v8 = vpop.f32.mrb[203].mxu0  ;;  %14434 = vmatprep.mubr.msk.bf16.mxu1 %vm16790_vm0, %v21707_v53  ;;  %14519 = vmatpush3.bf16.msra.mxu1 %v16167_v10 }
 0x29d   : > { %14520 = vmatprep.subr.bf16.mxu1 %v21707_v53  ;;  %v18001_v38 = vld [vmem:[#allocation6 + $0x4c] sm:$0xff]  }
 0x29e   : > { %v21682_v58 = vrot.slane %v18001_v38, 2 }
 0x2a0   : > { %14143 = vmatmul.mubr.bf16.gmra.mrb[4].mxu0 %v17995_v6  ;;  %14521 = vmatpush3.bf16.msra.mxu1 %v16168_v5  ;;  %v18011_v5 = vld [vmem:[#allocation5 + $0x40] sm:$0xf] }
 0x2a1   : > { %v1868_v10 = vld [vmem:[#allocation3 + $0x17a] sm:$0xff]  ;;  %v1869_v44 = vld [vmem:[#allocation3 + $0x182] sm:$0x3f]  ;;  %v18003_v8 = vpop.f32.mrb[204].mxu0  ;;  %14146 = vmatprep.mubr.msk.bf16.mxu0 %vm16790_vm0, %v21707_v53  ;;  %14522 = vmatprep.subr.bf16.mxu1 %v21707_v53 }
 0x2a2   : > { %v1870_v13 = vmax.f32 %v1866_v37, %v1868_v10  ;;  %v1871_v50 = vmax.f32 %v1867_v49, %v1869_v44  ;;  %v14072_v47 = vpop.f32.mrb[205].mxu0  ;;  %v2688_v10 = vrot.slane %v17824_v57, 1 }
 0x2a3   : > { %v18008_v7 = vpop.f32.mrb[206].mxu0  ;;  %14435 = vmatmul.mubr.bf16.gmra.mrb[44].mxu1 %v17283_v11  ;;  %v16172_v47 = vld [vmem:[%s21632_s3 + $0x268] sm:$0xff]   ;;  %v21749_v11 = vrot.slane %v17936_v19, 2 }
 0x2a4   : > { %1872 = vst [vmem:[#allocation4 + $0xb6] sm:$0xff] %v1870_v13  ;;  %1873 = vst [vmem:[#allocation4 + $0xbe] sm:$0x3f] %v1871_v50  ;;  %v14073_v18 = vpop.f32.mrb[207].mxu0  ;;  %14438 = vmatprep.mubr.msk.bf16.mxu1 %vm16790_vm0, %v21707_v53  ;;  %14523 = vmatpush3.bf16.msra.mxu1 %v16171_v22  ;;  %v2661_v13 = vld [vmem:[#allocation5] sm:$0xe]  ;;  %v11603_v50 = vcombine.low %v18011_v5, %v2195_v42 }
 0x2a5   : > { %14524 = vmatprep.subr.bf16.mxu1 %v21707_v53  ;;  %v18025_v37 = vsel %vm3131_vm3, %v21749_v11, %v21682_v58  ;;  %v16175_v18 = vld [vmem:[%s21632_s3 + $0x270] sm:$0xff]   ;;  %v11628_v49 = vcombine.low %v2661_v13, %v17767_v39  ;;  %v16176_v42 = vld [vmem:[%s21632_s3 + $0x278] sm:$0xff]  }
 0x2a6   : > { %21750 = vst [vmem:[#allocation55_spill] sm:$0xff] %v18025_v37 }
 0x2a7   : > { %v2687_v57 = vrot.slane %v11628_v49, 1 }
 0x2a8   : > { %14147 = vmatmul.mubr.bf16.gmra.mrb[8].mxu0 %v11603_v50  ;;  %14525 = vmatpush3.bf16.msra.mxu1 %v16172_v47 }
 0x2a9   : > { %v18032_v22 = vpop.f32.mrb[208].mxu0  ;;  %14166 = vmatprep.mubr.msk.bf16.mxu0 %vm16790_vm0, %v21707_v53  ;;  %14526 = vmatprep.subr.bf16.mxu1 %v21707_v53 }
 0x2aa   : > { %v14076_v19 = vpop.f32.mrb[209].mxu0 }
 0x2ab   : > { %v18038_v44 = vpop.f32.mrb[210].mxu0  ;;  %14439 = vmatmul.mubr.bf16.gmra.mrb[48].mxu1 %v17378_v52  ;;  %v1897_v47 = vld [vmem:[#allocation4 + $0xb0] sm:$0xff]  ;;  %v1898_v39 = vld [vmem:[#allocation4 + $0xb8] sm:$0xff]  ;;  %v2050_v58 = vld [vmem:[#allocation4 + $0xc1] sm:$0x3f] }
 0x2ac   : > { %v14077_v11 = vpop.f32.mrb[211].mxu0  ;;  %14442 = vmatprep.mubr.msk.bf16.mxu1 %vm16790_vm0, %v21707_v53  ;;  %14527 = vmatpush3.bf16.msra.mxu1 %v16175_v18  ;;  %v13025_v13 = vpack.c.bf16 %v1898_v39, %v1897_v47  ;;  %v2048_v50 = vld [vmem:[#allocation4 + $0xb1] sm:$0xff]  ;;  %v2049_v19 = vld [vmem:[#allocation4 + $0xb9] sm:$0xff]  ;;  %v16159_v52 = vld [vmem:[%s21632_s3 + $0xc0] sm:$0xff]   ;;  %v12966_v56 = vpack.c.bf16 %v2050_v58, %v2050_v58  ;;  %v2689_v18 = vsel %vm2686_vm2, %v2687_v57, %v2688_v10 }
 0x2ad   : > { %14528 = vmatprep.subr.bf16.mxu1 %v21707_v53  ;;  %v13085_v37 = vpack.c.bf16 %v2049_v19, %v2048_v50  ;;  %v1899_v55 = vld [vmem:[#allocation4 + $0xc0] sm:$0xff]  ;;  %v16165_v19 = vld [vmem:[%s21632_s3 + $0xd0] sm:$0xff]  }
 0x2ae   : > { %v18050_v35 = vpop.f32.mrb[8].mxu1  ;;  %13097 = vst [vmem:[#allocation5 + $0x58] sm:$0xff] %v13025_v13   ;;  %v12941_v11 = vpack.c.bf16 %v1899_v55, %v1899_v55  ;;  %2176 = vst [vmem:[#allocation6 + $0x60] sm:$0x7] %v12966_v56  ;;  %v16161_v55 = vld [vmem:[%s21632_s3 + $0xc8] sm:$0xff]   ;;  %v2690_v56 = vrot.slane %v17854_v41, 1 }
 0x2af   : > { %v14332_v47 = vpop.f32.mrb[9].mxu1  ;;  %13108 = vst [vmem:[#allocation6 + $0x58] sm:$0xff] %v13085_v37  }
 0x2b0   : > { %14167 = vmatmul.mubr.bf16.vlgmr.msra.gmra.mrb[12].mxu0 %v2689_v18  ;;  %v18053_v49 = vpop.f32.mrb[10].mxu1  ;;  %14529 = vmatpush3.bf16.msra.mxu1 %v16176_v42  ;;  %2025 = vst [vmem:[#allocation5 + $0x60] sm:$0xf] %v12941_v11  ;;  %v5881_v42 = vld [vmem:[#allocation5 + $0x54] sm:$0xf]  ;;  %v2691_v41 = vsel %vm2686_vm2, %v2688_v10, %v2690_v56  ;;  %v21751_v47 = vrot.slane %v17965_v27, 2 }
 0x2b1   : > { %14203 = vmatpush3.bf16.msra.mxu0 %v16159_v52  ;;  %v18055_v39 = vpop.f32.mrb[212].mxu0  ;;  %v14333_v50 = vpop.f32.mrb[11].mxu1  ;;  %14170 = vmatprep.mubr.msk.bf16.mxu0 %vm16790_vm0, %v21707_v53  ;;  %v6158_v18 = vld [vmem:[#allocation6 + $0x54] sm:$0xf] }
 0x2b2   : > { %v14080_v58 = vpop.f32.mrb[213].mxu0  ;;  %14204 = vmatprep.subr.bf16.mxu0 %v21707_v53  ;;  %14618 = vmatprep.subr.bf16.mxu1 %v21707_v53 }
 0x2b3   : > { %v18065_v37 = vpop.f32.mrb[214].mxu0  ;;  %14443 = vmatmul.mubr.bf16.gmra.mrb[52].mxu1 %v17481_v31  ;;  %v16169_v31 = vld [vmem:[%s21632_s3 + $0xd8] sm:$0xff]  }
 0x2b4   : > { %v14081_v13 = vpop.f32.mrb[215].mxu0  ;;  %14446 = vmatprep.mubr.msk.bf16.mxu1 %vm16790_vm0, %v21707_v53 }
 0x2b5   : > { %14205 = vmatpush3.bf16.msra.mxu0 %v16161_v55  ;;  %v6420_v57 = vld [vmem:[#allocation5 + $0x58] sm:$0xf]  ;;  %v2692_v55 = vrot.slane %v17873_v4, 1  ;;  %v21753_v4 = vrot.slane %v18001_v38, 2  ;;  %v16179_v38 = vld [vmem:[%s21632_s3 + $0xf0] sm:$0xff]  }
 0x2b6   : > { %14206 = vmatprep.subr.bf16.mxu0 %v21707_v53  ;;  %v12100_v52 = vcombine.low %v5881_v42, %v6420_v57  ;;  %v6642_v10 = vld [vmem:[#allocation6 + $0x58] sm:$0xf]  ;;  %v16174_v42 = vld [vmem:[%s21632_s3 + $0xe0] sm:$0xff]   ;;  %v2694_v57 = vrot.slane %v17905_v24, 1 }
 0x2b7   : > { %v12126_v58 = vcombine.low %v6158_v18, %v6642_v10  ;;  %v2693_v13 = vsel %vm2686_vm2, %v2690_v56, %v2692_v55  ;;  %v3896_v10 = vld [vmem:[#allocation5 + $0x4c] sm:$0x3] }
 0x2b8   : > { %14171 = vmatmul.mubr.bf16.gmra.mrb[16].mxu0 %v2691_v41  ;;  %v18075_v11 = vrot.slane %v12100_v52, 2  ;;  %v2695_v56 = vsel %vm2686_vm2, %v2692_v55, %v2694_v57  ;;  %v2696_v41 = vrot.slane %v17932_v9, 1 }
 0x2b9   : > { %14174 = vmatprep.mubr.msk.bf16.mxu0 %vm16790_vm0, %v21707_v53  ;;  %14207 = vmatpush3.bf16.msra.mxu0 %v16165_v19  ;;  %v18097_v27 = vrot.slane %v12126_v58, 2  ;;  %v16178_v19 = vld [vmem:[%s21632_s3 + $0xe8] sm:$0xff]  }
 0x2ba   : > { %14208 = vmatprep.subr.bf16.mxu0 %v21707_v53  ;;  %v18087_v50 = vsel %vm3131_vm3, %v21751_v47, %v18075_v11  ;;  %v2697_v58 = vsel %vm2686_vm2, %v2694_v57, %v2696_v41  ;;  %v16184_v57 = vld [vmem:[%s21632_s3 + $0x2c0] sm:$0xff]  }
 0x2bb   : > { %14447 = vmatmul.mubr.bf16.gmra.mrb[56].mxu1 %v17575_v0  ;;  %21752 = vst [vmem:[#allocation56_spill] sm:$0xff] %v18097_v27  ;;  %v18104_v0 = vsel %vm3131_vm3, %v21753_v4, %v18097_v27  ;;  %v3613_v27 = vld [vmem:[#allocation6 + $0x4] sm:$0x8] }
 0x2bc   : > { %14450 = vmatprep.mubr.msk.bf16.mxu1 %vm16790_vm0, %v21707_v53  ;;  %21754 = vst [vmem:[#allocation57_spill] sm:$0xff] %v18104_v0  ;;  %v16257_v0 = vld [vmem:[%s21632_s3 + $0x3f0] sm:$0xff]  }
 0x2bd   : > { %14209 = vmatpush3.bf16.msra.mxu0 %v16169_v31 }
 0x2be   : > { %14210 = vmatprep.subr.bf16.mxu0 %v21707_v53 }
 0x2c0   : > { %14175 = vmatmul.mubr.bf16.gmra.mrb[20].mxu0 %v2693_v13 }
 0x2c1   : > { %14178 = vmatprep.mubr.msk.bf16.mxu0 %vm16790_vm0, %v21707_v53  ;;  %14211 = vmatpush3.bf16.msra.mxu0 %v16174_v42 }
 0x2c2   : > { %14212 = vmatprep.subr.bf16.mxu0 %v21707_v53 }
 0x2c3   : > { %14451 = vmatmul.mubr.bf16.gmra.mrb[60].mxu1 %v17677_v36  ;;  %v16181_v36 = vld [vmem:[%s21632_s3 + $0xf8] sm:$0xff]  }
 0x2c4   : > { %14454 = vmatprep.mubr.msk.bf16.mxu1 %vm16790_vm0, %v21707_v53 }
 0x2c5   : > { %14213 = vmatpush3.bf16.msra.mxu0 %v16178_v19  ;;  %v2698_v19 = vrot.slane %v17967_v12, 1 }
 0x2c6   : > { %14214 = vmatprep.subr.bf16.mxu0 %v21707_v53 }
 0x2c8   : > { %14179 = vmatmul.mubr.bf16.gmra.mrb[24].mxu0 %v2695_v56  ;;  %v2662_v56 = vld [vmem:[#allocation5 + $0x44] sm:$0x7] }
 0x2c9   : > { %14182 = vmatprep.mubr.msk.bf16.mxu0 %vm16790_vm0, %v21707_v53  ;;  %14215 = vmatpush3.bf16.msra.mxu0 %v16179_v38  ;;  %v18126_v52 = vpop.f32.mrb[216].mxu0  ;;  %v2699_v38 = vsel %vm2686_vm2, %v2696_v41, %v2698_v19 }
 0x2ca   : > { %14216 = vmatprep.subr.bf16.mxu0 %v21707_v53  ;;  %v14084_v31 = vpop.f32.mrb[217].mxu0 }
 0x2cb   : > { %14455 = vmatmul.mubr.bf16.gmra.mrb[64].mxu1 %v17748_v3  ;;  %v18131_v18 = vpop.f32.mrb[218].mxu0  ;;  %v11782_v3 = vcombine.low %v17868_v40, %v3896_v10  ;;  %v2700_v40 = vrot.slane %v17995_v6, 1  ;;  %v11629_v31 = vcombine.low %v18011_v5, %v2662_v56  ;;  %v16188_v10 = vld [vmem:[%s21632_s3 + $0x2d8] sm:$0xff]   ;;  %v16669_v56 = vld [vmem:[#allocation6 + $0x4] sm:$0xf] }
 0x2cc   : > { %14458 = vmatprep.mubr.msk.bf16.mxu1 %vm16790_vm0, %v21707_v53  ;;  %v14085_v47 = vpop.f32.mrb[219].mxu0 }
 0x2cd   : > { %14217 = vmatpush3.bf16.msra.mxu0 %v16181_v36  ;;  %v16185_v36 = vld [vmem:[%s21632_s3 + $0x2c8] sm:$0xff]   ;;  %v2701_v41 = vsel %vm2686_vm2, %v2698_v19, %v2700_v40  ;;  %v2702_v47 = vrot.slane %v11629_v31, 1  ;;  %v16195_v31 = vld [vmem:[%s21632_s3 + $0x2f8] sm:$0xff]  }
 0x2ce   : > { %14254 = vmatprep.subr.bf16.mxu0 %v21707_v53 }
 0x2cf   : > { %v18136_v55 = vpop.f32.mrb[12].mxu1 }
 0x2d0   : > { %v14336_v42 = vpop.f32.mrb[13].mxu1  ;;  %14183 = vmatmul.mubr.bf16.gmra.mrb[28].mxu0 %v2697_v58 }
 0x2d1   : > { %v18139_v13 = vpop.f32.mrb[14].mxu1  ;;  %14186 = vmatprep.mubr.msk.bf16.mxu0 %vm16790_vm0, %v21707_v53 }
 0x2d2   : > { %v14337_v4 = vpop.f32.mrb[15].mxu1 }
 0x2d3   : > { %14459 = vmatmul.mubr.bf16.gmra.mrb[68].mxu1 %v11782_v3  ;;  %v2703_v3 = vsel %vm2686_vm2, %v2700_v40, %v2702_v47  ;;  %v16194_v40 = vld [vmem:[%s21632_s3 + $0x2f0] sm:$0xff]  }
 0x2d4   : > { %14530 = vmatprep.mubr.msk.bf16.mxu1 %vm16790_vm0, %v21707_v53 }
 0x2d8   : > { %14187 = vmatmul.mubr.bf16.gmra.mrb[32].mxu0 %v2699_v38  ;;  %v16192_v38 = vld [vmem:[%s21632_s3 + $0x2e8] sm:$0xff]  }
 0x2d9   : > { %14190 = vmatprep.mubr.msk.bf16.mxu0 %vm16790_vm0, %v21707_v53 }
 0x2db   : > { %14531 = vmatmul.mubr.bf16.vlgmr.msra.gmra.mrb[72].mxu1 %v17257_v43  ;;  %v16187_v43 = vld [vmem:[%s21632_s3 + $0x2d0] sm:$0xff]  }
 0x2dc   : > { %14534 = vmatprep.mubr.msk.bf16.mxu1 %vm16790_vm0, %v21707_v53  ;;  %14619 = vmatpush3.bf16.msra.mxu1 %v16184_v57  ;;  %v2884_v57 = vld [vmem:[#allocation6] sm:$0xe] }
 0x2dd   : > { %14620 = vmatprep.subr.bf16.mxu1 %v21707_v53 }
 0x2e0   : > { %14191 = vmatmul.mubr.bf16.gmra.mrb[36].mxu0 %v2701_v41  ;;  %14621 = vmatpush3.bf16.msra.mxu1 %v16185_v36  ;;  %v11654_v36 = vcombine.low %v2884_v57, %v16669_v56  ;;  %v21755_v57 = vrot.slane %v17314_v51, 1  ;;  %v16193_v51 = vld [vmem:[%s21632_s3 + $0x120] sm:$0xff]   ;;  %v16197_v56 = vld [vmem:[#allocation6 + $0x14] sm:$0xff]  }
 0x2e1   : > { %14194 = vmatprep.mubr.msk.bf16.mxu0 %vm16790_vm0, %v21707_v53  ;;  %14622 = vmatprep.subr.bf16.mxu1 %v21707_v53 }
 0x2e3   : > { %14535 = vmatmul.mubr.bf16.gmra.mrb[76].mxu1 %v17300_v33  ;;  %v16191_v33 = vld [vmem:[%s21632_s3 + $0x2e0] sm:$0xff]  }
 0x2e4   : > { %14538 = vmatprep.mubr.msk.bf16.mxu1 %vm16790_vm0, %v21707_v53  ;;  %14623 = vmatpush3.bf16.msra.mxu1 %v16187_v43  ;;  %v2909_v43 = vrot.slane %v11654_v36, 1 }
 0x2e5   : > { %14624 = vmatprep.subr.bf16.mxu1 %v21707_v53 }
 0x2e6   : > { %v18176_v58 = vpop.f32.mrb[16].mxu1 }
 0x2e7   : > { %v14340_v42 = vpop.f32.mrb[17].mxu1 }
 0x2e8   : > { %14195 = vmatmul.mubr.bf16.gmra.mrb[40].mxu0 %v2703_v3  ;;  %v18179_v4 = vpop.f32.mrb[18].mxu1  ;;  %14625 = vmatpush3.bf16.msra.mxu1 %v16188_v10 }
 0x2e9   : > { %v14341_v19 = vpop.f32.mrb[19].mxu1  ;;  %14198 = vmatprep.mubr.msk.bf16.mxu0 %vm16790_vm0, %v21707_v53  ;;  %14626 = vmatprep.subr.bf16.mxu1 %v21707_v53 }
 0x2eb   : > { %14539 = vmatmul.mubr.bf16.gmra.mrb[80].mxu1 %v17409_v48  ;;  %v16670_v48 = vld [vmem:[#allocation6 + $0x8] sm:$0xff]  }
 0x2ec   : > { %14542 = vmatprep.mubr.msk.bf16.mxu1 %vm16790_vm0, %v21707_v53  ;;  %14627 = vmatpush3.bf16.msra.mxu1 %v16191_v33  ;;  %v2910_v41 = vrot.slane %v16670_v48, 1 }
 0x2ed   : > { %14628 = vmatprep.subr.bf16.mxu1 %v21707_v53 }
 0x2ee   : > { %v2911_v10 = vsel %vm2686_vm2, %v2909_v43, %v2910_v41 }
 0x2f0   : > { %14199 = vmatmul.mubr.bf16.gmra.mrb[44].mxu0 %v2702_v47  ;;  %14629 = vmatpush3.bf16.msra.mxu1 %v16192_v38  ;;  %v16182_v47 = vld [vmem:[%s21632_s3 + $0x100] sm:$0xff]   ;;  %v16186_v38 = vld [vmem:[%s21632_s3 + $0x110] sm:$0xff]  }
 0x2f1   : > { %14218 = vmatprep.mubr.msk.bf16.mxu0 %vm16790_vm0, %v21707_v53  ;;  %14630 = vmatprep.subr.bf16.mxu1 %v21707_v53 }
 0x2f3   : > { %14543 = vmatmul.mubr.bf16.gmra.mrb[84].mxu1 %v17515_v59  ;;  %v16183_v59 = vld [vmem:[%s21632_s3 + $0x108] sm:$0xff]  }
 0x2f4   : > { %14546 = vmatprep.mubr.msk.bf16.mxu1 %vm16790_vm0, %v21707_v53  ;;  %14631 = vmatpush3.bf16.msra.mxu1 %v16194_v40  ;;  %v2913_v40 = vsel %vm2686_vm2, %v2910_v41, %v21755_v57  ;;  %v16212_v57 = vld [vmem:[%s21632_s3 + $0x350] sm:$0xff]  }
 0x2f5   : > { %14632 = vmatprep.subr.bf16.mxu1 %v21707_v53 }
 0x2f8   : > { %14219 = vmatmul.mubr.bf16.vlgmr.msra.gmra.mrb[48].mxu0 %v2911_v10  ;;  %14633 = vmatpush3.bf16.msra.mxu1 %v16195_v31  ;;  %v4894_v31 = vrot.slane %v16197_v56, 2  ;;  %v16208_v10 = vld [vmem:[%s21632_s3 + $0x340] sm:$0xff]  }
 0x2f9   : > { %14255 = vmatpush3.bf16.msra.mxu0 %v16182_v47  ;;  %14222 = vmatprep.mubr.msk.bf16.mxu0 %vm16790_vm0, %v21707_v53  ;;  %v18216_v42 = vpop.f32.mrb[220].mxu0 }
 0x2fa   : > { %14256 = vmatprep.subr.bf16.mxu0 %v21707_v53  ;;  %14722 = vmatprep.subr.bf16.mxu1 %v21707_v53  ;;  %v14088_v3 = vpop.f32.mrb[221].mxu0 }
 0x2fb   : > { %14547 = vmatmul.mubr.bf16.gmra.mrb[88].mxu1 %v17600_v26  ;;  %v18221_v33 = vpop.f32.mrb[222].mxu0  ;;  %v16189_v26 = vld [vmem:[%s21632_s3 + $0x118] sm:$0xff]  }
 0x2fc   : > { %14550 = vmatprep.mubr.msk.bf16.mxu1 %vm16790_vm0, %v21707_v53  ;;  %v14089_v19 = vpop.f32.mrb[223].mxu0 }
 0x2fd   : > { %14257 = vmatpush3.bf16.msra.mxu0 %v16183_v59  ;;  %v16199_v19 = vld [vmem:[#allocation6 + $0x1c] sm:$0xff]  }
 0x2fe   : > { %14258 = vmatprep.subr.bf16.mxu0 %v21707_v53 }
 0x300   : > { %14223 = vmatmul.mubr.bf16.gmra.mrb[52].mxu0 %v2913_v40 }
 0x301   : > { %14226 = vmatprep.mubr.msk.bf16.mxu0 %vm16790_vm0, %v21707_v53  ;;  %14259 = vmatpush3.bf16.msra.mxu0 %v16186_v38  ;;  %v4896_v38 = vrot.slane %v16199_v19, 2 }
 0x302   : > { %14260 = vmatprep.subr.bf16.mxu0 %v21707_v53 }
 0x303   : > { %14551 = vmatmul.mubr.bf16.gmra.mrb[92].mxu1 %v17703_v62  ;;  %v16198_v62 = vld [vmem:[%s21632_s3 + $0x128] sm:$0xff]   ;;  %v4897_v40 = vsel %vm3131_vm3, %v4894_v31, %v4896_v38 }
 0x304   : > { %14554 = vmatprep.mubr.msk.bf16.mxu1 %vm16790_vm0, %v21707_v53 }
 0x305   : > { %14261 = vmatpush3.bf16.msra.mxu0 %v16189_v26  ;;  %v16201_v26 = vld [vmem:[#allocation6 + $0x24] sm:$0xff]  }
 0x306   : > { %14262 = vmatprep.subr.bf16.mxu0 %v21707_v53 }
 0x308   : > { %14227 = vmatmul.mubr.bf16.gmra.mrb[56].mxu0 %v17341_v20  ;;  %v16200_v20 = vld [vmem:[%s21632_s3 + $0x130] sm:$0xff]  }
 0x309   : > { %14230 = vmatprep.mubr.msk.bf16.mxu0 %vm16790_vm0, %v21707_v53  ;;  %14263 = vmatpush3.bf16.msra.mxu0 %v16193_v51  ;;  %v4898_v51 = vrot.slane %v16201_v26, 2  ;;  %v16672_v26 = vld [vmem:[#allocation5 + $0x8] sm:$0xff]  }
 0x30a   : > { %14264 = vmatprep.subr.bf16.mxu0 %v21707_v53 }
 0x30b   : > { %14555 = vmatmul.mubr.bf16.gmra.mrb[96].mxu1 %v17777_v1  ;;  %v16202_v1 = vld [vmem:[%s21632_s3 + $0x138] sm:$0xff]  }
 0x30c   : > { %14558 = vmatprep.mubr.msk.bf16.mxu1 %vm16790_vm0, %v21707_v53 }
 0x30d   : > { %14265 = vmatpush3.bf16.msra.mxu0 %v16198_v62  ;;  %v16216_v62 = vld [vmem:[%s21632_s3 + $0x360] sm:$0xff]  }
 0x30e   : > { %14266 = vmatprep.subr.bf16.mxu0 %v21707_v53 }
 0x310   : > { %14231 = vmatmul.mubr.bf16.gmra.mrb[60].mxu0 %v17396_v23 }
 0x311   : > { %14234 = vmatprep.mubr.msk.bf16.mxu0 %vm16790_vm0, %v21707_v53  ;;  %14267 = vmatpush3.bf16.msra.mxu0 %v16200_v20  ;;  %v4899_v20 = vsel %vm3131_vm3, %v4896_v38, %v4898_v51 }
 0x312   : > { %14268 = vmatprep.subr.bf16.mxu0 %v21707_v53 }
 0x313   : > { %14559 = vmatmul.mubr.bf16.gmra.mrb[100].mxu1 %v17900_v61  ;;  %v16196_v61 = vld [vmem:[#allocation6 + $0xc] sm:$0xfc]  }
 0x314   : > { %14562 = vmatprep.mubr.msk.bf16.mxu1 %vm16790_vm0, %v21707_v53  ;;  %v4893_v47 = vrot.slane %v16196_v61, 2 }
 0x315   : > { %14269 = vmatpush3.bf16.msra.mxu0 %v16202_v1  ;;  %v16203_v1 = vld [vmem:[#allocation6 + $0x2c] sm:$0xff]  }
 0x316   : > { %14358 = vmatprep.subr.bf16.mxu0 %v21707_v53  ;;  %v4895_v3 = vsel %vm3131_vm3, %v4893_v47, %v4894_v31 }
 0x318   : > { %14235 = vmatmul.mubr.bf16.gmra.mrb[64].mxu0 %v17492_v25 }
 0x319   : > { %14238 = vmatprep.mubr.msk.bf16.mxu0 %vm16790_vm0, %v21707_v53  ;;  %v18273_v23 = vpop.f32.mrb[224].mxu0 }
 0x31a   : > { %v14092_v36 = vpop.f32.mrb[225].mxu0 }
 0x31b   : > { %14563 = vmatmul.mubr.bf16.gmra.mrb[104].mxu1 %v17885_v34  ;;  %v18276_v48 = vpop.f32.mrb[226].mxu0 }
 0x31c   : > { %14634 = vmatprep.mubr.msk.bf16.mxu1 %vm16790_vm0, %v21707_v53  ;;  %v14093_v41 = vpop.f32.mrb[227].mxu0 }
 0x31d   : > { %v3106_v41 = vld [vmem:[#allocation5] sm:$0xc] }
 0x31f   : > { %v18280_v43 = vpop.f32.mrb[20].mxu1 }
 0x320   : > { %v14344_v25 = vpop.f32.mrb[21].mxu1  ;;  %14239 = vmatmul.mubr.bf16.gmra.mrb[68].mxu0 %v17636_v21  ;;  %v16209_v21 = vld [vmem:[%s21632_s3 + $0x348] sm:$0xff]  }
 0x321   : > { %v18286_v34 = vpop.f32.mrb[22].mxu1  ;;  %14242 = vmatprep.mubr.msk.bf16.mxu0 %vm16790_vm0, %v21707_v53  ;;  %v4900_v25 = vrot.slane %v16203_v1, 2  ;;  %v16220_v1 = vld [vmem:[%s21632_s3 + $0x378] sm:$0xff]  }
 0x322   : > { %v14345_v59 = vpop.f32.mrb[23].mxu1 }
 0x323   : > { %14635 = vmatmul.mubr.bf16.vlgmr.msra.gmra.mrb[108].mxu1 %v4895_v3  ;;  %v16219_v59 = vld [vmem:[%s21632_s3 + $0x370] sm:$0xff]   ;;  %v16671_v3 = vld [vmem:[#allocation5 + $0x4] sm:$0xf] }
 0x324   : > { %14638 = vmatprep.mubr.msk.bf16.mxu1 %vm16790_vm0, %v21707_v53  ;;  %14723 = vmatpush3.bf16.msra.mxu1 %v16208_v10  ;;  %v11680_v19 = vcombine.low %v3106_v41, %v16671_v3 }
 0x325   : > { %14724 = vmatprep.subr.bf16.mxu1 %v21707_v53 }
 0x328   : > { %14243 = vmatmul.mubr.bf16.gmra.mrb[72].mxu0 %v17686_v14  ;;  %14725 = vmatpush3.bf16.msra.mxu1 %v16209_v21  ;;  %v16213_v14 = vld [vmem:[%s21632_s3 + $0x358] sm:$0xff]  }
 0x329   : > { %14246 = vmatprep.mubr.msk.bf16.mxu0 %vm16790_vm0, %v21707_v53  ;;  %14726 = vmatprep.subr.bf16.mxu1 %v21707_v53 }
 0x32b   : > { %14639 = vmatmul.mubr.bf16.gmra.mrb[112].mxu1 %v4897_v40  ;;  %v16205_v40 = vld [vmem:[#allocation6 + $0x34] sm:$0xff]  }
 0x32c   : > { %14642 = vmatprep.mubr.msk.bf16.mxu1 %vm16790_vm0, %v21707_v53  ;;  %14727 = vmatpush3.bf16.msra.mxu1 %v16212_v57  ;;  %v4901_v57 = vsel %vm3131_vm3, %v4898_v51, %v4900_v25  ;;  %v16204_v51 = vld [vmem:[%s21632_s3 + $0x180] sm:$0xff]  }
 0x32d   : > { %14728 = vmatprep.subr.bf16.mxu1 %v21707_v53 }
 0x330   : > { %14247 = vmatmul.mubr.bf16.gmra.mrb[76].mxu0 %v17761_v15  ;;  %14729 = vmatpush3.bf16.msra.mxu1 %v16213_v14  ;;  %v16217_v15 = vld [vmem:[%s21632_s3 + $0x368] sm:$0xff]  }
 0x331   : > { %14250 = vmatprep.mubr.msk.bf16.mxu0 %vm16790_vm0, %v21707_v53  ;;  %14730 = vmatprep.subr.bf16.mxu1 %v21707_v53 }
 0x333   : > { %v18319_v56 = vpop.f32.mrb[228].mxu0  ;;  %14643 = vmatmul.mubr.bf16.gmra.mrb[116].mxu1 %v4899_v20 }
 0x334   : > { %v14096_v36 = vpop.f32.mrb[229].mxu0  ;;  %14646 = vmatprep.mubr.msk.bf16.mxu1 %vm16790_vm0, %v21707_v53  ;;  %14731 = vmatpush3.bf16.msra.mxu1 %v16216_v62 }
 0x335   : > { %v18326_v61 = vpop.f32.mrb[230].mxu0  ;;  %14732 = vmatprep.subr.bf16.mxu1 %v21707_v53  ;;  %v3132_v36 = vrot.slane %v11680_v19, 2  ;;  %v16673_v19 = vld [vmem:[#allocation5 + $0x10] sm:$0xff]  }
 0x336   : > { %v14097_v31 = vpop.f32.mrb[231].mxu0 }
 0x337   : > { %v18329_v47 = vpop.f32.mrb[24].mxu1  ;;  %v4902_v31 = vrot.slane %v16205_v40, 2 }
 0x338   : > { %v14348_v10 = vpop.f32.mrb[25].mxu1  ;;  %14251 = vmatmul.mubr.bf16.gmra.mrb[80].mxu0 %v17750_v28  ;;  %14733 = vmatpush3.bf16.msra.mxu1 %v16217_v15  ;;  %v3133_v28 = vrot.slane %v16672_v26, 2 }
 0x339   : > { %v18335_v21 = vpop.f32.mrb[26].mxu1  ;;  %14270 = vmatprep.mubr.msk.bf16.mxu0 %vm16790_vm0, %v21707_v53  ;;  %14734 = vmatprep.subr.bf16.mxu1 %v21707_v53  ;;  %v4903_v3 = vsel %vm3131_vm3, %v4900_v25, %v4902_v31  ;;  %v16210_v25 = vld [vmem:[%s21632_s3 + $0x190] sm:$0xff]  }
 0x33a   : > { %v14349_v38 = vpop.f32.mrb[27].mxu1  ;;  %v3134_v10 = vsel %vm3131_vm3, %v3132_v36, %v3133_v28 }
 0x33b   : > { %v2590_v14 = vpop.f32.mrb[232].mxu0  ;;  %14647 = vmatmul.mubr.bf16.gmra.mrb[120].mxu1 %v4901_v57  ;;  %v3135_v38 = vrot.slane %v16673_v19, 2 }
 0x33c   : > { %v18342_v62 = vadd.f32 %v2590_v14, %v17943_v30  ;;  %v14116_v20 = vpop.f32.mrb[233].mxu0  ;;  %14650 = vmatprep.mubr.msk.bf16.mxu1 %vm16790_vm0, %v21707_v53  ;;  %14735 = vmatpush3.bf16.msra.mxu1 %v16219_v59  ;;  %v16206_v59 = vld [vmem:[%s21632_s3 + $0x188] sm:$0xff]  }
 0x33d   : > { %v2593_v15 = vpop.f32.mrb[234].mxu0  ;;  %14736 = vmatprep.subr.bf16.mxu1 %v21707_v53 }
 0x33e   : > { %v18354_v30 = vadd.f32 %v2593_v15, %v17954_v63  ;;  %v14117_v41 = vpop.f32.mrb[235].mxu0  ;;  %v16207_v63 = vld [vmem:[#allocation6 + $0x3c] sm:$0xff]   ;;  %v16214_v15 = vld [vmem:[%s21632_s3 + $0x198] sm:$0xff]  }
 0x33f   : > { %v4904_v36 = vrot.slane %v16207_v63, 2  ;;  %v16211_v41 = vld [vmem:[#allocation6 + $0x44] sm:$0xff]  }
 0x340   : > { %14271 = vmatmul.mubr.bf16.vlgmr.msra.gmra.mrb[84].mxu0 %v3134_v10  ;;  %14737 = vmatpush3.bf16.msra.mxu1 %v16220_v1 }
 0x341   : > { %14359 = vmatpush3.bf16.msra.mxu0 %v16204_v51  ;;  %14274 = vmatprep.mubr.msk.bf16.mxu0 %vm16790_vm0, %v21707_v53  ;;  %v4905_v51 = vsel %vm3131_vm3, %v4902_v31, %v4904_v36  ;;  %v16218_v31 = vld [vmem:[%s21632_s3 + $0x1a0] sm:$0xff]  }
 0x342   : > { %14360 = vmatprep.subr.bf16.mxu0 %v21707_v53  ;;  %14826 = vmatprep.subr.bf16.mxu1 %v21707_v53 }
 0x343   : > { %v2598_v57 = vpop.f32.mrb[236].mxu0  ;;  %14651 = vmatmul.mubr.bf16.gmra.mrb[124].mxu1 %v4903_v3 }
 0x344   : > { %v18366_v40 = vadd.f32 %v2598_v57, %v17974_v54  ;;  %v14120_v26 = vpop.f32.mrb[237].mxu0  ;;  %14654 = vmatprep.mubr.msk.bf16.mxu1 %vm16790_vm0, %v21707_v53  ;;  %v3136_v54 = vsel %vm3131_vm3, %v3133_v28, %v3135_v38 }
 0x345   : > { %v2601_v14 = vpop.f32.mrb[238].mxu0  ;;  %14361 = vmatpush3.bf16.msra.mxu0 %v16206_v59  ;;  %v4906_v26 = vrot.slane %v16211_v41, 2 }
 0x346   : > { %v18374_v20 = vadd.f32 %v2601_v14, %v17986_v60  ;;  %v14121_v1 = vpop.f32.mrb[239].mxu0  ;;  %14362 = vmatprep.subr.bf16.mxu0 %v21707_v53  ;;  %v16674_v60 = vld [vmem:[#allocation5 + $0x18] sm:$0xff]   ;;  %v16223_v14 = vld [vmem:[%s21632_s3 + $0x1a8] sm:$0xff]  }
 0x347   : > { %v3137_v10 = vrot.slane %v16674_v60, 2  ;;  %v16215_v1 = vld [vmem:[#allocation6 + $0x4c] sm:$0xff]  }
 0x348   : > { %14275 = vmatmul.mubr.bf16.gmra.mrb[88].mxu0 %v3136_v54 }
 0x349   : > { %14278 = vmatprep.mubr.msk.bf16.mxu0 %vm16790_vm0, %v21707_v53  ;;  %14363 = vmatpush3.bf16.msra.mxu0 %v16210_v25  ;;  %v4907_v25 = vsel %vm3131_vm3, %v4904_v36, %v4906_v26  ;;  %v16225_v36 = vld [vmem:[%s21632_s3 + $0x1b0] sm:$0xff]  }
 0x34a   : > { %14364 = vmatprep.subr.bf16.mxu0 %v21707_v53 }
 0x34b   : > { %v2606_v59 = vpop.f32.mrb[240].mxu0  ;;  %14655 = vmatmul.mubr.bf16.gmra.mrb[128].mxu1 %v4905_v51 }
 0x34c   : > { %v18386_v28 = vadd.f32 %v2606_v59, %v18003_v8  ;;  %v14124_v3 = vpop.f32.mrb[241].mxu0  ;;  %14658 = vmatprep.mubr.msk.bf16.mxu1 %vm16790_vm0, %v21707_v53  ;;  %v3138_v8 = vsel %vm3131_vm3, %v3135_v38, %v3137_v10  ;;  %v4908_v59 = vrot.slane %v16215_v1, 2 }
 0x34d   : > { %v2609_v63 = vpop.f32.mrb[242].mxu0  ;;  %14365 = vmatpush3.bf16.msra.mxu0 %v16214_v15 }
 0x34e   : > { %v18394_v19 = vadd.f32 %v2609_v63, %v18008_v7  ;;  %v14125_v57 = vpop.f32.mrb[243].mxu0  ;;  %14366 = vmatprep.subr.bf16.mxu0 %v21707_v53  ;;  %v3139_v7 = vrot.slane %v17905_v24, 2 }
 0x34f   : > { %v4909_v57 = vsel %vm3131_vm3, %v4906_v26, %v4908_v59 }
 0x350   : > { %14279 = vmatmul.mubr.bf16.gmra.mrb[92].mxu0 %v3138_v8  ;;  %v3140_v3 = vsel %vm3131_vm3, %v3137_v10, %v3139_v7  ;;  %v3141_v8 = vrot.slane %v17932_v9, 2 }
 0x351   : > { %14282 = vmatprep.mubr.msk.bf16.mxu0 %vm16790_vm0, %v21707_v53  ;;  %14367 = vmatpush3.bf16.msra.mxu0 %v16218_v31 }
 0x352   : > { %14368 = vmatprep.subr.bf16.mxu0 %v21707_v53 }
 0x353   : > { %v2614_v54 = vpop.f32.mrb[244].mxu0  ;;  %14659 = vmatmul.mubr.bf16.gmra.mrb[132].mxu1 %v4907_v25 }
 0x354   : > { %v18407_v38 = vadd.f32 %v2614_v54, %v18032_v22  ;;  %v14128_v15 = vpop.f32.mrb[245].mxu0  ;;  %14662 = vmatprep.mubr.msk.bf16.mxu1 %vm16790_vm0, %v21707_v53 }
 0x355   : > { %v2617_v51 = vpop.f32.mrb[246].mxu0  ;;  %14369 = vmatpush3.bf16.msra.mxu0 %v16223_v14 }
 0x356   : > { %v18415_v41 = vadd.f32 %v2617_v51, %v18038_v44  ;;  %v14129_v60 = vpop.f32.mrb[247].mxu0  ;;  %v18417_v24 = vpop.f32.mrb[28].mxu1  ;;  %14370 = vmatprep.subr.bf16.mxu0 %v21707_v53  ;;  %v16228_v44 = vld [vmem:[%s21632_s3 + $0x1b8] sm:$0xff]   ;;  %v3142_v51 = vsel %vm3131_vm3, %v3139_v7, %v3141_v8  ;;  %v16221_v7 = vld [vmem:[#allocation6 + $0xc] sm:$0xf8]  }
 0x357   : > { %v14352_v22 = vpop.f32.mrb[29].mxu1  ;;  %v16222_v60 = vld [vmem:[#allocation6 + $0x14] sm:$0xff]  }
 0x358   : > { %14283 = vmatmul.mubr.bf16.gmra.mrb[96].mxu0 %v3140_v3  ;;  %v18421_v63 = vpop.f32.mrb[30].mxu1 }
 0x359   : > { %v14353_v31 = vpop.f32.mrb[31].mxu1  ;;  %14286 = vmatprep.mubr.msk.bf16.mxu0 %vm16790_vm0, %v21707_v53  ;;  %14371 = vmatpush3.bf16.msra.mxu0 %v16225_v36 }
 0x35a   : > { %14372 = vmatprep.subr.bf16.mxu0 %v21707_v53 }
 0x35b   : > { %v2622_v14 = vpop.f32.mrb[248].mxu0  ;;  %14663 = vmatmul.mubr.bf16.gmra.mrb[136].mxu1 %v4909_v57 }
 0x35c   : > { %v18432_v10 = vadd.f32 %v2622_v14, %v18055_v39  ;;  %v14132_v25 = vpop.f32.mrb[249].mxu0  ;;  %14666 = vmatprep.mubr.msk.bf16.mxu1 %vm16790_vm0, %v21707_v53 }
 0x35d   : > { %v2625_v1 = vpop.f32.mrb[250].mxu0  ;;  %14373 = vmatpush3.bf16.msra.mxu0 %v16228_v44 }
 0x35e   : > { %v18437_v54 = vadd.f32 %v2625_v1, %v18065_v37  ;;  %v14133_v15 = vpop.f32.mrb[251].mxu0  ;;  %v18439_v26 = vpop.f32.mrb[32].mxu1  ;;  %14462 = vmatprep.subr.bf16.mxu0 %v21707_v53  ;;  %v3143_v37 = vrot.slane %v17967_v12, 2  ;;  %v5458_v1 = vrot.slane %v16222_v60, 3  ;;  %v3145_v60 = vrot.slane %v17995_v6, 2 }
 0x35f   : > { %v14356_v9 = vpop.f32.mrb[33].mxu1 }
 0x360   : > { %14287 = vmatmul.mubr.bf16.gmra.mrb[100].mxu0 %v3142_v51  ;;  %v18443_v39 = vpop.f32.mrb[34].mxu1  ;;  %v16239_v9 = vld [vmem:[%s21632_s3 + $0x3c0] sm:$0xff]  }
 0x361   : > { %v14357_v36 = vpop.f32.mrb[35].mxu1  ;;  %14290 = vmatprep.mubr.msk.bf16.mxu0 %vm16790_vm0, %v21707_v53 }
 0x362   : > { %v16224_v36 = vld [vmem:[#allocation6 + $0x1c] sm:$0xff]  }
 0x363   : > { %v2630_v22 = vpop.f32.mrb[252].mxu0  ;;  %14667 = vmatmul.mubr.bf16.gmra.mrb[140].mxu1 %v4908_v59  ;;  %v3144_v59 = vsel %vm3131_vm3, %v3141_v8, %v3143_v37 }
 0x364   : > { %v18449_v3 = vadd.f32 %v2630_v22, %v18126_v52  ;;  %v14136_v31 = vpop.f32.mrb[253].mxu0  ;;  %14738 = vmatprep.mubr.msk.bf16.mxu1 %vm16790_vm0, %v21707_v53  ;;  %v5457_v52 = vrot.slane %v16221_v7, 3  ;;  %v3107_v7 = vld [vmem:[#allocation5 + $0x44] sm:$0xf] }
 0x365   : > { %v2633_v44 = vpop.f32.mrb[254].mxu0 }
 0x366   : > { %v18454_v57 = vadd.f32 %v2633_v44, %v18131_v18  ;;  %v14137_v14 = vpop.f32.mrb[255].mxu0  ;;  %v18456_v25 = vpop.f32.mrb[36].mxu1  ;;  %v5459_v18 = vsel %vm3413_vm1, %v5457_v52, %v5458_v1  ;;  %v16242_v44 = vld [vmem:[%s21632_s3 + $0x3c8] sm:$0xff]  }
 0x367   : > { %v14428_v15 = vpop.f32.mrb[37].mxu1 }
 0x368   : > { %14291 = vmatmul.mubr.bf16.gmra.mrb[104].mxu0 %v3144_v59  ;;  %v18459_v12 = vpop.f32.mrb[38].mxu1 }
 0x369   : > { %v14429_v51 = vpop.f32.mrb[39].mxu1  ;;  %14294 = vmatprep.mubr.msk.bf16.mxu0 %vm16790_vm0, %v21707_v53 }
 0x36a   : > { %v3146_v51 = vsel %vm3131_vm3, %v3143_v37, %v3145_v60 }
 0x36b   : > { %v2638_v22 = vpop.f32.mrb[0].mxu0  ;;  %14739 = vmatmul.mubr.bf16.vlgmr.msra.gmra.mrb[144].mxu1 %v5459_v18  ;;  %v11681_v18 = vcombine.low %v18011_v5, %v3107_v7 }
 0x36c   : > { %v18469_v8 = vadd.f32 %v2638_v22, %v18216_v42  ;;  %v14140_v31 = vpop.f32.mrb[1].mxu0  ;;  %14742 = vmatprep.mubr.msk.bf16.mxu1 %vm16790_vm0, %v21707_v53  ;;  %14827 = vmatpush3.bf16.msra.mxu1 %v16239_v9  ;;  %v5460_v42 = vrot.slane %v16224_v36, 3  ;;  %v16245_v22 = vld [vmem:[%s21632_s3 + $0x3d0] sm:$0xff]   ;;  %v16227_v36 = vld [vmem:[#allocation6 + $0x24] sm:$0xff]  }
 0x36d   : > { %v2641_v14 = vpop.f32.mrb[2].mxu0  ;;  %14828 = vmatprep.subr.bf16.mxu1 %v21707_v53  ;;  %v3147_v5 = vrot.slane %v11681_v18, 2 }
 0x36e   : > { %v18478_v15 = vadd.f32 %v2641_v14, %v18221_v33  ;;  %v14141_v6 = vpop.f32.mrb[3].mxu0  ;;  %v18480_v59 = vpop.f32.mrb[40].mxu1  ;;  %v5461_v33 = vsel %vm3413_vm1, %v5458_v1, %v5460_v42  ;;  %v16248_v14 = vld [vmem:[%s21632_s3 + $0x3d8] sm:$0xff]  }
 0x36f   : > { %v14432_v52 = vpop.f32.mrb[41].mxu1 }
 0x370   : > { %14295 = vmatmul.mubr.bf16.gmra.mrb[108].mxu0 %v3146_v51  ;;  %v18484_v9 = vpop.f32.mrb[42].mxu1  ;;  %14829 = vmatpush3.bf16.msra.mxu1 %v16242_v44 }
 0x371   : > { %v14433_v31 = vpop.f32.mrb[43].mxu1  ;;  %14298 = vmatprep.mubr.msk.bf16.mxu0 %vm16790_vm0, %v21707_v53  ;;  %14830 = vmatprep.subr.bf16.mxu1 %v21707_v53 }
 0x372   : > { %v3148_v31 = vsel %vm3131_vm3, %v3145_v60, %v3147_v5 }
 0x373   : > { %v2646_v37 = vpop.f32.mrb[4].mxu0  ;;  %14743 = vmatmul.mubr.bf16.gmra.mrb[148].mxu1 %v5461_v33 }
 0x374   : > { %v18494_v7 = vadd.f32 %v2646_v37, %v18273_v23  ;;  %v14144_v44 = vpop.f32.mrb[5].mxu0  ;;  %14746 = vmatprep.mubr.msk.bf16.mxu1 %vm16790_vm0, %v21707_v53  ;;  %14831 = vmatpush3.bf16.msra.mxu1 %v16245_v22  ;;  %v5462_v23 = vrot.slane %v16227_v36, 3  ;;  %v16251_v22 = vld [vmem:[%s21632_s3 + $0x3e0] sm:$0xff]   ;;  %v16229_v36 = vld [vmem:[#allocation6 + $0x2c] sm:$0xff]  }
 0x375   : > { %v2649_v6 = vpop.f32.mrb[6].mxu0  ;;  %14832 = vmatprep.subr.bf16.mxu1 %v21707_v53 }
 0x376   : > { %v18503_v1 = vadd.f32 %v2649_v6, %v18276_v48  ;;  %v14145_v52 = vpop.f32.mrb[7].mxu0  ;;  %v18505_v51 = vpop.f32.mrb[44].mxu1  ;;  %v5463_v48 = vsel %vm3413_vm1, %v5460_v42, %v5462_v23 }
 0x377   : > { %21756 = vst [vmem:[#allocation58_spill] sm:$0xff] %v18505_v51  ;;  %v14436_v18 = vpop.f32.mrb[45].mxu1 }
 0x378   : > { %14299 = vmatmul.mubr.bf16.gmra.mrb[112].mxu0 %v3148_v31  ;;  %v18508_v33 = vpop.f32.mrb[46].mxu1  ;;  %14833 = vmatpush3.bf16.msra.mxu1 %v16248_v14  ;;  %v16254_v14 = vld [vmem:[%s21632_s3 + $0x3e8] sm:$0xff]  }
 0x379   : > { %21757 = vst [vmem:[#allocation59_spill] sm:$0xff] %v18508_v33  ;;  %v14437_v37 = vpop.f32.mrb[47].mxu1  ;;  %14302 = vmatprep.mubr.msk.bf16.mxu0 %vm16790_vm0, %v21707_v53  ;;  %14834 = vmatprep.subr.bf16.mxu1 %v21707_v53 }
 0x37b   : > { %v2654_v44 = vpop.f32.mrb[8].mxu0  ;;  %14747 = vmatmul.mubr.bf16.gmra.mrb[152].mxu1 %v5463_v48  ;;  %v16675_v48 = vld [vmem:[#allocation6 + $0xc] sm:$0xf] }
 0x37c   : > { %v18518_v60 = vadd.f32 %v2654_v44, %v18319_v56  ;;  %v14148_v6 = vpop.f32.mrb[9].mxu0  ;;  %14750 = vmatprep.mubr.msk.bf16.mxu1 %vm16790_vm0, %v21707_v53  ;;  %14835 = vmatpush3.bf16.msra.mxu1 %v16251_v22  ;;  %v5464_v56 = vrot.slane %v16229_v36, 3  ;;  %v16676_v44 = vld [vmem:[#allocation6 + $0x10] sm:$0xf] }
 0x37d   : > { %v2657_v52 = vpop.f32.mrb[10].mxu0  ;;  %14836 = vmatprep.subr.bf16.mxu1 %v21707_v53  ;;  %v11741_v6 = vcombine.low %v16675_v48, %v16676_v44 }
 0x37e   : > { %v18527_v42 = vadd.f32 %v2657_v52, %v18326_v61  ;;  %v14149_v18 = vpop.f32.mrb[11].mxu0  ;;  %v18529_v31 = vpop.f32.mrb[48].mxu1  ;;  %v16677_v61 = vld [vmem:[#allocation6 + $0x8] sm:$0xf]  ;;  %v5465_v36 = vsel %vm3413_vm1, %v5462_v23, %v5464_v56  ;;  %v16233_v23 = vld [vmem:[%s21632_s3 + $0x200] sm:$0xff]  }
 0x37f   : > { %21758 = vst [vmem:[#allocation60_spill] sm:$0xff] %v18529_v31  ;;  %v14440_v37 = vpop.f32.mrb[49].mxu1  ;;  %v11740_v52 = vcombine.low %v3613_v27, %v16677_v61  ;;  %v16234_v18 = vld [vmem:[#allocation6 + $0x34] sm:$0xff]  }
 0x380   : > { %14303 = vmatmul.mubr.bf16.gmra.mrb[116].mxu0 %v3147_v5  ;;  %v18531_v22 = vpop.f32.mrb[50].mxu1  ;;  %14837 = vmatpush3.bf16.msra.mxu1 %v16254_v14  ;;  %v3698_v37 = vrot.slane %v11741_v6, 3  ;;  %v16260_v27 = vld [vmem:[%s21632_s3 + $0x3f8] sm:$0xff]  }
 0x381   : > { %21759 = vst [vmem:[#allocation61_spill] sm:$0xff] %v18531_v22  ;;  %v14441_v33 = vpop.f32.mrb[51].mxu1  ;;  %14374 = vmatprep.mubr.msk.bf16.mxu0 %vm16790_vm0, %v21707_v53  ;;  %14838 = vmatprep.subr.bf16.mxu1 %v21707_v53  ;;  %v3697_v44 = vrot.slane %v11740_v52, 3  ;;  %v16679_v22 = vld [vmem:[#allocation6 + $0x18] sm:$0xf] }
 0x383   : > { %v2795_v5 = vpop.f32.mrb[12].mxu0  ;;  %14751 = vmatmul.mubr.bf16.gmra.mrb[156].mxu1 %v5465_v36  ;;  %v5466_v36 = vrot.slane %v16234_v18, 3 }
 0x384   : > { %v18541_v14 = vadd.f32 %v2795_v5, %v18342_v62  ;;  %v14168_v48 = vpop.f32.mrb[13].mxu0  ;;  %14754 = vmatprep.mubr.msk.bf16.mxu1 %vm16790_vm0, %v21707_v53  ;;  %14839 = vmatpush3.bf16.msra.mxu1 %v16257_v0  ;;  %v3699_v5 = vsel %vm3413_vm1, %v3697_v44, %v3698_v37 }
 0x385   : > { %v2798_v33 = vpop.f32.mrb[14].mxu0  ;;  %14840 = vmatprep.subr.bf16.mxu1 %v21707_v53  ;;  %v16678_v48 = vld [vmem:[#allocation6 + $0x14] sm:$0xf]  ;;  %v5467_v18 = vsel %vm3413_vm1, %v5464_v56, %v5466_v36  ;;  %v16243_v56 = vld [vmem:[%s21632_s3 + $0x210] sm:$0xff]  }
 0x386   : > { %v18553_v62 = vadd.f32 %v2798_v33, %v18354_v30  ;;  %v14169_v6 = vpop.f32.mrb[15].mxu0  ;;  %v18555_v61 = vpop.f32.mrb[52].mxu1  ;;  %v11742_v31 = vcombine.low %v16678_v48, %v16679_v22  ;;  %v16237_v30 = vld [vmem:[%s21632_s3 + $0x208] sm:$0xff]   ;;  %v16238_v33 = vld [vmem:[#allocation6 + $0x3c] sm:$0xff]  }
 0x387   : > { %21760 = vst [vmem:[#allocation62_spill] sm:$0xff] %v18555_v61  ;;  %v14444_v0 = vpop.f32.mrb[53].mxu1 }
 0x388   : > { %14375 = vmatmul.mubr.bf16.vlgmr.msra.gmra.mrb[120].mxu0 %v3699_v5  ;;  %v18558_v52 = vpop.f32.mrb[54].mxu1  ;;  %14841 = vmatpush3.bf16.msra.mxu1 %v16260_v27  ;;  %v3700_v44 = vrot.slane %v11742_v31, 3  ;;  %v5468_v31 = vrot.slane %v16238_v33, 3 }
 0x389   : > { %21761 = vst [vmem:[#allocation63_spill] sm:$0xff] %v18558_v52  ;;  %14463 = vmatpush3.bf16.msra.mxu0 %v16233_v23  ;;  %v14445_v51 = vpop.f32.mrb[55].mxu1  ;;  %14378 = vmatprep.mubr.msk.bf16.mxu0 %vm16790_vm0, %v21707_v53 }
 0x38a   : > { %14464 = vmatprep.subr.bf16.mxu0 %v21707_v53  ;;  %14930 = vmatprep.subr.bf16.mxu1 %v21707_v53  ;;  %v3701_v48 = vsel %vm3413_vm1, %v3698_v37, %v3700_v44  ;;  %v5469_v33 = vsel %vm3413_vm1, %v5466_v36, %v5468_v31 }
 0x38b   : > { %v2803_v22 = vpop.f32.mrb[16].mxu0  ;;  %14755 = vmatmul.mubr.bf16.gmra.mrb[160].mxu1 %v5467_v18  ;;  %v16680_v18 = vld [vmem:[#allocation6 + $0x1c] sm:$0xf] }
 0x38c   : > { %v18569_v27 = vadd.f32 %v2803_v22, %v18366_v40  ;;  %v14172_v51 = vpop.f32.mrb[17].mxu0  ;;  %14758 = vmatprep.mubr.msk.bf16.mxu1 %vm16790_vm0, %v21707_v53  ;;  %v16681_v22 = vld [vmem:[#allocation6 + $0x20] sm:$0xf] }
 0x38d   : > { %v2806_v23 = vpop.f32.mrb[18].mxu0  ;;  %14465 = vmatpush3.bf16.msra.mxu0 %v16237_v30  ;;  %v11743_v51 = vcombine.low %v16680_v18, %v16681_v22 }
 0x38e   : > { %v18577_v6 = vadd.f32 %v2806_v23, %v18374_v20  ;;  %v14173_v0 = vpop.f32.mrb[19].mxu0  ;;  %v18579_v5 = vpop.f32.mrb[56].mxu1  ;;  %14466 = vmatprep.subr.bf16.mxu0 %v21707_v53  ;;  %v16249_v20 = vld [vmem:[%s21632_s3 + $0x218] sm:$0xff]   ;;  %v16244_v23 = vld [vmem:[#allocation6 + $0x44] sm:$0xff]  }
 0x38f   : > { %21762 = vst [vmem:[#allocation64_spill] sm:$0xff] %v18579_v5  ;;  %v14448_v40 = vpop.f32.mrb[57].mxu1  ;;  %v3702_v0 = vrot.slane %v11743_v51, 3  ;;  %v5470_v51 = vrot.slane %v16244_v23, 3 }
 0x390   : > { %14379 = vmatmul.mubr.bf16.gmra.mrb[124].mxu0 %v3701_v48  ;;  %v18583_v30 = vpop.f32.mrb[58].mxu1  ;;  %v16256_v48 = vld [vmem:[%s21632_s3 + $0x220] sm:$0xff]  }
 0x391   : > { %21763 = vst [vmem:[#allocation65_spill] sm:$0xff] %v18583_v30  ;;  %v14449_v52 = vpop.f32.mrb[59].mxu1  ;;  %14382 = vmatprep.mubr.msk.bf16.mxu0 %vm16790_vm0, %v21707_v53  ;;  %14467 = vmatpush3.bf16.msra.mxu0 %v16243_v56  ;;  %v5471_v23 = vsel %vm3413_vm1, %v5468_v31, %v5470_v51 }
 0x392   : > { %14468 = vmatprep.subr.bf16.mxu0 %v21707_v53 }
 0x393   : > { %v2811_v37 = vpop.f32.mrb[20].mxu0  ;;  %14759 = vmatmul.mubr.bf16.gmra.mrb[164].mxu1 %v5469_v33  ;;  %v3703_v33 = vsel %vm3413_vm1, %v3700_v44, %v3702_v0 }
 0x394   : > { %v18593_v40 = vadd.f32 %v2811_v37, %v18386_v28  ;;  %v14176_v52 = vpop.f32.mrb[21].mxu0  ;;  %14762 = vmatprep.mubr.msk.bf16.mxu1 %vm16790_vm0, %v21707_v53  ;;  %v16682_v37 = vld [vmem:[#allocation6 + $0x24] sm:$0xf] }
 0x395   : > { %v2814_v56 = vpop.f32.mrb[22].mxu0  ;;  %14469 = vmatpush3.bf16.msra.mxu0 %v16249_v20  ;;  %v16683_v52 = vld [vmem:[#allocation6 + $0x28] sm:$0xf] }
 0x396   : > { %v18601_v36 = vadd.f32 %v2814_v56, %v18394_v19  ;;  %v14177_v18 = vpop.f32.mrb[23].mxu0  ;;  %v18603_v22 = vpop.f32.mrb[60].mxu1  ;;  %14470 = vmatprep.subr.bf16.mxu0 %v21707_v53  ;;  %v11744_v30 = vcombine.low %v16682_v37, %v16683_v52  ;;  %v16263_v19 = vld [vmem:[%s21632_s3 + $0x228] sm:$0xff]   ;;  %v16250_v56 = vld [vmem:[#allocation6 + $0x4c] sm:$0xff]  }
 0x397   : > { %21764 = vst [vmem:[#allocation66_spill] sm:$0xff] %v18603_v22  ;;  %v14452_v28 = vpop.f32.mrb[61].mxu1 }
 0x398   : > { %14383 = vmatmul.mubr.bf16.gmra.mrb[128].mxu0 %v3703_v33  ;;  %v18607_v20 = vpop.f32.mrb[62].mxu1  ;;  %v3704_v18 = vrot.slane %v11744_v30, 3  ;;  %v16267_v33 = vld [vmem:[%s21632_s3 + $0x230] sm:$0xff]   ;;  %v5472_v30 = vrot.slane %v16250_v56, 3 }
 0x399   : > { %21765 = vst [vmem:[#allocation67_spill] sm:$0xff] %v18607_v20  ;;  %v14453_v5 = vpop.f32.mrb[63].mxu1  ;;  %14386 = vmatprep.mubr.msk.bf16.mxu0 %vm16790_vm0, %v21707_v53  ;;  %14471 = vmatpush3.bf16.msra.mxu0 %v16256_v48 }
 0x39a   : > { %14472 = vmatprep.subr.bf16.mxu0 %v21707_v53  ;;  %v5473_v56 = vsel %vm3413_vm1, %v5470_v51, %v5472_v30 }
 0x39b   : > { %v2819_v44 = vpop.f32.mrb[24].mxu0  ;;  %14763 = vmatmul.mubr.bf16.gmra.mrb[168].mxu1 %v5471_v23  ;;  %v3705_v23 = vsel %vm3413_vm1, %v3702_v0, %v3704_v18 }
 0x39c   : > { %v18617_v28 = vadd.f32 %v2819_v44, %v18407_v38  ;;  %v14180_v5 = vpop.f32.mrb[25].mxu0  ;;  %14766 = vmatprep.mubr.msk.bf16.mxu1 %vm16790_vm0, %v21707_v53  ;;  %v16684_v44 = vld [vmem:[#allocation6 + $0x2c] sm:$0xf] }
 0x39d   : > { %v2822_v48 = vpop.f32.mrb[26].mxu0  ;;  %14473 = vmatpush3.bf16.msra.mxu0 %v16263_v19  ;;  %v16685_v5 = vld [vmem:[#allocation6 + $0x30] sm:$0xf] }
 0x39e   : > { %v18625_v31 = vadd.f32 %v2822_v48, %v18415_v41  ;;  %v14181_v37 = vpop.f32.mrb[27].mxu0  ;;  %v18627_v52 = vpop.f32.mrb[64].mxu1  ;;  %14474 = vmatprep.subr.bf16.mxu0 %v21707_v53  ;;  %v11745_v20 = vcombine.low %v16684_v44, %v16685_v5  ;;  %v16272_v41 = vld [vmem:[%s21632_s3 + $0x238] sm:$0xff]  }
 0x39f   : > { %21766 = vst [vmem:[#allocation68_spill] sm:$0xff] %v18627_v52  ;;  %v14456_v38 = vpop.f32.mrb[65].mxu1  ;;  %v16255_v48 = vld [vmem:[#allocation6 + $0x54] ss:$0 sps:$4 sm:$0x11]  }
 0x3a0   : > { %14387 = vmatmul.mubr.bf16.gmra.mrb[132].mxu0 %v3705_v23  ;;  %v18631_v19 = vpop.f32.mrb[66].mxu1  ;;  %v3706_v37 = vrot.slane %v11745_v20, 3  ;;  %v5474_v5 = vrot.slane %v16255_v48, 3 }
 0x3a1   : > { %21767 = vst [vmem:[#allocation69_spill] sm:$0xff] %v18631_v19  ;;  %v14457_v22 = vpop.f32.mrb[67].mxu1  ;;  %14390 = vmatprep.mubr.msk.bf16.mxu0 %vm16790_vm0, %v21707_v53  ;;  %14475 = vmatpush3.bf16.msra.mxu0 %v16267_v33 }
 0x3a2   : > { %14476 = vmatprep.subr.bf16.mxu0 %v21707_v53  ;;  %v3707_v20 = vsel %vm3413_vm1, %v3704_v18, %v3706_v37 }
 0x3a3   : > { %v2827_v0 = vpop.f32.mrb[28].mxu0  ;;  %14767 = vmatmul.mubr.bf16.gmra.mrb[172].mxu1 %v5473_v56 }
 0x3a4   : > { %v18641_v38 = vadd.f32 %v2827_v0, %v18432_v10  ;;  %v14184_v22 = vpop.f32.mrb[29].mxu0  ;;  %14770 = vmatprep.mubr.msk.bf16.mxu1 %vm16790_vm0, %v21707_v53  ;;  %v16686_v10 = vld [vmem:[#allocation6 + $0x34] sm:$0xf]  ;;  %v16687_v0 = vld [vmem:[#allocation6 + $0x38] sm:$0xf] }
 0x3a5   : > { %v2830_v33 = vpop.f32.mrb[30].mxu0  ;;  %14477 = vmatpush3.bf16.msra.mxu0 %v16272_v41  ;;  %v11746_v22 = vcombine.low %v16686_v10, %v16687_v0 }
 0x3a6   : > { %v18646_v23 = vadd.f32 %v2830_v33, %v18437_v54  ;;  %v14185_v44 = vpop.f32.mrb[31].mxu0  ;;  %v18648_v51 = vpop.f32.mrb[68].mxu1  ;;  %14566 = vmatprep.subr.bf16.mxu0 %v21707_v53  ;;  %v5475_v54 = vsel %vm3413_vm1, %v5472_v30, %v5474_v5  ;;  %v5865_v33 = vld [vmem:[#allocation5 + $0x14] sm:$0xe]  ;;  %v16689_v30 = vld [vmem:[#allocation5 + $0x1c] sm:$0xff]  }
 0x3a7   : > { %21768 = vst [vmem:[#allocation70_spill] sm:$0xff] %v18648_v51  ;;  %v14460_v56 = vpop.f32.mrb[69].mxu1  ;;  %v3708_v48 = vrot.slane %v11746_v22, 3  ;;  %v5946_v5 = vrot.slane %v16689_v30, 1 }
 0x3a8   : > { %14391 = vmatmul.mubr.bf16.gmra.mrb[136].mxu0 %v3707_v20  ;;  %v18652_v19 = vpop.f32.mrb[70].mxu1  ;;  %v16688_v56 = vld [vmem:[#allocation5 + $0x18] sm:$0xf] }
 0x3a9   : > { %21769 = vst [vmem:[#allocation71_spill] sm:$0xff] %v18652_v19  ;;  %v14461_v52 = vpop.f32.mrb[71].mxu1  ;;  %14394 = vmatprep.mubr.msk.bf16.mxu0 %vm16790_vm0, %v21707_v53  ;;  %v12033_v20 = vcombine.low %v5865_v33, %v16688_v56 }
 0x3ab   : > { %v2835_v41 = vpop.f32.mrb[32].mxu0  ;;  %14771 = vmatmul.mubr.bf16.gmra.mrb[176].mxu1 %v5475_v54  ;;  %v3709_v54 = vsel %vm3413_vm1, %v3706_v37, %v3708_v48  ;;  %v5945_v61 = vrot.slane %v12033_v20, 1  ;;  %v18681_v20 = vld [vmem:[#allocation6 + $0x48] sm:$0xf] }
 0x3ac   : > { %v18658_v44 = vadd.f32 %v2835_v41, %v18449_v3  ;;  %v14188_v18 = vpop.f32.mrb[33].mxu0  ;;  %14842 = vmatprep.mubr.msk.bf16.mxu1 %vm16790_vm0, %v21707_v53  ;;  %v16690_v3 = vld [vmem:[#allocation6 + $0x3c] sm:$0xf]  ;;  %v16691_v41 = vld [vmem:[#allocation6 + $0x40] sm:$0xf] }
 0x3ad   : > { %v2838_v10 = vpop.f32.mrb[34].mxu0  ;;  %v11747_v18 = vcombine.low %v16690_v3, %v16691_v41  ;;  %v5947_v56 = vsel %vm2686_vm2, %v5945_v61, %v5946_v5  ;;  %v16692_v41 = vld [vmem:[#allocation5 + $0x24] sm:$0xff]  }
 0x3ae   : > { %v18663_v52 = vadd.f32 %v2838_v10, %v18454_v57  ;;  %v14189_v0 = vpop.f32.mrb[35].mxu0  ;;  %v18665_v19 = vpop.f32.mrb[72].mxu1  ;;  %v16279_v57 = vld [vmem:[%s21632_s3 + $0x440] sm:$0xff]  }
 0x3af   : > { %v14532_v22 = vpop.f32.mrb[73].mxu1  ;;  %v3710_v37 = vrot.slane %v11747_v18, 3  ;;  %v5948_v18 = vrot.slane %v16692_v41, 1 }
 0x3b0   : > { %14395 = vmatmul.mubr.bf16.gmra.mrb[140].mxu0 %v3709_v54  ;;  %v18668_v51 = vpop.f32.mrb[74].mxu1  ;;  %v16280_v22 = vld [vmem:[%s21632_s3 + $0x448] sm:$0xff]  }
 0x3b1   : > { %21770 = vst [vmem:[#allocation72_spill] sm:$0xff] %v18668_v51  ;;  %v14533_v33 = vpop.f32.mrb[75].mxu1  ;;  %14398 = vmatprep.mubr.msk.bf16.mxu0 %vm16790_vm0, %v21707_v53 }
 0x3b3   : > { %v2843_v10 = vpop.f32.mrb[36].mxu0  ;;  %14843 = vmatmul.mubr.bf16.vlgmr.msra.gmra.mrb[180].mxu1 %v5947_v56  ;;  %v3711_v56 = vsel %vm3413_vm1, %v3708_v48, %v3710_v37 }
 0x3b4   : > { %v18677_v0 = vadd.f32 %v2843_v10, %v18469_v8  ;;  %v14192_v30 = vpop.f32.mrb[37].mxu0  ;;  %14846 = vmatprep.mubr.msk.bf16.mxu1 %vm16790_vm0, %v21707_v53  ;;  %14931 = vmatpush3.bf16.msra.mxu1 %v16279_v57  ;;  %v16693_v10 = vld [vmem:[#allocation6 + $0x44] sm:$0xf] }
 0x3b5   : > { %v2846_v54 = vpop.f32.mrb[38].mxu0  ;;  %14932 = vmatprep.subr.bf16.mxu1 %v21707_v53  ;;  %v11748_v57 = vcombine.low %v16693_v10, %v18681_v20 }
 0x3b6   : > { %v18688_v61 = vadd.f32 %v2846_v54, %v18478_v15  ;;  %v14193_v3 = vpop.f32.mrb[39].mxu0  ;;  %v18690_v8 = vpop.f32.mrb[76].mxu1  ;;  %v16283_v15 = vld [vmem:[%s21632_s3 + $0x450] sm:$0xff]  }
 0x3b7   : > { %21771 = vst [vmem:[#allocation73_spill] sm:$0xff] %v18690_v8  ;;  %v14536_v33 = vpop.f32.mrb[77].mxu1  ;;  %v5949_v3 = vsel %vm2686_vm2, %v5946_v5, %v5948_v18  ;;  %v3712_v41 = vrot.slane %v11748_v57, 3  ;;  %v16287_v8 = vld [vmem:[%s21632_s3 + $0x460] sm:$0xff]  }
 0x3b8   : > { %14399 = vmatmul.mubr.bf16.gmra.mrb[144].mxu0 %v3711_v56  ;;  %v18694_v30 = vpop.f32.mrb[78].mxu1  ;;  %14933 = vmatpush3.bf16.msra.mxu1 %v16280_v22  ;;  %v16284_v22 = vld [vmem:[%s21632_s3 + $0x458] sm:$0xff]  }
 0x3b9   : > { %21772 = vst [vmem:[#allocation74_spill] sm:$0xff] %v18694_v30  ;;  %v14537_v54 = vpop.f32.mrb[79].mxu1  ;;  %14402 = vmatprep.mubr.msk.bf16.mxu0 %vm16790_vm0, %v21707_v53  ;;  %14934 = vmatprep.subr.bf16.mxu1 %v21707_v53  ;;  %v16273_v30 = vld [vmem:[#allocation6 + $0x4c] ss:$0 sps:$4 sm:$0x11]  }
 0x3bb   : > { %v2851_v48 = vpop.f32.mrb[40].mxu0  ;;  %14847 = vmatmul.mubr.bf16.gmra.mrb[184].mxu1 %v5949_v3 }
 0x3bc   : > { %v18704_v33 = vadd.f32 %v2851_v48, %v18494_v7  ;;  %v14196_v56 = vpop.f32.mrb[41].mxu0  ;;  %14850 = vmatprep.mubr.msk.bf16.mxu1 %vm16790_vm0, %v21707_v53  ;;  %14935 = vmatpush3.bf16.msra.mxu1 %v16283_v15  ;;  %v16694_v7 = vld [vmem:[#allocation5 + $0x2c] sm:$0xff]  }
 0x3bd   : > { %v2854_v10 = vpop.f32.mrb[42].mxu0  ;;  %14936 = vmatprep.subr.bf16.mxu1 %v21707_v53  ;;  %v5950_v3 = vrot.slane %v16694_v7, 1  ;;  %v3713_v56 = vsel %vm3413_vm1, %v3710_v37, %v3712_v41  ;;  %v3714_v37 = vrot.slane %v16273_v30, 3 }
 0x3be   : > { %v18713_v5 = vadd.f32 %v2854_v10, %v18503_v1  ;;  %v14197_v54 = vpop.f32.mrb[43].mxu0  ;;  %v18715_v57 = vpop.f32.mrb[80].mxu1 }
 0x3bf   : > { %v14540_v48 = vpop.f32.mrb[81].mxu1  ;;  %v5951_v1 = vsel %vm2686_vm2, %v5948_v18, %v5950_v3 }
 0x3c0   : > { %14403 = vmatmul.mubr.bf16.gmra.mrb[148].mxu0 %v3713_v56  ;;  %v18718_v15 = vpop.f32.mrb[82].mxu1  ;;  %14937 = vmatpush3.bf16.msra.mxu1 %v16284_v22 }
 0x3c1   : > { %21773 = vst [vmem:[#allocation75_spill] sm:$0xff] %v18718_v15  ;;  %v14541_v51 = vpop.f32.mrb[83].mxu1  ;;  %14406 = vmatprep.mubr.msk.bf16.mxu0 %vm16790_vm0, %v21707_v53  ;;  %14938 = vmatprep.subr.bf16.mxu1 %v21707_v53 }
 0x3c2   : > { %v16288_v51 = vld [vmem:[%s21632_s3 + $0x468] sm:$0xff]  }
 0x3c3   : > { %v2859_v10 = vpop.f32.mrb[44].mxu0  ;;  %14851 = vmatmul.mubr.bf16.gmra.mrb[188].mxu1 %v5951_v1 }
 0x3c4   : > { %v18728_v54 = vadd.f32 %v2859_v10, %v18518_v60  ;;  %v14200_v7 = vpop.f32.mrb[45].mxu0  ;;  %14854 = vmatprep.mubr.msk.bf16.mxu1 %vm16790_vm0, %v21707_v53  ;;  %14939 = vmatpush3.bf16.msra.mxu1 %v16287_v8  ;;  %v16695_v60 = vld [vmem:[#allocation5 + $0x34] sm:$0xff]   ;;  %v3715_v10 = vsel %vm3413_vm1, %v3712_v41, %v3714_v37 }
 0x3c5   : > { %v2862_v22 = vpop.f32.mrb[46].mxu0  ;;  %14940 = vmatprep.subr.bf16.mxu1 %v21707_v53  ;;  %v5952_v56 = vrot.slane %v16695_v60, 1  ;;  %v16290_v7 = vld [vmem:[%s21632_s3 + $0x470] sm:$0xff]  }
 0x3c6   : > { %v18737_v18 = vadd.f32 %v2862_v22, %v18527_v42  ;;  %v14201_v48 = vpop.f32.mrb[47].mxu0  ;;  %v18739_v30 = vpop.f32.mrb[84].mxu1 }
 0x3c7   : > { %v14544_v1 = vpop.f32.mrb[85].mxu1  ;;  %v5953_v42 = vsel %vm2686_vm2, %v5950_v3, %v5952_v56  ;;  %v16275_v48 = vld [vmem:[%s21632_s3 + $0x280] sm:$0xff]  }
 0x3c8   : > { %14407 = vmatmul.mubr.bf16.gmra.mrb[152].mxu0 %v3715_v10  ;;  %v18742_v8 = vpop.f32.mrb[86].mxu1  ;;  %14941 = vmatpush3.bf16.msra.mxu1 %v16288_v51  ;;  %v16696_v1 = vld [vmem:[#allocation5 + $0x3c] sm:$0xff]  }
 0x3c9   : > { %v14545_v15 = vpop.f32.mrb[87].mxu1  ;;  %14478 = vmatprep.mubr.msk.bf16.mxu0 %vm16790_vm0, %v21707_v53  ;;  %14942 = vmatprep.subr.bf16.mxu1 %v21707_v53  ;;  %v5954_v10 = vrot.slane %v16696_v1, 1 }
 0x3ca   : > { %v16291_v15 = vld [vmem:[%s21632_s3 + $0x478] sm:$0xff]  }
 0x3cb   : > { %v3017_v22 = vpop.f32.mrb[48].mxu0  ;;  %14855 = vmatmul.mubr.bf16.gmra.mrb[192].mxu1 %v5953_v42  ;;  %v21774_v42 = vcombine.low %v17206_v16, %v17208_v17 }
 0x3cc   : > { %v18752_v41 = vadd.f32 %v3017_v22, %v18541_v14  ;;  %v14220_v37 = vpop.f32.mrb[49].mxu0  ;;  %14858 = vmatprep.mubr.msk.bf16.mxu1 %vm16790_vm0, %v21707_v53  ;;  %14943 = vmatpush3.bf16.msra.mxu1 %v16290_v7 }
 0x3cd   : > { %v3020_v51 = vpop.f32.mrb[50].mxu0  ;;  %14944 = vmatprep.subr.bf16.mxu1 %v21707_v53 }
 0x3ce   : > { %v18764_v3 = vadd.f32 %v3020_v51, %v18553_v62  ;;  %v14221_v14 = vpop.f32.mrb[51].mxu0  ;;  %v18766_v60 = vpop.f32.mrb[88].mxu1  ;;  %v16277_v62 = vld [vmem:[%s21632_s3 + $0x288] sm:$0xff]   ;;  %v5955_v51 = vsel %vm2686_vm2, %v5952_v56, %v5954_v10 }
 0x3cf   : > { %v14548_v7 = vpop.f32.mrb[89].mxu1  ;;  %v16281_v14 = vld [vmem:[%s21632_s3 + $0x290] sm:$0xff]  }
 0x3d0   : > { %14479 = vmatmul.mubr.bf16.vlgmr.msra.gmra.mrb[156].mxu0 %v21774_v42  ;;  %v18771_v22 = vpop.f32.mrb[90].mxu1  ;;  %14945 = vmatpush3.bf16.msra.mxu1 %v16291_v15  ;;  %v16697_v42 = vld [vmem:[#allocation5 + $0x44] sm:$0xff]  }
 0x3d1   : > { %14567 = vmatpush3.bf16.msra.mxu0 %v16275_v48  ;;  %v14549_v37 = vpop.f32.mrb[91].mxu1  ;;  %14482 = vmatprep.mubr.msk.bf16.mxu0 %vm16790_vm0, %v21707_v53 }
 0x3d2   : > { %14568 = vmatprep.subr.bf16.mxu0 %v21707_v53  ;;  %15034 = vmatprep.subr.bf16.mxu1 %v21707_v53  ;;  %v5956_v37 = vrot.slane %v16697_v42, 1 }
 0x3d3   : > { %v3025_v16 = vpop.f32.mrb[52].mxu0  ;;  %14859 = vmatmul.mubr.bf16.gmra.mrb[196].mxu1 %v5955_v51  ;;  %v21775_v51 = vcombine.low %v17262_v45, %v17264_v46 }
 0x3d4   : > { %v18782_v17 = vadd.f32 %v3025_v16, %v18569_v27  ;;  %v14224_v15 = vpop.f32.mrb[53].mxu0  ;;  %14862 = vmatprep.mubr.msk.bf16.mxu1 %vm16790_vm0, %v21707_v53 }
 0x3d5   : > { %v3028_v48 = vpop.f32.mrb[54].mxu0  ;;  %14569 = vmatpush3.bf16.msra.mxu0 %v16277_v62  ;;  %v5957_v15 = vsel %vm2686_vm2, %v5954_v10, %v5956_v37 }
 0x3d6   : > { %v18790_v56 = vadd.f32 %v3028_v48, %v18577_v6  ;;  %v14225_v1 = vpop.f32.mrb[55].mxu0  ;;  %v18792_v7 = vpop.f32.mrb[92].mxu1  ;;  %14570 = vmatprep.subr.bf16.mxu0 %v21707_v53  ;;  %v16285_v6 = vld [vmem:[%s21632_s3 + $0x298] sm:$0xff]  }
 0x3d7   : > { %v14552_v27 = vpop.f32.mrb[93].mxu1 }
 0x3d8   : > { %14483 = vmatmul.mubr.bf16.gmra.mrb[160].mxu0 %v21775_v51  ;;  %v18798_v62 = vpop.f32.mrb[94].mxu1  ;;  %v16698_v51 = vld [vmem:[#allocation5 + $0x4c] sm:$0xff]  }
 0x3d9   : > { %v14553_v16 = vpop.f32.mrb[95].mxu1  ;;  %14486 = vmatprep.mubr.msk.bf16.mxu0 %vm16790_vm0, %v21707_v53  ;;  %14571 = vmatpush3.bf16.msra.mxu0 %v16281_v14  ;;  %v16289_v14 = vld [vmem:[%s21632_s3 + $0x2a0] sm:$0xff]  }
 0x3da   : > { %14572 = vmatprep.subr.bf16.mxu0 %v21707_v53  ;;  %v5958_v16 = vrot.slane %v16698_v51, 1 }
 0x3db   : > { %v3033_v48 = vpop.f32.mrb[56].mxu0  ;;  %14863 = vmatmul.mubr.bf16.gmra.mrb[200].mxu1 %v5957_v15  ;;  %v5882_v15 = vld [vmem:[#allocation5 + $0x58] sm:$0x7] }
 0x3dc   : > { %v18808_v45 = vadd.f32 %v3033_v48, %v18593_v40  ;;  %v14228_v46 = vpop.f32.mrb[57].mxu0  ;;  %14866 = vmatprep.mubr.msk.bf16.mxu1 %vm16790_vm0, %v21707_v53  ;;  %v21777_v48 = vcombine.low %v17344_v29, %v17346_v32 }
 0x3dd   : > { %v3036_v1 = vpop.f32.mrb[58].mxu0  ;;  %14573 = vmatpush3.bf16.msra.mxu0 %v16285_v6 }
 0x3de   : > { %v18816_v42 = vadd.f32 %v3036_v1, %v18601_v36  ;;  %v14229_v10 = vpop.f32.mrb[59].mxu0  ;;  %v18818_v27 = vpop.f32.mrb[96].mxu1  ;;  %14574 = vmatprep.subr.bf16.mxu0 %v21707_v53  ;;  %v16293_v36 = vld [vmem:[%s21632_s3 + $0x2a8] sm:$0xff]   ;;  %v5959_v1 = vsel %vm2686_vm2, %v5956_v37, %v5958_v16 }
 0x3df   : > { %21776 = vst [vmem:[#allocation76_spill] sm:$0xff] %v18818_v27  ;;  %v14556_v40 = vpop.f32.mrb[97].mxu1  ;;  %v16699_v10 = vld [vmem:[#allocation5 + $0x54] sm:$0xf] }
 0x3e0   : > { %14487 = vmatmul.mubr.bf16.gmra.mrb[164].mxu0 %v21777_v48  ;;  %v18824_v6 = vpop.f32.mrb[98].mxu1  ;;  %v12041_v51 = vcombine.low %v16699_v10, %v5882_v15  ;;  %v16294_v48 = vld [vmem:[%s21632_s3 + $0x2b0] sm:$0xff]  }
 0x3e1   : > { %21778 = vst [vmem:[#allocation77_spill] sm:$0xff] %v18824_v6  ;;  %v14557_v46 = vpop.f32.mrb[99].mxu1  ;;  %14490 = vmatprep.mubr.msk.bf16.mxu0 %vm16790_vm0, %v21707_v53  ;;  %14575 = vmatpush3.bf16.msra.mxu0 %v16289_v14  ;;  %v21780_v10 = vld [vmem:[#allocation17_spill] sm:$0xff] }
 0x3e2   : > { %14576 = vmatprep.subr.bf16.mxu0 %v21707_v53 }
 0x3e3   : > { %v3041_v40 = vpop.f32.mrb[60].mxu0  ;;  %14867 = vmatmul.mubr.bf16.gmra.mrb[204].mxu1 %v5959_v1  ;;  %v5960_v1 = vrot.slane %v12041_v51, 1 }
 0x3e4   : > { %v18834_v29 = vadd.f32 %v3041_v40, %v18617_v28  ;;  %v14232_v32 = vpop.f32.mrb[61].mxu0  ;;  %14870 = vmatprep.mubr.msk.bf16.mxu1 %vm16790_vm0, %v21707_v53  ;;  %v21781_v40 = vcombine.low %v17415_v2, %v21780_v10 }
 0x3e5   : > { %v3044_v14 = vpop.f32.mrb[62].mxu0  ;;  %14577 = vmatpush3.bf16.msra.mxu0 %v16293_v36  ;;  %v5961_v51 = vsel %vm2686_vm2, %v5958_v16, %v5960_v1 }
 0x3e6   : > { %v18842_v37 = vadd.f32 %v3044_v14, %v18625_v31  ;;  %v14233_v15 = vpop.f32.mrb[63].mxu0  ;;  %v18844_v46 = vpop.f32.mrb[100].mxu1  ;;  %14578 = vmatprep.subr.bf16.mxu0 %v21707_v53  ;;  %v16295_v31 = vld [vmem:[%s21632_s3 + $0x2b8] sm:$0xff]  }
 0x3e7   : > { %21779 = vst [vmem:[#allocation78_spill] sm:$0xff] %v18844_v46  ;;  %v14560_v28 = vpop.f32.mrb[101].mxu1  ;;  %v21811_v46 = vld [vmem:[#allocation47_spill] sm:$0xff] }
 0x3e8   : > { %14491 = vmatmul.mubr.bf16.gmra.mrb[168].mxu0 %v21781_v40  ;;  %v18850_v32 = vpop.f32.mrb[102].mxu1 }
 0x3e9   : > { %21782 = vst [vmem:[#allocation17_spill] sm:$0xff] %v18850_v32  ;;  %v14561_v36 = vpop.f32.mrb[103].mxu1  ;;  %14494 = vmatprep.mubr.msk.bf16.mxu0 %vm16790_vm0, %v21707_v53  ;;  %14579 = vmatpush3.bf16.msra.mxu0 %v16294_v48 }
 0x3ea   : > { %14580 = vmatprep.subr.bf16.mxu0 %v21707_v53  ;;  %v21784_v36 = vld [vmem:[#allocation22_spill] sm:$0xff] }
 0x3eb   : > { %v3049_v14 = vpop.f32.mrb[64].mxu0  ;;  %14871 = vmatmul.mubr.bf16.gmra.mrb[208].mxu1 %v5961_v51  ;;  %v21785_v51 = vld [vmem:[#allocation23_spill] sm:$0xff] }
 0x3ec   : > { %v18860_v2 = vadd.f32 %v3049_v14, %v18641_v38  ;;  %v14236_v15 = vpop.f32.mrb[65].mxu0  ;;  %14874 = vmatprep.mubr.msk.bf16.mxu1 %vm16790_vm0, %v21707_v53  ;;  %v21786_v32 = vcombine.low %v21784_v36, %v21785_v51  ;;  %v21789_v51 = vld [vmem:[#allocation31_spill] sm:$0xff] }
 0x3ed   : > { %v3052_v28 = vpop.f32.mrb[66].mxu0  ;;  %14581 = vmatpush3.bf16.msra.mxu0 %v16295_v31 }
 0x3ee   : > { %v18865_v48 = vadd.f32 %v3052_v28, %v18646_v23  ;;  %v14237_v10 = vpop.f32.mrb[67].mxu0  ;;  %v18867_v40 = vpop.f32.mrb[104].mxu1  ;;  %14670 = vmatprep.subr.bf16.mxu0 %v21707_v53 }
 0x3ef   : > { %21783 = vst [vmem:[#allocation79_spill] sm:$0xff] %v18867_v40  ;;  %v14564_v16 = vpop.f32.mrb[105].mxu1  ;;  %v16299_v40 = vld [vmem:[#allocation5 + $0x1c] sm:$0xff]  }
 0x3f0   : > { %14495 = vmatmul.mubr.bf16.gmra.mrb[172].mxu0 %v21786_v32  ;;  %v18873_v38 = vpop.f32.mrb[106].mxu1 }
 0x3f1   : > { %21787 = vst [vmem:[#allocation22_spill] sm:$0xff] %v18873_v38  ;;  %v14565_v14 = vpop.f32.mrb[107].mxu1  ;;  %14498 = vmatprep.mubr.msk.bf16.mxu0 %vm16790_vm0, %v21707_v53 }
 0x3f2   : > { %v21790_v14 = vld [vmem:[#allocation32_spill] sm:$0xff] }
 0x3f3   : > { %v3057_v31 = vpop.f32.mrb[68].mxu0  ;;  %14875 = vmatmul.mubr.bf16.gmra.mrb[212].mxu1 %v5960_v1  ;;  %v21791_v38 = vcombine.low %v21789_v51, %v21790_v14 }
 0x3f4   : > { %v18878_v23 = vadd.f32 %v3057_v31, %v18658_v44  ;;  %v14240_v15 = vpop.f32.mrb[69].mxu0  ;;  %14946 = vmatprep.mubr.msk.bf16.mxu1 %vm16790_vm0, %v21707_v53  ;;  %v16301_v44 = vld [vmem:[%s21632_s3 + $0x4c0] sm:$0xff]  }
 0x3f5   : > { %v3060_v28 = vpop.f32.mrb[70].mxu0  ;;  %v21793_v15 = vld [vmem:[#allocation18_spill] sm:$0xff] }
 0x3f6   : > { %v18883_v10 = vadd.f32 %v3060_v28, %v18663_v52  ;;  %v14241_v32 = vpop.f32.mrb[71].mxu0  ;;  %v18885_v16 = vpop.f32.mrb[108].mxu1 }
 0x3f7   : > { %21788 = vst [vmem:[#allocation23_spill] sm:$0xff] %v18885_v16  ;;  %v14636_v36 = vpop.f32.mrb[109].mxu1 }
 0x3f8   : > { %14499 = vmatmul.mubr.bf16.gmra.mrb[176].mxu0 %v21791_v38  ;;  %v18890_v1 = vpop.f32.mrb[110].mxu1  ;;  %v16303_v38 = vld [vmem:[%s21632_s3 + $0x4c8] sm:$0xff]  }
 0x3f9   : > { %21792 = vst [vmem:[#allocation31_spill] sm:$0xff] %v18890_v1  ;;  %v14637_v31 = vpop.f32.mrb[111].mxu1  ;;  %14502 = vmatprep.mubr.msk.bf16.mxu0 %vm16790_vm0, %v21707_v53 }
 0x3fb   : > { %v3065_v52 = vpop.f32.mrb[72].mxu0  ;;  %14947 = vmatmul.mubr.bf16.vlgmr.msra.gmra.mrb[216].mxu1 %v21793_v15  ;;  %v21796_v15 = vld [vmem:[#allocation35_spill] sm:$0xff] }
 0x3fc   : > { %v18899_v28 = vadd.f32 %v3065_v52, %v18677_v0  ;;  %v14244_v32 = vpop.f32.mrb[73].mxu0  ;;  %14950 = vmatprep.mubr.msk.bf16.mxu1 %vm16790_vm0, %v21707_v53  ;;  %15035 = vmatpush3.bf16.msra.mxu1 %v16301_v44  ;;  %v21795_v52 = vld [vmem:[#allocation34_spill] sm:$0xff] }
 0x3fd   : > { %v3068_v36 = vpop.f32.mrb[74].mxu0  ;;  %15036 = vmatprep.subr.bf16.mxu1 %v21707_v53  ;;  %v21797_v32 = vcombine.low %v21795_v52, %v21796_v15  ;;  %v16305_v44 = vld [vmem:[%s21632_s3 + $0x4d0] sm:$0xff]  }
 0x3fe   : > { %v18908_v51 = vadd.f32 %v3068_v36, %v18688_v61  ;;  %v14245_v14 = vpop.f32.mrb[75].mxu0  ;;  %v18910_v31 = vpop.f32.mrb[112].mxu1  ;;  %v21799_v36 = vld [vmem:[#allocation24_spill] sm:$0xff] }
 0x3ff   : > { %21794 = vst [vmem:[#allocation32_spill] sm:$0xff] %v18910_v31  ;;  %v14640_v0 = vpop.f32.mrb[113].mxu1 }
 0x400   : > { %14503 = vmatmul.mubr.bf16.gmra.mrb[180].mxu0 %v21797_v32  ;;  %v18915_v1 = vpop.f32.mrb[114].mxu1  ;;  %15037 = vmatpush3.bf16.msra.mxu1 %v16303_v38 }
 0x401   : > { %21798 = vst [vmem:[#allocation18_spill] sm:$0xff] %v18915_v1  ;;  %v14641_v16 = vpop.f32.mrb[115].mxu1  ;;  %14506 = vmatprep.mubr.msk.bf16.mxu0 %vm16790_vm0, %v21707_v53  ;;  %15038 = vmatprep.subr.bf16.mxu1 %v21707_v53 }
 0x402   : > { %v16307_v16 = vld [vmem:[%s21632_s3 + $0x4d8] sm:$0xff]  }
 0x403   : > { %v3073_v61 = vpop.f32.mrb[76].mxu0  ;;  %14951 = vmatmul.mubr.bf16.gmra.mrb[220].mxu1 %v21799_v36  ;;  %v21802_v36 = vld [vmem:[#allocation41_spill] sm:$0xff] }
 0x404   : > { %v18925_v14 = vadd.f32 %v3073_v61, %v18704_v33  ;;  %v14248_v0 = vpop.f32.mrb[77].mxu0  ;;  %14954 = vmatprep.mubr.msk.bf16.mxu1 %vm16790_vm0, %v21707_v53  ;;  %15039 = vmatpush3.bf16.msra.mxu1 %v16305_v44  ;;  %v21801_v61 = vld [vmem:[#allocation40_spill] sm:$0xff] }
 0x405   : > { %v3076_v38 = vpop.f32.mrb[78].mxu0  ;;  %15040 = vmatprep.subr.bf16.mxu1 %v21707_v53  ;;  %v21803_v0 = vcombine.low %v21801_v61, %v21802_v36  ;;  %v16310_v44 = vld [vmem:[%s21632_s3 + $0x4e0] sm:$0xff]  }
 0x406   : > { %v18934_v52 = vadd.f32 %v3076_v38, %v18713_v5  ;;  %v14249_v15 = vpop.f32.mrb[79].mxu0  ;;  %v18936_v32 = vpop.f32.mrb[116].mxu1  ;;  %v4105_v5 = vld [vmem:[#allocation6 + $0x4c] sm:$0x3] }
 0x407   : > { %21800 = vst [vmem:[#allocation34_spill] sm:$0xff] %v18936_v32  ;;  %v14644_v33 = vpop.f32.mrb[117].mxu1  ;;  %v21805_v15 = vld [vmem:[#allocation28_spill] sm:$0xff]  ;;  %v11815_v36 = vcombine.low %v18681_v20, %v4105_v5  ;;  %v16296_v20 = vld [vmem:[#allocation5 + $0xc] sm:$0xfc]  }
 0x408   : > { %14507 = vmatmul.mubr.bf16.gmra.mrb[184].mxu0 %v21803_v0  ;;  %v18941_v1 = vpop.f32.mrb[118].mxu1  ;;  %15041 = vmatpush3.bf16.msra.mxu1 %v16307_v16  ;;  %v21808_v5 = vld [vmem:[#allocation36_spill] sm:$0xff] }
 0x409   : > { %21804 = vst [vmem:[#allocation35_spill] sm:$0xff] %v18941_v1  ;;  %v14645_v31 = vpop.f32.mrb[119].mxu1  ;;  %14510 = vmatprep.mubr.msk.bf16.mxu0 %vm16790_vm0, %v21707_v53  ;;  %15042 = vmatprep.subr.bf16.mxu1 %v21707_v53 }
 0x40a   : > { %v16312_v31 = vld [vmem:[%s21632_s3 + $0x4e8] sm:$0xff]  }
 0x40b   : > { %v3081_v38 = vpop.f32.mrb[80].mxu0  ;;  %14955 = vmatmul.mubr.bf16.gmra.mrb[224].mxu1 %v21805_v15 }
 0x40c   : > { %v18951_v33 = vadd.f32 %v3081_v38, %v18728_v54  ;;  %v14252_v61 = vpop.f32.mrb[81].mxu0  ;;  %14958 = vmatprep.mubr.msk.bf16.mxu1 %vm16790_vm0, %v21707_v53  ;;  %15043 = vmatpush3.bf16.msra.mxu1 %v16310_v44  ;;  %v16314_v44 = vld [vmem:[%s21632_s3 + $0x4f0] sm:$0xff]  }
 0x40d   : > { %v3084_v16 = vpop.f32.mrb[82].mxu0  ;;  %15044 = vmatprep.subr.bf16.mxu1 %v21707_v53  ;;  %v16297_v61 = vld [vmem:[#allocation5 + $0x14] sm:$0xff]  }
 0x40e   : > { %v18961_v0 = vadd.f32 %v3084_v16, %v18737_v18  ;;  %v14253_v15 = vpop.f32.mrb[83].mxu0  ;;  %v18963_v54 = vpop.f32.mrb[120].mxu1  ;;  %v4617_v16 = vrot.slane %v16297_v61, 2 }
 0x40f   : > { %21806 = vst [vmem:[#allocation24_spill] sm:$0xff] %v18963_v54  ;;  %v14648_v38 = vpop.f32.mrb[121].mxu1 }
 0x410   : > { %14511 = vmatmul.mubr.bf16.gmra.mrb[188].mxu0 %v11815_v36  ;;  %v18965_v1 = vpop.f32.mrb[122].mxu1  ;;  %15045 = vmatpush3.bf16.msra.mxu1 %v16312_v31  ;;  %v4616_v38 = vrot.slane %v16296_v20, 2 }
 0x411   : > { %21807 = vst [vmem:[#allocation40_spill] sm:$0xff] %v18965_v1  ;;  %v14649_v32 = vpop.f32.mrb[123].mxu1  ;;  %14582 = vmatprep.mubr.msk.bf16.mxu0 %vm16790_vm0, %v21707_v53  ;;  %15046 = vmatprep.subr.bf16.mxu1 %v21707_v53  ;;  %v16298_v1 = vld [vmem:[%s21632_s3 + $0x300] sm:$0xff]  }
 0x412   : > { %v16316_v32 = vld [vmem:[%s21632_s3 + $0x4f8] sm:$0xff]   ;;  %v4618_v54 = vsel %vm3131_vm3, %v4616_v38, %v4617_v16 }
 0x413   : > { %v3240_v18 = vpop.f32.mrb[84].mxu0  ;;  %14959 = vmatmul.mubr.bf16.gmra.mrb[228].mxu1 %v21808_v5  ;;  %v21809_v5 = vld [vmem:[#allocation46_spill] sm:$0xff] }
 0x414   : > { %v3311_v36 = vadd.f32 %v3240_v18, %v18752_v41  ;;  %v14272_v15 = vpop.f32.mrb[85].mxu0  ;;  %14962 = vmatprep.mubr.msk.bf16.mxu1 %vm16790_vm0, %v21707_v53  ;;  %15047 = vmatpush3.bf16.msra.mxu1 %v16314_v44 }
 0x415   : > { %v3243_v31 = vpop.f32.mrb[86].mxu0  ;;  %15048 = vmatprep.subr.bf16.mxu1 %v21707_v53 }
 0x416   : > { %v3312_v61 = vadd.f32 %v3243_v31, %v18764_v3  ;;  %v14273_v41 = vpop.f32.mrb[87].mxu0  ;;  %v18985_v18 = vpop.f32.mrb[124].mxu1  ;;  %v18988_v15 = vadd.f32 %v21809_v5, %v3311_v36  ;;  %v16300_v3 = vld [vmem:[%s21632_s3 + $0x308] sm:$0xff]   ;;  %v21812_v36 = vld [vmem:[#allocation42_spill] sm:$0xff] }
 0x417   : > { %v14652_v44 = vpop.f32.mrb[125].mxu1 }
 0x418   : > { %14583 = vmatmul.mubr.bf16.vlgmr.msra.gmra.mrb[192].mxu0 %v4618_v54  ;;  %v18991_v20 = vpop.f32.mrb[126].mxu1  ;;  %15049 = vmatpush3.bf16.msra.mxu1 %v16316_v32  ;;  %v18994_v6 = vadd.f32 %v21811_v46, %v3312_v61  ;;  %v4619_v32 = vrot.slane %v16299_v40, 2  ;;  %v21813_v40 = vld [vmem:[#allocation48_spill] sm:$0xff] }
 0x419   : > { %21810 = vst [vmem:[#allocation41_spill] sm:$0xff] %v18991_v20  ;;  %14671 = vmatpush3.bf16.msra.mxu0 %v16298_v1  ;;  %v14653_v27 = vpop.f32.mrb[127].mxu1  ;;  %14586 = vmatprep.mubr.msk.bf16.mxu0 %vm16790_vm0, %v21707_v53  ;;  %v16304_v1 = vld [vmem:[%s21632_s3 + $0x310] sm:$0xff]  }
 0x41a   : > { %14672 = vmatprep.subr.bf16.mxu0 %v21707_v53  ;;  %15138 = vmatprep.subr.bf16.mxu1 %v21707_v53  ;;  %v4620_v44 = vsel %vm3131_vm3, %v4617_v16, %v4619_v32  ;;  %v21815_v16 = vld [vmem:[#allocation50_spill] sm:$0xff] }
 0x41b   : > { %v3248_v54 = vpop.f32.mrb[88].mxu0  ;;  %14963 = vmatmul.mubr.bf16.gmra.mrb[232].mxu1 %v21812_v36  ;;  %v21814_v36 = vld [vmem:[#allocation49_spill] sm:$0xff] }
 0x41c   : > { %v3313_v46 = vadd.f32 %v3248_v54, %v18782_v17  ;;  %v14276_v31 = vpop.f32.mrb[89].mxu0  ;;  %14966 = vmatprep.mubr.msk.bf16.mxu1 %vm16790_vm0, %v21707_v53  ;;  %v16302_v54 = vld [vmem:[#allocation5 + $0x24] sm:$0xff]  }
 0x41d   : > { %v3251_v27 = vpop.f32.mrb[90].mxu0  ;;  %14673 = vmatpush3.bf16.msra.mxu0 %v16300_v3 }
 0x41e   : > { %v3314_v38 = vadd.f32 %v3251_v27, %v18790_v56  ;;  %v14277_v61 = vpop.f32.mrb[91].mxu0  ;;  %v19011_v41 = vpop.f32.mrb[128].mxu1  ;;  %14674 = vmatprep.subr.bf16.mxu0 %v21707_v53  ;;  %v19015_v5 = vadd.f32 %v21813_v40, %v3313_v46  ;;  %v16308_v56 = vld [vmem:[%s21632_s3 + $0x318] sm:$0xff]   ;;  %v4621_v27 = vrot.slane %v16302_v54, 2 }
 0x41f   : > { %v14656_v17 = vpop.f32.mrb[129].mxu1 }
 0x420   : > { %14587 = vmatmul.mubr.bf16.gmra.mrb[196].mxu0 %v4620_v44  ;;  %v19018_v3 = vpop.f32.mrb[130].mxu1  ;;  %v19021_v31 = vadd.f32 %v21814_v36, %v3314_v38  ;;  %v4622_v36 = vsel %vm3131_vm3, %v4619_v32, %v4621_v27  ;;  %v21816_v32 = vld [vmem:[#allocation54_spill] sm:$0xff] }
 0x421   : > { %v14657_v20 = vpop.f32.mrb[131].mxu1  ;;  %14590 = vmatprep.mubr.msk.bf16.mxu0 %vm16790_vm0, %v21707_v53  ;;  %14675 = vmatpush3.bf16.msra.mxu0 %v16304_v1  ;;  %v16313_v1 = vld [vmem:[%s21632_s3 + $0x320] sm:$0xff]  }
 0x422   : > { %14676 = vmatprep.subr.bf16.mxu0 %v21707_v53 }
 0x423   : > { %v3256_v46 = vpop.f32.mrb[92].mxu0  ;;  %14967 = vmatmul.mubr.bf16.gmra.mrb[236].mxu1 %v21815_v16 }
 0x424   : > { %v3315_v61 = vadd.f32 %v3256_v46, %v18808_v45  ;;  %v14280_v40 = vpop.f32.mrb[93].mxu0  ;;  %14970 = vmatprep.mubr.msk.bf16.mxu1 %vm16790_vm0, %v21707_v53  ;;  %v16306_v46 = vld [vmem:[#allocation5 + $0x2c] sm:$0xff]  }
 0x425   : > { %v3259_v20 = vpop.f32.mrb[94].mxu0  ;;  %14677 = vmatpush3.bf16.msra.mxu0 %v16308_v56 }
 0x426   : > { %v3316_v38 = vadd.f32 %v3259_v20, %v18816_v42  ;;  %v14281_v17 = vpop.f32.mrb[95].mxu0  ;;  %v19037_v44 = vpop.f32.mrb[132].mxu1  ;;  %14678 = vmatprep.subr.bf16.mxu0 %v21707_v53  ;;  %v19041_v54 = vadd.f32 %v18050_v35, %v3315_v61  ;;  %v16319_v35 = vld [vmem:[%s21632_s3 + $0x328] sm:$0xff]   ;;  %v4623_v61 = vrot.slane %v16306_v46, 2 }
 0x427   : > { %v14660_v45 = vpop.f32.mrb[133].mxu1 }
 0x428   : > { %14591 = vmatmul.mubr.bf16.gmra.mrb[200].mxu0 %v4622_v36  ;;  %v19044_v56 = vpop.f32.mrb[134].mxu1  ;;  %v19047_v16 = vadd.f32 %v18053_v49, %v3316_v38 }
 0x429   : > { %v14661_v40 = vpop.f32.mrb[135].mxu1  ;;  %14594 = vmatprep.mubr.msk.bf16.mxu0 %vm16790_vm0, %v21707_v53  ;;  %14679 = vmatpush3.bf16.msra.mxu0 %v16313_v1  ;;  %v16322_v1 = vld [vmem:[%s21632_s3 + $0x330] sm:$0xff]  }
 0x42a   : > { %14680 = vmatprep.subr.bf16.mxu0 %v21707_v53  ;;  %v4624_v40 = vsel %vm3131_vm3, %v4621_v27, %v4623_v61 }
 0x42b   : > { %v3264_v42 = vpop.f32.mrb[96].mxu0  ;;  %14971 = vmatmul.mubr.bf16.gmra.mrb[240].mxu1 %v21816_v32 }
 0x42c   : > { %v3317_v20 = vadd.f32 %v3264_v42, %v18834_v29  ;;  %v14284_v17 = vpop.f32.mrb[97].mxu0  ;;  %14974 = vmatprep.mubr.msk.bf16.mxu1 %vm16790_vm0, %v21707_v53  ;;  %v16311_v42 = vld [vmem:[#allocation5 + $0x34] sm:$0xff]  }
 0x42d   : > { %v3267_v49 = vpop.f32.mrb[98].mxu0  ;;  %14681 = vmatpush3.bf16.msra.mxu0 %v16319_v35  ;;  %v4625_v27 = vrot.slane %v16311_v42, 2 }
 0x42e   : > { %v3318_v38 = vadd.f32 %v3267_v49, %v18842_v37  ;;  %v14285_v45 = vpop.f32.mrb[99].mxu0  ;;  %v19063_v36 = vpop.f32.mrb[136].mxu1  ;;  %14682 = vmatprep.subr.bf16.mxu0 %v21707_v53  ;;  %v19067_v46 = vadd.f32 %v18136_v55, %v3317_v20  ;;  %v16325_v55 = vld [vmem:[%s21632_s3 + $0x338] sm:$0xff]  }
 0x42f   : > { %v14664_v29 = vpop.f32.mrb[137].mxu1 }
 0x430   : > { %14595 = vmatmul.mubr.bf16.gmra.mrb[204].mxu0 %v4624_v40  ;;  %v19070_v35 = vpop.f32.mrb[138].mxu1  ;;  %v19073_v32 = vadd.f32 %v18139_v13, %v3318_v38  ;;  %v4626_v40 = vsel %vm3131_vm3, %v4623_v61, %v4625_v27  ;;  %v16317_v61 = vld [vmem:[#allocation5 + $0x14] sm:$0xf8]  }
 0x431   : > { %v14665_v17 = vpop.f32.mrb[139].mxu1  ;;  %14598 = vmatprep.mubr.msk.bf16.mxu0 %vm16790_vm0, %v21707_v53  ;;  %14683 = vmatpush3.bf16.msra.mxu0 %v16322_v1 }
 0x432   : > { %14684 = vmatprep.subr.bf16.mxu0 %v21707_v53 }
 0x433   : > { %v3272_v37 = vpop.f32.mrb[100].mxu0  ;;  %14975 = vmatmul.mubr.bf16.gmra.mrb[244].mxu1 %v18087_v50 }
 0x434   : > { %v3319_v20 = vadd.f32 %v3272_v37, %v18860_v2  ;;  %v14288_v49 = vpop.f32.mrb[101].mxu0  ;;  %14978 = vmatprep.mubr.msk.bf16.mxu1 %vm16790_vm0, %v21707_v53  ;;  %v16315_v2 = vld [vmem:[#allocation5 + $0x3c] sm:$0xff]  }
 0x435   : > { %v3275_v13 = vpop.f32.mrb[102].mxu0  ;;  %14685 = vmatpush3.bf16.msra.mxu0 %v16325_v55 }
 0x436   : > { %v3320_v1 = vadd.f32 %v3275_v13, %v18865_v48  ;;  %v14289_v38 = vpop.f32.mrb[103].mxu0  ;;  %v19086_v45 = vpop.f32.mrb[140].mxu1  ;;  %14774 = vmatprep.subr.bf16.mxu0 %v21707_v53  ;;  %v19090_v29 = vadd.f32 %v18176_v58, %v3319_v20  ;;  %v16318_v48 = vld [vmem:[#allocation5 + $0x1c] sm:$0xff]   ;;  %v4627_v58 = vrot.slane %v16315_v2, 2  ;;  %v16320_v2 = vld [vmem:[#allocation5 + $0x44] sm:$0xff]  }
 0x437   : > { %v14668_v50 = vpop.f32.mrb[141].mxu1 }
 0x438   : > { %14599 = vmatmul.mubr.bf16.gmra.mrb[208].mxu0 %v4626_v40  ;;  %v19093_v42 = vpop.f32.mrb[142].mxu1  ;;  %v19096_v17 = vadd.f32 %v18179_v4, %v3320_v1  ;;  %v6948_v50 = vrot.slane %v16318_v48, 3  ;;  %v16321_v48 = vld [vmem:[#allocation5 + $0x24] sm:$0xff]  }
 0x439   : > { %v14669_v55 = vpop.f32.mrb[143].mxu1  ;;  %14602 = vmatprep.mubr.msk.bf16.mxu0 %vm16790_vm0, %v21707_v53 }
 0x43b   : > { %v3280_v37 = vpop.f32.mrb[104].mxu0  ;;  %14979 = vmatmul.mubr.bf16.gmra.mrb[248].mxu1 %v18075_v11  ;;  %v4628_v11 = vsel %vm3131_vm3, %v4625_v27, %v4627_v58 }
 0x43c   : > { %v3321_v20 = vadd.f32 %v3280_v37, %v18878_v23  ;;  %v14292_v49 = vpop.f32.mrb[105].mxu0  ;;  %15050 = vmatprep.mubr.msk.bf16.mxu1 %vm16790_vm0, %v21707_v53  ;;  %v6947_v37 = vrot.slane %v16317_v61, 3 }
 0x43d   : > { %v3283_v13 = vpop.f32.mrb[106].mxu0  ;;  %v16336_v49 = vld [vmem:[%s21632_s3 + $0x540] sm:$0xff]  }
 0x43e   : > { %v3322_v4 = vadd.f32 %v3283_v13, %v18883_v10  ;;  %v14293_v1 = vpop.f32.mrb[107].mxu0  ;;  %v19105_v38 = vpop.f32.mrb[144].mxu1  ;;  %v19108_v40 = vadd.f32 %v18280_v43, %v3321_v20  ;;  %v6949_v43 = vsel %vm3413_vm1, %v6947_v37, %v6948_v50  ;;  %v4629_v20 = vrot.slane %v16320_v2, 2 }
 0x43f   : > { %v14740_v55 = vpop.f32.mrb[145].mxu1  ;;  %v6950_v2 = vrot.slane %v16321_v48, 3 }
 0x440   : > { %14603 = vmatmul.mubr.bf16.gmra.mrb[212].mxu0 %v4628_v11  ;;  %v19111_v23 = vpop.f32.mrb[146].mxu1  ;;  %v19117_v10 = vadd.f32 %v18286_v34, %v3322_v4  ;;  %v16339_v34 = vld [vmem:[%s21632_s3 + $0x548] sm:$0xff]  }
 0x441   : > { %v14741_v13 = vpop.f32.mrb[147].mxu1  ;;  %14606 = vmatprep.mubr.msk.bf16.mxu0 %vm16790_vm0, %v21707_v53 }
 0x443   : > { %v3288_v27 = vpop.f32.mrb[108].mxu0  ;;  %15051 = vmatmul.mubr.bf16.vlgmr.msra.gmra.mrb[252].mxu1 %v6949_v43  ;;  %v4630_v43 = vsel %vm3131_vm3, %v4627_v58, %v4629_v20  ;;  %v16324_v58 = vld [vmem:[#allocation5 + $0x2c] sm:$0xff]  }
 0x444   : > { %v3323_v1 = vadd.f32 %v3288_v27, %v18899_v28  ;;  %v14296_v61 = vpop.f32.mrb[109].mxu0  ;;  %15054 = vmatprep.mubr.msk.bf16.mxu1 %vm16790_vm0, %v21707_v53  ;;  %15139 = vmatpush3.bf16.msra.mxu1 %v16336_v49  ;;  %v16323_v49 = vld [vmem:[#allocation5 + $0x4c] sm:$0xff]  }
 0x445   : > { %v3291_v4 = vpop.f32.mrb[110].mxu0  ;;  %15140 = vmatprep.subr.bf16.mxu1 %v21707_v53  ;;  %v16342_v61 = vld [vmem:[%s21632_s3 + $0x550] sm:$0xff]  }
 0x446   : > { %v3324_v55 = vadd.f32 %v3291_v4, %v18908_v51  ;;  %v14297_v11 = vpop.f32.mrb[111].mxu0  ;;  %v19130_v37 = vpop.f32.mrb[148].mxu1  ;;  %v19133_v28 = vadd.f32 %v18329_v47, %v3323_v1  ;;  %v6951_v47 = vsel %vm3413_vm1, %v6948_v50, %v6950_v2  ;;  %v4631_v1 = vrot.slane %v16323_v49, 2 }
 0x447   : > { %v14744_v13 = vpop.f32.mrb[149].mxu1  ;;  %v6952_v49 = vrot.slane %v16324_v58, 3 }
 0x448   : > { %14607 = vmatmul.mubr.bf16.gmra.mrb[216].mxu0 %v4630_v43  ;;  %v19136_v27 = vpop.f32.mrb[150].mxu1  ;;  %15141 = vmatpush3.bf16.msra.mxu1 %v16339_v34  ;;  %v19142_v51 = vadd.f32 %v18335_v21, %v3324_v55  ;;  %v16345_v21 = vld [vmem:[%s21632_s3 + $0x558] sm:$0xff]  }
 0x449   : > { %v14745_v4 = vpop.f32.mrb[151].mxu1  ;;  %14610 = vmatprep.mubr.msk.bf16.mxu0 %vm16790_vm0, %v21707_v53  ;;  %15142 = vmatprep.subr.bf16.mxu1 %v21707_v53 }
 0x44b   : > { %v3296_v48 = vpop.f32.mrb[112].mxu0  ;;  %15055 = vmatmul.mubr.bf16.gmra.mrb[0].mxu1 %v6951_v47  ;;  %v4632_v47 = vsel %vm3131_vm3, %v4629_v20, %v4631_v1  ;;  %v19174_v20 = vld [vmem:[#allocation5 + $0x34] sm:$0xff]  }
 0x44c   : > { %v3325_v34 = vadd.f32 %v3296_v48, %v18925_v14  ;;  %v14300_v11 = vpop.f32.mrb[113].mxu0  ;;  %15058 = vmatprep.mubr.msk.bf16.mxu1 %vm16790_vm0, %v21707_v53  ;;  %15143 = vmatpush3.bf16.msra.mxu1 %v16342_v61  ;;  %v16348_v48 = vld [vmem:[%s21632_s3 + $0x560] sm:$0xff]  }
 0x44d   : > { %v3299_v55 = vpop.f32.mrb[114].mxu0  ;;  %15144 = vmatprep.subr.bf16.mxu1 %v21707_v53 }
 0x44e   : > { %v3326_v50 = vadd.f32 %v3299_v55, %v18934_v52  ;;  %v14301_v13 = vpop.f32.mrb[115].mxu0  ;;  %v19156_v43 = vpop.f32.mrb[152].mxu1  ;;  %v19159_v14 = vadd.f32 %v18417_v24, %v3325_v34  ;;  %v6953_v24 = vsel %vm3413_vm1, %v6950_v2, %v6952_v49 }
 0x44f   : > { %v14748_v4 = vpop.f32.mrb[153].mxu1 }
 0x450   : > { %14611 = vmatmul.mubr.bf16.gmra.mrb[220].mxu0 %v4632_v47  ;;  %v19162_v61 = vpop.f32.mrb[154].mxu1  ;;  %15145 = vmatpush3.bf16.msra.mxu1 %v16345_v21  ;;  %v19168_v52 = vadd.f32 %v18421_v63, %v3326_v50  ;;  %v16351_v63 = vld [vmem:[%s21632_s3 + $0x568] sm:$0xff]   ;;  %v6954_v4 = vrot.slane %v19174_v20, 3 }
 0x451   : > { %v14749_v11 = vpop.f32.mrb[155].mxu1  ;;  %14614 = vmatprep.mubr.msk.bf16.mxu0 %vm16790_vm0, %v21707_v53  ;;  %15146 = vmatprep.subr.bf16.mxu1 %v21707_v53 }
 0x452   : > { %v16700_v11 = vld [vmem:[#allocation5 + $0x14] sm:$0xf] }
 0x453   : > { %v3304_v58 = vpop.f32.mrb[116].mxu0  ;;  %15059 = vmatmul.mubr.bf16.gmra.mrb[4].mxu1 %v6953_v24 }
 0x454   : > { %v3327_v34 = vadd.f32 %v3304_v58, %v18951_v33  ;;  %v14304_v21 = vpop.f32.mrb[117].mxu0  ;;  %15062 = vmatprep.mubr.msk.bf16.mxu1 %vm16790_vm0, %v21707_v53  ;;  %15147 = vmatpush3.bf16.msra.mxu1 %v16348_v48  ;;  %v16701_v48 = vld [vmem:[#allocation5 + $0x18] sm:$0xf] }
 0x455   : > { %v3307_v55 = vpop.f32.mrb[118].mxu0  ;;  %15148 = vmatprep.subr.bf16.mxu1 %v21707_v53  ;;  %v11933_v24 = vcombine.low %v16700_v11, %v16701_v48  ;;  %v5090_v21 = vld [vmem:[#allocation5 + $0xc] sm:$0x8] }
 0x456   : > { %v3328_v2 = vadd.f32 %v3307_v55, %v18961_v0  ;;  %v14305_v50 = vpop.f32.mrb[119].mxu0  ;;  %v19184_v13 = vpop.f32.mrb[156].mxu1  ;;  %v19188_v33 = vadd.f32 %v18439_v26, %v3327_v34  ;;  %v16354_v0 = vld [vmem:[%s21632_s3 + $0x570] sm:$0xff]  }
 0x457   : > { %21817 = vst [vmem:[#allocation28_spill] sm:$0xff] %v19184_v13  ;;  %v14752_v47 = vpop.f32.mrb[157].mxu1  ;;  %v16702_v26 = vld [vmem:[#allocation5 + $0x10] sm:$0xf]  ;;  %v19202_v50 = vld [vmem:[#allocation5 + $0x3c] sm:$0xff]  }
 0x458   : > { %14615 = vmatmul.mubr.bf16.gmra.mrb[224].mxu0 %v4631_v1  ;;  %v19190_v58 = vpop.f32.mrb[158].mxu1  ;;  %15149 = vmatpush3.bf16.msra.mxu1 %v16351_v63  ;;  %v19196_v55 = vadd.f32 %v18443_v39, %v3328_v2  ;;  %v11932_v34 = vcombine.low %v5090_v21, %v16702_v26  ;;  %v6955_v1 = vsel %vm3413_vm1, %v6952_v49, %v6954_v4  ;;  %v5175_v47 = vrot.slane %v11933_v24, 3  ;;  %v16357_v39 = vld [vmem:[%s21632_s3 + $0x578] sm:$0xff]   ;;  %v16330_v49 = vld [vmem:[%s21632_s3 + $0x380] sm:$0xff]  }
 0x459   : > { %21818 = vst [vmem:[#allocation36_spill] sm:$0xff] %v19190_v58  ;;  %v14753_v20 = vpop.f32.mrb[159].mxu1  ;;  %14686 = vmatprep.mubr.msk.bf16.mxu0 %vm16790_vm0, %v21707_v53  ;;  %15150 = vmatprep.subr.bf16.mxu1 %v21707_v53  ;;  %v6956_v26 = vrot.slane %v19202_v50, 3 }
 0x45a   : > { %v5174_v21 = vrot.slane %v11932_v34, 3  ;;  %v16703_v34 = vld [vmem:[#allocation5 + $0x1c] sm:$0xf] }
 0x45b   : > { %v3807_v63 = vpop.f32.mrb[120].mxu0  ;;  %15063 = vmatmul.mubr.bf16.gmra.mrb[8].mxu1 %v6955_v1  ;;  %v6957_v50 = vsel %vm3413_vm1, %v6954_v4, %v6956_v26  ;;  %v16340_v4 = vld [vmem:[%s21632_s3 + $0x390] sm:$0xff]  }
 0x45c   : > { %v3878_v11 = vadd.f32 %v3807_v63, %v18988_v15  ;;  %v14376_v48 = vpop.f32.mrb[121].mxu0  ;;  %15066 = vmatprep.mubr.msk.bf16.mxu1 %vm16790_vm0, %v21707_v53  ;;  %15151 = vmatpush3.bf16.msra.mxu1 %v16354_v0  ;;  %v5176_v63 = vsel %vm3413_vm1, %v5174_v21, %v5175_v47 }
 0x45d   : > { %v3810_v2 = vpop.f32.mrb[122].mxu0  ;;  %15152 = vmatprep.subr.bf16.mxu1 %v21707_v53  ;;  %v16704_v48 = vld [vmem:[#allocation5 + $0x20] sm:$0xf] }
 0x45e   : > { %v3879_v24 = vadd.f32 %v3810_v2, %v18994_v6  ;;  %v14377_v15 = vpop.f32.mrb[123].mxu0  ;;  %v19215_v20 = vpop.f32.mrb[160].mxu1  ;;  %v19219_v0 = vadd.f32 %v18456_v25, %v3878_v11  ;;  %v11934_v58 = vcombine.low %v16703_v34, %v16704_v48  ;;  %v16334_v25 = vld [vmem:[%s21632_s3 + $0x388] sm:$0xff]  }
 0x45f   : > { %v14756_v1 = vpop.f32.mrb[161].mxu1  ;;  %v16335_v11 = vld [vmem:[#allocation5 + $0x44] sm:$0xff]  }
 0x460   : > { %14687 = vmatmul.mubr.bf16.vlgmr.msra.gmra.mrb[228].mxu0 %v5176_v63  ;;  %v19222_v13 = vpop.f32.mrb[162].mxu1  ;;  %15153 = vmatpush3.bf16.msra.mxu1 %v16357_v39  ;;  %v19225_v6 = vadd.f32 %v18459_v12, %v3879_v24  ;;  %v5177_v12 = vrot.slane %v11934_v58, 3  ;;  %v6958_v34 = vrot.slane %v16335_v11, 3  ;;  %v16341_v11 = vld [vmem:[#allocation5 + $0x4c] sm:$0xff]  }
 0x461   : > { %14775 = vmatpush3.bf16.msra.mxu0 %v16330_v49  ;;  %v14757_v2 = vpop.f32.mrb[163].mxu1  ;;  %14690 = vmatprep.mubr.msk.bf16.mxu0 %vm16790_vm0, %v21707_v53 }
 0x462   : > { %14776 = vmatprep.subr.bf16.mxu0 %v21707_v53  ;;  %15242 = vmatprep.subr.bf16.mxu1 %v21707_v53  ;;  %v5178_v48 = vsel %vm3413_vm1, %v5175_v47, %v5177_v12  ;;  %v16705_v2 = vld [vmem:[#allocation5 + $0x24] sm:$0xf]  ;;  %v6959_v47 = vsel %vm3413_vm1, %v6956_v26, %v6958_v34 }
 0x463   : > { %v3815_v39 = vpop.f32.mrb[124].mxu0  ;;  %15067 = vmatmul.mubr.bf16.gmra.mrb[12].mxu1 %v6957_v50 }
 0x464   : > { %v3880_v21 = vadd.f32 %v3815_v39, %v19015_v5  ;;  %v14380_v49 = vpop.f32.mrb[125].mxu0  ;;  %15070 = vmatprep.mubr.msk.bf16.mxu1 %vm16790_vm0, %v21707_v53 }
 0x465   : > { %v3818_v24 = vpop.f32.mrb[126].mxu0  ;;  %14777 = vmatpush3.bf16.msra.mxu0 %v16334_v25  ;;  %v16706_v25 = vld [vmem:[#allocation5 + $0x28] sm:$0xf] }
 0x466   : > { %v3881_v15 = vadd.f32 %v3818_v24, %v19021_v31  ;;  %v14381_v1 = vpop.f32.mrb[127].mxu0  ;;  %v19242_v63 = vpop.f32.mrb[164].mxu1  ;;  %14778 = vmatprep.subr.bf16.mxu0 %v21707_v53  ;;  %v19246_v5 = vadd.f32 %v18480_v59, %v3880_v21  ;;  %v11935_v50 = vcombine.low %v16705_v2, %v16706_v25  ;;  %v16346_v59 = vld [vmem:[%s21632_s3 + $0x398] sm:$0xff]   ;;  %v6960_v2 = vrot.slane %v16341_v11, 3  ;;  %v16359_v11 = vld [vmem:[%s21632_s3 + $0x3a8] sm:$0xff]  }
 0x467   : > { %21819 = vst [vmem:[#allocation46_spill] sm:$0xff] %v19242_v63  ;;  %v14760_v58 = vpop.f32.mrb[165].mxu1  ;;  %v21822_v25 = vld [vmem:[#allocation58_spill] sm:$0xff] }
 0x468   : > { %14691 = vmatmul.mubr.bf16.gmra.mrb[232].mxu0 %v5178_v48  ;;  %v19249_v39 = vpop.f32.mrb[166].mxu1  ;;  %v19252_v31 = vadd.f32 %v18484_v9, %v3881_v15  ;;  %v5179_v24 = vrot.slane %v11935_v50, 3 }
 0x469   : > { %21820 = vst [vmem:[#allocation47_spill] sm:$0xff] %v19249_v39  ;;  %v14761_v49 = vpop.f32.mrb[167].mxu1  ;;  %14694 = vmatprep.mubr.msk.bf16.mxu0 %vm16790_vm0, %v21707_v53  ;;  %14779 = vmatpush3.bf16.msra.mxu0 %v16340_v4  ;;  %v16353_v4 = vld [vmem:[%s21632_s3 + $0x3a0] sm:$0xff]  }
 0x46a   : > { %14780 = vmatprep.subr.bf16.mxu0 %v21707_v53  ;;  %v5180_v49 = vsel %vm3413_vm1, %v5177_v12, %v5179_v24  ;;  %v21824_v39 = vld [vmem:[#allocation59_spill] sm:$0xff]  ;;  %v6961_v12 = vsel %vm3413_vm1, %v6958_v34, %v6960_v2 }
 0x46b   : > { %v3823_v21 = vpop.f32.mrb[128].mxu0  ;;  %15071 = vmatmul.mubr.bf16.gmra.mrb[16].mxu1 %v6959_v47  ;;  %v16707_v47 = vld [vmem:[#allocation5 + $0x2c] sm:$0xf] }
 0x46c   : > { %v3882_v9 = vadd.f32 %v3823_v21, %v19041_v54  ;;  %v14384_v15 = vpop.f32.mrb[129].mxu0  ;;  %15074 = vmatprep.mubr.msk.bf16.mxu1 %vm16790_vm0, %v21707_v53 }
 0x46d   : > { %v3826_v1 = vpop.f32.mrb[130].mxu0  ;;  %14781 = vmatpush3.bf16.msra.mxu0 %v16346_v59  ;;  %v16708_v59 = vld [vmem:[#allocation5 + $0x30] sm:$0xf] }
 0x46e   : > { %v3883_v26 = vadd.f32 %v3826_v1, %v19047_v16  ;;  %v14385_v58 = vpop.f32.mrb[131].mxu0  ;;  %v19268_v48 = vpop.f32.mrb[168].mxu1  ;;  %14782 = vmatprep.subr.bf16.mxu0 %v21707_v53  ;;  %v19272_v54 = vadd.f32 %v21822_v25, %v3882_v9  ;;  %v11936_v21 = vcombine.low %v16707_v47, %v16708_v59  ;;  %v16347_v9 = vld [vmem:[#allocation5 + $0x54] sm:$0xff]  }
 0x46f   : > { %21821 = vst [vmem:[#allocation42_spill] sm:$0xff] %v19268_v48  ;;  %v14764_v50 = vpop.f32.mrb[169].mxu1  ;;  %v6962_v59 = vrot.slane %v16347_v9, 3  ;;  %v21828_v48 = vld [vmem:[#allocation61_spill] sm:$0xff]  ;;  %v16368_v9 = vld [vmem:[%s21632_s3 + $0x3b8] sm:$0xff]  }
 0x470   : > { %14695 = vmatmul.mubr.bf16.gmra.mrb[236].mxu0 %v5180_v49  ;;  %v19275_v15 = vpop.f32.mrb[170].mxu1  ;;  %v19278_v16 = vadd.f32 %v21824_v39, %v3883_v26  ;;  %v5181_v25 = vrot.slane %v11936_v21, 3  ;;  %v21826_v21 = vld [vmem:[#allocation60_spill] sm:$0xff] }
 0x471   : > { %21823 = vst [vmem:[#allocation48_spill] sm:$0xff] %v19275_v15  ;;  %v14765_v1 = vpop.f32.mrb[171].mxu1  ;;  %14698 = vmatprep.mubr.msk.bf16.mxu0 %vm16790_vm0, %v21707_v53  ;;  %14783 = vmatpush3.bf16.msra.mxu0 %v16353_v4  ;;  %v16363_v4 = vld [vmem:[%s21632_s3 + $0x3b0] sm:$0xff]  }
 0x472   : > { %14784 = vmatprep.subr.bf16.mxu0 %v21707_v53 }
 0x473   : > { %v3831_v58 = vpop.f32.mrb[132].mxu0  ;;  %15075 = vmatmul.mubr.bf16.gmra.mrb[20].mxu1 %v6961_v12  ;;  %v5182_v12 = vsel %vm3413_vm1, %v5179_v24, %v5181_v25  ;;  %v6963_v24 = vsel %vm3413_vm1, %v6960_v2, %v6962_v59 }
 0x474   : > { %v3884_v39 = vadd.f32 %v3831_v58, %v19067_v46  ;;  %v14388_v26 = vpop.f32.mrb[133].mxu0  ;;  %15078 = vmatprep.mubr.msk.bf16.mxu1 %vm16790_vm0, %v21707_v53  ;;  %v16709_v58 = vld [vmem:[#allocation5 + $0x34] sm:$0xf] }
 0x475   : > { %v3834_v50 = vpop.f32.mrb[134].mxu0  ;;  %14785 = vmatpush3.bf16.msra.mxu0 %v16359_v11  ;;  %v16710_v11 = vld [vmem:[#allocation5 + $0x38] sm:$0xf] }
 0x476   : > { %v3885_v34 = vadd.f32 %v3834_v50, %v19073_v32  ;;  %v14389_v49 = vpop.f32.mrb[135].mxu0  ;;  %v19294_v47 = vpop.f32.mrb[172].mxu1  ;;  %14786 = vmatprep.subr.bf16.mxu0 %v21707_v53  ;;  %v19298_v46 = vadd.f32 %v21826_v21, %v3884_v39  ;;  %v11937_v26 = vcombine.low %v16709_v58, %v16710_v11  ;;  %v16352_v39 = vld [vmem:[#allocation5 + $0x5c] ss:$0 sps:$4 sm:$0x11]   ;;  %v21830_v11 = vld [vmem:[#allocation62_spill] sm:$0xff] }
 0x477   : > { %21825 = vst [vmem:[#allocation49_spill] sm:$0xff] %v19294_v47  ;;  %v14768_v1 = vpop.f32.mrb[173].mxu1  ;;  %v6964_v2 = vrot.slane %v16352_v39, 3 }
 0x478   : > { %14699 = vmatmul.mubr.bf16.gmra.mrb[240].mxu0 %v5182_v12  ;;  %v19301_v15 = vpop.f32.mrb[174].mxu1  ;;  %v19304_v32 = vadd.f32 %v21828_v48, %v3885_v34  ;;  %v5183_v21 = vrot.slane %v11937_v26, 3 }
 0x479   : > { %21827 = vst [vmem:[#allocation50_spill] sm:$0xff] %v19301_v15  ;;  %v14769_v50 = vpop.f32.mrb[175].mxu1  ;;  %14702 = vmatprep.mubr.msk.bf16.mxu0 %vm16790_vm0, %v21707_v53  ;;  %14787 = vmatpush3.bf16.msra.mxu0 %v16363_v4  ;;  %v6965_v39 = vsel %vm3413_vm1, %v6962_v59, %v6964_v2 }
 0x47a   : > { %14788 = vmatprep.subr.bf16.mxu0 %v21707_v53 }
 0x47b   : > { %v3839_v49 = vpop.f32.mrb[136].mxu0  ;;  %15079 = vmatmul.mubr.bf16.gmra.mrb[24].mxu1 %v6963_v24  ;;  %v16711_v24 = vld [vmem:[#allocation5 + $0x3c] sm:$0xf] }
 0x47c   : > { %v3886_v48 = vadd.f32 %v3839_v49, %v19090_v29  ;;  %v14392_v34 = vpop.f32.mrb[137].mxu0  ;;  %15082 = vmatprep.mubr.msk.bf16.mxu1 %vm16790_vm0, %v21707_v53  ;;  %v5184_v29 = vsel %vm3413_vm1, %v5181_v25, %v5183_v21  ;;  %v16712_v49 = vld [vmem:[#allocation5 + $0x40] sm:$0xf] }
 0x47d   : > { %v3842_v1 = vpop.f32.mrb[138].mxu0  ;;  %14789 = vmatpush3.bf16.msra.mxu0 %v16368_v9  ;;  %v11938_v34 = vcombine.low %v16711_v24, %v16712_v49  ;;  %v21832_v9 = vld [vmem:[#allocation63_spill] sm:$0xff]  ;;  %v19338_v49 = vld [vmem:[#allocation6 + $0x20] sm:$0xf] }
 0x47e   : > { %v3887_v4 = vadd.f32 %v3842_v1, %v19096_v17  ;;  %v14393_v12 = vpop.f32.mrb[139].mxu0  ;;  %v19317_v58 = vpop.f32.mrb[176].mxu1  ;;  %14878 = vmatprep.subr.bf16.mxu0 %v21707_v53  ;;  %v19321_v50 = vadd.f32 %v21830_v11, %v3886_v48 }
 0x47f   : > { %21829 = vst [vmem:[#allocation54_spill] sm:$0xff] %v19317_v58  ;;  %v14772_v26 = vpop.f32.mrb[177].mxu1  ;;  %v5185_v12 = vrot.slane %v11938_v34, 3  ;;  %v16713_v34 = vld [vmem:[#allocation5 + $0x44] sm:$0xf]  ;;  %v21844_v58 = vld [vmem:[#allocation69_spill] sm:$0xff] }
 0x480   : > { %14703 = vmatmul.mubr.bf16.gmra.mrb[244].mxu0 %v5184_v29  ;;  %v19324_v15 = vpop.f32.mrb[178].mxu1  ;;  %v19327_v17 = vadd.f32 %v21832_v9, %v3887_v4  ;;  %v21834_v9 = vld [vmem:[#allocation64_spill] sm:$0xff] }
 0x481   : > { %21831 = vst [vmem:[#allocation58_spill] sm:$0xff] %v19324_v15  ;;  %v14773_v1 = vpop.f32.mrb[179].mxu1  ;;  %14706 = vmatprep.mubr.msk.bf16.mxu0 %vm16790_vm0, %v21707_v53  ;;  %v5186_v2 = vsel %vm3413_vm1, %v5183_v21, %v5185_v12  ;;  %v16383_v15 = vld [vmem:[%s21632_s3 + $0x5e0] sm:$0xff]  }
 0x483   : > { %v3847_v48 = vpop.f32.mrb[140].mxu0  ;;  %15083 = vmatmul.mubr.bf16.gmra.mrb[28].mxu1 %v6965_v39 }
 0x484   : > { %v3888_v25 = vadd.f32 %v3847_v48, %v19108_v40  ;;  %v14396_v11 = vpop.f32.mrb[141].mxu0  ;;  %15154 = vmatprep.mubr.msk.bf16.mxu1 %vm16790_vm0, %v21707_v53  ;;  %v16714_v40 = vld [vmem:[#allocation5 + $0x48] sm:$0xf] }
 0x485   : > { %v3850_v26 = vpop.f32.mrb[142].mxu0  ;;  %v11939_v39 = vcombine.low %v16713_v34, %v16714_v40  ;;  %v7406_v11 = vld [vmem:[#allocation6 + $0x1c] sm:$0xf]  ;;  %v19358_v34 = vld [vmem:[#allocation5 + $0x50] sm:$0xf] }
 0x486   : > { %v3889_v29 = vadd.f32 %v3850_v26, %v19117_v10  ;;  %v14397_v4 = vpop.f32.mrb[143].mxu0  ;;  %v19336_v24 = vpop.f32.mrb[180].mxu1  ;;  %v19341_v1 = vadd.f32 %v21834_v9, %v3888_v25  ;;  %v16375_v10 = vld [vmem:[%s21632_s3 + $0x5c0] sm:$0xff]   ;;  %v21836_v26 = vld [vmem:[#allocation65_spill] sm:$0xff]  ;;  %v12218_v25 = vcombine.low %v7406_v11, %v19338_v49 }
 0x487   : > { %21833 = vst [vmem:[#allocation59_spill] sm:$0xff] %v19336_v24  ;;  %v14844_v59 = vpop.f32.mrb[181].mxu1  ;;  %v5187_v9 = vrot.slane %v11939_v39, 3 }
 0x488   : > { %14707 = vmatmul.mubr.bf16.gmra.mrb[248].mxu0 %v5186_v2  ;;  %v19344_v48 = vpop.f32.mrb[182].mxu1  ;;  %v19350_v4 = vadd.f32 %v21836_v26, %v3889_v29  ;;  %v16376_v29 = vld [vmem:[%s21632_s3 + $0x5c8] sm:$0xff]  }
 0x489   : > { %21835 = vst [vmem:[#allocation60_spill] sm:$0xff] %v19344_v48  ;;  %v14845_v24 = vpop.f32.mrb[183].mxu1  ;;  %14710 = vmatprep.mubr.msk.bf16.mxu0 %vm16790_vm0, %v21707_v53 }
 0x48b   : > { %v3855_v21 = vpop.f32.mrb[144].mxu0  ;;  %15155 = vmatmul.mubr.bf16.vlgmr.msra.gmra.mrb[32].mxu1 %v12218_v25 }
 0x48c   : > { %v3890_v59 = vadd.f32 %v3855_v21, %v19133_v28  ;;  %v14400_v2 = vpop.f32.mrb[145].mxu0  ;;  %15158 = vmatprep.mubr.msk.bf16.mxu1 %vm16790_vm0, %v21707_v53  ;;  %15243 = vmatpush3.bf16.msra.mxu1 %v16375_v10  ;;  %v21838_v28 = vld [vmem:[#allocation66_spill] sm:$0xff]  ;;  %v5188_v21 = vsel %vm3413_vm1, %v5185_v12, %v5187_v9 }
 0x48d   : > { %v3858_v24 = vpop.f32.mrb[146].mxu0  ;;  %15244 = vmatprep.subr.bf16.mxu1 %v21707_v53  ;;  %v16715_v2 = vld [vmem:[#allocation5 + $0x4c] sm:$0xf] }
 0x48e   : > { %v3891_v40 = vadd.f32 %v3858_v24, %v19142_v51  ;;  %v14401_v11 = vpop.f32.mrb[147].mxu0  ;;  %v19365_v39 = vpop.f32.mrb[184].mxu1  ;;  %v19368_v26 = vadd.f32 %v21838_v28, %v3890_v59  ;;  %v11940_v10 = vcombine.low %v16715_v2, %v19358_v34  ;;  %v16379_v51 = vld [vmem:[%s21632_s3 + $0x5d0] sm:$0xff]   ;;  %v21840_v24 = vld [vmem:[#allocation67_spill] sm:$0xff]  ;;  %v19380_v59 = vld [vmem:[#allocation6 + $0x24] sm:$0xff]  }
 0x48f   : > { %21837 = vst [vmem:[#allocation61_spill] sm:$0xff] %v19365_v39  ;;  %v14848_v25 = vpop.f32.mrb[185].mxu1 }
 0x490   : > { %14711 = vmatmul.mubr.bf16.gmra.mrb[252].mxu0 %v5188_v21  ;;  %v19372_v48 = vpop.f32.mrb[186].mxu1  ;;  %15245 = vmatpush3.bf16.msra.mxu1 %v16376_v29  ;;  %v19378_v11 = vadd.f32 %v21840_v24, %v3891_v40  ;;  %v5189_v28 = vrot.slane %v11940_v10, 3  ;;  %v16380_v40 = vld [vmem:[%s21632_s3 + $0x5d8] sm:$0xff]   ;;  %v21842_v10 = vld [vmem:[#allocation68_spill] sm:$0xff] }
 0x491   : > { %21839 = vst [vmem:[#allocation62_spill] sm:$0xff] %v19372_v48  ;;  %v14849_v39 = vpop.f32.mrb[187].mxu1  ;;  %14714 = vmatprep.mubr.msk.bf16.mxu0 %vm16790_vm0, %v21707_v53  ;;  %15246 = vmatprep.subr.bf16.mxu1 %v21707_v53 }
 0x493   : > { %v3863_v12 = vpop.f32.mrb[148].mxu0  ;;  %15159 = vmatmul.mubr.bf16.gmra.mrb[36].mxu1 %v19380_v59 }
 0x494   : > { %v3892_v29 = vadd.f32 %v3863_v12, %v19159_v14  ;;  %v14404_v25 = vpop.f32.mrb[149].mxu0  ;;  %15162 = vmatprep.mubr.msk.bf16.mxu1 %vm16790_vm0, %v21707_v53  ;;  %15247 = vmatpush3.bf16.msra.mxu1 %v16379_v51  ;;  %v5190_v12 = vsel %vm3413_vm1, %v5187_v9, %v5189_v28 }
 0x495   : > { %v3866_v39 = vpop.f32.mrb[150].mxu0  ;;  %15248 = vmatprep.subr.bf16.mxu1 %v21707_v53  ;;  %v16369_v25 = vld [vmem:[#allocation5 + $0x54] ss:$0 sps:$4 sm:$0x11]  }
 0x496   : > { %v3893_v21 = vadd.f32 %v3866_v39, %v19168_v52  ;;  %v14405_v2 = vpop.f32.mrb[151].mxu0  ;;  %v19394_v24 = vpop.f32.mrb[188].mxu1  ;;  %v19397_v48 = vadd.f32 %v21842_v10, %v3892_v29  ;;  %v5191_v29 = vrot.slane %v16369_v25, 3  ;;  %v21846_v25 = vld [vmem:[#allocation70_spill] sm:$0xff] }
 0x497   : > { %21841 = vst [vmem:[#allocation63_spill] sm:$0xff] %v19394_v24  ;;  %v14852_v14 = vpop.f32.mrb[189].mxu1  ;;  %v19408_v2 = vld [vmem:[#allocation6 + $0x2c] sm:$0xff]   ;;  %v21848_v24 = vld [vmem:[#allocation71_spill] sm:$0xff] }
 0x498   : > { %14715 = vmatmul.mubr.bf16.gmra.mrb[0].mxu0 %v5190_v12  ;;  %v19400_v51 = vpop.f32.mrb[190].mxu1  ;;  %15249 = vmatpush3.bf16.msra.mxu1 %v16380_v40  ;;  %v19406_v52 = vadd.f32 %v21844_v58, %v3893_v21  ;;  %v16384_v58 = vld [vmem:[%s21632_s3 + $0x5e8] sm:$0xff]  }
 0x499   : > { %21843 = vst [vmem:[#allocation64_spill] sm:$0xff] %v19400_v51  ;;  %v14853_v39 = vpop.f32.mrb[191].mxu1  ;;  %14718 = vmatprep.mubr.msk.bf16.mxu0 %vm16790_vm0, %v21707_v53  ;;  %15250 = vmatprep.subr.bf16.mxu1 %v21707_v53 }
 0x49b   : > { %v3871_v9 = vpop.f32.mrb[152].mxu0  ;;  %15163 = vmatmul.mubr.bf16.gmra.mrb[40].mxu1 %v19408_v2 }
 0x49c   : > { %v3894_v40 = vadd.f32 %v3871_v9, %v19188_v33  ;;  %v14408_v10 = vpop.f32.mrb[153].mxu0  ;;  %15166 = vmatprep.mubr.msk.bf16.mxu1 %vm16790_vm0, %v21707_v53  ;;  %15251 = vmatpush3.bf16.msra.mxu1 %v16383_v15  ;;  %v5192_v9 = vsel %vm3413_vm1, %v5189_v28, %v5191_v29 }
 0x49d   : > { %v3874_v21 = vpop.f32.mrb[154].mxu0  ;;  %15252 = vmatprep.subr.bf16.mxu1 %v21707_v53  ;;  %v16387_v10 = vld [vmem:[%s21632_s3 + $0x5f0] sm:$0xff]  }
 0x49e   : > { %v3895_v14 = vadd.f32 %v3874_v21, %v19196_v55  ;;  %v14409_v12 = vpop.f32.mrb[155].mxu0  ;;  %v19422_v39 = vpop.f32.mrb[192].mxu1  ;;  %v19425_v51 = vadd.f32 %v21846_v25, %v3894_v40  ;;  %v19436_v21 = vld [vmem:[#allocation6 + $0x34] sm:$0xff]  }
 0x49f   : > { %21845 = vst [vmem:[#allocation65_spill] sm:$0xff] %v19422_v39  ;;  %v14856_v33 = vpop.f32.mrb[193].mxu1 }
 0x4a0   : > { %14719 = vmatmul.mubr.bf16.gmra.mrb[4].mxu0 %v5192_v9  ;;  %v19428_v15 = vpop.f32.mrb[194].mxu1  ;;  %15253 = vmatpush3.bf16.msra.mxu1 %v16384_v58  ;;  %v19434_v47 = vadd.f32 %v21848_v24, %v3895_v14  ;;  %v16388_v24 = vld [vmem:[%s21632_s3 + $0x5f8] sm:$0xff]   ;;  %v16371_v14 = vld [vmem:[%s21632_s3 + $0x400] sm:$0xff]  }
 0x4a1   : > { %21847 = vst [vmem:[#allocation66_spill] sm:$0xff] %v19428_v15  ;;  %v14857_v55 = vpop.f32.mrb[195].mxu1  ;;  %14790 = vmatprep.mubr.msk.bf16.mxu0 %vm16790_vm0, %v21707_v53  ;;  %15254 = vmatprep.subr.bf16.mxu1 %v21707_v53  ;;  %v21854_v15 = vld [vmem:[#allocation72_spill] sm:$0xff] }
 0x4a2   : > { %v21851_v55 = vld [vmem:[#allocation14_spill] sm:$0xff] }
 0x4a3   : > { %v4225_v28 = vpop.f32.mrb[156].mxu0  ;;  %15167 = vmatmul.mubr.bf16.gmra.mrb[44].mxu1 %v19436_v21 }
 0x4a4   : > { %v4296_v29 = vadd.f32 %v4225_v28, %v19219_v0  ;;  %v14480_v40 = vpop.f32.mrb[157].mxu0  ;;  %15170 = vmatprep.mubr.msk.bf16.mxu1 %vm16790_vm0, %v21707_v53  ;;  %15255 = vmatpush3.bf16.msra.mxu1 %v16387_v10  ;;  %v21850_v10 = vld [vmem:[#allocation13_spill] sm:$0xff] }
 0x4a5   : > { %v4228_v58 = vpop.f32.mrb[158].mxu0  ;;  %15256 = vmatprep.subr.bf16.mxu1 %v21707_v53  ;;  %v21852_v28 = vcombine.low %v21850_v10, %v21851_v55  ;;  %v21857_v55 = vld [vmem:[#allocation15_spill] sm:$0xff] }
 0x4a6   : > { %v4297_v12 = vadd.f32 %v4228_v58, %v19225_v6  ;;  %v14481_v25 = vpop.f32.mrb[159].mxu0  ;;  %v19453_v0 = vpop.f32.mrb[196].mxu1  ;;  %v19456_v33 = vadd.f32 %v18665_v19, %v4296_v29  ;;  %v19466_v6 = vld [vmem:[#allocation6 + $0x3c] sm:$0xff]   ;;  %v16373_v19 = vld [vmem:[%s21632_s3 + $0x408] sm:$0xff]   ;;  %v16377_v58 = vld [vmem:[%s21632_s3 + $0x410] sm:$0xff]  }
 0x4a7   : > { %21849 = vst [vmem:[#allocation67_spill] sm:$0xff] %v19453_v0  ;;  %v14860_v9 = vpop.f32.mrb[197].mxu1 }
 0x4a8   : > { %14791 = vmatmul.mubr.bf16.vlgmr.msra.gmra.mrb[8].mxu0 %v21852_v28  ;;  %v19461_v40 = vpop.f32.mrb[198].mxu1  ;;  %15257 = vmatpush3.bf16.msra.mxu1 %v16388_v24  ;;  %v19464_v39 = vadd.f32 %v21854_v15, %v4297_v12  ;;  %v21856_v9 = vld [vmem:[#allocation73_spill] sm:$0xff]  ;;  %v21858_v28 = vld [vmem:[#allocation16_spill] sm:$0xff] }
 0x4a9   : > { %21853 = vst [vmem:[#allocation68_spill] sm:$0xff] %v19461_v40  ;;  %14879 = vmatpush3.bf16.msra.mxu0 %v16371_v14  ;;  %v14861_v63 = vpop.f32.mrb[199].mxu1  ;;  %14794 = vmatprep.mubr.msk.bf16.mxu0 %vm16790_vm0, %v21707_v53 }
 0x4aa   : > { %14880 = vmatprep.subr.bf16.mxu0 %v21707_v53  ;;  %15346 = vmatprep.subr.bf16.mxu1 %v21707_v53 }
 0x4ab   : > { %v4233_v29 = vpop.f32.mrb[160].mxu0  ;;  %15171 = vmatmul.mubr.bf16.gmra.mrb[48].mxu1 %v19466_v6 }
 0x4ac   : > { %v4298_v15 = vadd.f32 %v4233_v29, %v19246_v5  ;;  %v14484_v24 = vpop.f32.mrb[161].mxu0  ;;  %15174 = vmatprep.mubr.msk.bf16.mxu1 %vm16790_vm0, %v21707_v53  ;;  %v21859_v29 = vcombine.low %v21857_v55, %v21858_v28 }
 0x4ad   : > { %v4236_v63 = vpop.f32.mrb[162].mxu0  ;;  %14881 = vmatpush3.bf16.msra.mxu0 %v16373_v19  ;;  %v21861_v24 = vld [vmem:[#allocation74_spill] sm:$0xff] }
 0x4ae   : > { %v4299_v14 = vadd.f32 %v4236_v63, %v19252_v31  ;;  %v14485_v12 = vpop.f32.mrb[163].mxu0  ;;  %v19483_v25 = vpop.f32.mrb[200].mxu1  ;;  %14882 = vmatprep.subr.bf16.mxu0 %v21707_v53  ;;  %v19487_v10 = vadd.f32 %v21856_v9, %v4298_v15  ;;  %v19497_v31 = vld [vmem:[#allocation6 + $0x44] sm:$0xff]   ;;  %v16381_v15 = vld [vmem:[%s21632_s3 + $0x418] sm:$0xff]  }
 0x4af   : > { %21855 = vst [vmem:[#allocation69_spill] sm:$0xff] %v19483_v25  ;;  %v14864_v5 = vpop.f32.mrb[201].mxu1 }
 0x4b0   : > { %14795 = vmatmul.mubr.bf16.gmra.mrb[12].mxu0 %v21859_v29  ;;  %v19492_v19 = vpop.f32.mrb[202].mxu1  ;;  %v19495_v40 = vadd.f32 %v21861_v24, %v4299_v14  ;;  %v21862_v29 = vld [vmem:[#allocation19_spill] sm:$0xff]  ;;  %v21863_v24 = vld [vmem:[#allocation20_spill] sm:$0xff] }
 0x4b1   : > { %21860 = vst [vmem:[#allocation70_spill] sm:$0xff] %v19492_v19  ;;  %v14865_v0 = vpop.f32.mrb[203].mxu1  ;;  %14798 = vmatprep.mubr.msk.bf16.mxu0 %vm16790_vm0, %v21707_v53  ;;  %14883 = vmatpush3.bf16.msra.mxu0 %v16377_v58  ;;  %v16386_v58 = vld [vmem:[%s21632_s3 + $0x420] sm:$0xff]  }
 0x4b2   : > { %14884 = vmatprep.subr.bf16.mxu0 %v21707_v53 }
 0x4b3   : > { %v4241_v63 = vpop.f32.mrb[164].mxu0  ;;  %15175 = vmatmul.mubr.bf16.gmra.mrb[52].mxu1 %v19497_v31 }
 0x4b4   : > { %v4300_v12 = vadd.f32 %v4241_v63, %v19272_v54  ;;  %v14488_v14 = vpop.f32.mrb[165].mxu0  ;;  %15178 = vmatprep.mubr.msk.bf16.mxu1 %vm16790_vm0, %v21707_v53  ;;  %v21864_v63 = vcombine.low %v21862_v29, %v21863_v24 }
 0x4b5   : > { %v4244_v0 = vpop.f32.mrb[166].mxu0  ;;  %14885 = vmatpush3.bf16.msra.mxu0 %v16381_v15  ;;  %v21866_v14 = vld [vmem:[#allocation75_spill] sm:$0xff] }
 0x4b6   : > { %v4301_v9 = vadd.f32 %v4244_v0, %v19278_v16  ;;  %v14489_v5 = vpop.f32.mrb[167].mxu0  ;;  %v19513_v55 = vpop.f32.mrb[204].mxu1  ;;  %14886 = vmatprep.subr.bf16.mxu0 %v21707_v53  ;;  %v19517_v28 = vadd.f32 %v18715_v57, %v4300_v12  ;;  %v19527_v16 = vld [vmem:[#allocation6 + $0x4c] sm:$0xff]   ;;  %v16390_v57 = vld [vmem:[%s21632_s3 + $0x428] sm:$0xff]  }
 0x4b7   : > { %v14868_v54 = vpop.f32.mrb[205].mxu1 }
 0x4b8   : > { %14799 = vmatmul.mubr.bf16.gmra.mrb[16].mxu0 %v21864_v63  ;;  %v19522_v15 = vpop.f32.mrb[206].mxu1  ;;  %v19525_v19 = vadd.f32 %v21866_v14, %v4301_v9  ;;  %v21867_v63 = vld [vmem:[#allocation25_spill] sm:$0xff]  ;;  %v21868_v14 = vld [vmem:[#allocation26_spill] sm:$0xff] }
 0x4b9   : > { %21865 = vst [vmem:[#allocation71_spill] sm:$0xff] %v19522_v15  ;;  %v14869_v25 = vpop.f32.mrb[207].mxu1  ;;  %14802 = vmatprep.mubr.msk.bf16.mxu0 %vm16790_vm0, %v21707_v53  ;;  %14887 = vmatpush3.bf16.msra.mxu0 %v16386_v58  ;;  %v16391_v58 = vld [vmem:[%s21632_s3 + $0x430] sm:$0xff]  }
 0x4ba   : > { %14888 = vmatprep.subr.bf16.mxu0 %v21707_v53 }
 0x4bb   : > { %v4249_v12 = vpop.f32.mrb[168].mxu0  ;;  %15179 = vmatmul.mubr.bf16.gmra.mrb[56].mxu1 %v19527_v16 }
 0x4bc   : > { %v4302_v0 = vadd.f32 %v4249_v12, %v19298_v46  ;;  %v14492_v9 = vpop.f32.mrb[169].mxu0  ;;  %15182 = vmatprep.mubr.msk.bf16.mxu1 %vm16790_vm0, %v21707_v53  ;;  %v21869_v12 = vcombine.low %v21867_v63, %v21868_v14 }
 0x4bd   : > { %v4252_v25 = vpop.f32.mrb[170].mxu0  ;;  %14889 = vmatpush3.bf16.msra.mxu0 %v16390_v57 }
 0x4be   : > { %v4303_v5 = vadd.f32 %v4252_v25, %v19304_v32  ;;  %v14493_v54 = vpop.f32.mrb[171].mxu0  ;;  %v19543_v29 = vpop.f32.mrb[208].mxu1  ;;  %14890 = vmatprep.subr.bf16.mxu0 %v21707_v53  ;;  %v19547_v24 = vadd.f32 %v18739_v30, %v4302_v0  ;;  %v19557_v32 = vld [vmem:[#allocation6 + $0x54] sm:$0xff]  }
 0x4bf   : > { %v14872_v46 = vpop.f32.mrb[209].mxu1  ;;  %v16392_v30 = vld [vmem:[%s21632_s3 + $0x438] sm:$0xff]  }
 0x4c0   : > { %14803 = vmatmul.mubr.bf16.gmra.mrb[20].mxu0 %v21869_v12  ;;  %v19552_v57 = vpop.f32.mrb[210].mxu1  ;;  %v19555_v9 = vadd.f32 %v18742_v8, %v4303_v5  ;;  %v7423_v46 = vld [vmem:[#allocation6 + $0x60] sm:$0x3]  ;;  %v21872_v12 = vld [vmem:[#allocation29_spill] sm:$0xff] }
 0x4c1   : > { %21870 = vst [vmem:[#allocation13_spill] sm:$0xff] %v19552_v57  ;;  %v14873_v15 = vpop.f32.mrb[211].mxu1  ;;  %14806 = vmatprep.mubr.msk.bf16.mxu0 %vm16790_vm0, %v21707_v53  ;;  %14891 = vmatpush3.bf16.msra.mxu0 %v16391_v58  ;;  %v19581_v57 = vld [vmem:[#allocation6 + $0x5c] sm:$0xf] }
 0x4c2   : > { %14892 = vmatprep.subr.bf16.mxu0 %v21707_v53 }
 0x4c3   : > { %v4257_v0 = vpop.f32.mrb[172].mxu0  ;;  %15183 = vmatmul.mubr.bf16.gmra.mrb[60].mxu1 %v19557_v32 }
 0x4c4   : > { %v4304_v25 = vadd.f32 %v4257_v0, %v19321_v50  ;;  %v14496_v8 = vpop.f32.mrb[173].mxu0  ;;  %15186 = vmatprep.mubr.msk.bf16.mxu1 %vm16790_vm0, %v21707_v53  ;;  %v21873_v50 = vld [vmem:[#allocation30_spill] sm:$0xff] }
 0x4c5   : > { %v4260_v15 = vpop.f32.mrb[174].mxu0  ;;  %14893 = vmatpush3.bf16.msra.mxu0 %v16392_v30  ;;  %v21874_v0 = vcombine.low %v21872_v12, %v21873_v50 }
 0x4c6   : > { %v4305_v5 = vadd.f32 %v4260_v15, %v19327_v17  ;;  %v14497_v58 = vpop.f32.mrb[175].mxu0  ;;  %v19570_v54 = vpop.f32.mrb[212].mxu1  ;;  %14982 = vmatprep.subr.bf16.mxu0 %v21707_v53  ;;  %v19574_v63 = vadd.f32 %v18766_v60, %v4304_v25  ;;  %v12226_v15 = vcombine.low %v19581_v57, %v7423_v46  ;;  %v7888_v25 = vld [vmem:[#allocation6 + $0x1c] sm:$0xe]  ;;  %v7914_v46 = vrot.slane %v19380_v59, 1 }
 0x4c7   : > { %21871 = vst [vmem:[#allocation14_spill] sm:$0xff] %v19570_v54  ;;  %v14876_v14 = vpop.f32.mrb[213].mxu1  ;;  %v12277_v12 = vcombine.low %v7888_v25, %v19338_v49 }
 0x4c8   : > { %14807 = vmatmul.mubr.bf16.gmra.mrb[24].mxu0 %v21874_v0  ;;  %v19579_v8 = vpop.f32.mrb[214].mxu1  ;;  %v19584_v17 = vadd.f32 %v18771_v22, %v4305_v5 }
 0x4c9   : > { %21875 = vst [vmem:[#allocation72_spill] sm:$0xff] %v19579_v8  ;;  %v14877_v30 = vpop.f32.mrb[215].mxu1  ;;  %14810 = vmatprep.mubr.msk.bf16.mxu0 %vm16790_vm0, %v21707_v53  ;;  %v21876_v8 = vld [vmem:[#allocation37_spill] sm:$0xff]  ;;  %v7913_v54 = vrot.slane %v12277_v12, 1 }
 0x4cb   : > { %v4265_v60 = vpop.f32.mrb[176].mxu0  ;;  %15187 = vmatmul.mubr.bf16.gmra.mrb[64].mxu1 %v12226_v15  ;;  %v7915_v59 = vsel %vm2686_vm2, %v7913_v54, %v7914_v46 }
 0x4cc   : > { %v4306_v58 = vadd.f32 %v4265_v60, %v19341_v1  ;;  %v14500_v14 = vpop.f32.mrb[177].mxu0  ;;  %15258 = vmatprep.mubr.msk.bf16.mxu1 %vm16790_vm0, %v21707_v53  ;;  %v21877_v1 = vld [vmem:[#allocation38_spill] sm:$0xff] }
 0x4cd   : > { %v4268_v50 = vpop.f32.mrb[178].mxu0  ;;  %v21878_v60 = vcombine.low %v21876_v8, %v21877_v1  ;;  %v21880_v1 = vld [vmem:[#allocation43_spill] sm:$0xff] }
 0x4ce   : > { %v4307_v22 = vadd.f32 %v4268_v50, %v19350_v4  ;;  %v14501_v5 = vpop.f32.mrb[179].mxu0  ;;  %v19594_v0 = vpop.f32.mrb[216].mxu1  ;;  %v19598_v30 = vadd.f32 %v18792_v7, %v4306_v58 }
 0x4cf   : > { %v14948_v15 = vpop.f32.mrb[217].mxu1  ;;  %v21879_v5 = vld [vmem:[#allocation76_spill] sm:$0xff] }
 0x4d0   : > { %14811 = vmatmul.mubr.bf16.gmra.mrb[28].mxu0 %v21878_v60  ;;  %v19603_v14 = vpop.f32.mrb[218].mxu1  ;;  %v19606_v49 = vadd.f32 %v18798_v62, %v4307_v22  ;;  %v7916_v22 = vrot.slane %v19408_v2, 1  ;;  %v21881_v60 = vld [vmem:[#allocation44_spill] sm:$0xff] }
 0x4d1   : > { %v14949_v4 = vpop.f32.mrb[219].mxu1  ;;  %14814 = vmatprep.mubr.msk.bf16.mxu0 %vm16790_vm0, %v21707_v53 }
 0x4d2   : > { %v21882_v4 = vcombine.low %v21880_v1, %v21881_v60  ;;  %v7918_v1 = vrot.slane %v19436_v21, 1  ;;  %v21885_v60 = vld [vmem:[#allocation78_spill] sm:$0xff] }
 0x4d3   : > { %v4273_v25 = vpop.f32.mrb[180].mxu0  ;;  %15259 = vmatmul.mubr.bf16.vlgmr.msra.gmra.mrb[68].mxu1 %v7915_v59  ;;  %v21884_v59 = vld [vmem:[#allocation77_spill] sm:$0xff]  ;;  %v5656_v21 = vld [vmem:[#allocation5 + $0x54] sm:$0x3] }
 0x4d4   : > { %v4308_v7 = vadd.f32 %v4273_v25, %v19368_v26  ;;  %v14504_v58 = vpop.f32.mrb[181].mxu0  ;;  %15262 = vmatprep.mubr.msk.bf16.mxu1 %vm16790_vm0, %v21707_v53 }
 0x4d5   : > { %v4276_v8 = vpop.f32.mrb[182].mxu0 }
 0x4d6   : > { %v4309_v12 = vadd.f32 %v4276_v8, %v19378_v11  ;;  %v14505_v50 = vpop.f32.mrb[183].mxu0  ;;  %v19615_v62 = vpop.f32.mrb[220].mxu1  ;;  %v19619_v15 = vadd.f32 %v21879_v5, %v4308_v7  ;;  %v7917_v11 = vsel %vm2686_vm2, %v7914_v46, %v7916_v22 }
 0x4d7   : > { %v14952_v54 = vpop.f32.mrb[221].mxu1 }
 0x4d8   : > { %14815 = vmatmul.mubr.bf16.gmra.mrb[32].mxu0 %v21882_v4  ;;  %v19624_v26 = vpop.f32.mrb[222].mxu1  ;;  %v19627_v25 = vadd.f32 %v21884_v59, %v4309_v12  ;;  %v21886_v59 = vld [vmem:[#allocation51_spill] sm:$0xff] }
 0x4d9   : > { %21883 = vst [vmem:[#allocation73_spill] sm:$0xff] %v19624_v26  ;;  %v14953_v58 = vpop.f32.mrb[223].mxu1  ;;  %14818 = vmatprep.mubr.msk.bf16.mxu0 %vm16790_vm0, %v21707_v53 }
 0x4da   : > { %v21887_v58 = vld [vmem:[#allocation52_spill] sm:$0xff] }
 0x4db   : > { %v4281_v2 = vpop.f32.mrb[184].mxu0  ;;  %15263 = vmatmul.mubr.bf16.gmra.mrb[72].mxu1 %v7917_v11  ;;  %v21888_v11 = vcombine.low %v21886_v59, %v21887_v58  ;;  %v7920_v58 = vrot.slane %v19466_v6, 1 }
 0x4dc   : > { %v4310_v7 = vadd.f32 %v4281_v2, %v19397_v48  ;;  %v14508_v8 = vpop.f32.mrb[185].mxu0  ;;  %15266 = vmatprep.mubr.msk.bf16.mxu1 %vm16790_vm0, %v21707_v53  ;;  %v21890_v2 = vld [vmem:[#allocation17_spill] sm:$0xff] }
 0x4dd   : > { %v4284_v50 = vpop.f32.mrb[186].mxu0 }
 0x4de   : > { %v4311_v5 = vadd.f32 %v4284_v50, %v19406_v52  ;;  %v14509_v54 = vpop.f32.mrb[187].mxu0  ;;  %v19636_v12 = vpop.f32.mrb[224].mxu1  ;;  %v19640_v4 = vadd.f32 %v21885_v60, %v4310_v7  ;;  %v7919_v52 = vsel %vm2686_vm2, %v7916_v22, %v7918_v1  ;;  %v21891_v22 = vld [vmem:[#allocation79_spill] sm:$0xff] }
 0x4df   : > { %v14956_v46 = vpop.f32.mrb[225].mxu1 }
 0x4e0   : > { %14819 = vmatmul.mubr.bf16.gmra.mrb[36].mxu0 %v21888_v11  ;;  %v19645_v48 = vpop.f32.mrb[226].mxu1  ;;  %v19648_v8 = vadd.f32 %v21890_v2, %v4311_v5  ;;  %v12008_v46 = vcombine.low %v19358_v34, %v5656_v21  ;;  %v7921_v21 = vsel %vm2686_vm2, %v7918_v1, %v7920_v58 }
 0x4e1   : > { %21889 = vst [vmem:[#allocation15_spill] sm:$0xff] %v19645_v48  ;;  %v14957_v26 = vpop.f32.mrb[227].mxu1  ;;  %14822 = vmatprep.mubr.msk.bf16.mxu0 %vm16790_vm0, %v21707_v53 }
 0x4e3   : > { %v4289_v50 = vpop.f32.mrb[188].mxu0  ;;  %15267 = vmatmul.mubr.bf16.gmra.mrb[76].mxu1 %v7919_v52  ;;  %v6142_v52 = vld [vmem:[#allocation6 + $0x14] sm:$0xe] }
 0x4e4   : > { %v4312_v7 = vadd.f32 %v4289_v50, %v19425_v51  ;;  %v14512_v54 = vpop.f32.mrb[189].mxu0  ;;  %15270 = vmatprep.mubr.msk.bf16.mxu1 %vm16790_vm0, %v21707_v53  ;;  %v21893_v50 = vld [vmem:[#allocation22_spill] sm:$0xff] }
 0x4e5   : > { %v4292_v60 = vpop.f32.mrb[190].mxu0 }
 0x4e6   : > { %v4313_v5 = vadd.f32 %v4292_v60, %v19434_v47  ;;  %v14513_v26 = vpop.f32.mrb[191].mxu0  ;;  %v19658_v59 = vpop.f32.mrb[228].mxu1  ;;  %v19662_v11 = vadd.f32 %v21891_v22, %v4312_v7  ;;  %v16716_v47 = vld [vmem:[#allocation6 + $0x18] sm:$0xf]  ;;  %v16717_v7 = vld [vmem:[#allocation6 + $0x1c] sm:$0xff]  }
 0x4e7   : > { %v14960_v2 = vpop.f32.mrb[229].mxu1  ;;  %v12066_v34 = vcombine.low %v6142_v52, %v16716_v47  ;;  %v6223_v60 = vrot.slane %v16717_v7, 1  ;;  %v21894_v47 = vld [vmem:[#allocation23_spill] sm:$0xff] }
 0x4e8   : > { %14823 = vmatmul.mubr.bf16.gmra.mrb[40].mxu0 %v12008_v46  ;;  %v19664_v51 = vpop.f32.mrb[230].mxu1  ;;  %v19667_v54 = vadd.f32 %v21893_v50, %v4313_v5  ;;  %v7922_v50 = vrot.slane %v19497_v31, 1 }
 0x4e9   : > { %21892 = vst [vmem:[#allocation16_spill] sm:$0xff] %v19664_v51  ;;  %v14961_v48 = vpop.f32.mrb[231].mxu1  ;;  %14894 = vmatprep.mubr.msk.bf16.mxu0 %vm16790_vm0, %v21707_v53  ;;  %v6222_v22 = vrot.slane %v12066_v34, 1  ;;  %v21895_v34 = vld [vmem:[#allocation31_spill] sm:$0xff] }
 0x4ea   : > { %v16395_v48 = vld [vmem:[%s21632_s3 + $0x480] sm:$0xff]   ;;  %v7923_v31 = vsel %vm2686_vm2, %v7920_v58, %v7922_v50 }
 0x4eb   : > { %v4724_v6 = vpop.f32.mrb[192].mxu0  ;;  %15271 = vmatmul.mubr.bf16.gmra.mrb[80].mxu1 %v7921_v21 }
 0x4ec   : > { %v4795_v46 = vadd.f32 %v4724_v6, %v19456_v33  ;;  %v14584_v26 = vpop.f32.mrb[193].mxu0  ;;  %15274 = vmatprep.mubr.msk.bf16.mxu1 %vm16790_vm0, %v21707_v53  ;;  %v6224_v6 = vsel %vm2686_vm2, %v6222_v22, %v6223_v60 }
 0x4ed   : > { %v4727_v5 = vpop.f32.mrb[194].mxu0 }
 0x4ee   : > { %v4796_v2 = vadd.f32 %v4727_v5, %v19464_v39  ;;  %v14585_v52 = vpop.f32.mrb[195].mxu0  ;;  %v19679_v1 = vpop.f32.mrb[232].mxu1  ;;  %v19683_v21 = vadd.f32 %v21894_v47, %v4795_v46  ;;  %v16397_v39 = vld [vmem:[%s21632_s3 + $0x488] sm:$0xff]  }
 0x4ef   : > { %v14964_v33 = vpop.f32.mrb[233].mxu1  ;;  %v16718_v5 = vld [vmem:[#allocation6 + $0x24] sm:$0xff]  }
 0x4f0   : > { %14895 = vmatmul.mubr.bf16.vlgmr.msra.gmra.mrb[44].mxu0 %v6224_v6  ;;  %v19686_v7 = vpop.f32.mrb[234].mxu1  ;;  %v19689_v26 = vadd.f32 %v21895_v34, %v4796_v2  ;;  %v6225_v22 = vrot.slane %v16718_v5, 1  ;;  %v7924_v6 = vrot.slane %v19527_v16, 1  ;;  %v21899_v5 = vld [vmem:[#allocation18_spill] sm:$0xff] }
 0x4f1   : > { %14983 = vmatpush3.bf16.msra.mxu0 %v16395_v48  ;;  %v14965_v51 = vpop.f32.mrb[235].mxu1  ;;  %14898 = vmatprep.mubr.msk.bf16.mxu0 %vm16790_vm0, %v21707_v53  ;;  %v16399_v48 = vld [vmem:[%s21632_s3 + $0x490] sm:$0xff]   ;;  %v16401_v16 = vld [vmem:[%s21632_s3 + $0x498] sm:$0xff]  }
 0x4f2   : > { %14984 = vmatprep.subr.bf16.mxu0 %v21707_v53 }
 0x4f3   : > { %v4732_v46 = vpop.f32.mrb[196].mxu0  ;;  %15275 = vmatmul.mubr.bf16.gmra.mrb[84].mxu1 %v7923_v31 }
 0x4f4   : > { %v4797_v2 = vadd.f32 %v4732_v46, %v19487_v10  ;;  %v14588_v52 = vpop.f32.mrb[197].mxu0  ;;  %15278 = vmatprep.mubr.msk.bf16.mxu1 %vm16790_vm0, %v21707_v53  ;;  %v21897_v10 = vld [vmem:[#allocation32_spill] sm:$0xff]  ;;  %v6226_v46 = vsel %vm2686_vm2, %v6223_v60, %v6225_v22 }
 0x4f5   : > { %v4735_v51 = vpop.f32.mrb[198].mxu0  ;;  %14985 = vmatpush3.bf16.msra.mxu0 %v16397_v39 }
 0x4f6   : > { %v4798_v58 = vadd.f32 %v4735_v51, %v19495_v40  ;;  %v14589_v47 = vpop.f32.mrb[199].mxu0  ;;  %v19705_v33 = vpop.f32.mrb[236].mxu1  ;;  %14986 = vmatprep.subr.bf16.mxu0 %v21707_v53  ;;  %v19710_v34 = vadd.f32 %v21897_v10, %v4797_v2  ;;  %v7925_v2 = vsel %vm2686_vm2, %v7922_v50, %v7924_v6  ;;  %v16719_v51 = vld [vmem:[#allocation6 + $0x2c] sm:$0xff]  }
 0x4f7   : > { %21896 = vst [vmem:[#allocation74_spill] sm:$0xff] %v19705_v33  ;;  %v14968_v31 = vpop.f32.mrb[237].mxu1  ;;  %v6227_v47 = vrot.slane %v16719_v51, 1 }
 0x4f8   : > { %14899 = vmatmul.mubr.bf16.gmra.mrb[48].mxu0 %v6226_v46  ;;  %v19713_v39 = vpop.f32.mrb[238].mxu1  ;;  %v19716_v52 = vadd.f32 %v21899_v5, %v4798_v58 }
 0x4f9   : > { %21898 = vst [vmem:[#allocation19_spill] sm:$0xff] %v19713_v39  ;;  %v14969_v40 = vpop.f32.mrb[239].mxu1  ;;  %14902 = vmatprep.mubr.msk.bf16.mxu0 %vm16790_vm0, %v21707_v53  ;;  %14987 = vmatpush3.bf16.msra.mxu0 %v16399_v48  ;;  %v16404_v48 = vld [vmem:[%s21632_s3 + $0x4a0] sm:$0xff]   ;;  %v6228_v51 = vsel %vm2686_vm2, %v6225_v22, %v6227_v47 }
 0x4fa   : > { %14988 = vmatprep.subr.bf16.mxu0 %v21707_v53  ;;  %v7926_v40 = vrot.slane %v19557_v32, 1  ;;  %v21902_v39 = vld [vmem:[#allocation35_spill] sm:$0xff]  ;;  %v16406_v32 = vld [vmem:[%s21632_s3 + $0x4a8] sm:$0xff]  }
 0x4fb   : > { %v4740_v60 = vpop.f32.mrb[200].mxu0  ;;  %15279 = vmatmul.mubr.bf16.gmra.mrb[88].mxu1 %v7925_v2 }
 0x4fc   : > { %v4799_v58 = vadd.f32 %v4740_v60, %v19517_v28  ;;  %v14592_v10 = vpop.f32.mrb[201].mxu0  ;;  %15282 = vmatprep.mubr.msk.bf16.mxu1 %vm16790_vm0, %v21707_v53  ;;  %v21900_v28 = vld [vmem:[#allocation34_spill] sm:$0xff] }
 0x4fd   : > { %v4743_v31 = vpop.f32.mrb[202].mxu0  ;;  %14989 = vmatpush3.bf16.msra.mxu0 %v16401_v16  ;;  %v7889_v16 = vld [vmem:[#allocation6 + $0x60] sm:$0x7] }
 0x4fe   : > { %v4800_v50 = vadd.f32 %v4743_v31, %v19525_v19  ;;  %v14593_v46 = vpop.f32.mrb[203].mxu0  ;;  %v19732_v5 = vpop.f32.mrb[240].mxu1  ;;  %14990 = vmatprep.subr.bf16.mxu0 %v21707_v53  ;;  %v19737_v2 = vadd.f32 %v21900_v28, %v4799_v58  ;;  %v7927_v58 = vsel %vm2686_vm2, %v7924_v6, %v7926_v40  ;;  %v12278_v22 = vcombine.low %v19581_v57, %v7889_v16  ;;  %v16408_v6 = vld [vmem:[%s21632_s3 + $0x4b0] sm:$0xff]  }
 0x4ff   : > { %v14972_v60 = vpop.f32.mrb[241].mxu1  ;;  %v16720_v46 = vld [vmem:[#allocation6 + $0x34] sm:$0xff]  }
 0x500   : > { %14903 = vmatmul.mubr.bf16.gmra.mrb[52].mxu0 %v6228_v51  ;;  %v19740_v10 = vpop.f32.mrb[242].mxu1  ;;  %v19743_v33 = vadd.f32 %v21902_v39, %v4800_v50  ;;  %v6229_v39 = vrot.slane %v16720_v46, 1  ;;  %v7928_v16 = vrot.slane %v12278_v22, 1  ;;  %v21904_v46 = vld [vmem:[#allocation40_spill] sm:$0xff] }
 0x501   : > { %21901 = vst [vmem:[#allocation20_spill] sm:$0xff] %v19740_v10  ;;  %v14973_v19 = vpop.f32.mrb[243].mxu1  ;;  %14906 = vmatprep.mubr.msk.bf16.mxu0 %vm16790_vm0, %v21707_v53  ;;  %14991 = vmatpush3.bf16.msra.mxu0 %v16404_v48 }
 0x502   : > { %14992 = vmatprep.subr.bf16.mxu0 %v21707_v53  ;;  %v21903_v19 = vld [vmem:[#allocation24_spill] sm:$0xff]  ;;  %v7929_v22 = vsel %vm2686_vm2, %v7926_v40, %v7928_v16 }
 0x503   : > { %v4748_v31 = vpop.f32.mrb[204].mxu0  ;;  %15283 = vmatmul.mubr.bf16.gmra.mrb[92].mxu1 %v7927_v58 }
 0x504   : > { %v4801_v50 = vadd.f32 %v4748_v31, %v19547_v24  ;;  %v14596_v28 = vpop.f32.mrb[205].mxu0  ;;  %15286 = vmatprep.mubr.msk.bf16.mxu1 %vm16790_vm0, %v21707_v53  ;;  %v6230_v31 = vsel %vm2686_vm2, %v6227_v47, %v6229_v39 }
 0x505   : > { %v4751_v48 = vpop.f32.mrb[206].mxu0  ;;  %14993 = vmatpush3.bf16.msra.mxu0 %v16406_v32 }
 0x506   : > { %v4802_v57 = vadd.f32 %v4751_v48, %v19555_v9  ;;  %v14597_v60 = vpop.f32.mrb[207].mxu0  ;;  %v19760_v51 = vpop.f32.mrb[244].mxu1  ;;  %14994 = vmatprep.subr.bf16.mxu0 %v21707_v53  ;;  %v19764_v24 = vadd.f32 %v21903_v19, %v4801_v50  ;;  %v16410_v9 = vld [vmem:[%s21632_s3 + $0x4b8] sm:$0xff]   ;;  %v16721_v50 = vld [vmem:[#allocation6 + $0x3c] sm:$0xff]  }
 0x507   : > { %v14976_v58 = vpop.f32.mrb[245].mxu1  ;;  %v6231_v48 = vrot.slane %v16721_v50, 1  ;;  %v16722_v50 = vld [vmem:[#allocation6 + $0x44] sm:$0xff]  }
 0x508   : > { %14907 = vmatmul.mubr.bf16.gmra.mrb[56].mxu0 %v6230_v31  ;;  %v19767_v32 = vpop.f32.mrb[246].mxu1  ;;  %v19770_v28 = vadd.f32 %v21904_v46, %v4802_v57 }
 0x509   : > { %v14977_v10 = vpop.f32.mrb[247].mxu1  ;;  %14910 = vmatprep.mubr.msk.bf16.mxu0 %vm16790_vm0, %v21707_v53  ;;  %14995 = vmatpush3.bf16.msra.mxu0 %v16408_v6  ;;  %v6232_v46 = vsel %vm2686_vm2, %v6229_v39, %v6231_v48 }
 0x50a   : > { %14996 = vmatprep.subr.bf16.mxu0 %v21707_v53 }
 0x50b   : > { %v4756_v47 = vpop.f32.mrb[208].mxu0  ;;  %15287 = vmatmul.mubr.bf16.gmra.mrb[96].mxu1 %v7929_v22  ;;  %v21905_v22 = vld [vmem:[#allocation41_spill] sm:$0xff] }
 0x50c   : > { %v4803_v57 = vadd.f32 %v4756_v47, %v19574_v63  ;;  %v14600_v60 = vpop.f32.mrb[209].mxu0  ;;  %15290 = vmatprep.mubr.msk.bf16.mxu1 %vm16790_vm0, %v21707_v53 }
 0x50d   : > { %v4759_v10 = vpop.f32.mrb[210].mxu0  ;;  %14997 = vmatpush3.bf16.msra.mxu0 %v16410_v9  ;;  %v6233_v60 = vrot.slane %v16722_v50, 1 }
 0x50e   : > { %v4804_v6 = vadd.f32 %v4759_v10, %v19584_v17  ;;  %v14601_v19 = vpop.f32.mrb[211].mxu0  ;;  %v19783_v58 = vpop.f32.mrb[248].mxu1  ;;  %15086 = vmatprep.subr.bf16.mxu0 %v21707_v53  ;;  %v19787_v40 = vadd.f32 %v18985_v18, %v4803_v57 }
 0x50f   : > { %v14980_v31 = vpop.f32.mrb[249].mxu1 }
 0x510   : > { %14911 = vmatmul.mubr.bf16.gmra.mrb[60].mxu0 %v6232_v46  ;;  %v19790_v63 = vpop.f32.mrb[250].mxu1  ;;  %v19793_v47 = vadd.f32 %v21905_v22, %v4804_v6 }
 0x511   : > { %v14981_v9 = vpop.f32.mrb[251].mxu1  ;;  %14914 = vmatprep.mubr.msk.bf16.mxu0 %vm16790_vm0, %v21707_v53 }
 0x513   : > { %v4764_v17 = vpop.f32.mrb[212].mxu0  ;;  %15291 = vmatmul.mubr.bf16.gmra.mrb[100].mxu1 %v7928_v16  ;;  %v6234_v16 = vsel %vm2686_vm2, %v6231_v48, %v6233_v60 }
 0x514   : > { %v4805_v18 = vadd.f32 %v4764_v17, %v19598_v30  ;;  %v14604_v57 = vpop.f32.mrb[213].mxu0  ;;  %15362 = vmatprep.mubr.msk.bf16.mxu1 %vm16790_vm0, %v21707_v53  ;;  %v16723_v17 = vld [vmem:[#allocation6 + $0x4c] sm:$0xff]  }
 0x515   : > { %v4767_v39 = vpop.f32.mrb[214].mxu0  ;;  %v6235_v50 = vrot.slane %v16723_v17, 1 }
 0x516   : > { %v4806_v10 = vadd.f32 %v4767_v39, %v19606_v49  ;;  %v14605_v19 = vpop.f32.mrb[215].mxu0  ;;  %v19801_v6 = vpop.f32.mrb[252].mxu1  ;;  %v19804_v31 = vadd.f32 %v19011_v41, %v4805_v18  ;;  %v6159_v18 = vld [vmem:[#allocation6 + $0x58] sm:$0x7] }
 0x517   : > { %v15052_v46 = vpop.f32.mrb[253].mxu1 }
 0x518   : > { %14915 = vmatmul.mubr.bf16.gmra.mrb[64].mxu0 %v6234_v16  ;;  %v19807_v22 = vpop.f32.mrb[254].mxu1  ;;  %v19810_v30 = vadd.f32 %v19018_v3, %v4806_v10  ;;  %v6236_v16 = vsel %vm2686_vm2, %v6233_v60, %v6235_v50 }
 0x519   : > { %21906 = vst [vmem:[#allocation75_spill] sm:$0xff] %v19807_v22  ;;  %v15053_v9 = vpop.f32.mrb[255].mxu1  ;;  %14918 = vmatprep.mubr.msk.bf16.mxu0 %vm16790_vm0, %v21707_v53 }
 0x51a   : > { %v16724_v9 = vld [vmem:[#allocation6 + $0x54] sm:$0xf] }
 0x51b   : > { %v4772_v49 = vpop.f32.mrb[216].mxu0  ;;  %v12074_v22 = vcombine.low %v16724_v9, %v6159_v18 }
 0x51c   : > { %v4807_v57 = vadd.f32 %v4772_v49, %v19619_v15  ;;  %v14608_v41 = vpop.f32.mrb[217].mxu0 }
 0x51d   : > { %v4775_v39 = vpop.f32.mrb[218].mxu0  ;;  %v6237_v41 = vrot.slane %v12074_v22, 1 }
 0x51e   : > { %v4808_v48 = vadd.f32 %v4775_v39, %v19627_v25  ;;  %v14609_v19 = vpop.f32.mrb[219].mxu0  ;;  %v19816_v46 = vpop.f32.mrb[0].mxu1  ;;  %v19819_v3 = vadd.f32 %v19037_v44, %v4807_v57 }
 0x51f   : > { %v15056_v10 = vpop.f32.mrb[1].mxu1 }
 0x520   : > { %14919 = vmatmul.mubr.bf16.gmra.mrb[68].mxu0 %v6236_v16  ;;  %v19822_v17 = vpop.f32.mrb[2].mxu1  ;;  %v19825_v15 = vadd.f32 %v19044_v56, %v4808_v48  ;;  %v6238_v48 = vsel %vm2686_vm2, %v6235_v50, %v6237_v41 }
 0x521   : > { %v15057_v49 = vpop.f32.mrb[3].mxu1  ;;  %14922 = vmatprep.mubr.msk.bf16.mxu0 %vm16790_vm0, %v21707_v53 }
 0x523   : > { %v4780_v25 = vpop.f32.mrb[220].mxu0 }
 0x524   : > { %v4809_v44 = vadd.f32 %v4780_v25, %v19640_v4  ;;  %v14612_v57 = vpop.f32.mrb[221].mxu0 }
 0x525   : > { %v4783_v39 = vpop.f32.mrb[222].mxu0 }
 0x526   : > { %v4810_v60 = vadd.f32 %v4783_v39, %v19648_v8  ;;  %v14613_v19 = vpop.f32.mrb[223].mxu0  ;;  %v19831_v18 = vpop.f32.mrb[4].mxu1  ;;  %v19834_v10 = vadd.f32 %v19063_v36, %v4809_v44 }
 0x527   : > { %v15060_v56 = vpop.f32.mrb[5].mxu1 }
 0x528   : > { %14923 = vmatmul.mubr.bf16.gmra.mrb[72].mxu0 %v6238_v48  ;;  %v19837_v16 = vpop.f32.mrb[6].mxu1  ;;  %v19840_v22 = vadd.f32 %v19070_v35, %v4810_v60 }
 0x529   : > { %v15061_v4 = vpop.f32.mrb[7].mxu1  ;;  %14926 = vmatprep.mubr.msk.bf16.mxu0 %vm16790_vm0, %v21707_v53 }
 0x52b   : > { %v4788_v8 = vpop.f32.mrb[224].mxu0 }
 0x52c   : > { %v4811_v9 = vadd.f32 %v4788_v8, %v19662_v11  ;;  %v14616_v49 = vpop.f32.mrb[225].mxu0 }
 0x52d   : > { %v4791_v25 = vpop.f32.mrb[226].mxu0  ;;  %v21907_v49 = vld [vmem:[#allocation21_spill] sm:$0xff] }
 0x52e   : > { %v4812_v36 = vadd.f32 %v4791_v25, %v19667_v54  ;;  %v14617_v44 = vpop.f32.mrb[227].mxu0  ;;  %v19846_v57 = vpop.f32.mrb[8].mxu1  ;;  %v19849_v50 = vadd.f32 %v19086_v45, %v4811_v9  ;;  %v16412_v45 = vld [vmem:[%s21632_s3 + $0x500] sm:$0xff]  }
 0x52f   : > { %v15064_v39 = vpop.f32.mrb[9].mxu1 }
 0x530   : > { %14927 = vmatmul.mubr.bf16.gmra.mrb[76].mxu0 %v6237_v41  ;;  %v19851_v35 = vpop.f32.mrb[10].mxu1  ;;  %v19854_v60 = vadd.f32 %v19093_v42, %v4812_v36 }
 0x531   : > { %v15065_v19 = vpop.f32.mrb[11].mxu1  ;;  %14998 = vmatprep.mubr.msk.bf16.mxu0 %vm16790_vm0, %v21707_v53 }
 0x533   : > { %v5284_v11 = vpop.f32.mrb[228].mxu0 }
 0x534   : > { %v5355_v54 = vadd.f32 %v5284_v11, %v19683_v21  ;;  %v14688_v56 = vpop.f32.mrb[229].mxu0 }
 0x535   : > { %v5287_v48 = vpop.f32.mrb[230].mxu0 }
 0x536   : > { %v5356_v41 = vadd.f32 %v5287_v48, %v19689_v26  ;;  %v14689_v4 = vpop.f32.mrb[231].mxu0  ;;  %v19863_v8 = vpop.f32.mrb[12].mxu1  ;;  %v19866_v42 = vadd.f32 %v19105_v38, %v5355_v54  ;;  %v16413_v26 = vld [vmem:[%s21632_s3 + $0x508] sm:$0xff]  }
 0x537   : > { %v15068_v9 = vpop.f32.mrb[13].mxu1 }
 0x538   : > { %14999 = vmatmul.mubr.bf16.vlgmr.msra.gmra.mrb[80].mxu0 %v21907_v49  ;;  %v19869_v25 = vpop.f32.mrb[14].mxu1  ;;  %v19872_v21 = vadd.f32 %v19111_v23, %v5356_v41  ;;  %v16414_v23 = vld [vmem:[%s21632_s3 + $0x510] sm:$0xff]   ;;  %v21908_v41 = vld [vmem:[#allocation27_spill] sm:$0xff] }
 0x539   : > { %15087 = vmatpush3.bf16.msra.mxu0 %v16412_v45  ;;  %v15069_v36 = vpop.f32.mrb[15].mxu1  ;;  %15002 = vmatprep.mubr.msk.bf16.mxu0 %vm16790_vm0, %v21707_v53 }
 0x53a   : > { %15088 = vmatprep.subr.bf16.mxu0 %v21707_v53 }
 0x53b   : > { %v5292_v38 = vpop.f32.mrb[232].mxu0 }
 0x53c   : > { %v5357_v44 = vadd.f32 %v5292_v38, %v19710_v34  ;;  %v14692_v39 = vpop.f32.mrb[233].mxu0 }
 0x53d   : > { %v5295_v19 = vpop.f32.mrb[234].mxu0  ;;  %15089 = vmatpush3.bf16.msra.mxu0 %v16413_v26 }
 0x53e   : > { %v5358_v11 = vadd.f32 %v5295_v19, %v19716_v52  ;;  %v14693_v54 = vpop.f32.mrb[235].mxu0  ;;  %v19885_v56 = vpop.f32.mrb[16].mxu1  ;;  %15090 = vmatprep.subr.bf16.mxu0 %v21707_v53  ;;  %v19889_v48 = vadd.f32 %v19130_v37, %v5357_v44  ;;  %v16415_v52 = vld [vmem:[%s21632_s3 + $0x518] sm:$0xff]  }
 0x53f   : > { %v15072_v45 = vpop.f32.mrb[17].mxu1 }
 0x540   : > { %15003 = vmatmul.mubr.bf16.gmra.mrb[84].mxu0 %v21908_v41  ;;  %v19892_v34 = vpop.f32.mrb[18].mxu1  ;;  %v19895_v4 = vadd.f32 %v19136_v27, %v5358_v11  ;;  %v16416_v27 = vld [vmem:[%s21632_s3 + $0x520] sm:$0xff]   ;;  %v21911_v11 = vld [vmem:[#allocation33_spill] sm:$0xff] }
 0x541   : > { %21909 = vst [vmem:[#allocation25_spill] sm:$0xff] %v19892_v34  ;;  %v15073_v9 = vpop.f32.mrb[19].mxu1  ;;  %15006 = vmatprep.mubr.msk.bf16.mxu0 %vm16790_vm0, %v21707_v53  ;;  %15091 = vmatpush3.bf16.msra.mxu0 %v16414_v23  ;;  %v7666_v34 = vld [vmem:[#allocation5 + $0x1c] sm:$0xe] }
 0x542   : > { %15092 = vmatprep.subr.bf16.mxu0 %v21707_v53 }
 0x543   : > { %v5300_v37 = vpop.f32.mrb[236].mxu0 }
 0x544   : > { %v5359_v49 = vadd.f32 %v5300_v37, %v19737_v2  ;;  %v14696_v36 = vpop.f32.mrb[237].mxu0 }
 0x545   : > { %v5303_v26 = vpop.f32.mrb[238].mxu0  ;;  %15093 = vmatpush3.bf16.msra.mxu0 %v16415_v52 }
 0x546   : > { %v5360_v38 = vadd.f32 %v5303_v26, %v19743_v33  ;;  %v14697_v44 = vpop.f32.mrb[239].mxu0  ;;  %v19908_v39 = vpop.f32.mrb[20].mxu1  ;;  %15094 = vmatprep.subr.bf16.mxu0 %v21707_v53  ;;  %v19912_v19 = vadd.f32 %v19156_v43, %v5359_v49  ;;  %v16417_v33 = vld [vmem:[%s21632_s3 + $0x528] sm:$0xff]  }
 0x547   : > { %21910 = vst [vmem:[#allocation26_spill] sm:$0xff] %v19908_v39  ;;  %v15076_v23 = vpop.f32.mrb[21].mxu1  ;;  %v21914_v26 = vld [vmem:[#allocation28_spill] sm:$0xff]  ;;  %v21915_v44 = vld [vmem:[#allocation39_spill] sm:$0xff] }
 0x548   : > { %15007 = vmatmul.mubr.bf16.gmra.mrb[88].mxu0 %v21911_v11  ;;  %v19915_v2 = vpop.f32.mrb[22].mxu1  ;;  %v19918_v54 = vadd.f32 %v19162_v61, %v5360_v38  ;;  %v16418_v61 = vld [vmem:[%s21632_s3 + $0x530] sm:$0xff]   ;;  %v21917_v23 = vld [vmem:[#allocation36_spill] sm:$0xff] }
 0x549   : > { %21912 = vst [vmem:[#allocation29_spill] sm:$0xff] %v19915_v2  ;;  %v15077_v45 = vpop.f32.mrb[23].mxu1  ;;  %15010 = vmatprep.mubr.msk.bf16.mxu0 %vm16790_vm0, %v21707_v53  ;;  %15095 = vmatpush3.bf16.msra.mxu0 %v16416_v27 }
 0x54a   : > { %15096 = vmatprep.subr.bf16.mxu0 %v21707_v53 }
 0x54b   : > { %v5308_v43 = vpop.f32.mrb[240].mxu0 }
 0x54c   : > { %v5361_v41 = vadd.f32 %v5308_v43, %v19764_v24  ;;  %v14700_v9 = vpop.f32.mrb[241].mxu0 }
 0x54d   : > { %v5311_v52 = vpop.f32.mrb[242].mxu0  ;;  %15097 = vmatpush3.bf16.msra.mxu0 %v16417_v33 }
 0x54e   : > { %v5362_v37 = vadd.f32 %v5311_v52, %v19770_v28  ;;  %v14701_v49 = vpop.f32.mrb[243].mxu0  ;;  %v19931_v36 = vpop.f32.mrb[24].mxu1  ;;  %15098 = vmatprep.subr.bf16.mxu0 %v21707_v53  ;;  %v19935_v27 = vadd.f32 %v21914_v26, %v5361_v41  ;;  %v16420_v28 = vld [vmem:[%s21632_s3 + $0x538] sm:$0xff]  }
 0x54f   : > { %21913 = vst [vmem:[#allocation30_spill] sm:$0xff] %v19931_v36  ;;  %v15080_v38 = vpop.f32.mrb[25].mxu1 }
 0x550   : > { %15011 = vmatmul.mubr.bf16.gmra.mrb[92].mxu0 %v21915_v44  ;;  %v19938_v24 = vpop.f32.mrb[26].mxu1  ;;  %v19941_v11 = vadd.f32 %v21917_v23, %v5362_v37  ;;  %v21919_v38 = vld [vmem:[#allocation45_spill] sm:$0xff] }
 0x551   : > { %21916 = vst [vmem:[#allocation37_spill] sm:$0xff] %v19938_v24  ;;  %v15081_v45 = vpop.f32.mrb[27].mxu1  ;;  %15014 = vmatprep.mubr.msk.bf16.mxu0 %vm16790_vm0, %v21707_v53  ;;  %15099 = vmatpush3.bf16.msra.mxu0 %v16418_v61 }
 0x552   : > { %15100 = vmatprep.subr.bf16.mxu0 %v21707_v53 }
 0x553   : > { %v5316_v33 = vpop.f32.mrb[244].mxu0 }
 0x554   : > { %v5363_v43 = vadd.f32 %v5316_v33, %v19787_v40  ;;  %v14704_v41 = vpop.f32.mrb[245].mxu0 }
 0x555   : > { %v5319_v9 = vpop.f32.mrb[246].mxu0  ;;  %15101 = vmatpush3.bf16.msra.mxu0 %v16420_v28 }
 0x556   : > { %v5364_v52 = vadd.f32 %v5319_v9, %v19793_v47  ;;  %v14705_v37 = vpop.f32.mrb[247].mxu0  ;;  %v19951_v49 = vpop.f32.mrb[28].mxu1  ;;  %15190 = vmatprep.subr.bf16.mxu0 %v21707_v53  ;;  %v19955_v61 = vadd.f32 %v19215_v20, %v5363_v43  ;;  %v21922_v9 = vld [vmem:[#allocation46_spill] sm:$0xff] }
 0x557   : > { %21918 = vst [vmem:[#allocation38_spill] sm:$0xff] %v19951_v49  ;;  %v15084_v26 = vpop.f32.mrb[29].mxu1 }
 0x558   : > { %15015 = vmatmul.mubr.bf16.gmra.mrb[96].mxu0 %v21919_v38  ;;  %v19958_v44 = vpop.f32.mrb[30].mxu1  ;;  %v19961_v40 = vadd.f32 %v19222_v13, %v5364_v52  ;;  %v21923_v13 = vld [vmem:[#allocation53_spill] sm:$0xff]  ;;  %v21925_v38 = vld [vmem:[#allocation47_spill] sm:$0xff] }
 0x559   : > { %21920 = vst [vmem:[#allocation76_spill] sm:$0xff] %v19958_v44  ;;  %v15085_v23 = vpop.f32.mrb[31].mxu1  ;;  %15018 = vmatprep.mubr.msk.bf16.mxu0 %vm16790_vm0, %v21707_v53 }
 0x55b   : > { %v5324_v47 = vpop.f32.mrb[248].mxu0 }
 0x55c   : > { %v5365_v45 = vadd.f32 %v5324_v47, %v19804_v31  ;;  %v14708_v28 = vpop.f32.mrb[249].mxu0 }
 0x55d   : > { %v5327_v33 = vpop.f32.mrb[250].mxu0 }
 0x55e   : > { %v5366_v20 = vadd.f32 %v5327_v33, %v19810_v30  ;;  %v14709_v43 = vpop.f32.mrb[251].mxu0  ;;  %v19967_v41 = vpop.f32.mrb[32].mxu1  ;;  %v19970_v37 = vadd.f32 %v21922_v9, %v5365_v45  ;;  %v21927_v9 = vld [vmem:[#allocation42_spill] sm:$0xff] }
 0x55f   : > { %21921 = vst [vmem:[#allocation43_spill] sm:$0xff] %v19967_v41  ;;  %v15156_v26 = vpop.f32.mrb[33].mxu1 }
 0x560   : > { %15019 = vmatmul.mubr.bf16.gmra.mrb[100].mxu0 %v21923_v13  ;;  %v19973_v52 = vpop.f32.mrb[34].mxu1  ;;  %v19976_v23 = vadd.f32 %v21925_v38, %v5366_v20  ;;  %v21928_v20 = vld [vmem:[#allocation55_spill] sm:$0xff]  ;;  %v21930_v38 = vld [vmem:[#allocation48_spill] sm:$0xff] }
 0x561   : > { %21924 = vst [vmem:[#allocation44_spill] sm:$0xff] %v19973_v52  ;;  %v15157_v44 = vpop.f32.mrb[35].mxu1  ;;  %15022 = vmatprep.mubr.msk.bf16.mxu0 %vm16790_vm0, %v21707_v53 }
 0x563   : > { %v5332_v31 = vpop.f32.mrb[252].mxu0 }
 0x564   : > { %v5367_v30 = vadd.f32 %v5332_v31, %v19819_v3  ;;  %v14712_v47 = vpop.f32.mrb[253].mxu0 }
 0x565   : > { %v5335_v28 = vpop.f32.mrb[254].mxu0 }
 0x566   : > { %v5368_v45 = vadd.f32 %v5335_v28, %v19825_v15  ;;  %v14713_v33 = vpop.f32.mrb[255].mxu0  ;;  %v19982_v43 = vpop.f32.mrb[36].mxu1  ;;  %v19985_v26 = vadd.f32 %v21927_v9, %v5367_v30  ;;  %v21932_v9 = vld [vmem:[#allocation49_spill] sm:$0xff] }
 0x567   : > { %21926 = vst [vmem:[#allocation77_spill] sm:$0xff] %v19982_v43  ;;  %v15160_v13 = vpop.f32.mrb[37].mxu1 }
 0x568   : > { %15023 = vmatmul.mubr.bf16.gmra.mrb[104].mxu0 %v21928_v20  ;;  %v19988_v44 = vpop.f32.mrb[38].mxu1  ;;  %v19991_v52 = vadd.f32 %v21930_v38, %v5368_v45  ;;  %v21933_v45 = vld [vmem:[#allocation57_spill] sm:$0xff]  ;;  %v21935_v38 = vld [vmem:[#allocation50_spill] sm:$0xff] }
 0x569   : > { %21929 = vst [vmem:[#allocation78_spill] sm:$0xff] %v19988_v44  ;;  %v15161_v41 = vpop.f32.mrb[39].mxu1  ;;  %15026 = vmatprep.mubr.msk.bf16.mxu0 %vm16790_vm0, %v21707_v53 }
 0x56b   : > { %v5340_v3 = vpop.f32.mrb[0].mxu0 }
 0x56c   : > { %v5369_v15 = vadd.f32 %v5340_v3, %v19834_v10  ;;  %v14716_v31 = vpop.f32.mrb[1].mxu0 }
 0x56d   : > { %v5343_v47 = vpop.f32.mrb[2].mxu0 }
 0x56e   : > { %v5370_v30 = vadd.f32 %v5343_v47, %v19840_v22  ;;  %v14717_v28 = vpop.f32.mrb[3].mxu0  ;;  %v19997_v33 = vpop.f32.mrb[40].mxu1  ;;  %v20000_v13 = vadd.f32 %v21932_v9, %v5369_v15  ;;  %v21937_v9 = vld [vmem:[#allocation54_spill] sm:$0xff] }
 0x56f   : > { %21931 = vst [vmem:[#allocation51_spill] sm:$0xff] %v19997_v33  ;;  %v15164_v20 = vpop.f32.mrb[41].mxu1 }
 0x570   : > { %15027 = vmatmul.mubr.bf16.gmra.mrb[108].mxu0 %v21933_v45  ;;  %v20003_v41 = vpop.f32.mrb[42].mxu1  ;;  %v20006_v44 = vadd.f32 %v21935_v38, %v5370_v30  ;;  %v21938_v30 = vld [vmem:[#allocation56_spill] sm:$0xff]  ;;  %v21940_v38 = vld [vmem:[#allocation58_spill] sm:$0xff] }
 0x571   : > { %21934 = vst [vmem:[#allocation52_spill] sm:$0xff] %v20003_v41  ;;  %v15165_v43 = vpop.f32.mrb[43].mxu1  ;;  %15030 = vmatprep.mubr.msk.bf16.mxu0 %vm16790_vm0, %v21707_v53 }
 0x573   : > { %v5348_v10 = vpop.f32.mrb[4].mxu0 }
 0x574   : > { %v5371_v22 = vadd.f32 %v5348_v10, %v19849_v50  ;;  %v14720_v3 = vpop.f32.mrb[5].mxu0 }
 0x575   : > { %v5351_v31 = vpop.f32.mrb[6].mxu0 }
 0x576   : > { %v5372_v15 = vadd.f32 %v5351_v31, %v19854_v60  ;;  %v14721_v47 = vpop.f32.mrb[7].mxu0  ;;  %v20012_v28 = vpop.f32.mrb[44].mxu1  ;;  %v20015_v20 = vadd.f32 %v21937_v9, %v5371_v22  ;;  %v20025_v60 = vld [vmem:[#allocation5 + $0x20] sm:$0xf]  ;;  %v7146_v31 = vld [vmem:[#allocation5 + $0x1c] sm:$0xf] }
 0x577   : > { %21936 = vst [vmem:[#allocation17_spill] sm:$0xff] %v20012_v28  ;;  %v15168_v45 = vpop.f32.mrb[45].mxu1  ;;  %v16422_v47 = vld [vmem:[%s21632_s3 + $0x580] sm:$0xff]  }
 0x578   : > { %15031 = vmatmul.mubr.bf16.gmra.mrb[112].mxu0 %v21938_v30  ;;  %v20018_v43 = vpop.f32.mrb[46].mxu1  ;;  %v20021_v41 = vadd.f32 %v21940_v38, %v5372_v15  ;;  %v21942_v30 = vld [vmem:[#allocation59_spill] sm:$0xff] }
 0x579   : > { %21939 = vst [vmem:[#allocation79_spill] sm:$0xff] %v20018_v43  ;;  %v15169_v33 = vpop.f32.mrb[47].mxu1  ;;  %15102 = vmatprep.mubr.msk.bf16.mxu0 %vm16790_vm0, %v21707_v53 }
 0x57a   : > { %v12185_v33 = vcombine.low %v7146_v31, %v20025_v60 }
 0x57b   : > { %v5776_v50 = vpop.f32.mrb[8].mxu0 }
 0x57c   : > { %v5847_v10 = vadd.f32 %v5776_v50, %v19866_v42  ;;  %v14792_v3 = vpop.f32.mrb[9].mxu0  ;;  %v21944_v50 = vld [vmem:[#allocation60_spill] sm:$0xff] }
 0x57d   : > { %v5779_v22 = vpop.f32.mrb[10].mxu0 }
 0x57e   : > { %v5848_v9 = vadd.f32 %v5779_v22, %v19872_v21  ;;  %v14793_v15 = vpop.f32.mrb[11].mxu0  ;;  %v20032_v45 = vpop.f32.mrb[48].mxu1  ;;  %v20036_v38 = vadd.f32 %v21942_v30, %v5847_v10  ;;  %v16424_v21 = vld [vmem:[%s21632_s3 + $0x588] sm:$0xff]  }
 0x57f   : > { %21941 = vst [vmem:[#allocation22_spill] sm:$0xff] %v20032_v45  ;;  %v15172_v43 = vpop.f32.mrb[49].mxu1  ;;  %v21946_v30 = vld [vmem:[#allocation61_spill] sm:$0xff] }
 0x580   : > { %15103 = vmatmul.mubr.bf16.vlgmr.msra.gmra.mrb[116].mxu0 %v12185_v33  ;;  %v20038_v42 = vpop.f32.mrb[50].mxu1  ;;  %v20041_v3 = vadd.f32 %v21944_v50, %v5848_v9  ;;  %v20056_v33 = vld [vmem:[#allocation5 + $0x24] sm:$0xff]  }
 0x581   : > { %21943 = vst [vmem:[#allocation23_spill] sm:$0xff] %v20038_v42  ;;  %15191 = vmatpush3.bf16.msra.mxu0 %v16422_v47  ;;  %v15173_v28 = vpop.f32.mrb[51].mxu1  ;;  %15106 = vmatprep.mubr.msk.bf16.mxu0 %vm16790_vm0, %v21707_v53  ;;  %v16426_v47 = vld [vmem:[%s21632_s3 + $0x590] sm:$0xff]  }
 0x582   : > { %15192 = vmatprep.subr.bf16.mxu0 %v21707_v53 }
 0x583   : > { %v5784_v10 = vpop.f32.mrb[12].mxu0 }
 0x584   : > { %v5849_v43 = vadd.f32 %v5784_v10, %v19889_v48  ;;  %v14796_v22 = vpop.f32.mrb[13].mxu0  ;;  %v21948_v10 = vld [vmem:[#allocation62_spill] sm:$0xff] }
 0x585   : > { %v5787_v31 = vpop.f32.mrb[14].mxu0  ;;  %15193 = vmatpush3.bf16.msra.mxu0 %v16424_v21 }
 0x586   : > { %v5850_v28 = vadd.f32 %v5787_v31, %v19895_v4  ;;  %v14797_v9 = vpop.f32.mrb[15].mxu0  ;;  %v20054_v15 = vpop.f32.mrb[52].mxu1  ;;  %15194 = vmatprep.subr.bf16.mxu0 %v21707_v53  ;;  %v20060_v50 = vadd.f32 %v21946_v30, %v5849_v43  ;;  %v16428_v4 = vld [vmem:[%s21632_s3 + $0x598] sm:$0xff]  }
 0x587   : > { %21945 = vst [vmem:[#allocation31_spill] sm:$0xff] %v20054_v15  ;;  %v15176_v48 = vpop.f32.mrb[53].mxu1 }
 0x588   : > { %15107 = vmatmul.mubr.bf16.gmra.mrb[120].mxu0 %v20056_v33  ;;  %v20063_v21 = vpop.f32.mrb[54].mxu1  ;;  %v20066_v22 = vadd.f32 %v21948_v10, %v5850_v28  ;;  %v20081_v10 = vld [vmem:[#allocation5 + $0x2c] sm:$0xff]  }
 0x589   : > { %21947 = vst [vmem:[#allocation32_spill] sm:$0xff] %v20063_v21  ;;  %v15177_v42 = vpop.f32.mrb[55].mxu1  ;;  %15110 = vmatprep.mubr.msk.bf16.mxu0 %vm16790_vm0, %v21707_v53  ;;  %15195 = vmatpush3.bf16.msra.mxu0 %v16426_v47  ;;  %v21950_v21 = vld [vmem:[#allocation63_spill] sm:$0xff] }
 0x58a   : > { %15196 = vmatprep.subr.bf16.mxu0 %v21707_v53  ;;  %v16430_v42 = vld [vmem:[%s21632_s3 + $0x5a0] sm:$0xff]  }
 0x58b   : > { %v5792_v43 = vpop.f32.mrb[16].mxu0 }
 0x58c   : > { %v5851_v31 = vadd.f32 %v5792_v43, %v19912_v19  ;;  %v14800_v9 = vpop.f32.mrb[17].mxu0  ;;  %v21952_v43 = vld [vmem:[#allocation64_spill] sm:$0xff] }
 0x58d   : > { %v5795_v30 = vpop.f32.mrb[18].mxu0  ;;  %15197 = vmatpush3.bf16.msra.mxu0 %v16428_v4 }
 0x58e   : > { %v5852_v28 = vadd.f32 %v5795_v30, %v19918_v54  ;;  %v14801_v48 = vpop.f32.mrb[19].mxu0  ;;  %v20079_v47 = vpop.f32.mrb[56].mxu1  ;;  %15198 = vmatprep.subr.bf16.mxu0 %v21707_v53  ;;  %v20085_v15 = vadd.f32 %v21950_v21, %v5851_v31  ;;  %v16432_v54 = vld [vmem:[%s21632_s3 + $0x5a8] sm:$0xff]  }
 0x58f   : > { %21949 = vst [vmem:[#allocation18_spill] sm:$0xff] %v20079_v47  ;;  %v15180_v19 = vpop.f32.mrb[57].mxu1 }
 0x590   : > { %15111 = vmatmul.mubr.bf16.gmra.mrb[124].mxu0 %v20081_v10  ;;  %v20088_v4 = vpop.f32.mrb[58].mxu1  ;;  %v20091_v9 = vadd.f32 %v21952_v43, %v5852_v28  ;;  %v20106_v43 = vld [vmem:[#allocation5 + $0x34] sm:$0xff]  }
 0x591   : > { %21951 = vst [vmem:[#allocation34_spill] sm:$0xff] %v20088_v4  ;;  %v15181_v45 = vpop.f32.mrb[59].mxu1  ;;  %15114 = vmatprep.mubr.msk.bf16.mxu0 %vm16790_vm0, %v21707_v53  ;;  %15199 = vmatpush3.bf16.msra.mxu0 %v16430_v42  ;;  %v21954_v4 = vld [vmem:[#allocation65_spill] sm:$0xff] }
 0x592   : > { %15200 = vmatprep.subr.bf16.mxu0 %v21707_v53  ;;  %v16434_v45 = vld [vmem:[%s21632_s3 + $0x5b0] sm:$0xff]  }
 0x593   : > { %v5800_v21 = vpop.f32.mrb[20].mxu0 }
 0x594   : > { %v5853_v31 = vadd.f32 %v5800_v21, %v19935_v27  ;;  %v14804_v30 = vpop.f32.mrb[21].mxu0  ;;  %v21956_v21 = vld [vmem:[#allocation66_spill] sm:$0xff] }
 0x595   : > { %v5803_v48 = vpop.f32.mrb[22].mxu0  ;;  %15201 = vmatpush3.bf16.msra.mxu0 %v16432_v54 }
 0x596   : > { %v5854_v28 = vadd.f32 %v5803_v48, %v19941_v11  ;;  %v14805_v19 = vpop.f32.mrb[23].mxu0  ;;  %v20104_v42 = vpop.f32.mrb[60].mxu1  ;;  %15202 = vmatprep.subr.bf16.mxu0 %v21707_v53  ;;  %v20110_v47 = vadd.f32 %v21954_v4, %v5853_v31  ;;  %v16436_v11 = vld [vmem:[%s21632_s3 + $0x5b8] sm:$0xff]  }
 0x597   : > { %21953 = vst [vmem:[#allocation35_spill] sm:$0xff] %v20104_v42  ;;  %v15184_v27 = vpop.f32.mrb[61].mxu1 }
 0x598   : > { %15115 = vmatmul.mubr.bf16.gmra.mrb[128].mxu0 %v20106_v43  ;;  %v20113_v54 = vpop.f32.mrb[62].mxu1  ;;  %v20116_v30 = vadd.f32 %v21956_v21, %v5854_v28  ;;  %v20128_v21 = vld [vmem:[#allocation5 + $0x3c] sm:$0xff]  }
 0x599   : > { %21955 = vst [vmem:[#allocation24_spill] sm:$0xff] %v20113_v54  ;;  %v15185_v49 = vpop.f32.mrb[63].mxu1  ;;  %15118 = vmatprep.mubr.msk.bf16.mxu0 %vm16790_vm0, %v21707_v53  ;;  %15203 = vmatpush3.bf16.msra.mxu0 %v16434_v45  ;;  %v21958_v45 = vld [vmem:[#allocation67_spill] sm:$0xff] }
 0x59a   : > { %15204 = vmatprep.subr.bf16.mxu0 %v21707_v53 }
 0x59b   : > { %v5808_v4 = vpop.f32.mrb[24].mxu0 }
 0x59c   : > { %v5855_v31 = vadd.f32 %v5808_v4, %v19955_v61  ;;  %v14808_v48 = vpop.f32.mrb[25].mxu0  ;;  %v21960_v61 = vld [vmem:[#allocation68_spill] sm:$0xff] }
 0x59d   : > { %v5811_v19 = vpop.f32.mrb[26].mxu0  ;;  %15205 = vmatpush3.bf16.msra.mxu0 %v16436_v11 }
 0x59e   : > { %v5856_v28 = vadd.f32 %v5811_v19, %v19961_v40  ;;  %v14809_v27 = vpop.f32.mrb[27].mxu0  ;;  %v20126_v49 = vpop.f32.mrb[64].mxu1  ;;  %15294 = vmatprep.subr.bf16.mxu0 %v21707_v53  ;;  %v20132_v54 = vadd.f32 %v21958_v45, %v5855_v31 }
 0x59f   : > { %21957 = vst [vmem:[#allocation40_spill] sm:$0xff] %v20126_v49  ;;  %v15188_v42 = vpop.f32.mrb[65].mxu1  ;;  %v20146_v49 = vld [vmem:[#allocation5 + $0x44] sm:$0xff]  }
 0x5a0   : > { %15119 = vmatmul.mubr.bf16.gmra.mrb[132].mxu0 %v20128_v21  ;;  %v20135_v24 = vpop.f32.mrb[66].mxu1  ;;  %v20138_v4 = vadd.f32 %v21960_v61, %v5856_v28 }
 0x5a1   : > { %21959 = vst [vmem:[#allocation41_spill] sm:$0xff] %v20135_v24  ;;  %v15189_v11 = vpop.f32.mrb[67].mxu1  ;;  %15122 = vmatprep.mubr.msk.bf16.mxu0 %vm16790_vm0, %v21707_v53  ;;  %v21962_v24 = vld [vmem:[#allocation69_spill] sm:$0xff] }
 0x5a2   : > { %v21964_v11 = vld [vmem:[#allocation70_spill] sm:$0xff] }
 0x5a3   : > { %v5816_v40 = vpop.f32.mrb[28].mxu0 }
 0x5a4   : > { %v5857_v48 = vadd.f32 %v5816_v40, %v19970_v37  ;;  %v14812_v19 = vpop.f32.mrb[29].mxu0 }
 0x5a5   : > { %v5819_v27 = vpop.f32.mrb[30].mxu0 }
 0x5a6   : > { %v5858_v31 = vadd.f32 %v5819_v27, %v19976_v23  ;;  %v14813_v45 = vpop.f32.mrb[31].mxu0  ;;  %v20144_v42 = vpop.f32.mrb[68].mxu1  ;;  %v20149_v36 = vadd.f32 %v21962_v24, %v5857_v48 }
 0x5a7   : > { %21961 = vst [vmem:[#allocation21_spill] sm:$0xff] %v20144_v42  ;;  %v15260_v28 = vpop.f32.mrb[69].mxu1 }
 0x5a8   : > { %15123 = vmatmul.mubr.bf16.gmra.mrb[136].mxu0 %v20146_v49  ;;  %v20152_v61 = vpop.f32.mrb[70].mxu1  ;;  %v20155_v2 = vadd.f32 %v21964_v11, %v5858_v31  ;;  %v20163_v28 = vld [vmem:[#allocation5 + $0x4c] sm:$0xff]  }
 0x5a9   : > { %21963 = vst [vmem:[#allocation27_spill] sm:$0xff] %v20152_v61  ;;  %v15261_v37 = vpop.f32.mrb[71].mxu1  ;;  %15126 = vmatprep.mubr.msk.bf16.mxu0 %vm16790_vm0, %v21707_v53 }
 0x5aa   : > { %v21967_v37 = vld [vmem:[#allocation71_spill] sm:$0xff] }
 0x5ab   : > { %v5824_v23 = vpop.f32.mrb[32].mxu0 }
 0x5ac   : > { %v5859_v40 = vadd.f32 %v5824_v23, %v19985_v26  ;;  %v14816_v19 = vpop.f32.mrb[33].mxu0 }
 0x5ad   : > { %v5827_v27 = vpop.f32.mrb[34].mxu0 }
 0x5ae   : > { %v5860_v24 = vadd.f32 %v5827_v27, %v19991_v52  ;;  %v14817_v48 = vpop.f32.mrb[35].mxu0  ;;  %v20161_v45 = vpop.f32.mrb[72].mxu1  ;;  %v20166_v61 = vadd.f32 %v19513_v55, %v5859_v40 }
 0x5af   : > { %21965 = vst [vmem:[#allocation33_spill] sm:$0xff] %v20161_v45  ;;  %v15264_v31 = vpop.f32.mrb[73].mxu1 }
 0x5b0   : > { %15127 = vmatmul.mubr.bf16.gmra.mrb[140].mxu0 %v20163_v28  ;;  %v20169_v11 = vpop.f32.mrb[74].mxu1  ;;  %v20172_v42 = vadd.f32 %v21967_v37, %v5860_v24  ;;  %v20180_v31 = vld [vmem:[#allocation5 + $0x54] sm:$0xff]  }
 0x5b1   : > { %21966 = vst [vmem:[#allocation28_spill] sm:$0xff] %v20169_v11  ;;  %v15265_v26 = vpop.f32.mrb[75].mxu1  ;;  %15130 = vmatprep.mubr.msk.bf16.mxu0 %vm16790_vm0, %v21707_v53 }
 0x5b2   : > { %v21970_v26 = vld [vmem:[#allocation13_spill] sm:$0xff] }
 0x5b3   : > { %v5832_v52 = vpop.f32.mrb[36].mxu0 }
 0x5b4   : > { %v5861_v23 = vadd.f32 %v5832_v52, %v20000_v13  ;;  %v14820_v19 = vpop.f32.mrb[37].mxu0  ;;  %v7163_v52 = vld [vmem:[#allocation5 + $0x60] sm:$0x3] }
 0x5b5   : > { %v5835_v27 = vpop.f32.mrb[38].mxu0 }
 0x5b6   : > { %v5862_v55 = vadd.f32 %v5835_v27, %v20006_v44  ;;  %v14821_v40 = vpop.f32.mrb[39].mxu0  ;;  %v20178_v48 = vpop.f32.mrb[76].mxu1  ;;  %v20183_v11 = vadd.f32 %v19543_v29, %v5861_v23  ;;  %v20194_v29 = vld [vmem:[#allocation5 + $0x5c] sm:$0xf] }
 0x5b7   : > { %21968 = vst [vmem:[#allocation39_spill] sm:$0xff] %v20178_v48  ;;  %v15268_v24 = vpop.f32.mrb[77].mxu1 }
 0x5b8   : > { %15131 = vmatmul.mubr.bf16.gmra.mrb[144].mxu0 %v20180_v31  ;;  %v20186_v37 = vpop.f32.mrb[78].mxu1  ;;  %v20189_v45 = vadd.f32 %v21970_v26, %v5862_v55  ;;  %v12193_v55 = vcombine.low %v20194_v29, %v7163_v52  ;;  %v21972_v26 = vld [vmem:[#allocation14_spill] sm:$0xff]  ;;  %v7692_v52 = vrot.slane %v20056_v33, 1 }
 0x5b9   : > { %21969 = vst [vmem:[#allocation36_spill] sm:$0xff] %v20186_v37  ;;  %v15269_v13 = vpop.f32.mrb[79].mxu1  ;;  %15134 = vmatprep.mubr.msk.bf16.mxu0 %vm16790_vm0, %v21707_v53 }
 0x5bb   : > { %v5840_v44 = vpop.f32.mrb[40].mxu0 }
 0x5bc   : > { %v5863_v19 = vadd.f32 %v5840_v44, %v20015_v20  ;;  %v14824_v27 = vpop.f32.mrb[41].mxu0  ;;  %v21974_v20 = vld [vmem:[#allocation72_spill] sm:$0xff] }
 0x5bd   : > { %v5843_v40 = vpop.f32.mrb[42].mxu0 }
 0x5be   : > { %v5864_v23 = vadd.f32 %v5843_v40, %v20021_v41  ;;  %v14825_v24 = vpop.f32.mrb[43].mxu0  ;;  %v20197_v48 = vpop.f32.mrb[80].mxu1  ;;  %v20201_v13 = vadd.f32 %v21972_v26, %v5863_v19  ;;  %v12251_v41 = vcombine.low %v7666_v34, %v20025_v60  ;;  %v16439_v26 = vld [vmem:[%s21632_s3 + $0x600] sm:$0xff]  }
 0x5bf   : > { %21971 = vst [vmem:[#allocation45_spill] sm:$0xff] %v20197_v48  ;;  %v15272_v37 = vpop.f32.mrb[81].mxu1 }
 0x5c0   : > { %15135 = vmatmul.mubr.bf16.gmra.mrb[148].mxu0 %v12193_v55  ;;  %v20203_v39 = vpop.f32.mrb[82].mxu1  ;;  %v20206_v44 = vadd.f32 %v21974_v20, %v5864_v23  ;;  %v7691_v55 = vrot.slane %v12251_v41, 1 }
 0x5c1   : > { %21973 = vst [vmem:[#allocation46_spill] sm:$0xff] %v20203_v39  ;;  %v15273_v27 = vpop.f32.mrb[83].mxu1  ;;  %15206 = vmatprep.mubr.msk.bf16.mxu0 %vm16790_vm0, %v21707_v53 }
 0x5c2   : > { %v7693_v48 = vsel %vm2686_vm2, %v7691_v55, %v7692_v52 }
 0x5c3   : > { %v6330_v40 = vpop.f32.mrb[44].mxu0 }
 0x5c4   : > { %v6401_v19 = vadd.f32 %v6330_v40, %v20036_v38  ;;  %v14896_v24 = vpop.f32.mrb[45].mxu0 }
 0x5c5   : > { %v6333_v37 = vpop.f32.mrb[46].mxu0 }
 0x5c6   : > { %v6402_v23 = vadd.f32 %v6333_v37, %v20041_v3  ;;  %v14897_v20 = vpop.f32.mrb[47].mxu0  ;;  %v20217_v27 = vpop.f32.mrb[84].mxu1  ;;  %v20220_v39 = vadd.f32 %v19594_v0, %v6401_v19  ;;  %v16440_v3 = vld [vmem:[%s21632_s3 + $0x608] sm:$0xff]   ;;  %v7694_v19 = vrot.slane %v20081_v10, 1 }
 0x5c7   : > { %v15276_v34 = vpop.f32.mrb[85].mxu1 }
 0x5c8   : > { %15207 = vmatmul.mubr.bf16.vlgmr.msra.gmra.mrb[152].mxu0 %v7693_v48  ;;  %v20223_v38 = vpop.f32.mrb[86].mxu1  ;;  %v20226_v41 = vadd.f32 %v19603_v14, %v6402_v23  ;;  %v16441_v14 = vld [vmem:[%s21632_s3 + $0x610] sm:$0xff]  }
 0x5c9   : > { %15295 = vmatpush3.bf16.msra.mxu0 %v16439_v26  ;;  %v15277_v40 = vpop.f32.mrb[87].mxu1  ;;  %15210 = vmatprep.mubr.msk.bf16.mxu0 %vm16790_vm0, %v21707_v53 }
 0x5ca   : > { %15296 = vmatprep.subr.bf16.mxu0 %v21707_v53 }
 0x5cb   : > { %v6338_v0 = vpop.f32.mrb[48].mxu0 }
 0x5cc   : > { %v6403_v48 = vadd.f32 %v6338_v0, %v20060_v50  ;;  %v14900_v24 = vpop.f32.mrb[49].mxu0  ;;  %v7695_v50 = vsel %vm2686_vm2, %v7692_v52, %v7694_v19  ;;  %v7696_v52 = vrot.slane %v20106_v43, 1 }
 0x5cd   : > { %v6341_v37 = vpop.f32.mrb[50].mxu0  ;;  %15297 = vmatpush3.bf16.msra.mxu0 %v16440_v3  ;;  %v21976_v3 = vld [vmem:[#allocation73_spill] sm:$0xff] }
 0x5ce   : > { %v6404_v55 = vadd.f32 %v6341_v37, %v20066_v22  ;;  %v14901_v26 = vpop.f32.mrb[51].mxu0  ;;  %v20240_v23 = vpop.f32.mrb[88].mxu1  ;;  %15298 = vmatprep.subr.bf16.mxu0 %v21707_v53  ;;  %v20244_v20 = vadd.f32 %v19615_v62, %v6403_v48  ;;  %v16442_v22 = vld [vmem:[%s21632_s3 + $0x618] sm:$0xff]  }
 0x5cf   : > { %v15280_v34 = vpop.f32.mrb[89].mxu1 }
 0x5d0   : > { %15211 = vmatmul.mubr.bf16.gmra.mrb[156].mxu0 %v7695_v50  ;;  %v20247_v40 = vpop.f32.mrb[90].mxu1  ;;  %v20250_v0 = vadd.f32 %v21976_v3, %v6404_v55  ;;  %v16443_v55 = vld [vmem:[%s21632_s3 + $0x620] sm:$0xff]  }
 0x5d1   : > { %21975 = vst [vmem:[#allocation53_spill] sm:$0xff] %v20247_v40  ;;  %v15281_v24 = vpop.f32.mrb[91].mxu1  ;;  %15214 = vmatprep.mubr.msk.bf16.mxu0 %vm16790_vm0, %v21707_v53  ;;  %15299 = vmatpush3.bf16.msra.mxu0 %v16441_v14 }
 0x5d2   : > { %15300 = vmatprep.subr.bf16.mxu0 %v21707_v53 }
 0x5d3   : > { %v6346_v62 = vpop.f32.mrb[52].mxu0 }
 0x5d4   : > { %v6405_v48 = vadd.f32 %v6346_v62, %v20085_v15  ;;  %v14904_v37 = vpop.f32.mrb[53].mxu0  ;;  %v7697_v15 = vsel %vm2686_vm2, %v7694_v19, %v7696_v52  ;;  %v7698_v19 = vrot.slane %v20128_v21, 1 }
 0x5d5   : > { %v6349_v26 = vpop.f32.mrb[54].mxu0  ;;  %15301 = vmatpush3.bf16.msra.mxu0 %v16442_v22  ;;  %v21978_v22 = vld [vmem:[#allocation15_spill] sm:$0xff] }
 0x5d6   : > { %v6406_v14 = vadd.f32 %v6349_v26, %v20091_v9  ;;  %v14905_v34 = vpop.f32.mrb[55].mxu0  ;;  %v20264_v50 = vpop.f32.mrb[92].mxu1  ;;  %15302 = vmatprep.subr.bf16.mxu0 %v21707_v53  ;;  %v20268_v3 = vadd.f32 %v19636_v12, %v6405_v48  ;;  %v16444_v9 = vld [vmem:[%s21632_s3 + $0x628] sm:$0xff]  }
 0x5d7   : > { %v15284_v24 = vpop.f32.mrb[93].mxu1 }
 0x5d8   : > { %15215 = vmatmul.mubr.bf16.gmra.mrb[160].mxu0 %v7697_v15  ;;  %v20271_v62 = vpop.f32.mrb[94].mxu1  ;;  %v20274_v37 = vadd.f32 %v21978_v22, %v6406_v14 }
 0x5d9   : > { %21977 = vst [vmem:[#allocation47_spill] sm:$0xff] %v20271_v62  ;;  %v15285_v40 = vpop.f32.mrb[95].mxu1  ;;  %15218 = vmatprep.mubr.msk.bf16.mxu0 %vm16790_vm0, %v21707_v53  ;;  %15303 = vmatpush3.bf16.msra.mxu0 %v16443_v55 }
 0x5da   : > { %15304 = vmatprep.subr.bf16.mxu0 %v21707_v53  ;;  %v16445_v40 = vld [vmem:[%s21632_s3 + $0x630] sm:$0xff]  }
 0x5db   : > { %v6354_v12 = vpop.f32.mrb[56].mxu0 }
 0x5dc   : > { %v6407_v48 = vadd.f32 %v6354_v12, %v20110_v47  ;;  %v14908_v26 = vpop.f32.mrb[57].mxu0  ;;  %v7699_v47 = vsel %vm2686_vm2, %v7696_v52, %v7698_v19  ;;  %v7700_v52 = vrot.slane %v20146_v49, 1 }
 0x5dd   : > { %v6357_v34 = vpop.f32.mrb[58].mxu0  ;;  %15305 = vmatpush3.bf16.msra.mxu0 %v16444_v9  ;;  %v21980_v9 = vld [vmem:[#allocation16_spill] sm:$0xff] }
 0x5de   : > { %v6408_v55 = vadd.f32 %v6357_v34, %v20116_v30  ;;  %v14909_v14 = vpop.f32.mrb[59].mxu0  ;;  %v20288_v24 = vpop.f32.mrb[96].mxu1  ;;  %15306 = vmatprep.subr.bf16.mxu0 %v21707_v53  ;;  %v20292_v15 = vadd.f32 %v19658_v59, %v6407_v48  ;;  %v16447_v30 = vld [vmem:[%s21632_s3 + $0x638] sm:$0xff]  }
 0x5df   : > { %v15288_v22 = vpop.f32.mrb[97].mxu1 }
 0x5e0   : > { %15219 = vmatmul.mubr.bf16.gmra.mrb[164].mxu0 %v7699_v47  ;;  %v20295_v12 = vpop.f32.mrb[98].mxu1  ;;  %v20298_v26 = vadd.f32 %v21980_v9, %v6408_v55  ;;  %v7701_v9 = vsel %vm2686_vm2, %v7698_v19, %v7700_v52 }
 0x5e1   : > { %21979 = vst [vmem:[#allocation42_spill] sm:$0xff] %v20295_v12  ;;  %v15289_v62 = vpop.f32.mrb[99].mxu1  ;;  %15222 = vmatprep.mubr.msk.bf16.mxu0 %vm16790_vm0, %v21707_v53  ;;  %15307 = vmatpush3.bf16.msra.mxu0 %v16445_v40 }
 0x5e2   : > { %15308 = vmatprep.subr.bf16.mxu0 %v21707_v53 }
 0x5e3   : > { %v6362_v59 = vpop.f32.mrb[60].mxu0 }
 0x5e4   : > { %v6409_v48 = vadd.f32 %v6362_v59, %v20132_v54  ;;  %v14912_v34 = vpop.f32.mrb[61].mxu0  ;;  %v7702_v59 = vrot.slane %v20163_v28, 1 }
 0x5e5   : > { %v6365_v14 = vpop.f32.mrb[62].mxu0  ;;  %15309 = vmatpush3.bf16.msra.mxu0 %v16447_v30 }
 0x5e6   : > { %v6410_v62 = vadd.f32 %v6365_v14, %v20138_v4  ;;  %v14913_v55 = vpop.f32.mrb[63].mxu0  ;;  %v20309_v22 = vpop.f32.mrb[100].mxu1  ;;  %v20312_v40 = vadd.f32 %v19679_v1, %v6409_v48  ;;  %15846 = vmatprep.subr.bf16.mxu0 %v21707_v53 }
 0x5e7   : > { %v15292_v47 = vpop.f32.mrb[101].mxu1  ;;  %v21981_v55 = vld [vmem:[#allocation74_spill] sm:$0xff] }
 0x5e8   : > { %15223 = vmatmul.mubr.bf16.gmra.mrb[168].mxu0 %v7701_v9  ;;  %v20316_v12 = vpop.f32.mrb[102].mxu1  ;;  %v20319_v54 = vadd.f32 %v19686_v7, %v6410_v62  ;;  %v7703_v7 = vsel %vm2686_vm2, %v7700_v52, %v7702_v59  ;;  %v21982_v62 = vld [vmem:[#allocation19_spill] sm:$0xff] }
 0x5e9   : > { %v15293_v30 = vpop.f32.mrb[103].mxu1  ;;  %15226 = vmatprep.mubr.msk.bf16.mxu0 %vm16790_vm0, %v21707_v53 }
 0x5eb   : > { %v6370_v4 = vpop.f32.mrb[64].mxu0 }
 0x5ec   : > { %v6411_v1 = vadd.f32 %v6370_v4, %v20149_v36  ;;  %v14916_v48 = vpop.f32.mrb[65].mxu0  ;;  %v7704_v36 = vrot.slane %v20180_v31, 1 }
 0x5ed   : > { %v6373_v34 = vpop.f32.mrb[66].mxu0 }
 0x5ee   : > { %v6412_v14 = vadd.f32 %v6373_v34, %v20155_v2  ;;  %v14917_v19 = vpop.f32.mrb[67].mxu0  ;;  %v20327_v47 = vadd.f32 %v21981_v55, %v6411_v1  ;;  %v7667_v2 = vld [vmem:[#allocation5 + $0x60] sm:$0x7] }
 0x5ef   : > { %v12252_v55 = vcombine.low %v20194_v29, %v7667_v2 }
 0x5f0   : > { %15227 = vmatmul.mubr.bf16.gmra.mrb[172].mxu0 %v7703_v7  ;;  %v20331_v9 = vadd.f32 %v21982_v62, %v6412_v14  ;;  %v7705_v14 = vsel %vm2686_vm2, %v7702_v59, %v7704_v36  ;;  %v21983_v7 = vld [vmem:[#allocation20_spill] sm:$0xff] }
 0x5f1   : > { %15230 = vmatprep.mubr.msk.bf16.mxu0 %vm16790_vm0, %v21707_v53 }
 0x5f3   : > { %v6378_v30 = vpop.f32.mrb[68].mxu0 }
 0x5f4   : > { %v6413_v4 = vadd.f32 %v6378_v30, %v20166_v61  ;;  %v14920_v48 = vpop.f32.mrb[69].mxu0  ;;  %v7706_v30 = vrot.slane %v12252_v55, 1 }
 0x5f5   : > { %v6381_v34 = vpop.f32.mrb[70].mxu0 }
 0x5f6   : > { %v6414_v1 = vadd.f32 %v6381_v34, %v20172_v42  ;;  %v14921_v19 = vpop.f32.mrb[71].mxu0  ;;  %v20339_v52 = vadd.f32 %v19732_v5, %v6413_v4  ;;  %v7707_v2 = vsel %vm2686_vm2, %v7704_v36, %v7706_v30  ;;  %v8110_v36 = vld [vmem:[#allocation5 + $0x1c] sm:$0xc] }
 0x5f8   : > { %15231 = vmatmul.mubr.bf16.gmra.mrb[176].mxu0 %v7705_v14  ;;  %v20344_v62 = vadd.f32 %v21983_v7, %v6414_v1 }
 0x5f9   : > { %15234 = vmatprep.mubr.msk.bf16.mxu0 %vm16790_vm0, %v21707_v53 }
 0x5fb   : > { %v6386_v61 = vpop.f32.mrb[72].mxu0 }
 0x5fc   : > { %v6415_v48 = vadd.f32 %v6386_v61, %v20183_v11  ;;  %v14924_v42 = vpop.f32.mrb[73].mxu0 }
 0x5fd   : > { %v6389_v34 = vpop.f32.mrb[74].mxu0 }
 0x5fe   : > { %v6416_v5 = vadd.f32 %v6389_v34, %v20189_v45  ;;  %v14925_v4 = vpop.f32.mrb[75].mxu0  ;;  %v20351_v59 = vadd.f32 %v19760_v51, %v6415_v48 }
 0x600   : > { %15235 = vmatmul.mubr.bf16.gmra.mrb[180].mxu0 %v7707_v2  ;;  %v20355_v1 = vadd.f32 %v19767_v32, %v6416_v5  ;;  %v12303_v32 = vcombine.low %v8110_v36, %v20025_v60  ;;  %v21984_v2 = vld [vmem:[#allocation75_spill] sm:$0xff] }
 0x601   : > { %15238 = vmatprep.mubr.msk.bf16.mxu0 %vm16790_vm0, %v21707_v53 }
 0x602   : > { %v8135_v5 = vrot.slane %v12303_v32, 2 }
 0x603   : > { %v6394_v19 = vpop.f32.mrb[76].mxu0 }
 0x604   : > { %v6417_v11 = vadd.f32 %v6394_v19, %v20201_v13  ;;  %v14928_v14 = vpop.f32.mrb[77].mxu0  ;;  %v8136_v13 = vrot.slane %v20056_v33, 2 }
 0x605   : > { %v6397_v55 = vpop.f32.mrb[78].mxu0 }
 0x606   : > { %v6418_v45 = vadd.f32 %v6397_v55, %v20206_v44  ;;  %v14929_v7 = vpop.f32.mrb[79].mxu0  ;;  %v20362_v51 = vadd.f32 %v19783_v58, %v6417_v11 }
 0x608   : > { %15239 = vmatmul.mubr.bf16.gmra.mrb[184].mxu0 %v7706_v30  ;;  %v20365_v61 = vadd.f32 %v19790_v63, %v6418_v45  ;;  %v8137_v63 = vsel %vm3131_vm3, %v8135_v5, %v8136_v13 }
 0x609   : > { %15310 = vmatprep.mubr.msk.bf16.mxu0 %vm16790_vm0, %v21707_v53 }
 0x60b   : > { %v6774_v48 = vpop.f32.mrb[80].mxu0 }
 0x60c   : > { %v6845_v42 = vadd.f32 %v6774_v48, %v20220_v39  ;;  %v15000_v44 = vpop.f32.mrb[81].mxu0  ;;  %v8138_v39 = vrot.slane %v20081_v10, 2 }
 0x60d   : > { %v6777_v34 = vpop.f32.mrb[82].mxu0 }
 0x60e   : > { %v6846_v58 = vadd.f32 %v6777_v34, %v20226_v41  ;;  %v15001_v30 = vpop.f32.mrb[83].mxu0  ;;  %v20374_v4 = vadd.f32 %v19801_v6, %v6845_v42  ;;  %v8139_v45 = vsel %vm3131_vm3, %v8136_v13, %v8138_v39 }
 0x610   : > { %15311 = vmatmul.mubr.bf16.vlgmr.msra.gmra.mrb[188].mxu0 %v8137_v63  ;;  %v20378_v19 = vadd.f32 %v21984_v2, %v6846_v58 }
 0x611   : > { %15314 = vmatprep.mubr.msk.bf16.mxu0 %vm16790_vm0, %v21707_v53 }
 0x613   : > { %v6782_v60 = vpop.f32.mrb[84].mxu0 }
 0x614   : > { %v6847_v33 = vadd.f32 %v6782_v60, %v20244_v20  ;;  %v15004_v11 = vpop.f32.mrb[85].mxu0  ;;  %v8140_v20 = vrot.slane %v20106_v43, 2 }
 0x615   : > { %v6785_v41 = vpop.f32.mrb[86].mxu0 }
 0x616   : > { %v6848_v14 = vadd.f32 %v6785_v41, %v20250_v0  ;;  %v15005_v6 = vpop.f32.mrb[87].mxu0  ;;  %v20386_v55 = vadd.f32 %v19816_v46, %v6847_v33  ;;  %v8141_v13 = vsel %vm3131_vm3, %v8138_v39, %v8140_v20 }
 0x618   : > { %15315 = vmatmul.mubr.bf16.gmra.mrb[192].mxu0 %v8139_v45  ;;  %v20390_v7 = vadd.f32 %v19822_v17, %v6848_v14 }
 0x619   : > { %15318 = vmatprep.mubr.msk.bf16.mxu0 %vm16790_vm0, %v21707_v53 }
 0x61b   : > { %v6790_v10 = vpop.f32.mrb[88].mxu0 }
 0x61c   : > { %v6849_v36 = vadd.f32 %v6790_v10, %v20268_v3  ;;  %v15008_v32 = vpop.f32.mrb[89].mxu0  ;;  %v8142_v3 = vrot.slane %v20128_v21, 2 }
 0x61d   : > { %v6793_v0 = vpop.f32.mrb[90].mxu0 }
 0x61e   : > { %v6850_v48 = vadd.f32 %v6793_v0, %v20274_v37  ;;  %v15009_v46 = vpop.f32.mrb[91].mxu0  ;;  %v20398_v42 = vadd.f32 %v19831_v18, %v6849_v36  ;;  %v8143_v30 = vsel %vm3131_vm3, %v8140_v20, %v8142_v3 }
 0x620   : > { %15319 = vmatmul.mubr.bf16.gmra.mrb[196].mxu0 %v8141_v13  ;;  %v20402_v17 = vadd.f32 %v19837_v16, %v6850_v48  ;;  %v21986_v48 = vld [vmem:[#allocation26_spill] sm:$0xff] }
 0x621   : > { %15322 = vmatprep.mubr.msk.bf16.mxu0 %vm16790_vm0, %v21707_v53 }
 0x623   : > { %v6798_v43 = vpop.f32.mrb[92].mxu0 }
 0x624   : > { %v6851_v44 = vadd.f32 %v6798_v43, %v20292_v15  ;;  %v15012_v34 = vpop.f32.mrb[93].mxu0  ;;  %v8144_v15 = vrot.slane %v20146_v49, 2 }
 0x625   : > { %v6801_v37 = vpop.f32.mrb[94].mxu0 }
 0x626   : > { %v6852_v5 = vadd.f32 %v6801_v37, %v20298_v26  ;;  %v15013_v18 = vpop.f32.mrb[95].mxu0  ;;  %v20410_v58 = vadd.f32 %v19846_v57, %v6851_v44  ;;  %v8145_v33 = vsel %vm3131_vm3, %v8142_v3, %v8144_v15  ;;  %v21987_v3 = vld [vmem:[#allocation29_spill] sm:$0xff] }
 0x628   : > { %15323 = vmatmul.mubr.bf16.gmra.mrb[200].mxu0 %v8143_v30  ;;  %v20414_v16 = vadd.f32 %v19851_v35, %v6852_v5  ;;  %v21988_v30 = vld [vmem:[#allocation30_spill] sm:$0xff] }
 0x629   : > { %15326 = vmatprep.mubr.msk.bf16.mxu0 %vm16790_vm0, %v21707_v53 }
 0x62b   : > { %v6806_v21 = vpop.f32.mrb[96].mxu0 }
 0x62c   : > { %v6853_v63 = vadd.f32 %v6806_v21, %v20312_v40  ;;  %v15016_v2 = vpop.f32.mrb[97].mxu0  ;;  %v8146_v40 = vrot.slane %v20163_v28, 2 }
 0x62d   : > { %v6809_v26 = vpop.f32.mrb[98].mxu0 }
 0x62e   : > { %v6854_v60 = vadd.f32 %v6809_v26, %v20319_v54  ;;  %v15017_v57 = vpop.f32.mrb[99].mxu0  ;;  %v20422_v39 = vadd.f32 %v19863_v8, %v6853_v63  ;;  %v8147_v45 = vsel %vm3131_vm3, %v8144_v15, %v8146_v40  ;;  %v21989_v63 = vld [vmem:[#allocation37_spill] sm:$0xff] }
 0x630   : > { %15327 = vmatmul.mubr.bf16.gmra.mrb[204].mxu0 %v8145_v33  ;;  %v20426_v35 = vadd.f32 %v19869_v25, %v6854_v60  ;;  %v21985_v25 = vld [vmem:[#allocation25_spill] sm:$0xff] }
 0x631   : > { %15330 = vmatprep.mubr.msk.bf16.mxu0 %vm16790_vm0, %v21707_v53 }
 0x633   : > { %v6814_v49 = vpop.f32.mrb[100].mxu0 }
 0x634   : > { %v6855_v11 = vadd.f32 %v6814_v49, %v20327_v47  ;;  %v15020_v41 = vpop.f32.mrb[101].mxu0  ;;  %v8148_v47 = vrot.slane %v20180_v31, 2  ;;  %v21990_v49 = vld [vmem:[#allocation38_spill] sm:$0xff] }
 0x635   : > { %v6817_v54 = vpop.f32.mrb[102].mxu0 }
 0x636   : > { %v6856_v14 = vadd.f32 %v6817_v54, %v20331_v9  ;;  %v15021_v8 = vpop.f32.mrb[103].mxu0  ;;  %v20434_v6 = vadd.f32 %v19885_v56, %v6855_v11  ;;  %v8111_v9 = vld [vmem:[#allocation5 + $0x60] sm:$0xf]  ;;  %v8149_v13 = vsel %vm3131_vm3, %v8146_v40, %v8148_v47 }
 0x637   : > { %v12304_v43 = vcombine.low %v20194_v29, %v8111_v9  ;;  %v16450_v29 = vld [vmem:[%s21634_s5] sm:$0xff]  }
 0x638   : > { %15331 = vmatmul.mubr.bf16.gmra.mrb[208].mxu0 %v8147_v45  ;;  %v20438_v10 = vadd.f32 %v21985_v25, %v6856_v14  ;;  %15347 = vmatpush3.bf16.msra.mxu1 %v16450_v29  ;;  %v21991_v11 = vld [vmem:[#allocation76_spill] sm:$0xff] }
 0x639   : > { %15334 = vmatprep.mubr.msk.bf16.mxu0 %vm16790_vm0, %v21707_v53  ;;  %15348 = vmatprep.subr.bf16.mxu1 %v21707_v53 }
 0x63b   : > { %v6822_v28 = vpop.f32.mrb[104].mxu0 }
 0x63c   : > { %v6857_v20 = vadd.f32 %v6822_v28, %v20339_v52  ;;  %v15024_v36 = vpop.f32.mrb[105].mxu0  ;;  %v8150_v52 = vrot.slane %v12304_v43, 2  ;;  %v21992_v28 = vld [vmem:[#allocation43_spill] sm:$0xff] }
 0x63d   : > { %v6825_v32 = vpop.f32.mrb[106].mxu0 }
 0x63e   : > { %v6858_v56 = vadd.f32 %v6825_v32, %v20344_v62  ;;  %v15025_v0 = vpop.f32.mrb[107].mxu0  ;;  %v20446_v46 = vadd.f32 %v21986_v48, %v6857_v20  ;;  %v8151_v15 = vsel %vm3131_vm3, %v8148_v47, %v8150_v52  ;;  %v21993_v20 = vld [vmem:[#allocation44_spill] sm:$0xff] }
 0x640   : > { %15335 = vmatmul.mubr.bf16.gmra.mrb[212].mxu0 %v8149_v13  ;;  %v20451_v44 = vadd.f32 %v21987_v3, %v6858_v56  ;;  %v16452_v56 = vld [vmem:[%s21634_s5 + $0x10] sm:$0xff]  }
 0x641   : > { %15338 = vmatprep.mubr.msk.bf16.mxu0 %vm16790_vm0, %v21707_v53  ;;  %v21994_v13 = vld [vmem:[#allocation77_spill] sm:$0xff]  ;;  %v21995_v3 = vld [vmem:[#allocation78_spill] sm:$0xff] }
 0x643   : > { %v6830_v31 = vpop.f32.mrb[108].mxu0 }
 0x644   : > { %v6859_v34 = vadd.f32 %v6830_v31, %v20351_v59  ;;  %v15028_v62 = vpop.f32.mrb[109].mxu0 }
 0x645   : > { %v6833_v37 = vpop.f32.mrb[110].mxu0 }
 0x646   : > { %v6860_v5 = vadd.f32 %v6833_v37, %v20355_v1  ;;  %v15029_v18 = vpop.f32.mrb[111].mxu0  ;;  %v20458_v21 = vadd.f32 %v21988_v30, %v6859_v34  ;;  %v21997_v30 = vld [vmem:[#allocation52_spill] sm:$0xff] }
 0x647   : > { %v21996_v18 = vld [vmem:[#allocation51_spill] sm:$0xff] }
 0x648   : > { %15339 = vmatmul.mubr.bf16.gmra.mrb[216].mxu0 %v8151_v15  ;;  %v20465_v2 = vadd.f32 %v21989_v63, %v6860_v5 }
 0x649   : > { %15342 = vmatprep.mubr.msk.bf16.mxu0 %vm16790_vm0, %v21707_v53 }
 0x64b   : > { %v6838_v59 = vpop.f32.mrb[112].mxu0 }
 0x64c   : > { %v6861_v1 = vadd.f32 %v6838_v59, %v20362_v51  ;;  %v15032_v26 = vpop.f32.mrb[113].mxu0  ;;  %v16451_v51 = vld [vmem:[%s21634_s5 + $0x8] sm:$0xff]  }
 0x64d   : > { %v6841_v60 = vpop.f32.mrb[114].mxu0  ;;  %15349 = vmatpush3.bf16.msra.mxu1 %v16451_v51 }
 0x64e   : > { %v6862_v57 = vadd.f32 %v6841_v60, %v20365_v61  ;;  %v15033_v33 = vpop.f32.mrb[115].mxu0  ;;  %v20473_v40 = vadd.f32 %v21990_v49, %v6861_v1  ;;  %15350 = vmatprep.subr.bf16.mxu1 %v21707_v53 }
 0x64f   : > { %v21999_v33 = vld [vmem:[#allocation79_spill] sm:$0xff] }
 0x650   : > { %15343 = vmatmul.mubr.bf16.gmra.mrb[220].mxu0 %v8150_v52  ;;  %v20476_v41 = vadd.f32 %v21991_v11, %v6862_v57 }
 0x651   : > { %15862 = vmatprep.mubr.msk.bf16.mxu0 %vm16790_vm0, %v21707_v53  ;;  %15351 = vmatpush3.bf16.msra.mxu1 %v16452_v56 }
 0x652   : > { %15352 = vmatprep.subr.bf16.mxu1 %v21707_v53 }
 0x653   : > { %v7317_v54 = vpop.f32.mrb[116].mxu0 }
 0x654   : > { %v7388_v14 = vadd.f32 %v7317_v54, %v20374_v4  ;;  %v15104_v8 = vpop.f32.mrb[117].mxu0 }
 0x655   : > { %v7320_v61 = vpop.f32.mrb[118].mxu0 }
 0x656   : > { %v7389_v45 = vadd.f32 %v7320_v61, %v20378_v19  ;;  %v15105_v25 = vpop.f32.mrb[119].mxu0  ;;  %v20486_v47 = vadd.f32 %v21992_v28, %v7388_v14 }
 0x658   : > { %v20490_v36 = vadd.f32 %v21993_v20, %v7389_v45  ;;  %v22001_v45 = vld [vmem:[#allocation23_spill] sm:$0xff] }
 0x65b   : > { %v7325_v9 = vpop.f32.mrb[120].mxu0 }
 0x65c   : > { %v7390_v4 = vadd.f32 %v7325_v9, %v20386_v55  ;;  %v15108_v32 = vpop.f32.mrb[121].mxu0 }
 0x65d   : > { %v7328_v0 = vpop.f32.mrb[122].mxu0 }
 0x65e   : > { %v7391_v19 = vadd.f32 %v7328_v0, %v20390_v7  ;;  %v15109_v48 = vpop.f32.mrb[123].mxu0  ;;  %v20498_v43 = vadd.f32 %v21994_v13, %v7390_v4  ;;  %v22003_v0 = vld [vmem:[#allocation32_spill] sm:$0xff] }
 0x660   : > { %v20502_v31 = vadd.f32 %v21995_v3, %v7391_v19 }
 0x663   : > { %v7333_v52 = vpop.f32.mrb[124].mxu0 }
 0x664   : > { %v7392_v55 = vadd.f32 %v7333_v52, %v20398_v42  ;;  %v15112_v34 = vpop.f32.mrb[125].mxu0  ;;  %v21998_v42 = vld [vmem:[#allocation17_spill] sm:$0xff] }
 0x665   : > { %v7336_v62 = vpop.f32.mrb[126].mxu0  ;;  %v22004_v34 = vld [vmem:[#allocation18_spill] sm:$0xff] }
 0x666   : > { %v7393_v37 = vadd.f32 %v7336_v62, %v20402_v17  ;;  %v15113_v5 = vpop.f32.mrb[127].mxu0  ;;  %v20507_v7 = vadd.f32 %v21996_v18, %v7392_v55  ;;  %v22005_v62 = vld [vmem:[#allocation34_spill] sm:$0xff] }
 0x667   : > { %v16454_v5 = vld [vmem:[%s21634_s5 + $0x20] sm:$0xff]  }
 0x668   : > { %v20510_v29 = vadd.f32 %v21997_v30, %v7393_v37 }
 0x66b   : > { %v7341_v15 = vpop.f32.mrb[128].mxu0 }
 0x66c   : > { %v7394_v63 = vadd.f32 %v7341_v15, %v20410_v58  ;;  %v15116_v59 = vpop.f32.mrb[129].mxu0  ;;  %v22000_v58 = vld [vmem:[#allocation22_spill] sm:$0xff] }
 0x66d   : > { %v7344_v1 = vpop.f32.mrb[130].mxu0 }
 0x66e   : > { %v7395_v26 = vadd.f32 %v7344_v1, %v20414_v16  ;;  %v15117_v60 = vpop.f32.mrb[131].mxu0  ;;  %v20515_v57 = vadd.f32 %v21998_v42, %v7394_v63  ;;  %v22006_v1 = vld [vmem:[#allocation35_spill] sm:$0xff]  ;;  %v22007_v42 = vld [vmem:[#allocation24_spill] sm:$0xff] }
 0x66f   : > { %v16456_v60 = vld [vmem:[%s21634_s5 + $0x30] sm:$0xff]  }
 0x670   : > { %v20518_v17 = vadd.f32 %v21999_v33, %v7395_v26 }
 0x673   : > { %v7349_v49 = vpop.f32.mrb[132].mxu0 }
 0x674   : > { %v7396_v11 = vadd.f32 %v7349_v49, %v20422_v39  ;;  %v15120_v54 = vpop.f32.mrb[133].mxu0  ;;  %v16453_v39 = vld [vmem:[%s21634_s5 + $0x18] sm:$0xff]  }
 0x675   : > { %v7352_v14 = vpop.f32.mrb[134].mxu0  ;;  %15353 = vmatpush3.bf16.msra.mxu1 %v16453_v39 }
 0x676   : > { %v7397_v8 = vadd.f32 %v7352_v14, %v20426_v35  ;;  %v15121_v51 = vpop.f32.mrb[135].mxu0  ;;  %v20523_v61 = vadd.f32 %v22000_v58, %v7396_v11  ;;  %v22002_v35 = vld [vmem:[#allocation31_spill] sm:$0xff]  ;;  %15354 = vmatprep.subr.bf16.mxu1 %v21707_v53 }
 0x677   : > { %v16457_v58 = vld [vmem:[%s21634_s5 + $0x38] sm:$0xff]  }
 0x678   : > { %v20526_v16 = vadd.f32 %v22001_v45, %v7397_v8  ;;  %v22008_v8 = vld [vmem:[#allocation40_spill] sm:$0xff]  ;;  %v22009_v45 = vld [vmem:[#allocation41_spill] sm:$0xff] }
 0x679   : > { %15355 = vmatpush3.bf16.msra.mxu1 %v16454_v5 }
 0x67a   : > { %15356 = vmatprep.subr.bf16.mxu1 %v21707_v53 }
 0x67b   : > { %v7357_v25 = vpop.f32.mrb[136].mxu0 }
 0x67c   : > { %v7398_v28 = vadd.f32 %v7357_v25, %v20434_v6  ;;  %v15124_v20 = vpop.f32.mrb[137].mxu0 }
 0x67d   : > { %v7360_v9 = vpop.f32.mrb[138].mxu0 }
 0x67e   : > { %v7399_v4 = vadd.f32 %v7360_v9, %v20438_v10  ;;  %v15125_v32 = vpop.f32.mrb[139].mxu0  ;;  %v20534_v56 = vadd.f32 %v22002_v35, %v7398_v28  ;;  %v22011_v35 = vld [vmem:[#allocation27_spill] sm:$0xff] }
 0x680   : > { %v20537_v19 = vadd.f32 %v22003_v0, %v7399_v4  ;;  %v22010_v4 = vld [vmem:[#allocation21_spill] sm:$0xff] }
 0x683   : > { %v7365_v48 = vpop.f32.mrb[140].mxu0 }
 0x684   : > { %v7400_v6 = vadd.f32 %v7365_v48, %v20446_v46  ;;  %v15128_v13 = vpop.f32.mrb[141].mxu0  ;;  %v16455_v46 = vld [vmem:[%s21634_s5 + $0x28] sm:$0xff]  }
 0x685   : > { %v7368_v3 = vpop.f32.mrb[142].mxu0  ;;  %15357 = vmatpush3.bf16.msra.mxu1 %v16455_v46 }
 0x686   : > { %v7401_v52 = vadd.f32 %v7368_v3, %v20451_v44  ;;  %v15129_v55 = vpop.f32.mrb[143].mxu0  ;;  %v20543_v10 = vadd.f32 %v22004_v34, %v7400_v6  ;;  %15358 = vmatprep.subr.bf16.mxu1 %v21707_v53 }
 0x688   : > { %v20546_v37 = vadd.f32 %v22005_v62, %v7401_v52  ;;  %v22013_v62 = vld [vmem:[#allocation28_spill] sm:$0xff] }
 0x689   : > { %15359 = vmatpush3.bf16.msra.mxu1 %v16456_v60 }
 0x68a   : > { %15360 = vmatprep.subr.bf16.mxu1 %v21707_v53 }
 0x68b   : > { %v7373_v18 = vpop.f32.mrb[144].mxu0 }
 0x68c   : > { %v7402_v44 = vadd.f32 %v7373_v18, %v20458_v21  ;;  %v15132_v30 = vpop.f32.mrb[145].mxu0 }
 0x68d   : > { %v7376_v15 = vpop.f32.mrb[146].mxu0  ;;  %15361 = vmatpush3.bf16.msra.mxu1 %v16457_v58 }
 0x68e   : > { %v7403_v63 = vadd.f32 %v7376_v15, %v20465_v2  ;;  %v15133_v59 = vpop.f32.mrb[147].mxu0  ;;  %v20558_v26 = vadd.f32 %v22006_v1, %v7402_v44  ;;  %15366 = vmatprep.subr.bf16.mxu1 %v21707_v53 }
 0x68f   : > { %v22015_v59 = vld [vmem:[#allocation36_spill] sm:$0xff] }
 0x690   : > { %v20565_v33 = vadd.f32 %v22007_v42, %v7403_v63 }
 0x693   : > { %v7381_v21 = vpop.f32.mrb[148].mxu0 }
 0x694   : > { %v7404_v2 = vadd.f32 %v7381_v21, %v20473_v40  ;;  %v15136_v49 = vpop.f32.mrb[149].mxu0 }
 0x695   : > { %v7384_v11 = vpop.f32.mrb[150].mxu0 }
 0x696   : > { %v7405_v54 = vadd.f32 %v7384_v11, %v20476_v41  ;;  %v15137_v14 = vpop.f32.mrb[151].mxu0  ;;  %v20571_v51 = vadd.f32 %v22008_v8, %v7404_v2 }
 0x698   : > { %v20577_v25 = vadd.f32 %v22009_v45, %v7405_v54  ;;  %v22017_v54 = vld [vmem:[#allocation46_spill] sm:$0xff] }
 0x69b   : > { %v7799_v28 = vpop.f32.mrb[152].mxu0 }
 0x69c   : > { %v7870_v40 = vadd.f32 %v7799_v28, %v20486_v47  ;;  %v15208_v20 = vpop.f32.mrb[153].mxu0  ;;  %v22012_v47 = vld [vmem:[#allocation33_spill] sm:$0xff] }
 0x69d   : > { %v7802_v9 = vpop.f32.mrb[154].mxu0 }
 0x69e   : > { %v7871_v41 = vadd.f32 %v7802_v9, %v20490_v36  ;;  %v15209_v39 = vpop.f32.mrb[155].mxu0  ;;  %v20583_v32 = vadd.f32 %v22010_v4, %v7870_v40 }
 0x6a0   : > { %v20586_v0 = vadd.f32 %v22011_v35, %v7871_v41 }
 0x6a3   : > { %v7807_v48 = vpop.f32.mrb[156].mxu0 }
 0x6a4   : > { %v7872_v6 = vadd.f32 %v7807_v48, %v20498_v43  ;;  %v15212_v13 = vpop.f32.mrb[157].mxu0  ;;  %v22014_v43 = vld [vmem:[#allocation39_spill] sm:$0xff]  ;;  %v22018_v48 = vld [vmem:[#allocation53_spill] sm:$0xff] }
 0x6a5   : > { %v7810_v3 = vpop.f32.mrb[158].mxu0 }
 0x6a6   : > { %v7873_v52 = vadd.f32 %v7810_v3, %v20502_v31  ;;  %v15213_v55 = vpop.f32.mrb[159].mxu0  ;;  %v20591_v34 = vadd.f32 %v22012_v47, %v7872_v6 }
 0x6a7   : > { %v22019_v55 = vld [vmem:[#allocation47_spill] sm:$0xff] }
 0x6a8   : > { %v20594_v36 = vadd.f32 %v22013_v62, %v7873_v52 }
 0x6ab   : > { %v7815_v5 = vpop.f32.mrb[160].mxu0 }
 0x6ac   : > { %v7874_v46 = vadd.f32 %v7815_v5, %v20507_v7  ;;  %v15216_v18 = vpop.f32.mrb[161].mxu0  ;;  %v22016_v7 = vld [vmem:[#allocation45_spill] sm:$0xff] }
 0x6ad   : > { %v7818_v44 = vpop.f32.mrb[162].mxu0 }
 0x6ae   : > { %v7875_v30 = vadd.f32 %v7818_v44, %v20510_v29  ;;  %v15217_v15 = vpop.f32.mrb[163].mxu0  ;;  %v20599_v63 = vadd.f32 %v22014_v43, %v7874_v46  ;;  %v22020_v44 = vld [vmem:[#allocation42_spill] sm:$0xff] }
 0x6b0   : > { %v20602_v31 = vadd.f32 %v22015_v59, %v7875_v30 }
 0x6b3   : > { %v7823_v1 = vpop.f32.mrb[164].mxu0 }
 0x6b4   : > { %v7876_v60 = vadd.f32 %v7823_v1, %v20515_v57  ;;  %v15220_v42 = vpop.f32.mrb[165].mxu0 }
 0x6b5   : > { %v7826_v21 = vpop.f32.mrb[166].mxu0 }
 0x6b6   : > { %v7877_v2 = vadd.f32 %v7826_v21, %v20518_v17  ;;  %v15221_v49 = vpop.f32.mrb[167].mxu0  ;;  %v20607_v11 = vadd.f32 %v22016_v7, %v7876_v60 }
 0x6b8   : > { %v20610_v29 = vadd.f32 %v22017_v54, %v7877_v2 }
 0x6bb   : > { %v7831_v14 = vpop.f32.mrb[168].mxu0 }
 0x6bc   : > { %v7878_v8 = vadd.f32 %v7831_v14, %v20523_v61  ;;  %v15224_v58 = vpop.f32.mrb[169].mxu0 }
 0x6bd   : > { %v7834_v45 = vpop.f32.mrb[170].mxu0 }
 0x6be   : > { %v7879_v28 = vadd.f32 %v7834_v45, %v20526_v16  ;;  %v15225_v40 = vpop.f32.mrb[171].mxu0  ;;  %v20615_v57 = vadd.f32 %v20217_v27, %v7878_v8 }
 0x6c0   : > { %v20618_v17 = vadd.f32 %v20223_v38, %v7879_v28 }
 0x6c3   : > { %v7839_v20 = vpop.f32.mrb[172].mxu0 }
 0x6c4   : > { %v7880_v9 = vadd.f32 %v7839_v20, %v20534_v56  ;;  %v15228_v41 = vpop.f32.mrb[173].mxu0 }
 0x6c5   : > { %v7842_v39 = vpop.f32.mrb[174].mxu0 }
 0x6c6   : > { %v7881_v4 = vadd.f32 %v7842_v39, %v20537_v19  ;;  %v15229_v35 = vpop.f32.mrb[175].mxu0  ;;  %v20623_v61 = vadd.f32 %v20240_v23, %v7880_v9 }
 0x6c8   : > { %v20626_v16 = vadd.f32 %v22018_v48, %v7881_v4 }
 0x6cb   : > { %v7847_v6 = vpop.f32.mrb[176].mxu0 }
 0x6cc   : > { %v7882_v27 = vadd.f32 %v7847_v6, %v20543_v10  ;;  %v15232_v13 = vpop.f32.mrb[177].mxu0 }
 0x6cd   : > { %v7850_v38 = vpop.f32.mrb[178].mxu0 }
 0x6ce   : > { %v7883_v3 = vadd.f32 %v7850_v38, %v20546_v37  ;;  %v15233_v52 = vpop.f32.mrb[179].mxu0  ;;  %v20631_v56 = vadd.f32 %v20264_v50, %v7882_v27 }
 0x6d0   : > { %v20634_v19 = vadd.f32 %v22019_v55, %v7883_v3 }
 0x6d3   : > { %v7855_v47 = vpop.f32.mrb[180].mxu0 }
 0x6d4   : > { %v7884_v23 = vadd.f32 %v7855_v47, %v20558_v26  ;;  %v15236_v62 = vpop.f32.mrb[181].mxu0 }
 0x6d5   : > { %v7858_v5 = vpop.f32.mrb[182].mxu0 }
 0x6d6   : > { %v7885_v46 = vadd.f32 %v7858_v5, %v20565_v33  ;;  %v15237_v18 = vpop.f32.mrb[183].mxu0  ;;  %v20639_v10 = vadd.f32 %v20288_v24, %v7884_v23  ;;  %v20655_v24 = vld [vmem:[%s21633_s4] ss:$0 sm:$0xff] }
 0x6d8   : > { %v20642_v37 = vadd.f32 %v22020_v44, %v7885_v46 }
 0x6db   : > { %v7863_v30 = vpop.f32.mrb[184].mxu0 }
 0x6dc   : > { %v7886_v50 = vadd.f32 %v7863_v30, %v20571_v51  ;;  %v15240_v15 = vpop.f32.mrb[185].mxu0 }
 0x6dd   : > { %v7866_v43 = vpop.f32.mrb[186].mxu0 }
 0x6de   : > { %v7887_v59 = vadd.f32 %v7866_v43, %v20577_v25  ;;  %v15241_v1 = vpop.f32.mrb[187].mxu0  ;;  %v20647_v26 = vadd.f32 %v20309_v22, %v7886_v50 }
 0x6e0   : > { %v20650_v33 = vadd.f32 %v20316_v12, %v7887_v59 }
 0x6e3   : > { %v8243_v60 = vpop.f32.mrb[188].mxu0 }
 0x6e4   : > { %v8314_v42 = vadd.f32 %v8243_v60, %v20583_v32  ;;  %v15312_v51 = vpop.f32.mrb[189].mxu0 }
 0x6e5   : > { %v8246_v21 = vpop.f32.mrb[190].mxu0 }
 0x6e6   : > { %v8339_v2 = vadd.f32 %v20655_v24, %v8314_v42  ;;  %v8315_v25 = vadd.f32 %v8246_v21, %v20586_v0  ;;  %v15313_v49 = vpop.f32.mrb[191].mxu0 }
 0x6e8   : > { %v8357_v22 = vmax.f32 %v8339_v2, 0.0  ;;  %v8340_v7 = vadd.f32 %v20655_v24, %v8315_v25 }
 0x6ea   : > { %8375 = vst [vmem:[#allocation7] sm:$0xff] %v8357_v22  ;;  %v8358_v12 = vmax.f32 %v8340_v7, 0.0 }
 0x6eb   : > { %v8251_v54 = vpop.f32.mrb[192].mxu0 }
 0x6ec   : > { %8376 = vst [vmem:[#allocation7 + $0x8] sm:$0xff] %v8358_v12  ;;  %v8316_v14 = vadd.f32 %v8251_v54, %v20591_v34  ;;  %v15316_v8 = vpop.f32.mrb[193].mxu0 }
 0x6ed   : > { %v8254_v58 = vpop.f32.mrb[194].mxu0 }
 0x6ee   : > { %v8341_v32 = vadd.f32 %v20655_v24, %v8316_v14  ;;  %v8317_v45 = vadd.f32 %v8254_v58, %v20594_v36  ;;  %v15317_v28 = vpop.f32.mrb[195].mxu0 }
 0x6f0   : > { %v8359_v40 = vmax.f32 %v8341_v32, 0.0  ;;  %v8342_v0 = vadd.f32 %v20655_v24, %v8317_v45 }
 0x6f2   : > { %8377 = vst [vmem:[#allocation7 + $0x10] sm:$0xff] %v8359_v40  ;;  %v8360_v20 = vmax.f32 %v8342_v0, 0.0 }
 0x6f3   : > { %v8393_v9 = vld [vmem:[#allocation7] ss:$2 sm:$0xff]  ;;  %v8411_v41 = vld [vmem:[#allocation7 + $0x1] ss:$2 sm:$0xff]  ;;  %v8259_v39 = vpop.f32.mrb[196].mxu0 }
 0x6f4   : > { %v8428_v4 = vmax.f32 %v8393_v9, %v8411_v41  ;;  %8378 = vst [vmem:[#allocation7 + $0x18] sm:$0xff] %v8360_v20  ;;  %v8318_v35 = vadd.f32 %v8259_v39, %v20599_v63  ;;  %v15320_v34 = vpop.f32.mrb[197].mxu0  ;;  %v16458_v20 = vld [vmem:[%s21634_s5 + $0x40] sm:$0xff]  }
 0x6f5   : > { %v8262_v48 = vpop.f32.mrb[198].mxu0 }
 0x6f6   : > { %8437 = vst [vmem:[#allocation8] sm:$0xff] %v8428_v4  ;;  %v8343_v6 = vadd.f32 %v20655_v24, %v8318_v35  ;;  %v8319_v36 = vadd.f32 %v8262_v48, %v20602_v31  ;;  %v15321_v27 = vpop.f32.mrb[199].mxu0 }
 0x6f8   : > { %v8361_v13 = vmax.f32 %v8343_v6, 0.0  ;;  %v8344_v38 = vadd.f32 %v20655_v24, %v8319_v36 }
 0x6fa   : > { %8379 = vst [vmem:[#allocation7 + $0x20] sm:$0xff] %v8361_v13  ;;  %v8362_v3 = vmax.f32 %v8344_v38, 0.0 }
 0x6fb   : > { %v8395_v52 = vld [vmem:[#allocation7 + $0x10] ss:$2 sm:$0xff]  ;;  %v8413_v55 = vld [vmem:[#allocation7 + $0x11] ss:$2 sm:$0xff]  ;;  %v8267_v47 = vpop.f32.mrb[200].mxu0 }
 0x6fc   : > { %v8429_v23 = vmax.f32 %v8395_v52, %v8413_v55  ;;  %8380 = vst [vmem:[#allocation7 + $0x28] sm:$0xff] %v8362_v3  ;;  %v8320_v63 = vadd.f32 %v8267_v47, %v20607_v11  ;;  %v15324_v62 = vpop.f32.mrb[201].mxu0 }
 0x6fd   : > { %v8270_v5 = vpop.f32.mrb[202].mxu0  ;;  %v8446_v42 = vld [vmem:[#allocation8] sm:$0x1f] }
 0x6fe   : > { %8438 = vst [vmem:[#allocation8 + $0x8] sm:$0xff] %v8429_v23  ;;  %v8345_v46 = vadd.f32 %v20655_v24, %v8320_v63  ;;  %v8321_v31 = vadd.f32 %v8270_v5, %v20610_v29  ;;  %v15325_v18 = vpop.f32.mrb[203].mxu0  ;;  %v16460_v23 = vld [vmem:[%s21634_s5 + $0x50] sm:$0xff]  }
 0x700   : > { %v8363_v44 = vmax.f32 %v8345_v46, 0.0  ;;  %v8346_v30 = vadd.f32 %v20655_v24, %v8321_v31 }
 0x702   : > { %8381 = vst [vmem:[#allocation7 + $0x30] sm:$0xff] %v8363_v44  ;;  %v8364_v50 = vmax.f32 %v8346_v30, 0.0 }
 0x703   : > { %v8397_v15 = vld [vmem:[#allocation7 + $0x20] ss:$2 sm:$0xff]  ;;  %v8415_v43 = vld [vmem:[#allocation7 + $0x21] ss:$2 sm:$0xff]  ;;  %v8275_v59 = vpop.f32.mrb[204].mxu0 }
 0x704   : > { %v8430_v1 = vmax.f32 %v8397_v15, %v8415_v43  ;;  %8382 = vst [vmem:[#allocation7 + $0x38] sm:$0xff] %v8364_v50  ;;  %v8322_v11 = vadd.f32 %v8275_v59, %v20615_v57  ;;  %v15328_v60 = vpop.f32.mrb[205].mxu0 }
 0x705   : > { %v8447_v51 = vld [vmem:[#allocation8 + $0x7] sm:$0x1f]  ;;  %v8278_v21 = vpop.f32.mrb[206].mxu0 }
 0x706   : > { %v8448_v2 = vmax.f32 %v8446_v42, %v8447_v51  ;;  %8439 = vst [vmem:[#allocation8 + $0x10] sm:$0xff] %v8430_v1  ;;  %v8347_v29 = vadd.f32 %v20655_v24, %v8322_v11  ;;  %v8323_v25 = vadd.f32 %v8278_v21, %v20618_v17  ;;  %v15329_v49 = vpop.f32.mrb[207].mxu0  ;;  %v16462_v42 = vld [vmem:[%s21634_s5 + $0x60] sm:$0xff]  }
 0x708   : > { %8449 = vst [vmem:[#allocation9] sm:$0x1f] %v8448_v2  ;;  %v8365_v22 = vmax.f32 %v8347_v29, 0.0  ;;  %v8348_v7 = vadd.f32 %v20655_v24, %v8323_v25 }
 0x70a   : > { %8383 = vst [vmem:[#allocation7 + $0x40] sm:$0xff] %v8365_v22  ;;  %v8366_v12 = vmax.f32 %v8348_v7, 0.0 }
 0x70b   : > { %v8399_v54 = vld [vmem:[#allocation7 + $0x30] ss:$2 sm:$0xff]  ;;  %v8417_v14 = vld [vmem:[#allocation7 + $0x31] ss:$2 sm:$0xff]  ;;  %v8283_v57 = vpop.f32.mrb[208].mxu0 }
 0x70c   : > { %v8431_v8 = vmax.f32 %v8399_v54, %v8417_v14  ;;  %8384 = vst [vmem:[#allocation7 + $0x48] sm:$0xff] %v8366_v12  ;;  %v8324_v58 = vadd.f32 %v8283_v57, %v20623_v61  ;;  %v15332_v32 = vpop.f32.mrb[209].mxu0 }
 0x70d   : > { %v8286_v45 = vpop.f32.mrb[210].mxu0  ;;  %v8450_v13 = vld [vmem:[#allocation8 + $0xe] sm:$0x1f] }
 0x70e   : > { %8440 = vst [vmem:[#allocation8 + $0x18] sm:$0xff] %v8431_v8  ;;  %v8349_v28 = vadd.f32 %v20655_v24, %v8324_v58  ;;  %v8325_v17 = vadd.f32 %v8286_v45, %v20626_v16  ;;  %v15333_v40 = vpop.f32.mrb[211].mxu0  ;;  %v16459_v16 = vld [vmem:[%s21634_s5 + $0x48] sm:$0xff]   ;;  %v16464_v8 = vld [vmem:[%s21634_s5 + $0x70] sm:$0xff]  }
 0x70f   : > { %v8467_v0 = vld [vmem:[#allocation9] sm:$0x1]  ;;  %v8574_v40 = vld [vmem:[#allocation9 + $0x1] sm:$0x1] }
 0x710   : > { %v8367_v9 = vmax.f32 %v8349_v28, 0.0  ;;  %v8350_v41 = vadd.f32 %v20655_v24, %v8325_v17  ;;  %v8468_v39 = vpack.c.bf16 %v8467_v0, %v8467_v0 }
 0x712   : > { %8385 = vst [vmem:[#allocation7 + $0x50] sm:$0xff] %v8367_v9  ;;  %v8368_v4 = vmax.f32 %v8350_v41, 0.0  ;;  %15363 = vmatmul.mubr.bf16.vlgmr.msra.gmra.mrb[104].mxu1 %v8468_v39  ;;  %v16466_v9 = vld [vmem:[%s21634_s5 + $0x80] sm:$0xff]   ;;  %v8575_v41 = vpack.c.bf16 %v8574_v40, %v8574_v40  ;;  %v16467_v39 = vld [vmem:[%s21634_s5 + $0x88] sm:$0xff]   ;;  %v16508_v40 = vld [vmem:[%s21634_s5 + $0x1d0] sm:$0xff]  }
 0x713   : > { %v8401_v61 = vld [vmem:[#allocation7 + $0x40] ss:$2 sm:$0xff]  ;;  %v8419_v35 = vld [vmem:[#allocation7 + $0x41] ss:$2 sm:$0xff]  ;;  %15367 = vmatpush3.bf16.msra.mxu1 %v16458_v20  ;;  %v8291_v34 = vpop.f32.mrb[212].mxu0  ;;  %15382 = vmatprep.mubr.msk.bf16.mxu1 %vm16790_vm0, %v21707_v53 }
 0x714   : > { %v8432_v48 = vmax.f32 %v8401_v61, %v8419_v35  ;;  %8386 = vst [vmem:[#allocation7 + $0x58] sm:$0xff] %v8368_v4  ;;  %v8326_v6 = vadd.f32 %v8291_v34, %v20631_v56  ;;  %v15336_v36 = vpop.f32.mrb[213].mxu0  ;;  %15368 = vmatprep.subr.bf16.mxu1 %v21707_v53  ;;  %v16468_v34 = vld [vmem:[%s21634_s5 + $0x90] sm:$0xff]  }
 0x715   : > { %v8294_v27 = vpop.f32.mrb[214].mxu0  ;;  %v8451_v38 = vld [vmem:[#allocation8 + $0x15] sm:$0x1f] }
 0x716   : > { %8441 = vst [vmem:[#allocation8 + $0x20] sm:$0xff] %v8432_v48  ;;  %v8351_v3 = vadd.f32 %v20655_v24, %v8326_v6  ;;  %v8327_v52 = vadd.f32 %v8294_v27, %v20634_v19  ;;  %v15337_v55 = vpop.f32.mrb[215].mxu0  ;;  %v8452_v47 = vmax.f32 %v8450_v13, %v8451_v38  ;;  %v16461_v19 = vld [vmem:[%s21634_s5 + $0x58] sm:$0xff]   ;;  %v16470_v27 = vld [vmem:[%s21634_s5 + $0xa0] sm:$0xff]   ;;  %v16471_v13 = vld [vmem:[%s21634_s5 + $0xa8] sm:$0xff]  }
 0x717   : > { %15369 = vmatpush3.bf16.msra.mxu1 %v16459_v16  ;;  %v16469_v16 = vld [vmem:[%s21634_s5 + $0x98] sm:$0xff]   ;;  %v16472_v38 = vld [vmem:[%s21634_s5 + $0xb0] sm:$0xff]   ;;  %v16474_v55 = vld [vmem:[%s21634_s5 + $0xc0] sm:$0xff]  }
 0x718   : > { %v8369_v63 = vmax.f32 %v8351_v3, 0.0  ;;  %v8352_v56 = vadd.f32 %v20655_v24, %v8327_v52  ;;  %15370 = vmatprep.subr.bf16.mxu1 %v21707_v53  ;;  %8453 = vst [vmem:[#allocation9 + $0x8] sm:$0x1f] %v8452_v47  ;;  %v16473_v3 = vld [vmem:[%s21634_s5 + $0xb8] sm:$0xff]   ;;  %v8682_v52 = vld [vmem:[#allocation9 + $0x2] sm:$0x1] }
 0x719   : > { %v8683_v47 = vpack.c.bf16 %v8682_v52, %v8682_v52  ;;  %v16523_v52 = vld [vmem:[%s21634_s5 + $0x248] sm:$0xff]  }
 0x71a   : > { %8387 = vst [vmem:[#allocation7 + $0x60] sm:$0xff] %v8369_v63  ;;  %v8370_v62 = vmax.f32 %v8352_v56, 0.0  ;;  %v16476_v63 = vld [vmem:[%s21634_s5 + $0xd0] sm:$0xff]   ;;  %v16477_v56 = vld [vmem:[%s21634_s5 + $0xd8] sm:$0xff]  }
 0x71b   : > { %v8403_v5 = vld [vmem:[#allocation7 + $0x50] ss:$2 sm:$0xff]  ;;  %v8421_v46 = vld [vmem:[#allocation7 + $0x51] ss:$2 sm:$0xff]  ;;  %15371 = vmatpush3.bf16.msra.mxu1 %v16460_v23  ;;  %v8299_v31 = vpop.f32.mrb[216].mxu0  ;;  %v16475_v23 = vld [vmem:[%s21634_s5 + $0xc8] sm:$0xff]  }
 0x71c   : > { %v8433_v18 = vmax.f32 %v8403_v5, %v8421_v46  ;;  %8388 = vst [vmem:[#allocation7 + $0x68] sm:$0xff] %v8370_v62  ;;  %v8328_v44 = vadd.f32 %v8299_v31, %v20639_v10  ;;  %v15340_v30 = vpop.f32.mrb[217].mxu0  ;;  %15372 = vmatprep.subr.bf16.mxu1 %v21707_v53  ;;  %v16478_v62 = vld [vmem:[%s21634_s5 + $0xe0] sm:$0xff]   ;;  %v16479_v5 = vld [vmem:[%s21634_s5 + $0xe8] sm:$0xff]   ;;  %v16480_v46 = vld [vmem:[%s21634_s5 + $0xf0] sm:$0xff]  }
 0x71d   : > { %v8302_v50 = vpop.f32.mrb[218].mxu0  ;;  %v8454_v15 = vld [vmem:[#allocation8 + $0x1c] sm:$0x1f]  ;;  %v8455_v43 = vld [vmem:[#allocation8 + $0x23] sm:$0x1f]  ;;  %v16483_v30 = vld [vmem:[%s21634_s5 + $0x108] sm:$0xff]  }
 0x71e   : > { %8442 = vst [vmem:[#allocation8 + $0x28] sm:$0xff] %v8433_v18  ;;  %v8353_v59 = vadd.f32 %v20655_v24, %v8328_v44  ;;  %v8329_v1 = vadd.f32 %v8302_v50, %v20642_v37  ;;  %v15341_v11 = vpop.f32.mrb[219].mxu0  ;;  %v8456_v60 = vmax.f32 %v8454_v15, %v8455_v43  ;;  %v16463_v37 = vld [vmem:[%s21634_s5 + $0x68] sm:$0xff]   ;;  %v16481_v31 = vld [vmem:[%s21634_s5 + $0xf8] sm:$0xff]   ;;  %v16482_v18 = vld [vmem:[%s21634_s5 + $0x100] sm:$0xff]  }
 0x71f   : > { %15373 = vmatpush3.bf16.msra.mxu1 %v16461_v19  ;;  %v8790_v19 = vld [vmem:[#allocation9 + $0x3] sm:$0x1]  ;;  %v16484_v50 = vld [vmem:[%s21634_s5 + $0x110] sm:$0xff]   ;;  %v16485_v15 = vld [vmem:[%s21634_s5 + $0x118] sm:$0xff]  }
 0x720   : > { %v8371_v51 = vmax.f32 %v8353_v59, 0.0  ;;  %v8354_v10 = vadd.f32 %v20655_v24, %v8329_v1  ;;  %15374 = vmatprep.subr.bf16.mxu1 %v21707_v53  ;;  %8457 = vst [vmem:[#allocation9 + $0x10] sm:$0x1f] %v8456_v60  ;;  %v8791_v44 = vpack.c.bf16 %v8790_v19, %v8790_v19  ;;  %v16486_v43 = vld [vmem:[%s21634_s5 + $0x120] sm:$0xff]   ;;  %v16487_v59 = vld [vmem:[%s21634_s5 + $0x128] sm:$0xff]   ;;  %v16488_v1 = vld [vmem:[%s21634_s5 + $0x130] sm:$0xff]  }
 0x721   : > { %v16489_v11 = vld [vmem:[%s21634_s5 + $0x138] sm:$0xff]   ;;  %v8898_v60 = vld [vmem:[#allocation9 + $0x4] sm:$0x1]  ;;  %v16531_v19 = vld [vmem:[%s21634_s5 + $0x288] sm:$0xff]  }
 0x722   : > { %8389 = vst [vmem:[#allocation7 + $0x70] sm:$0xff] %v8371_v51  ;;  %v8372_v21 = vmax.f32 %v8354_v10, 0.0  ;;  %v8899_v51 = vpack.c.bf16 %v8898_v60, %v8898_v60  ;;  %v16491_v10 = vld [vmem:[%s21634_s5 + $0x148] sm:$0xff]  }
 0x723   : > { %v8405_v2 = vld [vmem:[#allocation7 + $0x60] ss:$2 sm:$0xff]  ;;  %v8423_v29 = vld [vmem:[#allocation7 + $0x61] ss:$2 sm:$0xff]  ;;  %15375 = vmatpush3.bf16.msra.mxu1 %v16462_v42  ;;  %v8307_v25 = vpop.f32.mrb[220].mxu0  ;;  %v16490_v42 = vld [vmem:[%s21634_s5 + $0x140] sm:$0xff]  }
 0x724   : > { %v8434_v49 = vmax.f32 %v8405_v2, %v8423_v29  ;;  %8390 = vst [vmem:[#allocation7 + $0x78] sm:$0xff] %v8372_v21  ;;  %v8330_v22 = vadd.f32 %v8307_v25, %v20647_v26  ;;  %v15344_v7 = vpop.f32.mrb[221].mxu0  ;;  %15376 = vmatprep.subr.bf16.mxu1 %v21707_v53  ;;  %v16492_v21 = vld [vmem:[%s21634_s5 + $0x150] sm:$0xff]   ;;  %v16493_v2 = vld [vmem:[%s21634_s5 + $0x158] sm:$0xff]   ;;  %v16494_v29 = vld [vmem:[%s21634_s5 + $0x160] sm:$0xff]  }
 0x725   : > { %v8310_v12 = vpop.f32.mrb[222].mxu0  ;;  %v8458_v0 = vld [vmem:[#allocation8 + $0x2a] sm:$0x1f]  ;;  %v16495_v25 = vld [vmem:[%s21634_s5 + $0x168] sm:$0xff]  }
 0x726   : > { %8443 = vst [vmem:[#allocation8 + $0x30] sm:$0xff] %v8434_v49  ;;  %v8355_v54 = vadd.f32 %v20655_v24, %v8330_v22  ;;  %v8331_v14 = vadd.f32 %v8310_v12, %v20650_v33  ;;  %v15345_v57 = vpop.f32.mrb[223].mxu0  ;;  %v16465_v33 = vld [vmem:[%s21634_s5 + $0x78] sm:$0xff]   ;;  %v9006_v22 = vld [vmem:[#allocation9 + $0x8] sm:$0x1]  ;;  %v16498_v7 = vld [vmem:[%s21634_s5 + $0x180] sm:$0xff]  }
 0x727   : > { %15377 = vmatpush3.bf16.msra.mxu1 %v16463_v37  ;;  %v16496_v37 = vld [vmem:[%s21634_s5 + $0x170] sm:$0xff]   ;;  %v16497_v49 = vld [vmem:[%s21634_s5 + $0x178] sm:$0xff]   ;;  %v9007_v12 = vpack.c.bf16 %v9006_v22, %v9006_v22  ;;  %v16539_v60 = vld [vmem:[%s21634_s5 + $0x2c8] sm:$0xff]  }
 0x728   : > { %v8373_v58 = vmax.f32 %v8355_v54, 0.0  ;;  %v8356_v32 = vadd.f32 %v20655_v24, %v8331_v14  ;;  %15378 = vmatprep.subr.bf16.mxu1 %v21707_v53  ;;  %v16499_v54 = vld [vmem:[%s21634_s5 + $0x188] sm:$0xff]   ;;  %v16500_v14 = vld [vmem:[%s21634_s5 + $0x190] sm:$0xff]   ;;  %v16501_v57 = vld [vmem:[%s21634_s5 + $0x198] sm:$0xff]  }
 0x729   : > { %v16547_v22 = vld [vmem:[%s21634_s5 + $0x308] sm:$0xff]  }
 0x72a   : > { %8391 = vst [vmem:[#allocation7 + $0x80] sm:$0xff] %v8373_v58  ;;  %v8374_v26 = vmax.f32 %v8356_v32, 0.0  ;;  %v16503_v58 = vld [vmem:[%s21634_s5 + $0x1a8] sm:$0xff]   ;;  %v16504_v32 = vld [vmem:[%s21634_s5 + $0x1b0] sm:$0xff]  }
 0x72b   : > { %v8407_v45 = vld [vmem:[#allocation7 + $0x70] ss:$2 sm:$0xff]  ;;  %v8425_v28 = vld [vmem:[#allocation7 + $0x71] ss:$2 sm:$0xff]  ;;  %15379 = vmatpush3.bf16.msra.mxu1 %v16464_v8 }
 0x72c   : > { %v8435_v17 = vmax.f32 %v8407_v45, %v8425_v28  ;;  %8392 = vst [vmem:[#allocation7 + $0x88] sm:$0xf] %v8374_v26  ;;  %15380 = vmatprep.subr.bf16.mxu1 %v21707_v53  ;;  %v16502_v8 = vld [vmem:[%s21634_s5 + $0x1a0] sm:$0xff]   ;;  %v16505_v26 = vld [vmem:[%s21634_s5 + $0x1b8] sm:$0xff]   ;;  %v9114_v45 = vld [vmem:[#allocation9 + $0x9] sm:$0x1] }
 0x72d   : > { %v8459_v20 = vld [vmem:[#allocation8 + $0x31] sm:$0x1f]  ;;  %v16506_v28 = vld [vmem:[%s21634_s5 + $0x1c0] sm:$0xff]  }
 0x72e   : > { %8444 = vst [vmem:[#allocation8 + $0x38] sm:$0xff] %v8435_v17  ;;  %v8460_v24 = vmax.f32 %v8458_v0, %v8459_v20  ;;  %v16507_v17 = vld [vmem:[%s21634_s5 + $0x1c8] sm:$0xff]   ;;  %v16509_v0 = vld [vmem:[%s21634_s5 + $0x1d8] sm:$0xff]   ;;  %v16510_v20 = vld [vmem:[%s21634_s5 + $0x1e0] sm:$0xff]  }
 0x72f   : > { %15381 = vmatpush3.bf16.msra.mxu1 %v16465_v33  ;;  %v9115_v33 = vpack.c.bf16 %v9114_v45, %v9114_v45  ;;  %v16555_v45 = vld [vmem:[%s21634_s5 + $0x348] sm:$0xff]  }
 0x730   : > { %15386 = vmatprep.subr.bf16.mxu1 %v21707_v53  ;;  %8461 = vst [vmem:[#allocation9 + $0x18] sm:$0x1f] %v8460_v24  ;;  %v16511_v24 = vld [vmem:[%s21634_s5 + $0x1e8] sm:$0xff]  }
 0x732   : > { %15383 = vmatmul.mubr.bf16.vlgmr.msra.gmra.mrb[104].mxu1 %v8575_v41  ;;  %v16513_v41 = vld [vmem:[%s21634_s5 + $0x1f8] sm:$0xff]  }
 0x733   : > { %v8409_v4 = vld [vmem:[#allocation7 + $0x80] ss:$2 sm:$0x3f]  ;;  %v8427_v61 = vld [vmem:[#allocation7 + $0x81] ss:$2 sm:$0x3f]  ;;  %15387 = vmatpush3.bf16.msra.mxu1 %v16466_v9  ;;  %15402 = vmatprep.mubr.msk.bf16.mxu1 %vm16790_vm0, %v21707_v53 }
 0x734   : > { %v8436_v35 = vmax.f32 %v8409_v4, %v8427_v61  ;;  %15388 = vmatprep.subr.bf16.mxu1 %v21707_v53  ;;  %v16512_v9 = vld [vmem:[%s21634_s5 + $0x1f0] sm:$0xff]   ;;  %v16514_v4 = vld [vmem:[%s21634_s5 + $0x200] sm:$0xff]  }
 0x735   : > { %v8462_v48 = vld [vmem:[#allocation8 + $0x38] sm:$0x1f] }
 0x736   : > { %8445 = vst [vmem:[#allocation8 + $0x40] sm:$0x3f] %v8436_v35  ;;  %v16515_v35 = vld [vmem:[%s21634_s5 + $0x208] sm:$0xff]  }
 0x737   : > { %15389 = vmatpush3.bf16.msra.mxu1 %v16467_v39  ;;  %v9222_v39 = vld [vmem:[#allocation9 + $0xa] sm:$0x1] }
 0x738   : > { %15390 = vmatprep.subr.bf16.mxu1 %v21707_v53  ;;  %v9223_v61 = vpack.c.bf16 %v9222_v39, %v9222_v39  ;;  %v16563_v39 = vld [vmem:[%s21634_s5 + $0x388] sm:$0xff]  }
 0x73b   : > { %15391 = vmatpush3.bf16.msra.mxu1 %v16468_v34  ;;  %v16516_v34 = vld [vmem:[%s21634_s5 + $0x210] sm:$0xff]  }
 0x73c   : > { %15392 = vmatprep.subr.bf16.mxu1 %v21707_v53 }
 0x73d   : > { %v8463_v6 = vld [vmem:[#allocation8 + $0x3f] sm:$0x1f] }
 0x73e   : > { %v8464_v36 = vmax.f32 %v8462_v48, %v8463_v6  ;;  %v16518_v48 = vld [vmem:[%s21634_s5 + $0x220] sm:$0xff]   ;;  %v16519_v6 = vld [vmem:[%s21634_s5 + $0x228] sm:$0xff]  }
 0x73f   : > { %15393 = vmatpush3.bf16.msra.mxu1 %v16469_v16  ;;  %v16517_v16 = vld [vmem:[%s21634_s5 + $0x218] sm:$0xff]  }
 0x740   : > { %15394 = vmatprep.subr.bf16.mxu1 %v21707_v53  ;;  %8465 = vst [vmem:[#allocation9 + $0x20] sm:$0x1f] %v8464_v36  ;;  %v16520_v36 = vld [vmem:[%s21634_s5 + $0x230] sm:$0xff]  }
 0x743   : > { %15395 = vmatpush3.bf16.msra.mxu1 %v16470_v27  ;;  %v16521_v27 = vld [vmem:[%s21634_s5 + $0x238] sm:$0xff]  }
 0x744   : > { %15396 = vmatprep.subr.bf16.mxu1 %v21707_v53 }
 0x747   : > { %15397 = vmatpush3.bf16.msra.mxu1 %v16471_v13  ;;  %v9330_v13 = vld [vmem:[#allocation9 + $0xb] sm:$0x1] }
 0x748   : > { %15398 = vmatprep.subr.bf16.mxu1 %v21707_v53 }
 0x74b   : > { %15399 = vmatpush3.bf16.msra.mxu1 %v16472_v38  ;;  %v16522_v38 = vld [vmem:[%s21634_s5 + $0x240] sm:$0xff]  }
 0x74c   : > { %15400 = vmatprep.subr.bf16.mxu1 %v21707_v53 }
 0x74f   : > { %15401 = vmatpush3.bf16.msra.mxu1 %v16473_v3  ;;  %v9331_v3 = vpack.c.bf16 %v9330_v13, %v9330_v13  ;;  %v16571_v13 = vld [vmem:[%s21634_s5 + $0x3c8] sm:$0xff]  }
 0x750   : > { %15406 = vmatprep.subr.bf16.mxu1 %v21707_v53 }
 0x752   : > { %15403 = vmatmul.mubr.bf16.vlgmr.msra.gmra.mrb[104].mxu1 %v8683_v47  ;;  %v16525_v47 = vld [vmem:[%s21634_s5 + $0x258] sm:$0xff]  }
 0x753   : > { %15407 = vmatpush3.bf16.msra.mxu1 %v16474_v55  ;;  %15422 = vmatprep.mubr.msk.bf16.mxu1 %vm16790_vm0, %v21707_v53  ;;  %v16524_v55 = vld [vmem:[%s21634_s5 + $0x250] sm:$0xff]  }
 0x754   : > { %15408 = vmatprep.subr.bf16.mxu1 %v21707_v53 }
 0x757   : > { %15409 = vmatpush3.bf16.msra.mxu1 %v16475_v23  ;;  %v16526_v23 = vld [vmem:[%s21634_s5 + $0x260] sm:$0xff]  }
 0x758   : > { %15410 = vmatprep.subr.bf16.mxu1 %v21707_v53 }
 0x75b   : > { %15411 = vmatpush3.bf16.msra.mxu1 %v16476_v63  ;;  %v16527_v63 = vld [vmem:[%s21634_s5 + $0x268] sm:$0xff]  }
 0x75c   : > { %15412 = vmatprep.subr.bf16.mxu1 %v21707_v53 }
 0x75f   : > { %15413 = vmatpush3.bf16.msra.mxu1 %v16477_v56  ;;  %v16528_v56 = vld [vmem:[%s21634_s5 + $0x270] sm:$0xff]  }
 0x760   : > { %15414 = vmatprep.subr.bf16.mxu1 %v21707_v53 }
 0x763   : > { %15415 = vmatpush3.bf16.msra.mxu1 %v16478_v62  ;;  %v16529_v62 = vld [vmem:[%s21634_s5 + $0x278] sm:$0xff]  }
 0x764   : > { %15416 = vmatprep.subr.bf16.mxu1 %v21707_v53 }
 0x767   : > { %15417 = vmatpush3.bf16.msra.mxu1 %v16479_v5  ;;  %v9438_v5 = vld [vmem:[#allocation9 + $0xc] sm:$0x1] }
 0x768   : > { %15418 = vmatprep.subr.bf16.mxu1 %v21707_v53 }
 0x76b   : > { %15419 = vmatpush3.bf16.msra.mxu1 %v16480_v46  ;;  %v16530_v46 = vld [vmem:[%s21634_s5 + $0x280] sm:$0xff]  }
 0x76c   : > { %15420 = vmatprep.subr.bf16.mxu1 %v21707_v53 }
 0x76f   : > { %15421 = vmatpush3.bf16.msra.mxu1 %v16481_v31  ;;  %v9439_v31 = vpack.c.bf16 %v9438_v5, %v9438_v5  ;;  %v16579_v5 = vld [vmem:[%s21634_s5 + $0x408] sm:$0xff]  }
 0x770   : > { %15426 = vmatprep.subr.bf16.mxu1 %v21707_v53 }
 0x772   : > { %15423 = vmatmul.mubr.bf16.vlgmr.msra.gmra.mrb[104].mxu1 %v8791_v44  ;;  %v16533_v44 = vld [vmem:[%s21634_s5 + $0x298] sm:$0xff]  }
 0x773   : > { %15427 = vmatpush3.bf16.msra.mxu1 %v16482_v18  ;;  %15442 = vmatprep.mubr.msk.bf16.mxu1 %vm16790_vm0, %v21707_v53  ;;  %v16532_v18 = vld [vmem:[%s21634_s5 + $0x290] sm:$0xff]  }
 0x774   : > { %15428 = vmatprep.subr.bf16.mxu1 %v21707_v53 }
 0x777   : > { %15429 = vmatpush3.bf16.msra.mxu1 %v16483_v30  ;;  %v16534_v30 = vld [vmem:[%s21634_s5 + $0x2a0] sm:$0xff]  }
 0x778   : > { %15430 = vmatprep.subr.bf16.mxu1 %v21707_v53 }
 0x77b   : > { %15431 = vmatpush3.bf16.msra.mxu1 %v16484_v50  ;;  %v16535_v50 = vld [vmem:[%s21634_s5 + $0x2a8] sm:$0xff]  }
 0x77c   : > { %15432 = vmatprep.subr.bf16.mxu1 %v21707_v53 }
 0x77f   : > { %15433 = vmatpush3.bf16.msra.mxu1 %v16485_v15  ;;  %v16536_v15 = vld [vmem:[%s21634_s5 + $0x2b0] sm:$0xff]  }
 0x780   : > { %15434 = vmatprep.subr.bf16.mxu1 %v21707_v53 }
 0x783   : > { %15435 = vmatpush3.bf16.msra.mxu1 %v16486_v43  ;;  %v16537_v43 = vld [vmem:[%s21634_s5 + $0x2b8] sm:$0xff]  }
 0x784   : > { %15436 = vmatprep.subr.bf16.mxu1 %v21707_v53 }
 0x787   : > { %15437 = vmatpush3.bf16.msra.mxu1 %v16487_v59  ;;  %v9546_v59 = vld [vmem:[#allocation9 + $0x10] sm:$0x1] }
 0x788   : > { %15438 = vmatprep.subr.bf16.mxu1 %v21707_v53 }
 0x78b   : > { %15439 = vmatpush3.bf16.msra.mxu1 %v16488_v1  ;;  %v16538_v1 = vld [vmem:[%s21634_s5 + $0x2c0] sm:$0xff]  }
 0x78c   : > { %15440 = vmatprep.subr.bf16.mxu1 %v21707_v53 }
 0x78f   : > { %15441 = vmatpush3.bf16.msra.mxu1 %v16489_v11  ;;  %v9547_v11 = vpack.c.bf16 %v9546_v59, %v9546_v59  ;;  %v16587_v59 = vld [vmem:[%s21634_s5 + $0x448] sm:$0xff]  }
 0x790   : > { %15446 = vmatprep.subr.bf16.mxu1 %v21707_v53 }
 0x792   : > { %15443 = vmatmul.mubr.bf16.vlgmr.msra.gmra.mrb[104].mxu1 %v8899_v51  ;;  %v16541_v51 = vld [vmem:[%s21634_s5 + $0x2d8] sm:$0xff]  }
 0x793   : > { %15447 = vmatpush3.bf16.msra.mxu1 %v16490_v42  ;;  %15462 = vmatprep.mubr.msk.bf16.mxu1 %vm16790_vm0, %v21707_v53  ;;  %v16540_v42 = vld [vmem:[%s21634_s5 + $0x2d0] sm:$0xff]  }
 0x794   : > { %15448 = vmatprep.subr.bf16.mxu1 %v21707_v53 }
 0x797   : > { %15449 = vmatpush3.bf16.msra.mxu1 %v16491_v10  ;;  %v16542_v10 = vld [vmem:[%s21634_s5 + $0x2e0] sm:$0xff]  }
 0x798   : > { %15450 = vmatprep.subr.bf16.mxu1 %v21707_v53 }
 0x79b   : > { %15451 = vmatpush3.bf16.msra.mxu1 %v16492_v21  ;;  %v16543_v21 = vld [vmem:[%s21634_s5 + $0x2e8] sm:$0xff]  }
 0x79c   : > { %15452 = vmatprep.subr.bf16.mxu1 %v21707_v53 }
 0x79f   : > { %15453 = vmatpush3.bf16.msra.mxu1 %v16493_v2  ;;  %v16544_v2 = vld [vmem:[%s21634_s5 + $0x2f0] sm:$0xff]  }
 0x7a0   : > { %15454 = vmatprep.subr.bf16.mxu1 %v21707_v53 }
 0x7a3   : > { %15455 = vmatpush3.bf16.msra.mxu1 %v16494_v29  ;;  %v16545_v29 = vld [vmem:[%s21634_s5 + $0x2f8] sm:$0xff]  }
 0x7a4   : > { %15456 = vmatprep.subr.bf16.mxu1 %v21707_v53 }
 0x7a7   : > { %15457 = vmatpush3.bf16.msra.mxu1 %v16495_v25  ;;  %v9654_v25 = vld [vmem:[#allocation9 + $0x11] sm:$0x1] }
 0x7a8   : > { %15458 = vmatprep.subr.bf16.mxu1 %v21707_v53 }
 0x7ab   : > { %15459 = vmatpush3.bf16.msra.mxu1 %v16496_v37  ;;  %v16546_v37 = vld [vmem:[%s21634_s5 + $0x300] sm:$0xff]  }
 0x7ac   : > { %15460 = vmatprep.subr.bf16.mxu1 %v21707_v53 }
 0x7af   : > { %15461 = vmatpush3.bf16.msra.mxu1 %v16497_v49  ;;  %v9655_v49 = vpack.c.bf16 %v9654_v25, %v9654_v25  ;;  %v16595_v25 = vld [vmem:[%s21634_s5 + $0x488] sm:$0xff]  }
 0x7b0   : > { %15466 = vmatprep.subr.bf16.mxu1 %v21707_v53 }
 0x7b2   : > { %15463 = vmatmul.mubr.bf16.vlgmr.msra.gmra.mrb[104].mxu1 %v9007_v12  ;;  %v16549_v12 = vld [vmem:[%s21634_s5 + $0x318] sm:$0xff]  }
 0x7b3   : > { %15467 = vmatpush3.bf16.msra.mxu1 %v16498_v7  ;;  %15482 = vmatprep.mubr.msk.bf16.mxu1 %vm16790_vm0, %v21707_v53  ;;  %v16548_v7 = vld [vmem:[%s21634_s5 + $0x310] sm:$0xff]  }
 0x7b4   : > { %15468 = vmatprep.subr.bf16.mxu1 %v21707_v53 }
 0x7b7   : > { %15469 = vmatpush3.bf16.msra.mxu1 %v16499_v54  ;;  %v16550_v54 = vld [vmem:[%s21634_s5 + $0x320] sm:$0xff]  }
 0x7b8   : > { %15470 = vmatprep.subr.bf16.mxu1 %v21707_v53 }
 0x7bb   : > { %15471 = vmatpush3.bf16.msra.mxu1 %v16500_v14  ;;  %v16551_v14 = vld [vmem:[%s21634_s5 + $0x328] sm:$0xff]  }
 0x7bc   : > { %15472 = vmatprep.subr.bf16.mxu1 %v21707_v53 }
 0x7bf   : > { %15473 = vmatpush3.bf16.msra.mxu1 %v16501_v57  ;;  %v16552_v57 = vld [vmem:[%s21634_s5 + $0x330] sm:$0xff]  }
 0x7c0   : > { %15474 = vmatprep.subr.bf16.mxu1 %v21707_v53 }
 0x7c3   : > { %15475 = vmatpush3.bf16.msra.mxu1 %v16502_v8  ;;  %v16553_v8 = vld [vmem:[%s21634_s5 + $0x338] sm:$0xff]  }
 0x7c4   : > { %15476 = vmatprep.subr.bf16.mxu1 %v21707_v53 }
 0x7c7   : > { %15477 = vmatpush3.bf16.msra.mxu1 %v16503_v58  ;;  %v9762_v58 = vld [vmem:[#allocation9 + $0x12] sm:$0x1] }
 0x7c8   : > { %15478 = vmatprep.subr.bf16.mxu1 %v21707_v53 }
 0x7cb   : > { %15479 = vmatpush3.bf16.msra.mxu1 %v16504_v32  ;;  %v16554_v32 = vld [vmem:[%s21634_s5 + $0x340] sm:$0xff]  }
 0x7cc   : > { %15480 = vmatprep.subr.bf16.mxu1 %v21707_v53 }
 0x7cf   : > { %15481 = vmatpush3.bf16.msra.mxu1 %v16505_v26  ;;  %v9763_v26 = vpack.c.bf16 %v9762_v58, %v9762_v58  ;;  %v16603_v58 = vld [vmem:[%s21634_s5 + $0x4c8] sm:$0xff]  }
 0x7d0   : > { %15486 = vmatprep.subr.bf16.mxu1 %v21707_v53 }
 0x7d2   : > { %15483 = vmatmul.mubr.bf16.vlgmr.msra.gmra.mrb[104].mxu1 %v9115_v33  ;;  %v16557_v33 = vld [vmem:[%s21634_s5 + $0x358] sm:$0xff]  }
 0x7d3   : > { %15487 = vmatpush3.bf16.msra.mxu1 %v16506_v28  ;;  %15502 = vmatprep.mubr.msk.bf16.mxu1 %vm16790_vm0, %v21707_v53  ;;  %v16556_v28 = vld [vmem:[%s21634_s5 + $0x350] sm:$0xff]  }
 0x7d4   : > { %15488 = vmatprep.subr.bf16.mxu1 %v21707_v53 }
 0x7d7   : > { %15489 = vmatpush3.bf16.msra.mxu1 %v16507_v17  ;;  %v16558_v17 = vld [vmem:[%s21634_s5 + $0x360] sm:$0xff]  }
 0x7d8   : > { %15490 = vmatprep.subr.bf16.mxu1 %v21707_v53 }
 0x7db   : > { %15491 = vmatpush3.bf16.msra.mxu1 %v16508_v40  ;;  %v16559_v40 = vld [vmem:[%s21634_s5 + $0x368] sm:$0xff]  }
 0x7dc   : > { %15492 = vmatprep.subr.bf16.mxu1 %v21707_v53 }
 0x7df   : > { %15493 = vmatpush3.bf16.msra.mxu1 %v16509_v0  ;;  %v16560_v0 = vld [vmem:[%s21634_s5 + $0x370] sm:$0xff]  }
 0x7e0   : > { %15494 = vmatprep.subr.bf16.mxu1 %v21707_v53 }
 0x7e3   : > { %15495 = vmatpush3.bf16.msra.mxu1 %v16510_v20  ;;  %v16561_v20 = vld [vmem:[%s21634_s5 + $0x378] sm:$0xff]  }
 0x7e4   : > { %15496 = vmatprep.subr.bf16.mxu1 %v21707_v53 }
 0x7e7   : > { %15497 = vmatpush3.bf16.msra.mxu1 %v16511_v24  ;;  %v9870_v24 = vld [vmem:[#allocation9 + $0x13] sm:$0x1] }
 0x7e8   : > { %15498 = vmatprep.subr.bf16.mxu1 %v21707_v53 }
 0x7eb   : > { %15499 = vmatpush3.bf16.msra.mxu1 %v16512_v9  ;;  %v16562_v9 = vld [vmem:[%s21634_s5 + $0x380] sm:$0xff]  }
 0x7ec   : > { %15500 = vmatprep.subr.bf16.mxu1 %v21707_v53 }
 0x7ef   : > { %15501 = vmatpush3.bf16.msra.mxu1 %v16513_v41  ;;  %v9871_v41 = vpack.c.bf16 %v9870_v24, %v9870_v24  ;;  %v16611_v24 = vld [vmem:[%s21634_s5 + $0x508] sm:$0xff]  }
 0x7f0   : > { %15506 = vmatprep.subr.bf16.mxu1 %v21707_v53 }
 0x7f2   : > { %15503 = vmatmul.mubr.bf16.vlgmr.msra.gmra.mrb[104].mxu1 %v9223_v61  ;;  %v16565_v61 = vld [vmem:[%s21634_s5 + $0x398] sm:$0xff]  }
 0x7f3   : > { %15507 = vmatpush3.bf16.msra.mxu1 %v16514_v4  ;;  %15522 = vmatprep.mubr.msk.bf16.mxu1 %vm16790_vm0, %v21707_v53  ;;  %v16564_v4 = vld [vmem:[%s21634_s5 + $0x390] sm:$0xff]  }
 0x7f4   : > { %15508 = vmatprep.subr.bf16.mxu1 %v21707_v53 }
 0x7f7   : > { %15509 = vmatpush3.bf16.msra.mxu1 %v16515_v35  ;;  %v16566_v35 = vld [vmem:[%s21634_s5 + $0x3a0] sm:$0xff]  }
 0x7f8   : > { %15510 = vmatprep.subr.bf16.mxu1 %v21707_v53 }
 0x7fb   : > { %15511 = vmatpush3.bf16.msra.mxu1 %v16516_v34  ;;  %v16567_v34 = vld [vmem:[%s21634_s5 + $0x3a8] sm:$0xff]  }
 0x7fc   : > { %15512 = vmatprep.subr.bf16.mxu1 %v21707_v53 }
 0x7ff   : > { %15513 = vmatpush3.bf16.msra.mxu1 %v16517_v16  ;;  %v16568_v16 = vld [vmem:[%s21634_s5 + $0x3b0] sm:$0xff]  }
 0x800   : > { %15514 = vmatprep.subr.bf16.mxu1 %v21707_v53 }
 0x803   : > { %15515 = vmatpush3.bf16.msra.mxu1 %v16518_v48  ;;  %v16569_v48 = vld [vmem:[%s21634_s5 + $0x3b8] sm:$0xff]  }
 0x804   : > { %15516 = vmatprep.subr.bf16.mxu1 %v21707_v53 }
 0x807   : > { %15517 = vmatpush3.bf16.msra.mxu1 %v16519_v6  ;;  %v9978_v6 = vld [vmem:[#allocation9 + $0x14] sm:$0x1] }
 0x808   : > { %15518 = vmatprep.subr.bf16.mxu1 %v21707_v53 }
 0x80b   : > { %15519 = vmatpush3.bf16.msra.mxu1 %v16520_v36  ;;  %v16570_v36 = vld [vmem:[%s21634_s5 + $0x3c0] sm:$0xff]  }
 0x80c   : > { %15520 = vmatprep.subr.bf16.mxu1 %v21707_v53 }
 0x80f   : > { %15521 = vmatpush3.bf16.msra.mxu1 %v16521_v27  ;;  %v9979_v27 = vpack.c.bf16 %v9978_v6, %v9978_v6  ;;  %v16650_v6 = vld [vmem:[%s21636_s7] sm:$0xff]  }
 0x810   : > { %15526 = vmatprep.subr.bf16.mxu1 %v21707_v53  ;;  %15847 = vmatpush3.bf16.msra.mxu0 %v16650_v6  ;;  %v11184_v6 = vld [vmem:[%s21637_s8] sm:$0x1] }
 0x811   : > { %15848 = vmatprep.subr.bf16.mxu0 %v21707_v53 }
 0x812   : > { %15523 = vmatmul.mubr.bf16.vlgmr.msra.gmra.mrb[104].mxu1 %v9331_v3  ;;  %v16573_v3 = vld [vmem:[%s21634_s5 + $0x3d8] sm:$0xff]  }
 0x813   : > { %15527 = vmatpush3.bf16.msra.mxu1 %v16522_v38  ;;  %15542 = vmatprep.mubr.msk.bf16.mxu1 %vm16790_vm0, %v21707_v53  ;;  %v16572_v38 = vld [vmem:[%s21634_s5 + $0x3d0] sm:$0xff]  }
 0x814   : > { %15528 = vmatprep.subr.bf16.mxu1 %v21707_v53 }
 0x817   : > { %15529 = vmatpush3.bf16.msra.mxu1 %v16523_v52  ;;  %v16574_v52 = vld [vmem:[%s21634_s5 + $0x3e0] sm:$0xff]  }
 0x818   : > { %15530 = vmatprep.subr.bf16.mxu1 %v21707_v53 }
 0x81b   : > { %15531 = vmatpush3.bf16.msra.mxu1 %v16524_v55  ;;  %v16575_v55 = vld [vmem:[%s21634_s5 + $0x3e8] sm:$0xff]  }
 0x81c   : > { %15532 = vmatprep.subr.bf16.mxu1 %v21707_v53 }
 0x81f   : > { %15533 = vmatpush3.bf16.msra.mxu1 %v16525_v47  ;;  %v16576_v47 = vld [vmem:[%s21634_s5 + $0x3f0] sm:$0xff]  }
 0x820   : > { %15534 = vmatprep.subr.bf16.mxu1 %v21707_v53 }
 0x823   : > { %15535 = vmatpush3.bf16.msra.mxu1 %v16526_v23  ;;  %v16577_v23 = vld [vmem:[%s21634_s5 + $0x3f8] sm:$0xff]  }
 0x824   : > { %15536 = vmatprep.subr.bf16.mxu1 %v21707_v53 }
 0x827   : > { %15537 = vmatpush3.bf16.msra.mxu1 %v16527_v63  ;;  %v10086_v63 = vld [vmem:[#allocation9 + $0x18] sm:$0x1] }
 0x828   : > { %15538 = vmatprep.subr.bf16.mxu1 %v21707_v53 }
 0x82b   : > { %15539 = vmatpush3.bf16.msra.mxu1 %v16528_v56  ;;  %v16578_v56 = vld [vmem:[%s21634_s5 + $0x400] sm:$0xff]  }
 0x82c   : > { %15540 = vmatprep.subr.bf16.mxu1 %v21707_v53 }
 0x82f   : > { %15541 = vmatpush3.bf16.msra.mxu1 %v16529_v62  ;;  %v10087_v62 = vpack.c.bf16 %v10086_v63, %v10086_v63  ;;  %v16655_v63 = vld [vmem:[%s21636_s7 + $0x28] sm:$0xff]  }
 0x830   : > { %15546 = vmatprep.subr.bf16.mxu1 %v21707_v53 }
 0x832   : > { %15543 = vmatmul.mubr.bf16.vlgmr.msra.gmra.mrb[104].mxu1 %v9439_v31  ;;  %v16581_v31 = vld [vmem:[%s21634_s5 + $0x418] sm:$0xff]  }
 0x833   : > { %15547 = vmatpush3.bf16.msra.mxu1 %v16530_v46  ;;  %15562 = vmatprep.mubr.msk.bf16.mxu1 %vm16790_vm0, %v21707_v53  ;;  %v16580_v46 = vld [vmem:[%s21634_s5 + $0x410] sm:$0xff]  }
 0x834   : > { %15548 = vmatprep.subr.bf16.mxu1 %v21707_v53 }
 0x837   : > { %15549 = vmatpush3.bf16.msra.mxu1 %v16531_v19  ;;  %v16582_v19 = vld [vmem:[%s21634_s5 + $0x420] sm:$0xff]  }
 0x838   : > { %15550 = vmatprep.subr.bf16.mxu1 %v21707_v53 }
 0x83b   : > { %15551 = vmatpush3.bf16.msra.mxu1 %v16532_v18  ;;  %v16583_v18 = vld [vmem:[%s21634_s5 + $0x428] sm:$0xff]  }
 0x83c   : > { %15552 = vmatprep.subr.bf16.mxu1 %v21707_v53 }
 0x83f   : > { %15553 = vmatpush3.bf16.msra.mxu1 %v16533_v44  ;;  %v16584_v44 = vld [vmem:[%s21634_s5 + $0x430] sm:$0xff]  }
 0x840   : > { %15554 = vmatprep.subr.bf16.mxu1 %v21707_v53 }
 0x843   : > { %15555 = vmatpush3.bf16.msra.mxu1 %v16534_v30  ;;  %v16585_v30 = vld [vmem:[%s21634_s5 + $0x438] sm:$0xff]  }
 0x844   : > { %15556 = vmatprep.subr.bf16.mxu1 %v21707_v53 }
 0x847   : > { %15557 = vmatpush3.bf16.msra.mxu1 %v16535_v50  ;;  %v10194_v50 = vld [vmem:[#allocation9 + $0x19] sm:$0x1] }
 0x848   : > { %15558 = vmatprep.subr.bf16.mxu1 %v21707_v53 }
 0x84b   : > { %15559 = vmatpush3.bf16.msra.mxu1 %v16536_v15  ;;  %v16586_v15 = vld [vmem:[%s21634_s5 + $0x440] sm:$0xff]  }
 0x84c   : > { %15560 = vmatprep.subr.bf16.mxu1 %v21707_v53 }
 0x84f   : > { %15561 = vmatpush3.bf16.msra.mxu1 %v16537_v43  ;;  %v10195_v43 = vpack.c.bf16 %v10194_v50, %v10194_v50  ;;  %v16629_v50 = vld [vmem:[%s21634_s5 + $0x598] sm:$0xff]  }
 0x850   : > { %15566 = vmatprep.subr.bf16.mxu1 %v21707_v53 }
 0x852   : > { %15563 = vmatmul.mubr.bf16.vlgmr.msra.gmra.mrb[104].mxu1 %v9547_v11  ;;  %v16589_v11 = vld [vmem:[%s21634_s5 + $0x458] sm:$0xff]  }
 0x853   : > { %15567 = vmatpush3.bf16.msra.mxu1 %v16538_v1  ;;  %15582 = vmatprep.mubr.msk.bf16.mxu1 %vm16790_vm0, %v21707_v53  ;;  %v16588_v1 = vld [vmem:[%s21634_s5 + $0x450] sm:$0xff]  }
 0x854   : > { %15568 = vmatprep.subr.bf16.mxu1 %v21707_v53 }
 0x857   : > { %15569 = vmatpush3.bf16.msra.mxu1 %v16539_v60  ;;  %v16590_v60 = vld [vmem:[%s21634_s5 + $0x460] sm:$0xff]  }
 0x858   : > { %15570 = vmatprep.subr.bf16.mxu1 %v21707_v53 }
 0x85b   : > { %15571 = vmatpush3.bf16.msra.mxu1 %v16540_v42  ;;  %v16591_v42 = vld [vmem:[%s21634_s5 + $0x468] sm:$0xff]  }
 0x85c   : > { %15572 = vmatprep.subr.bf16.mxu1 %v21707_v53 }
 0x85f   : > { %15573 = vmatpush3.bf16.msra.mxu1 %v16541_v51  ;;  %v16592_v51 = vld [vmem:[%s21634_s5 + $0x470] sm:$0xff]  }
 0x860   : > { %15574 = vmatprep.subr.bf16.mxu1 %v21707_v53 }
 0x863   : > { %15575 = vmatpush3.bf16.msra.mxu1 %v16542_v10  ;;  %v16593_v10 = vld [vmem:[%s21634_s5 + $0x478] sm:$0xff]  }
 0x864   : > { %15576 = vmatprep.subr.bf16.mxu1 %v21707_v53 }
 0x867   : > { %15577 = vmatpush3.bf16.msra.mxu1 %v16543_v21  ;;  %v10302_v21 = vld [vmem:[#allocation9 + $0x1a] sm:$0x1] }
 0x868   : > { %15578 = vmatprep.subr.bf16.mxu1 %v21707_v53 }
 0x86b   : > { %15579 = vmatpush3.bf16.msra.mxu1 %v16544_v2  ;;  %v16594_v2 = vld [vmem:[%s21634_s5 + $0x480] sm:$0xff]  }
 0x86c   : > { %15580 = vmatprep.subr.bf16.mxu1 %v21707_v53 }
 0x86f   : > { %15581 = vmatpush3.bf16.msra.mxu1 %v16545_v29  ;;  %v10303_v29 = vpack.c.bf16 %v10302_v21, %v10302_v21  ;;  %v16637_v21 = vld [vmem:[%s21634_s5 + $0x5d8] sm:$0xff]  }
 0x870   : > { %15586 = vmatprep.subr.bf16.mxu1 %v21707_v53 }
 0x872   : > { %15583 = vmatmul.mubr.bf16.vlgmr.msra.gmra.mrb[104].mxu1 %v9655_v49  ;;  %v16597_v49 = vld [vmem:[%s21634_s5 + $0x498] sm:$0xff]  }
 0x873   : > { %15587 = vmatpush3.bf16.msra.mxu1 %v16546_v37  ;;  %15602 = vmatprep.mubr.msk.bf16.mxu1 %vm16790_vm0, %v21707_v53  ;;  %v16596_v37 = vld [vmem:[%s21634_s5 + $0x490] sm:$0xff]  }
 0x874   : > { %15588 = vmatprep.subr.bf16.mxu1 %v21707_v53 }
 0x877   : > { %15589 = vmatpush3.bf16.msra.mxu1 %v16547_v22  ;;  %v16598_v22 = vld [vmem:[%s21634_s5 + $0x4a0] sm:$0xff]  }
 0x878   : > { %15590 = vmatprep.subr.bf16.mxu1 %v21707_v53 }
 0x87b   : > { %15591 = vmatpush3.bf16.msra.mxu1 %v16548_v7  ;;  %v16599_v7 = vld [vmem:[%s21634_s5 + $0x4a8] sm:$0xff]  }
 0x87c   : > { %15592 = vmatprep.subr.bf16.mxu1 %v21707_v53 }
 0x87f   : > { %15593 = vmatpush3.bf16.msra.mxu1 %v16549_v12  ;;  %v16600_v12 = vld [vmem:[%s21634_s5 + $0x4b0] sm:$0xff]  }
 0x880   : > { %15594 = vmatprep.subr.bf16.mxu1 %v21707_v53 }
 0x883   : > { %15595 = vmatpush3.bf16.msra.mxu1 %v16550_v54  ;;  %v16601_v54 = vld [vmem:[%s21634_s5 + $0x4b8] sm:$0xff]  }
 0x884   : > { %15596 = vmatprep.subr.bf16.mxu1 %v21707_v53 }
 0x887   : > { %15597 = vmatpush3.bf16.msra.mxu1 %v16551_v14  ;;  %v10410_v14 = vld [vmem:[#allocation9 + $0x1b] sm:$0x1] }
 0x888   : > { %15598 = vmatprep.subr.bf16.mxu1 %v21707_v53 }
 0x88b   : > { %15599 = vmatpush3.bf16.msra.mxu1 %v16552_v57  ;;  %v16602_v57 = vld [vmem:[%s21634_s5 + $0x4c0] sm:$0xff]  }
 0x88c   : > { %15600 = vmatprep.subr.bf16.mxu1 %v21707_v53 }
 0x88f   : > { %15601 = vmatpush3.bf16.msra.mxu1 %v16553_v8  ;;  %v10411_v8 = vpack.c.bf16 %v10410_v14, %v10410_v14  ;;  %v16645_v14 = vld [vmem:[%s21634_s5 + $0x618] sm:$0xff]  }
 0x890   : > { %15606 = vmatprep.subr.bf16.mxu1 %v21707_v53 }
 0x892   : > { %15603 = vmatmul.mubr.bf16.vlgmr.msra.gmra.mrb[104].mxu1 %v9763_v26  ;;  %v16605_v26 = vld [vmem:[%s21634_s5 + $0x4d8] sm:$0xff]  }
 0x893   : > { %15607 = vmatpush3.bf16.msra.mxu1 %v16554_v32  ;;  %15622 = vmatprep.mubr.msk.bf16.mxu1 %vm16790_vm0, %v21707_v53  ;;  %v16604_v32 = vld [vmem:[%s21634_s5 + $0x4d0] sm:$0xff]  }
 0x894   : > { %15608 = vmatprep.subr.bf16.mxu1 %v21707_v53 }
 0x897   : > { %15609 = vmatpush3.bf16.msra.mxu1 %v16555_v45  ;;  %v16606_v45 = vld [vmem:[%s21634_s5 + $0x4e0] sm:$0xff]  }
 0x898   : > { %15610 = vmatprep.subr.bf16.mxu1 %v21707_v53 }
 0x89b   : > { %15611 = vmatpush3.bf16.msra.mxu1 %v16556_v28  ;;  %v16607_v28 = vld [vmem:[%s21634_s5 + $0x4e8] sm:$0xff]  }
 0x89c   : > { %15612 = vmatprep.subr.bf16.mxu1 %v21707_v53 }
 0x89f   : > { %15613 = vmatpush3.bf16.msra.mxu1 %v16557_v33  ;;  %v16608_v33 = vld [vmem:[%s21634_s5 + $0x4f0] sm:$0xff]  }
 0x8a0   : > { %15614 = vmatprep.subr.bf16.mxu1 %v21707_v53 }
 0x8a3   : > { %15615 = vmatpush3.bf16.msra.mxu1 %v16558_v17  ;;  %v16609_v17 = vld [vmem:[%s21634_s5 + $0x4f8] sm:$0xff]  }
 0x8a4   : > { %15616 = vmatprep.subr.bf16.mxu1 %v21707_v53 }
 0x8a7   : > { %15617 = vmatpush3.bf16.msra.mxu1 %v16559_v40  ;;  %v10518_v40 = vld [vmem:[#allocation9 + $0x1c] sm:$0x1] }
 0x8a8   : > { %15618 = vmatprep.subr.bf16.mxu1 %v21707_v53 }
 0x8ab   : > { %15619 = vmatpush3.bf16.msra.mxu1 %v16560_v0  ;;  %v16610_v0 = vld [vmem:[%s21634_s5 + $0x500] sm:$0xff]  }
 0x8ac   : > { %15620 = vmatprep.subr.bf16.mxu1 %v21707_v53 }
 0x8af   : > { %15621 = vmatpush3.bf16.msra.mxu1 %v16561_v20  ;;  %v10519_v20 = vpack.c.bf16 %v10518_v40, %v10518_v40 }
 0x8b0   : > { %15626 = vmatprep.subr.bf16.mxu1 %v21707_v53 }
 0x8b2   : > { %15623 = vmatmul.mubr.bf16.vlgmr.msra.gmra.mrb[104].mxu1 %v9871_v41  ;;  %v16613_v41 = vld [vmem:[%s21634_s5 + $0x518] sm:$0xff]  }
 0x8b3   : > { %15627 = vmatpush3.bf16.msra.mxu1 %v16562_v9  ;;  %15642 = vmatprep.mubr.msk.bf16.mxu1 %vm16790_vm0, %v21707_v53  ;;  %v16612_v9 = vld [vmem:[%s21634_s5 + $0x510] sm:$0xff]  }
 0x8b4   : > { %15628 = vmatprep.subr.bf16.mxu1 %v21707_v53 }
 0x8b7   : > { %15629 = vmatpush3.bf16.msra.mxu1 %v16563_v39  ;;  %v16614_v39 = vld [vmem:[%s21634_s5 + $0x520] sm:$0xff]  }
 0x8b8   : > { %15630 = vmatprep.subr.bf16.mxu1 %v21707_v53 }
 0x8bb   : > { %15631 = vmatpush3.bf16.msra.mxu1 %v16564_v4  ;;  %v16615_v4 = vld [vmem:[%s21634_s5 + $0x528] sm:$0xff]  }
 0x8bc   : > { %15632 = vmatprep.subr.bf16.mxu1 %v21707_v53 }
 0x8bf   : > { %15633 = vmatpush3.bf16.msra.mxu1 %v16565_v61  ;;  %v16616_v61 = vld [vmem:[%s21634_s5 + $0x530] sm:$0xff]  }
 0x8c0   : > { %15634 = vmatprep.subr.bf16.mxu1 %v21707_v53 }
 0x8c3   : > { %15635 = vmatpush3.bf16.msra.mxu1 %v16566_v35  ;;  %v16617_v35 = vld [vmem:[%s21634_s5 + $0x538] sm:$0xff]  }
 0x8c4   : > { %15636 = vmatprep.subr.bf16.mxu1 %v21707_v53 }
 0x8c7   : > { %15637 = vmatpush3.bf16.msra.mxu1 %v16567_v34  ;;  %v10626_v34 = vld [vmem:[#allocation9 + $0x20] sm:$0x1] }
 0x8c8   : > { %15638 = vmatprep.subr.bf16.mxu1 %v21707_v53 }
 0x8cb   : > { %15639 = vmatpush3.bf16.msra.mxu1 %v16568_v16  ;;  %v16618_v16 = vld [vmem:[%s21634_s5 + $0x540] sm:$0xff]  }
 0x8cc   : > { %15640 = vmatprep.subr.bf16.mxu1 %v21707_v53 }
 0x8cf   : > { %15641 = vmatpush3.bf16.msra.mxu1 %v16569_v48  ;;  %v10627_v48 = vpack.c.bf16 %v10626_v34, %v10626_v34  ;;  %v16663_v34 = vld [vmem:[%s21638_s9 + $0x28] sm:$0xff]  }
 0x8d0   : > { %15646 = vmatprep.subr.bf16.mxu1 %v21707_v53 }
 0x8d2   : > { %15643 = vmatmul.mubr.bf16.vlgmr.msra.gmra.mrb[104].mxu1 %v9979_v27  ;;  %v16651_v27 = vld [vmem:[%s21636_s7 + $0x8] sm:$0xff]  }
 0x8d3   : > { %15647 = vmatpush3.bf16.msra.mxu1 %v16570_v36  ;;  %15662 = vmatprep.mubr.msk.bf16.mxu1 %vm16790_vm0, %v21707_v53  ;;  %v16619_v36 = vld [vmem:[%s21634_s5 + $0x548] sm:$0xff]  }
 0x8d4   : > { %15648 = vmatprep.subr.bf16.mxu1 %v21707_v53  ;;  %15849 = vmatpush3.bf16.msra.mxu0 %v16651_v27 }
 0x8d5   : > { %15850 = vmatprep.subr.bf16.mxu0 %v21707_v53 }
 0x8d7   : > { %15649 = vmatpush3.bf16.msra.mxu1 %v16571_v13  ;;  %v16620_v13 = vld [vmem:[%s21634_s5 + $0x550] sm:$0xff]  }
 0x8d8   : > { %15650 = vmatprep.subr.bf16.mxu1 %v21707_v53 }
 0x8db   : > { %15651 = vmatpush3.bf16.msra.mxu1 %v16572_v38  ;;  %v16652_v38 = vld [vmem:[%s21636_s7 + $0x10] sm:$0xff]  }
 0x8dc   : > { %15652 = vmatprep.subr.bf16.mxu1 %v21707_v53  ;;  %15851 = vmatpush3.bf16.msra.mxu0 %v16652_v38 }
 0x8dd   : > { %15852 = vmatprep.subr.bf16.mxu0 %v21707_v53 }
 0x8df   : > { %15653 = vmatpush3.bf16.msra.mxu1 %v16573_v3  ;;  %v16621_v3 = vld [vmem:[%s21634_s5 + $0x558] sm:$0xff]  }
 0x8e0   : > { %15654 = vmatprep.subr.bf16.mxu1 %v21707_v53 }
 0x8e3   : > { %15655 = vmatpush3.bf16.msra.mxu1 %v16574_v52  ;;  %v16653_v52 = vld [vmem:[%s21636_s7 + $0x18] sm:$0xff]  }
 0x8e4   : > { %15656 = vmatprep.subr.bf16.mxu1 %v21707_v53  ;;  %15853 = vmatpush3.bf16.msra.mxu0 %v16653_v52 }
 0x8e5   : > { %15854 = vmatprep.subr.bf16.mxu0 %v21707_v53 }
 0x8e7   : > { %15657 = vmatpush3.bf16.msra.mxu1 %v16575_v55  ;;  %v16622_v55 = vld [vmem:[%s21634_s5 + $0x560] sm:$0xff]  }
 0x8e8   : > { %15658 = vmatprep.subr.bf16.mxu1 %v21707_v53 }
 0x8eb   : > { %15659 = vmatpush3.bf16.msra.mxu1 %v16576_v47  ;;  %v16654_v47 = vld [vmem:[%s21636_s7 + $0x20] sm:$0xff]  }
 0x8ec   : > { %15660 = vmatprep.subr.bf16.mxu1 %v21707_v53  ;;  %15855 = vmatpush3.bf16.msra.mxu0 %v16654_v47  ;;  %v11291_v47 = vld [vmem:[%s21639_s10] sm:$0x1] }
 0x8ed   : > { %15856 = vmatprep.subr.bf16.mxu0 %v21707_v53 }
 0x8ef   : > { %15661 = vmatpush3.bf16.msra.mxu1 %v16577_v23  ;;  %v16623_v23 = vld [vmem:[%s21634_s5 + $0x568] sm:$0xff]  }
 0x8f0   : > { %15666 = vmatprep.subr.bf16.mxu1 %v21707_v53  ;;  %15857 = vmatpush3.bf16.msra.mxu0 %v16655_v63 }
 0x8f1   : > { %15858 = vmatprep.subr.bf16.mxu0 %v21707_v53 }
 0x8f2   : > { %15663 = vmatmul.mubr.bf16.vlgmr.msra.gmra.mrb[104].mxu1 %v10087_v62  ;;  %v16656_v62 = vld [vmem:[%s21636_s7 + $0x30] sm:$0xff]  }
 0x8f3   : > { %15667 = vmatpush3.bf16.msra.mxu1 %v16578_v56  ;;  %15682 = vmatprep.mubr.msk.bf16.mxu1 %vm16790_vm0, %v21707_v53  ;;  %v16624_v56 = vld [vmem:[%s21634_s5 + $0x570] sm:$0xff]  }
 0x8f4   : > { %15668 = vmatprep.subr.bf16.mxu1 %v21707_v53  ;;  %15859 = vmatpush3.bf16.msra.mxu0 %v16656_v62 }
 0x8f5   : > { %15860 = vmatprep.subr.bf16.mxu0 %v21707_v53 }
 0x8f7   : > { %15669 = vmatpush3.bf16.msra.mxu1 %v16579_v5  ;;  %v16625_v5 = vld [vmem:[%s21634_s5 + $0x578] sm:$0xff]  }
 0x8f8   : > { %15670 = vmatprep.subr.bf16.mxu1 %v21707_v53 }
 0x8fb   : > { %15671 = vmatpush3.bf16.msra.mxu1 %v16580_v46  ;;  %v16657_v46 = vld [vmem:[%s21636_s7 + $0x38] sm:$0xff]  }
 0x8fc   : > { %15672 = vmatprep.subr.bf16.mxu1 %v21707_v53  ;;  %15861 = vmatpush3.bf16.msra.mxu0 %v16657_v46 }
 0x8fd   : > { %15866 = vmatprep.subr.bf16.mxu0 %v21707_v53 }
 0x8ff   : > { %15673 = vmatpush3.bf16.msra.mxu1 %v16581_v31  ;;  %v10734_v31 = vld [vmem:[#allocation9 + $0x21] sm:$0x1] }
 0x900   : > { %15674 = vmatprep.subr.bf16.mxu1 %v21707_v53 }
 0x903   : > { %15675 = vmatpush3.bf16.msra.mxu1 %v16582_v19  ;;  %v16626_v19 = vld [vmem:[%s21634_s5 + $0x580] sm:$0xff]  }
 0x904   : > { %15676 = vmatprep.subr.bf16.mxu1 %v21707_v53 }
 0x907   : > { %15677 = vmatpush3.bf16.msra.mxu1 %v16583_v18  ;;  %v10735_v18 = vpack.c.bf16 %v10734_v31, %v10734_v31 }
 0x908   : > { %15678 = vmatprep.subr.bf16.mxu1 %v21707_v53 }
 0x90b   : > { %15679 = vmatpush3.bf16.msra.mxu1 %v16584_v44  ;;  %v16627_v44 = vld [vmem:[%s21634_s5 + $0x588] sm:$0xff]  }
 0x90c   : > { %15680 = vmatprep.subr.bf16.mxu1 %v21707_v53 }
 0x90f   : > { %15681 = vmatpush3.bf16.msra.mxu1 %v16585_v30  ;;  %v16628_v30 = vld [vmem:[%s21634_s5 + $0x590] sm:$0xff]  }
 0x910   : > { %15686 = vmatprep.subr.bf16.mxu1 %v21707_v53 }
 0x912   : > { %15683 = vmatmul.mubr.bf16.vlgmr.msra.gmra.mrb[104].mxu1 %v10195_v43  ;;  %v16631_v43 = vld [vmem:[%s21634_s5 + $0x5a8] sm:$0xff]  }
 0x913   : > { %15687 = vmatpush3.bf16.msra.mxu1 %v16586_v15  ;;  %15702 = vmatprep.mubr.msk.bf16.mxu1 %vm16790_vm0, %v21707_v53  ;;  %v16630_v15 = vld [vmem:[%s21634_s5 + $0x5a0] sm:$0xff]  }
 0x914   : > { %15688 = vmatprep.subr.bf16.mxu1 %v21707_v53 }
 0x917   : > { %15689 = vmatpush3.bf16.msra.mxu1 %v16587_v59  ;;  %v16632_v59 = vld [vmem:[%s21634_s5 + $0x5b0] sm:$0xff]  }
 0x918   : > { %15690 = vmatprep.subr.bf16.mxu1 %v21707_v53 }
 0x91b   : > { %15691 = vmatpush3.bf16.msra.mxu1 %v16588_v1  ;;  %v16633_v1 = vld [vmem:[%s21634_s5 + $0x5b8] sm:$0xff]  }
 0x91c   : > { %15692 = vmatprep.subr.bf16.mxu1 %v21707_v53 }
 0x91f   : > { %15693 = vmatpush3.bf16.msra.mxu1 %v16589_v11  ;;  %v10842_v11 = vld [vmem:[#allocation9 + $0x22] sm:$0x1] }
 0x920   : > { %15694 = vmatprep.subr.bf16.mxu1 %v21707_v53 }
 0x923   : > { %15695 = vmatpush3.bf16.msra.mxu1 %v16590_v60  ;;  %v16634_v60 = vld [vmem:[%s21634_s5 + $0x5c0] sm:$0xff]  }
 0x924   : > { %15696 = vmatprep.subr.bf16.mxu1 %v21707_v53 }
 0x927   : > { %15697 = vmatpush3.bf16.msra.mxu1 %v16591_v42  ;;  %v10843_v42 = vpack.c.bf16 %v10842_v11, %v10842_v11 }
 0x928   : > { %15698 = vmatprep.subr.bf16.mxu1 %v21707_v53 }
 0x92b   : > { %15699 = vmatpush3.bf16.msra.mxu1 %v16592_v51  ;;  %v16635_v51 = vld [vmem:[%s21634_s5 + $0x5c8] sm:$0xff]  }
 0x92c   : > { %15700 = vmatprep.subr.bf16.mxu1 %v21707_v53 }
 0x92f   : > { %15701 = vmatpush3.bf16.msra.mxu1 %v16593_v10  ;;  %v16636_v10 = vld [vmem:[%s21634_s5 + $0x5d0] sm:$0xff]  }
 0x930   : > { %15706 = vmatprep.subr.bf16.mxu1 %v21707_v53 }
 0x932   : > { %15703 = vmatmul.mubr.bf16.vlgmr.msra.gmra.mrb[104].mxu1 %v10303_v29  ;;  %v16639_v29 = vld [vmem:[%s21634_s5 + $0x5e8] sm:$0xff]  }
 0x933   : > { %15707 = vmatpush3.bf16.msra.mxu1 %v16594_v2  ;;  %15722 = vmatprep.mubr.msk.bf16.mxu1 %vm16790_vm0, %v21707_v53  ;;  %v16638_v2 = vld [vmem:[%s21634_s5 + $0x5e0] sm:$0xff]  }
 0x934   : > { %15708 = vmatprep.subr.bf16.mxu1 %v21707_v53 }
 0x937   : > { %15709 = vmatpush3.bf16.msra.mxu1 %v16595_v25  ;;  %v16640_v25 = vld [vmem:[%s21634_s5 + $0x5f0] sm:$0xff]  }
 0x938   : > { %15710 = vmatprep.subr.bf16.mxu1 %v21707_v53 }
 0x93b   : > { %15711 = vmatpush3.bf16.msra.mxu1 %v16596_v37  ;;  %v16641_v37 = vld [vmem:[%s21634_s5 + $0x5f8] sm:$0xff]  }
 0x93c   : > { %15712 = vmatprep.subr.bf16.mxu1 %v21707_v53 }
 0x93f   : > { %15713 = vmatpush3.bf16.msra.mxu1 %v16597_v49  ;;  %v10950_v49 = vld [vmem:[#allocation9 + $0x23] sm:$0x1] }
 0x940   : > { %15714 = vmatprep.subr.bf16.mxu1 %v21707_v53 }
 0x943   : > { %15715 = vmatpush3.bf16.msra.mxu1 %v16598_v22  ;;  %v16642_v22 = vld [vmem:[%s21634_s5 + $0x600] sm:$0xff]  }
 0x944   : > { %15716 = vmatprep.subr.bf16.mxu1 %v21707_v53 }
 0x947   : > { %15717 = vmatpush3.bf16.msra.mxu1 %v16599_v7  ;;  %v10951_v7 = vpack.c.bf16 %v10950_v49, %v10950_v49 }
 0x948   : > { %15718 = vmatprep.subr.bf16.mxu1 %v21707_v53 }
 0x94b   : > { %15719 = vmatpush3.bf16.msra.mxu1 %v16600_v12  ;;  %v16643_v12 = vld [vmem:[%s21634_s5 + $0x608] sm:$0xff]  }
 0x94c   : > { %15720 = vmatprep.subr.bf16.mxu1 %v21707_v53 }
 0x94f   : > { %15721 = vmatpush3.bf16.msra.mxu1 %v16601_v54  ;;  %v16644_v54 = vld [vmem:[%s21634_s5 + $0x610] sm:$0xff]  }
 0x950   : > { %15726 = vmatprep.subr.bf16.mxu1 %v21707_v53 }
 0x952   : > { %15723 = vmatmul.mubr.bf16.vlgmr.msra.gmra.mrb[104].mxu1 %v10411_v8  ;;  %v16647_v8 = vld [vmem:[%s21634_s5 + $0x628] sm:$0xff]  }
 0x953   : > { %15727 = vmatpush3.bf16.msra.mxu1 %v16602_v57  ;;  %15742 = vmatprep.mubr.msk.bf16.mxu1 %vm16790_vm0, %v21707_v53  ;;  %v16646_v57 = vld [vmem:[%s21634_s5 + $0x620] sm:$0xff]  }
 0x954   : > { %15728 = vmatprep.subr.bf16.mxu1 %v21707_v53 }
 0x957   : > { %15729 = vmatpush3.bf16.msra.mxu1 %v16603_v58  ;;  %v16648_v58 = vld [vmem:[%s21634_s5 + $0x630] sm:$0xff]  }
 0x958   : > { %15730 = vmatprep.subr.bf16.mxu1 %v21707_v53 }
 0x95b   : > { %15731 = vmatpush3.bf16.msra.mxu1 %v16604_v32  ;;  %v16649_v32 = vld [vmem:[%s21634_s5 + $0x638] sm:$0xff]  }
 0x95c   : > { %15732 = vmatprep.subr.bf16.mxu1 %v21707_v53 }
 0x95f   : > { %15733 = vmatpush3.bf16.msra.mxu1 %v16605_v26  ;;  %v11058_v26 = vld [vmem:[#allocation9 + $0x24] sm:$0x1] }
 0x960   : > { %15734 = vmatprep.subr.bf16.mxu1 %v21707_v53 }
 0x963   : > { %15735 = vmatpush3.bf16.msra.mxu1 %v16606_v45  ;;  %v11059_v45 = vpack.c.bf16 %v11058_v26, %v11058_v26 }
 0x964   : > { %15736 = vmatprep.subr.bf16.mxu1 %v21707_v53 }
 0x967   : > { %15737 = vmatpush3.bf16.msra.mxu1 %v16607_v28  ;;  %v8466_v28 = vld [vmem:[%s21635_s6] sm:$0x1] }
 0x968   : > { %15738 = vmatprep.subr.bf16.mxu1 %v21707_v53 }
 0x96b   : > { %15739 = vmatpush3.bf16.msra.mxu1 %v16608_v33 }
 0x96c   : > { %15740 = vmatprep.subr.bf16.mxu1 %v21707_v53 }
 0x96f   : > { %15741 = vmatpush3.bf16.msra.mxu1 %v16609_v17 }
 0x970   : > { %15746 = vmatprep.subr.bf16.mxu1 %v21707_v53 }
 0x972   : > { %15743 = vmatmul.mubr.bf16.vlgmr.msra.gmra.mrb[104].mxu1 %v10519_v20 }
 0x973   : > { %15747 = vmatpush3.bf16.msra.mxu1 %v16610_v0  ;;  %15762 = vmatprep.mubr.msk.bf16.mxu1 %vm16790_vm0, %v21707_v53 }
 0x974   : > { %15748 = vmatprep.subr.bf16.mxu1 %v21707_v53 }
 0x977   : > { %15749 = vmatpush3.bf16.msra.mxu1 %v16611_v24 }
 0x978   : > { %15750 = vmatprep.subr.bf16.mxu1 %v21707_v53 }
 0x97b   : > { %15751 = vmatpush3.bf16.msra.mxu1 %v16612_v9  ;;  %v16658_v9 = vld [vmem:[%s21638_s9] sm:$0xff]  }
 0x97c   : > { %15752 = vmatprep.subr.bf16.mxu1 %v21707_v53 }
 0x97f   : > { %15753 = vmatpush3.bf16.msra.mxu1 %v16613_v41 }
 0x980   : > { %15754 = vmatprep.subr.bf16.mxu1 %v21707_v53 }
 0x983   : > { %15755 = vmatpush3.bf16.msra.mxu1 %v16614_v39  ;;  %v16659_v39 = vld [vmem:[%s21638_s9 + $0x8] sm:$0xff]  }
 0x984   : > { %15756 = vmatprep.subr.bf16.mxu1 %v21707_v53 }
 0x987   : > { %15757 = vmatpush3.bf16.msra.mxu1 %v16615_v4  ;;  %v16660_v4 = vld [vmem:[%s21638_s9 + $0x10] sm:$0xff]  }
 0x988   : > { %15758 = vmatprep.subr.bf16.mxu1 %v21707_v53 }
 0x98b   : > { %15759 = vmatpush3.bf16.msra.mxu1 %v16616_v61  ;;  %v16661_v61 = vld [vmem:[%s21638_s9 + $0x18] sm:$0xff]  }
 0x98c   : > { %15760 = vmatprep.subr.bf16.mxu1 %v21707_v53 }
 0x98f   : > { %15761 = vmatpush3.bf16.msra.mxu1 %v16617_v35  ;;  %v16662_v35 = vld [vmem:[%s21638_s9 + $0x20] sm:$0xff]  }
 0x990   : > { %15766 = vmatprep.subr.bf16.mxu1 %v21707_v53 }
 0x992   : > { %15763 = vmatmul.mubr.bf16.vlgmr.msra.gmra.mrb[104].mxu1 %v10627_v48  ;;  %v16665_v48 = vld [vmem:[%s21638_s9 + $0x38] sm:$0xff]  }
 0x993   : > { %15767 = vmatpush3.bf16.msra.mxu1 %v16618_v16  ;;  %15782 = vmatprep.mubr.msk.bf16.mxu1 %vm16790_vm0, %v21707_v53  ;;  %v16664_v16 = vld [vmem:[%s21638_s9 + $0x30] sm:$0xff]  }
 0x994   : > { %15768 = vmatprep.subr.bf16.mxu1 %v21707_v53 }
 0x997   : > { %15769 = vmatpush3.bf16.msra.mxu1 %v16619_v36 }
 0x998   : > { %15770 = vmatprep.subr.bf16.mxu1 %v21707_v53 }
 0x99b   : > { %15771 = vmatpush3.bf16.msra.mxu1 %v16620_v13 }
 0x99c   : > { %15772 = vmatprep.subr.bf16.mxu1 %v21707_v53 }
 0x99f   : > { %15773 = vmatpush3.bf16.msra.mxu1 %v16621_v3 }
 0x9a0   : > { %15774 = vmatprep.subr.bf16.mxu1 %v21707_v53 }
 0x9a3   : > { %15775 = vmatpush3.bf16.msra.mxu1 %v16622_v55 }
 0x9a4   : > { %15776 = vmatprep.subr.bf16.mxu1 %v21707_v53 }
 0x9a7   : > { %15777 = vmatpush3.bf16.msra.mxu1 %v16623_v23 }
 0x9a8   : > { %15778 = vmatprep.subr.bf16.mxu1 %v21707_v53 }
 0x9ab   : > { %15779 = vmatpush3.bf16.msra.mxu1 %v16624_v56 }
 0x9ac   : > { %15780 = vmatprep.subr.bf16.mxu1 %v21707_v53 }
 0x9af   : > { %15781 = vmatpush3.bf16.msra.mxu1 %v16625_v5 }
 0x9b0   : > { %15786 = vmatprep.subr.bf16.mxu1 %v21707_v53 }
 0x9b2   : > { %15783 = vmatmul.mubr.bf16.vlgmr.msra.gmra.mrb[104].mxu1 %v10735_v18 }
 0x9b3   : > { %15787 = vmatpush3.bf16.msra.mxu1 %v16626_v19  ;;  %15802 = vmatprep.mubr.msk.bf16.mxu1 %vm16790_vm0, %v21707_v53 }
 0x9b4   : > { %15788 = vmatprep.subr.bf16.mxu1 %v21707_v53 }
 0x9b7   : > { %15789 = vmatpush3.bf16.msra.mxu1 %v16627_v44 }
 0x9b8   : > { %15790 = vmatprep.subr.bf16.mxu1 %v21707_v53 }
 0x9bb   : > { %15791 = vmatpush3.bf16.msra.mxu1 %v16628_v30 }
 0x9bc   : > { %15792 = vmatprep.subr.bf16.mxu1 %v21707_v53 }
 0x9bf   : > { %15793 = vmatpush3.bf16.msra.mxu1 %v16629_v50 }
 0x9c0   : > { %15794 = vmatprep.subr.bf16.mxu1 %v21707_v53 }
 0x9c3   : > { %15795 = vmatpush3.bf16.msra.mxu1 %v16630_v15 }
 0x9c4   : > { %15796 = vmatprep.subr.bf16.mxu1 %v21707_v53 }
 0x9c7   : > { %15797 = vmatpush3.bf16.msra.mxu1 %v16631_v43 }
 0x9c8   : > { %15798 = vmatprep.subr.bf16.mxu1 %v21707_v53 }
 0x9cb   : > { %15799 = vmatpush3.bf16.msra.mxu1 %v16632_v59 }
 0x9cc   : > { %15800 = vmatprep.subr.bf16.mxu1 %v21707_v53 }
 0x9cf   : > { %15801 = vmatpush3.bf16.msra.mxu1 %v16633_v1 }
 0x9d0   : > { %15806 = vmatprep.subr.bf16.mxu1 %v21707_v53 }
 0x9d2   : > { %15803 = vmatmul.mubr.bf16.vlgmr.msra.gmra.mrb[104].mxu1 %v10843_v42 }
 0x9d3   : > { %15807 = vmatpush3.bf16.msra.mxu1 %v16634_v60  ;;  %15822 = vmatprep.mubr.msk.bf16.mxu1 %vm16790_vm0, %v21707_v53 }
 0x9d4   : > { %15808 = vmatprep.subr.bf16.mxu1 %v21707_v53 }
 0x9d7   : > { %15809 = vmatpush3.bf16.msra.mxu1 %v16635_v51 }
 0x9d8   : > { %15810 = vmatprep.subr.bf16.mxu1 %v21707_v53 }
 0x9db   : > { %15811 = vmatpush3.bf16.msra.mxu1 %v16636_v10 }
 0x9dc   : > { %15812 = vmatprep.subr.bf16.mxu1 %v21707_v53 }
 0x9df   : > { %15813 = vmatpush3.bf16.msra.mxu1 %v16637_v21 }
 0x9e0   : > { %15814 = vmatprep.subr.bf16.mxu1 %v21707_v53 }
 0x9e3   : > { %15815 = vmatpush3.bf16.msra.mxu1 %v16638_v2 }
 0x9e4   : > { %15816 = vmatprep.subr.bf16.mxu1 %v21707_v53 }
 0x9e7   : > { %15817 = vmatpush3.bf16.msra.mxu1 %v16639_v29 }
 0x9e8   : > { %15818 = vmatprep.subr.bf16.mxu1 %v21707_v53 }
 0x9eb   : > { %15819 = vmatpush3.bf16.msra.mxu1 %v16640_v25 }
 0x9ec   : > { %15820 = vmatprep.subr.bf16.mxu1 %v21707_v53 }
 0x9ef   : > { %15821 = vmatpush3.bf16.msra.mxu1 %v16641_v37 }
 0x9f0   : > { %15826 = vmatprep.subr.bf16.mxu1 %v21707_v53 }
 0x9f2   : > { %15823 = vmatmul.mubr.bf16.vlgmr.msra.gmra.mrb[104].mxu1 %v10951_v7 }
 0x9f3   : > { %15827 = vmatpush3.bf16.msra.mxu1 %v16642_v22  ;;  %15842 = vmatprep.mubr.msk.bf16.mxu1 %vm16790_vm0, %v21707_v53 }
 0x9f4   : > { %15828 = vmatprep.subr.bf16.mxu1 %v21707_v53 }
 0x9f7   : > { %15829 = vmatpush3.bf16.msra.mxu1 %v16643_v12 }
 0x9f8   : > { %15830 = vmatprep.subr.bf16.mxu1 %v21707_v53 }
 0x9fb   : > { %15831 = vmatpush3.bf16.msra.mxu1 %v16644_v54 }
 0x9fc   : > { %15832 = vmatprep.subr.bf16.mxu1 %v21707_v53 }
 0x9ff   : > { %15833 = vmatpush3.bf16.msra.mxu1 %v16645_v14 }
 0xa00   : > { %15834 = vmatprep.subr.bf16.mxu1 %v21707_v53 }
 0xa03   : > { %15835 = vmatpush3.bf16.msra.mxu1 %v16646_v57 }
 0xa04   : > { %15836 = vmatprep.subr.bf16.mxu1 %v21707_v53 }
 0xa07   : > { %15837 = vmatpush3.bf16.msra.mxu1 %v16647_v8 }
 0xa08   : > { %15838 = vmatprep.subr.bf16.mxu1 %v21707_v53 }
 0xa0b   : > { %15839 = vmatpush3.bf16.msra.mxu1 %v16648_v58 }
 0xa0c   : > { %15840 = vmatprep.subr.bf16.mxu1 %v21707_v53 }
 0xa0f   : > { %15841 = vmatpush3.bf16.msra.mxu1 %v16649_v32 }
 0xa12   : > { %15843 = vmatmul.mubr.bf16.vlgmr.msra.gmra.mrb[104].mxu1 %v11059_v45 }
 0xae5   : > { %v11159_v33 = vpop.f32.mrb[104].mxu1 }
 0xae6   : > { %v15886_v17 = vadd.f32 %v11159_v33, %v8466_v28  ;;  %v15844_v40 = vpop.f32.mrb[105].mxu1 }
 0xae7   : > { %v11162_v0 = vpop.f32.mrb[106].mxu1 }
 0xae8   : > { %v11166_v20 = vmax.f32 %v15886_v17, 0.0  ;;  %v15845_v24 = vpop.f32.mrb[107].mxu1 }
 0xaea   : > { %v11167_v41 = vpack.c.bf16 %v11166_v20, %v11166_v20 }
 0xaec   : > { %15863 = vmatmul.mubr.bf16.vlgmr.msra.gmra.mrb[224].mxu0 %v11167_v41 }
 0xaed   : > { %15867 = vmatpush3.bf16.msra.mxu0 %v16658_v9  ;;  %15882 = vmatprep.mubr.msk.bf16.mxu0 %vm16790_vm0, %v21707_v53 }
 0xaee   : > { %15868 = vmatprep.subr.bf16.mxu0 %v21707_v53 }
 0xaf1   : > { %15869 = vmatpush3.bf16.msra.mxu0 %v16659_v39 }
 0xaf2   : > { %15870 = vmatprep.subr.bf16.mxu0 %v21707_v53 }
 0xaf5   : > { %15871 = vmatpush3.bf16.msra.mxu0 %v16660_v4 }
 0xaf6   : > { %15872 = vmatprep.subr.bf16.mxu0 %v21707_v53 }
 0xaf9   : > { %15873 = vmatpush3.bf16.msra.mxu0 %v16661_v61 }
 0xafa   : > { %15874 = vmatprep.subr.bf16.mxu0 %v21707_v53 }
 0xafd   : > { %15875 = vmatpush3.bf16.msra.mxu0 %v16662_v35 }
 0xafe   : > { %15876 = vmatprep.subr.bf16.mxu0 %v21707_v53 }
 0xb01   : > { %15877 = vmatpush3.bf16.msra.mxu0 %v16663_v34 }
 0xb02   : > { %15878 = vmatprep.subr.bf16.mxu0 %v21707_v53 }
 0xb05   : > { %15879 = vmatpush3.bf16.msra.mxu0 %v16664_v16 }
 0xb06   : > { %15880 = vmatprep.subr.bf16.mxu0 %v21707_v53 }
 0xb09   : > { %15881 = vmatpush3.bf16.msra.mxu0 %v16665_v48 }
 0xbbf   : > { %v11267_v36 = vpop.f32.mrb[224].mxu0 }
 0xbc0   : > { %v11268_v27 = vadd.f32 %v11267_v36, %v11184_v6  ;;  %v15864_v13 = vpop.f32.mrb[225].mxu0 }
 0xbc1   : > { %v11270_v38 = vpop.f32.mrb[226].mxu0 }
 0xbc2   : > { %v11273_v3 = vmax.f32 %v11268_v27, 0.0  ;;  %v15865_v52 = vpop.f32.mrb[227].mxu0 }
 0xbc4   : > { %v11274_v55 = vpack.c.bf16 %v11273_v3, %v11273_v3 }
 0xbc6   : > { %15883 = vmatmul.mubr.bf16.vlgmr.msra.gmra.mrb[228].mxu0 %v11274_v55 }
 0xc99   : > { %v11374_v53 = vpop.f32.mrb[228].mxu0 }
 0xc9a   : > { %v11375_v23 = vadd.f32 %v11374_v53, %v11291_v47  ;;  %v15884_v63 = vpop.f32.mrb[229].mxu0 }
 0xc9b   : > { %v11377_v56 = vpop.f32.mrb[230].mxu0 }
 0xc9c   : > { %11380 = vst [vmem:[%s378_s14] sm:$0x1] %v11375_v23  ;;  %v15885_v62 = vpop.f32.mrb[231].mxu0 }
 0xc9d   : > { %16738 = shalt.err (!%p16735_p3)
}
 0xc9e   : > { %s16739_s29 = scalar_lea.hbm %s21587_s25, 16  ;;  %s16743_s24 = scalar_lea.hbm %s21640_s11, 32 }
 0xc9f   : > { %p16740_p4 = scmp.ne.s32.totalorder %s21587_s25, %s16739_s29  ;;  %p16744_p9 = scmp.lt.u32.totalorder %s21587_s25, %s21640_s11 }
 0xca0   : > { %p16745_p10 = scmp.lt.u32.totalorder %s16743_s24, %s16739_s29  ;;  %p16747_p12 = scmp.lt.u32.totalorder %s16739_s29, %s21587_s25 }
 0xca1   : > { %p16741_p7 = pnand %p16740_p4, %p16890_p5 }
 0xca2   : > { %p16746_p11 = por %p16745_p10, %p16744_p9 }
 0xca3   : > { %p16742_p8 = pneg %p16741_p7 }
 0xca4   : > { %p16748_p13 = por %p16747_p12, %p16746_p11 }
 0xca6   : > { %p16749_p0 = pnand %p16748_p13, %p16742_p8 }
 0xca8   : > { %16752 = shalt.err (!%p16749_p0)
}
 0xca9   : > { %15984 = dma.vmem_to_hbm [thread:$0]  (%p16890_p5), %s21589_s16, 16, %s21587_s25, %s11382_s30  }
 0xcaa PF: > { %p15990_p1 = scmp.ge.s32.totalorder %s16787_s20, 2  ;;  %s11406_s21 = sand.u32 1, %s16775_s17  }
 0xcab   : > { %s11407_s22 = scalar_lea.sflag [#allocation11], %s11406_s21 }
 0xcac   : > { %p15987_p2 = pnand %p15990_p1, %p16894_p6 }
 0xcae   : > { %16770 = dma.done.wait (!%p15987_p2), %s11407_s22, 16  }
 0xcaf   : > { %16772 = vsyncadd (!%p15987_p2), %s11407_s22, 4294967280  ;;  %p21_p3 = scmp.ge.s32.totalorder %s16877_s23, 4   ;;  %s22021_s17 = smov %s16779_s18 }
 0xcb0   : > { %s22022_s18 = smov %s16783_s19  ;;  %s22023_s19 = smov %s16888_s26 }
 0xcb1   : > { %s22024_s20 = smov %s16877_s23  ;;  %23 = sbr.rel (!%p21_p3) target bundleno = 3 (0x3), region = 261 }
 0xcb8   :  { %11411 = vsyncpa [#allocation11], 1 }
 0xcb9   :  { %11413 = vsyncpa [#allocation11 + $0x1], 1 }

</bundles_post_ra>
